<compile_context>
chip_gen: v7x
topology: tpu7x:2x2x1
jax: 0.10.0
libtpu: 0.0.40
codegen_flags: <defaults>
</compile_context>

<pallas_src>
import functools
import math

import jax
import jax.numpy as jnp
from jax import lax
from jax.experimental import pallas as pl
from jax.experimental.pallas import tpu as pltpu

EPS = 1e-5
SLOPE = 0.1   # LeakyReLU negative_slope
PAD = 1       # zero-pad ring: enough for the 3x3/pad-1 taps AND conv_extra pad


def _leaky(z):
    # max(z, 0.1*z) == LeakyReLU(0.1) with one mul + one max (no compare/select)
    return jnp.maximum(z, SLOPE * z)


# ---------------------------------------------------------------------------
# Kernel 1: both residual children, fully fused (one image per grid step)
# ---------------------------------------------------------------------------
def _children_kernel(xp_ref, mask_ref,
                     w1a_ref, b1a_ref, w2a_ref, b2a_ref,
                     w1b_ref, b1b_ref, w2b_ref, b2b_ref,
                     out_ref, y1g_ref, *, wp, guard):
    mp = out_ref.shape[1]                     # padded rows per image (hp*wp)
    cmid = w1a_ref.shape[1]                   # 64
    mask = mask_ref[...]                      # (mp, 1) f32; 1 = real pixel, 0 = pad ring

    # Zero ONLY the halo rows of the guarded y1 buffer.  The shifted stores
    # below never touch rows [0, guard+1) or [mp+guard-1, mp+2*guard), and the
    # 3x3 taps read at most +-wp rows past the stored region (guard >= wp), so
    # these zeros implement the conv's zero padding.  Every other row is fully
    # rewritten by each conv_block call, so no full-buffer zero fill is needed.
    zero_halo = jnp.zeros((guard + 1, y1g_ref.shape[1]), y1g_ref.dtype)
    y1g_ref[pl.ds(0, guard + 1), :] = zero_halo
    y1g_ref[pl.ds(mp + guard - 1, guard + 1), :] = zero_halo

    def conv_block(x_bf16, w1_ref, b1_ref, w2_ref, b2_ref):
        # 1x1 conv (bf16 MXU, f32 acc) + folded BN bias + LeakyReLU.  The mask
        # zeroes the pad-ring rows so the 3x3 taps see conv-style zero padding.
        z1 = jnp.dot(x_bf16, w1_ref[...], preferred_element_type=jnp.float32)
        y1 = _leaky(z1 + b1_ref[...]) * mask                      # (mp, 64) f32
        # Store 3 row-shifted copies (shift = dw-1) at channel offsets
        # 0 / cmid / 2*cmid, so each dh tap of the 3x3 conv is one contiguous
        # (mp, 3*cmid) slice -> 3 matmuls of K=192 instead of 9 of K=64.
        for j in range(3):
            y1g_ref[pl.ds(guard - (j - 1), mp), pl.ds(j * cmid, cmid)] = y1
        # 3x3 / pad-1 conv as a value chain of 3 MXU pushes (no scratch RMW).
        def tap(dh):
            t = y1g_ref[pl.ds(guard + (dh - 1) * wp, mp), :].astype(jnp.bfloat16)
            return jnp.dot(t, w2_ref[dh], preferred_element_type=jnp.float32)
        y2 = tap(0) + tap(1) + tap(2) + b2_ref[...]
        return _leaky(y2)

    x_in = xp_ref[0]                                              # (mp, C) bf16
    # ---- child A ----
    y_a = conv_block(x_in, w1a_ref, b1a_ref, w2a_ref, b2a_ref)
    out_ref[0] = (x_in.astype(jnp.float32) + y_a).astype(out_ref.dtype)
    # ---- child B (reads child-A result straight out of the output VMEM tile) ----
    y_b = conv_block(out_ref[0], w1b_ref, b1b_ref, w2b_ref, b2b_ref)
    # Zero the pad ring so the downstream stride-2 conv can reuse the padded layout.
    out_ref[0] = jnp.where(mask > 0.0,
                           out_ref[0].astype(jnp.float32) + y_b,
                           0.0).astype(out_ref.dtype)


def fused_residual_children(xp, mask, wa, wb, *, wp):
    """Run both resblock2_child blocks.  xp: (N, hp*wp, C) bf16 padded layout."""
    n, mp, c = xp.shape
    cmid = wa[0].shape[1]
    guard = ((wp + 15) // 16) * 16            # >= wp, 16-row aligned

    args = (xp, mask) + tuple(wa) + tuple(wb)

    def bcast_spec(arr):                      # same block for every grid step
        nd = arr.ndim
        return pl.BlockSpec(arr.shape, lambda b, _nd=nd: (0,) * _nd)

    in_specs = [pl.BlockSpec((1, mp, c), lambda b: (b, 0, 0))]
    in_specs += [bcast_spec(a) for a in args[1:]]

    return pl.pallas_call(
        functools.partial(_children_kernel, wp=wp, guard=guard),
        out_shape=jax.ShapeDtypeStruct((n, mp, c), jnp.bfloat16),
        grid_spec=pltpu.PrefetchScalarGridSpec(
            num_scalar_prefetch=0,
            grid=(n,),                        # one image per step, independent
            in_specs=in_specs,
            out_specs=pl.BlockSpec((1, mp, c), lambda b: (b, 0, 0)),
            scratch_shapes=[
                pltpu.VMEM((mp + 2 * guard, 3 * cmid), jnp.float32),  # guarded y1 (3 dw copies)
            ],
        ),
        compiler_params=pltpu.CompilerParams(dimension_semantics=("parallel",)),
    )(*args)


# ---------------------------------------------------------------------------
# Kernel 2: generic tiled matmul + bias + LeakyReLU (used for conv_extra)
# ---------------------------------------------------------------------------
def _matmul_bias_leaky_kernel(a_ref, b_ref, bias_ref, o_ref, acc_ref):
    k = pl.program_id(2)

    @pl.when(k == 0)
    def _():
        acc_ref[...] = jnp.zeros_like(acc_ref)

    acc_ref[...] += jnp.dot(a_ref[...], b_ref[...],
                            preferred_element_type=jnp.float32)

    @pl.when(k == pl.num_programs(2) - 1)
    def _():
        o_ref[...] = _leaky(acc_ref[...] + bias_ref[...]).astype(o_ref.dtype)


def _pick_tile(dim, cap, align):
    """Largest tile <= cap that divides dim and is `align`-aligned; falls back
    to the full dim (which always satisfies the BlockSpec tiling rule)."""
    if dim <= cap:
        return dim
    t = (cap // align) * align
    while t >= align:
        if dim % t == 0:
            return t
        t -= align
    return dim


def fused_matmul_bias_leaky(a, b, bias, *, tm=512, tn=256, tk=2304):
    """out = leaky(a @ b + bias); a/b streamed as bf16, f32 accumulation."""
    m, k = a.shape
    k2, n = b.shape
    assert k == k2
    tm = _pick_tile(m, tm, 16)                # bf16 LHS sublane pack = 16
    tn = _pick_tile(n, tn, 128)               # lane-dense output (256-wide MXU)
    tk = _pick_tile(k, tk, 128)
    grid = (m // tm, n // tn, k // tk)
    bias2d = bias.reshape(1, n).astype(jnp.float32)

    return pl.pallas_call(
        _matmul_bias_leaky_kernel,
        out_shape=jax.ShapeDtypeStruct((m, n), jnp.float32),
        grid_spec=pltpu.PrefetchScalarGridSpec(
            num_scalar_prefetch=0,
            grid=grid,
            in_specs=[
                pl.BlockSpec((tm, tk), lambda i, j, kk: (i, kk)),
                pl.BlockSpec((tk, tn), lambda i, j, kk: (kk, j)),
                pl.BlockSpec((1, tn), lambda i, j, kk: (0, j)),
            ],
            out_specs=pl.BlockSpec((tm, tn), lambda i, j, kk: (i, j)),
            scratch_shapes=[pltpu.VMEM((tm, tn), jnp.float32)],
        ),
        compiler_params=pltpu.CompilerParams(
            dimension_semantics=("parallel", "parallel", "arbitrary")),
    )(a.astype(jnp.bfloat16), b.astype(jnp.bfloat16), bias2d)


# ---------------------------------------------------------------------------
# Parameters (deterministic init mirroring the module's __init__ shapes)
# ---------------------------------------------------------------------------
def init_params(key):
    keys = iter(jax.random.split(key, 40))

    def nrm(shape, scale):
        return scale * jax.random.normal(next(keys), shape, jnp.float32)

    p = {}
    for c in ("a", "b"):                                   # two resblock2_child blocks
        p[f"conv1_w_{c}"] = nrm((64, 128, 1, 1), 1.0 / math.sqrt(128))
        p[f"conv1_b_{c}"] = nrm((64,), 0.1)
        p[f"g1_{c}"] = 1.0 + nrm((64,), 0.1)
        p[f"be1_{c}"] = nrm((64,), 0.1)
        p[f"m1_{c}"] = nrm((64,), 0.1)
        p[f"v1_{c}"] = 1.0 + jnp.abs(nrm((64,), 0.1))
        p[f"conv2_w_{c}"] = nrm((128, 64, 3, 3), 1.0 / math.sqrt(64 * 9))
        p[f"conv2_b_{c}"] = nrm((128,), 0.1)
        p[f"g2_{c}"] = 1.0 + nrm((128,), 0.1)
        p[f"be2_{c}"] = nrm((128,), 0.1)
        p[f"m2_{c}"] = nrm((128,), 0.1)
        p[f"v2_{c}"] = 1.0 + jnp.abs(nrm((128,), 0.1))
    p["convE_w"] = nrm((256, 128, 3, 3), 1.0 / math.sqrt(128 * 9))
    p["convE_b"] = nrm((256,), 0.1)
    p["gE"] = 1.0 + nrm((256,), 0.1)
    p["beE"] = nrm((256,), 0.1)
    p["mE"] = nrm((256,), 0.1)
    p["vE"] = 1.0 + jnp.abs(nrm((256,), 0.1))
    return p


# ---------------------------------------------------------------------------
# BN folding (eval mode): y = conv(x)*s + bias  with s folded into the weights
# ---------------------------------------------------------------------------
def _bn_fold(conv_b, gamma, beta, mean, var):
    s = gamma / jnp.sqrt(var + EPS)
    bias = (beta + s * (conv_b - mean)).reshape(1, -1).astype(jnp.float32)
    return s, bias


def _fold_child(p, c):
    s1, b1 = _bn_fold(p[f"conv1_b_{c}"], p[f"g1_{c}"], p[f"be1_{c}"],
                      p[f"m1_{c}"], p[f"v1_{c}"])
    w1 = jnp.transpose(p[f"conv1_w_{c}"][:, :, 0, 0], (1, 0)) * s1[None, :]   # (128, 64)
    s2, b2 = _bn_fold(p[f"conv2_b_{c}"], p[f"g2_{c}"], p[f"be2_{c}"],
                      p[f"m2_{c}"], p[f"v2_{c}"])
    # (kh, kw, cin, cout) -> (3, 3*64, 128): rows within a kh block are (kw, cin),
    # matching the y1g channel-block layout (block j = dw, inner = cin).
    w2 = jnp.transpose(p[f"conv2_w_{c}"], (2, 3, 1, 0)).reshape(3, 192, 128) * s2
    return (w1.astype(jnp.bfloat16), b1, w2.astype(jnp.bfloat16), b2)


# ---------------------------------------------------------------------------
# Forward pass (matches resblock2.forward)
# ---------------------------------------------------------------------------
def resblock2_forward(x_nchw, p):
    n, c, h, w = x_nchw.shape
    assert c == 128
    hp, wp = h + 2 * PAD, w + 2 * PAD
    mp = hp * wp

    x = jnp.transpose(x_nchw, (0, 2, 3, 1))                              # NHWC
    xp = jnp.pad(x, ((0, 0), (PAD, PAD), (PAD, PAD), (0, 0)))
    xp = xp.reshape(n, mp, c).astype(jnp.bfloat16)                       # bf16 streaming
    mask = jnp.pad(jnp.ones((h, w, 1), jnp.float32),
                   ((PAD, PAD), (PAD, PAD), (0, 0))).reshape(mp, 1)      # per-image mask

    # ---- both residual children in one fused kernel (batch-parallel grid) ----
    wa = _fold_child(p, "a")
    wb = _fold_child(p, "b")
    xo = fused_residual_children(xp, mask, wa, wb, wp=wp)                # (n, mp, 128) bf16, ring = 0

    # ---- conv_extra: 3x3, stride 2, pad 1 (small bf16 im2col from padded layout) ----
    ho, wo = (h - 1) // 2 + 1, (w - 1) // 2 + 1
    xo4 = xo.reshape(n, hp, wp, c)
    cols = [xo4[:, dh: dh + 2 * ho: 2, dw: dw + 2 * wo: 2, :]
            for dh in range(3) for dw in range(3)]
    a_ex = jnp.concatenate(cols, axis=-1).reshape(n * ho * wo, 9 * c)
    sE, bE = _bn_fold(p["convE_b"], p["gE"], p["beE"], p["mE"], p["vE"])
    wE = jnp.transpose(p["convE_w"], (2, 3, 1, 0)).reshape(9 * c, 256) * sE
    y = fused_matmul_bias_leaky(a_ex, wE, bE)                            # (n*ho*wo, 256) f32
    return jnp.transpose(y.reshape(n, ho, wo, 256), (0, 3, 1, 2))


# ---------------------------------------------------------------------------
# Plain-JAX reference (same eval-mode BN semantics) for validation
# ---------------------------------------------------------------------------
def reference_forward(x_nchw, p):
    x = jnp.transpose(x_nchw, (0, 2, 3, 1))
    dn = ("NHWC", "HWIO", "NHWC")
    hi = lax.Precision.HIGHEST

    def bn_leaky(y, g, b, m, v, cb):
        y = y + cb
        y = (y - m) / jnp.sqrt(v + EPS) * g + b
        return jnp.where(y >= 0.0, y, SLOPE * y)

    def child(xc, c):
        w1 = jnp.transpose(p[f"conv1_w_{c}"], (2, 3, 1, 0))
        y = lax.conv_general_dilated(xc, w1, (1, 1), "VALID",
                                     dimension_numbers=dn, precision=hi)
        y = bn_leaky(y, p[f"g1_{c}"], p[f"be1_{c}"], p[f"m1_{c}"], p[f"v1_{c}"],
                     p[f"conv1_b_{c}"])
        w2 = jnp.transpose(p[f"conv2_w_{c}"], (2, 3, 1, 0))
        y = lax.conv_general_dilated(y, w2, (1, 1), ((1, 1), (1, 1)),
                                     dimension_numbers=dn, precision=hi)
        y = bn_leaky(y, p[f"g2_{c}"], p[f"be2_{c}"], p[f"m2_{c}"], p[f"v2_{c}"],
                     p[f"conv2_b_{c}"])
        return xc + y

    x = child(x, "a")
    x = child(x, "b")
    wE = jnp.transpose(p["convE_w"], (2, 3, 1, 0))
    y = lax.conv_general_dilated(x, wE, (2, 2), ((1, 1), (1, 1)),
                                 dimension_numbers=dn, precision=hi)
    y = bn_leaky(y, p["gE"], p["beE"], p["mE"], p["vE"], p["convE_b"])
    return jnp.transpose(y, (0, 3, 1, 2))


if __name__ == "__main__":
    key = jax.random.PRNGKey(0)
    kp, kx = jax.random.split(key)
    params = init_params(kp)
    # module fixes channels at 128 in / 256 out; small spatial size for the test
    x = jax.random.normal(kx, (2, 128, 16, 16), jnp.float32)

    out = jax.jit(resblock2_forward)(x, params)
    out = jax.block_until_ready(out)

    ref = reference_forward(x, params)
    assert out.shape == (2, 256, 8, 8) and out.dtype == jnp.float32
    err = float(jnp.max(jnp.abs(out - ref)))
    scale = float(jnp.max(jnp.abs(ref)))
    assert err <= 3e-2 * scale + 1e-3, f"max abs err {err} vs ref scale {scale}"
    print("KERNEL_OK")
</pallas_src>

<mosaic_0001>
module attributes {stable_mosaic.version = 11 : i64} {
  func.func @_children_kernel(%arg0: i32, %arg1: memref<1x324x128xbf16, #tpu.memory_space<vmem>>, %arg2: memref<324x1xf32, #tpu.memory_space<vmem>>, %arg3: memref<128x64xbf16, #tpu.memory_space<vmem>>, %arg4: memref<1x64xf32, #tpu.memory_space<vmem>>, %arg5: memref<3x192x128xbf16, #tpu.memory_space<vmem>>, %arg6: memref<1x128xf32, #tpu.memory_space<vmem>>, %arg7: memref<128x64xbf16, #tpu.memory_space<vmem>>, %arg8: memref<1x64xf32, #tpu.memory_space<vmem>>, %arg9: memref<3x192x128xbf16, #tpu.memory_space<vmem>>, %arg10: memref<1x128xf32, #tpu.memory_space<vmem>>, %arg11: memref<1x324x128xbf16, #tpu.memory_space<vmem>>, %arg12: memref<388x192xf32, #tpu.memory_space<vmem>>) attributes {dimension_semantics = [#tpu.dimension_semantics<parallel>], iteration_bounds = array<i64: 2>, scalar_prefetch = 0 : i64, scratch_operands = 1 : i64, tpu.core_type = #tpu.core_type<tc>, window_params = [{transform_indices = @transform_0, window_bounds = array<i64: 1, 324, 128>}, {pipeline_mode = #tpu.pipeline_mode<synchronous>, transform_indices = @transform_1, window_bounds = array<i64: 324, 1>}, {pipeline_mode = #tpu.pipeline_mode<synchronous>, transform_indices = @transform_2, window_bounds = array<i64: 128, 64>}, {pipeline_mode = #tpu.pipeline_mode<synchronous>, transform_indices = @transform_3, window_bounds = array<i64: 1, 64>}, {pipeline_mode = #tpu.pipeline_mode<synchronous>, transform_indices = @transform_4, window_bounds = array<i64: 3, 192, 128>}, {pipeline_mode = #tpu.pipeline_mode<synchronous>, transform_indices = @transform_5, window_bounds = array<i64: 1, 128>}, {pipeline_mode = #tpu.pipeline_mode<synchronous>, transform_indices = @transform_6, window_bounds = array<i64: 128, 64>}, {pipeline_mode = #tpu.pipeline_mode<synchronous>, transform_indices = @transform_7, window_bounds = array<i64: 1, 64>}, {pipeline_mode = #tpu.pipeline_mode<synchronous>, transform_indices = @transform_8, window_bounds = array<i64: 3, 192, 128>}, {pipeline_mode = #tpu.pipeline_mode<synchronous>, transform_indices = @transform_9, window_bounds = array<i64: 1, 128>}, {transform_indices = @transform_10, window_bounds = array<i64: 1, 324, 128>}]} {
    %c0 = arith.constant 0 : index
    %c0_0 = arith.constant 0 : index
    %0 = vector.load %arg2[%c0, %c0_0] : memref<324x1xf32, #tpu.memory_space<vmem>>, vector<324x1xf32>
    %cst = arith.constant 0.000000e+00 : f32
    %1 = vector.broadcast %cst : f32 to vector<33x192xf32>
    %c0_1 = arith.constant 0 : index
    %c0_2 = arith.constant 0 : index
    %2 = vector.load %arg12[%c0_1, %c0_2] : memref<388x192xf32, #tpu.memory_space<vmem>>, vector<33x192xf32>
    tpu.vector_store %arg12[%c0_1, %c0_2], %1 {strides = array<i32>} : memref<388x192xf32, #tpu.memory_space<vmem>>, vector<33x192xf32>,
    %c355 = arith.constant 355 : index
    %c0_3 = arith.constant 0 : index
    %3 = vector.load %arg12[%c355, %c0_3] : memref<388x192xf32, #tpu.memory_space<vmem>>, vector<33x192xf32>
    tpu.vector_store %arg12[%c355, %c0_3], %1 {strides = array<i32>} : memref<388x192xf32, #tpu.memory_space<vmem>>, vector<33x192xf32>,
    %c0_4 = arith.constant 0 : index
    %c0_5 = arith.constant 0 : index
    %c0_6 = arith.constant 0 : index
    %4 = vector.load %arg1[%c0_4, %c0_5, %c0_6] : memref<1x324x128xbf16, #tpu.memory_space<vmem>>, vector<1x324x128xbf16>
    %5 = vector.shape_cast %4 : vector<1x324x128xbf16> to vector<324x128xbf16>
    %c0_7 = arith.constant 0 : index
    %c0_8 = arith.constant 0 : index
    %6 = vector.load %arg3[%c0_7, %c0_8] : memref<128x64xbf16, #tpu.memory_space<vmem>>, vector<128x64xbf16>
    %cst_9 = arith.constant dense<0.000000e+00> : vector<324x64xf32>
    %7 = tpu.matmul %5, %6, %cst_9 {dimension_numbers = #tpu.dot_dimension_numbers<[1], [0], [0], [1], [0, 0, 1, 1], [], []>} : vector<324x128xbf16>, vector<128x64xbf16>, vector<324x64xf32> -> vector<324x64xf32>
    %c0_10 = arith.constant 0 : index
    %c0_11 = arith.constant 0 : index
    %8 = vector.load %arg4[%c0_10, %c0_11] : memref<1x64xf32, #tpu.memory_space<vmem>>, vector<1x64xf32>
    %9 = vector.broadcast %8 : vector<1x64xf32> to vector<324x64xf32>
    %10 = arith.addf %7, %9 : vector<324x64xf32>
    %cst_12 = arith.constant 1.000000e-01 : f32
    %11 = vector.broadcast %cst_12 : f32 to vector<324x64xf32>
    %12 = arith.mulf %11, %10 : vector<324x64xf32>
    %13 = arith.maximumf %10, %12 : vector<324x64xf32>
    %14 = vector.broadcast %0 : vector<324x1xf32> to vector<324x64xf32>
    %15 = arith.mulf %13, %14 : vector<324x64xf32>
    %c33 = arith.constant 33 : index
    %c0_13 = arith.constant 0 : index
    %16 = vector.load %arg12[%c33, %c0_13] : memref<388x192xf32, #tpu.memory_space<vmem>>, vector<324x64xf32>
    tpu.vector_store %arg12[%c33, %c0_13], %15 {strides = array<i32>} : memref<388x192xf32, #tpu.memory_space<vmem>>, vector<324x64xf32>,
    %c32 = arith.constant 32 : index
    %c64 = arith.constant 64 : index
    %17 = vector.load %arg12[%c32, %c64] : memref<388x192xf32, #tpu.memory_space<vmem>>, vector<324x64xf32>
    tpu.vector_store %arg12[%c32, %c64], %15 {strides = array<i32>} : memref<388x192xf32, #tpu.memory_space<vmem>>, vector<324x64xf32>,
    %c31 = arith.constant 31 : index
    %c128 = arith.constant 128 : index
    %18 = vector.load %arg12[%c31, %c128] : memref<388x192xf32, #tpu.memory_space<vmem>>, vector<324x64xf32>
    tpu.vector_store %arg12[%c31, %c128], %15 {strides = array<i32>} : memref<388x192xf32, #tpu.memory_space<vmem>>, vector<324x64xf32>,
    %c14 = arith.constant 14 : index
    %c0_14 = arith.constant 0 : index
    %19 = vector.load %arg12[%c14, %c0_14] : memref<388x192xf32, #tpu.memory_space<vmem>>, vector<324x192xf32>
    %20 = arith.truncf %19 : vector<324x192xf32> to vector<324x192xbf16>
    %c0_15 = arith.constant 0 : index
    %c0_16 = arith.constant 0 : index
    %c0_17 = arith.constant 0 : index
    %21 = vector.load %arg5[%c0_15, %c0_16, %c0_17] : memref<3x192x128xbf16, #tpu.memory_space<vmem>>, vector<1x192x128xbf16>
    %22 = vector.shape_cast %21 : vector<1x192x128xbf16> to vector<192x128xbf16>
    %cst_18 = arith.constant dense<0.000000e+00> : vector<324x128xf32>
    %23 = tpu.matmul %20, %22, %cst_18 {dimension_numbers = #tpu.dot_dimension_numbers<[1], [0], [0], [1], [0, 0, 1, 1], [], []>} : vector<324x192xbf16>, vector<192x128xbf16>, vector<324x128xf32> -> vector<324x128xf32>
    %c32_19 = arith.constant 32 : index
    %c0_20 = arith.constant 0 : index
    %24 = vector.load %arg12[%c32_19, %c0_20] : memref<388x192xf32, #tpu.memory_space<vmem>>, vector<324x192xf32>
    %25 = arith.truncf %24 : vector<324x192xf32> to vector<324x192xbf16>
    %c1 = arith.constant 1 : index
    %c0_21 = arith.constant 0 : index
    %c0_22 = arith.constant 0 : index
    %26 = vector.load %arg5[%c1, %c0_21, %c0_22] : memref<3x192x128xbf16, #tpu.memory_space<vmem>>, vector<1x192x128xbf16>
    %27 = vector.shape_cast %26 : vector<1x192x128xbf16> to vector<192x128xbf16>
    %cst_23 = arith.constant dense<0.000000e+00> : vector<324x128xf32>
    %28 = tpu.matmul %25, %27, %cst_23 {dimension_numbers = #tpu.dot_dimension_numbers<[1], [0], [0], [1], [0, 0, 1, 1], [], []>} : vector<324x192xbf16>, vector<192x128xbf16>, vector<324x128xf32> -> vector<324x128xf32>
    %29 = arith.addf %23, %28 : vector<324x128xf32>
    %c50 = arith.constant 50 : index
    %c0_24 = arith.constant 0 : index
    %30 = vector.load %arg12[%c50, %c0_24] : memref<388x192xf32, #tpu.memory_space<vmem>>, vector<324x192xf32>
    %31 = arith.truncf %30 : vector<324x192xf32> to vector<324x192xbf16>
    %c2 = arith.constant 2 : index
    %c0_25 = arith.constant 0 : index
    %c0_26 = arith.constant 0 : index
    %32 = vector.load %arg5[%c2, %c0_25, %c0_26] : memref<3x192x128xbf16, #tpu.memory_space<vmem>>, vector<1x192x128xbf16>
    %33 = vector.shape_cast %32 : vector<1x192x128xbf16> to vector<192x128xbf16>
    %cst_27 = arith.constant dense<0.000000e+00> : vector<324x128xf32>
    %34 = tpu.matmul %31, %33, %cst_27 {dimension_numbers = #tpu.dot_dimension_numbers<[1], [0], [0], [1], [0, 0, 1, 1], [], []>} : vector<324x192xbf16>, vector<192x128xbf16>, vector<324x128xf32> -> vector<324x128xf32>
    %35 = arith.addf %29, %34 : vector<324x128xf32>
    %c0_28 = arith.constant 0 : index
    %c0_29 = arith.constant 0 : index
    %36 = vector.load %arg6[%c0_28, %c0_29] : memref<1x128xf32, #tpu.memory_space<vmem>>, vector<1x128xf32>
    %37 = vector.broadcast %36 : vector<1x128xf32> to vector<324x128xf32>
    %38 = arith.addf %35, %37 : vector<324x128xf32>
    %cst_30 = arith.constant 1.000000e-01 : f32
    %39 = vector.broadcast %cst_30 : f32 to vector<324x128xf32>
    %40 = arith.mulf %39, %38 : vector<324x128xf32>
    %41 = arith.maximumf %38, %40 : vector<324x128xf32>
    %42 = arith.extf %5 : vector<324x128xbf16> to vector<324x128xf32>
    %43 = arith.addf %42, %41 : vector<324x128xf32>
    %44 = arith.truncf %43 : vector<324x128xf32> to vector<324x128xbf16>
    %c0_31 = arith.constant 0 : index
    %c0_32 = arith.constant 0 : index
    %c0_33 = arith.constant 0 : index
    %45 = vector.load %arg11[%c0_31, %c0_32, %c0_33] : memref<1x324x128xbf16, #tpu.memory_space<vmem>>, vector<1x324x128xbf16>
    %46 = vector.shape_cast %45 : vector<1x324x128xbf16> to vector<324x128xbf16>
    %47 = vector.shape_cast %44 : vector<324x128xbf16> to vector<1x324x128xbf16>
    tpu.vector_store %arg11[%c0_31, %c0_32, %c0_33], %47 {strides = array<i32>} : memref<1x324x128xbf16, #tpu.memory_space<vmem>>, vector<1x324x128xbf16>,
    %c0_34 = arith.constant 0 : index
    %c0_35 = arith.constant 0 : index
    %c0_36 = arith.constant 0 : index
    %48 = vector.load %arg11[%c0_34, %c0_35, %c0_36] : memref<1x324x128xbf16, #tpu.memory_space<vmem>>, vector<1x324x128xbf16>
    %49 = vector.shape_cast %48 : vector<1x324x128xbf16> to vector<324x128xbf16>
    %c0_37 = arith.constant 0 : index
    %c0_38 = arith.constant 0 : index
    %50 = vector.load %arg7[%c0_37, %c0_38] : memref<128x64xbf16, #tpu.memory_space<vmem>>, vector<128x64xbf16>
    %cst_39 = arith.constant dense<0.000000e+00> : vector<324x64xf32>
    %51 = tpu.matmul %49, %50, %cst_39 {dimension_numbers = #tpu.dot_dimension_numbers<[1], [0], [0], [1], [0, 0, 1, 1], [], []>} : vector<324x128xbf16>, vector<128x64xbf16>, vector<324x64xf32> -> vector<324x64xf32>
    %c0_40 = arith.constant 0 : index
    %c0_41 = arith.constant 0 : index
    %52 = vector.load %arg8[%c0_40, %c0_41] : memref<1x64xf32, #tpu.memory_space<vmem>>, vector<1x64xf32>
    %53 = vector.broadcast %52 : vector<1x64xf32> to vector<324x64xf32>
    %54 = arith.addf %51, %53 : vector<324x64xf32>
    %cst_42 = arith.constant 1.000000e-01 : f32
    %55 = vector.broadcast %cst_42 : f32 to vector<324x64xf32>
    %56 = arith.mulf %55, %54 : vector<324x64xf32>
    %57 = arith.maximumf %54, %56 : vector<324x64xf32>
    %58 = vector.broadcast %0 : vector<324x1xf32> to vector<324x64xf32>
    %59 = arith.mulf %57, %58 : vector<324x64xf32>
    %c33_43 = arith.constant 33 : index
    %c0_44 = arith.constant 0 : index
    %60 = vector.load %arg12[%c33_43, %c0_44] : memref<388x192xf32, #tpu.memory_space<vmem>>, vector<324x64xf32>
    tpu.vector_store %arg12[%c33_43, %c0_44], %59 {strides = array<i32>} : memref<388x192xf32, #tpu.memory_space<vmem>>, vector<324x64xf32>,
    %c32_45 = arith.constant 32 : index
    %c64_46 = arith.constant 64 : index
    %61 = vector.load %arg12[%c32_45, %c64_46] : memref<388x192xf32, #tpu.memory_space<vmem>>, vector<324x64xf32>
    tpu.vector_store %arg12[%c32_45, %c64_46], %59 {strides = array<i32>} : memref<388x192xf32, #tpu.memory_space<vmem>>, vector<324x64xf32>,
    %c31_47 = arith.constant 31 : index
    %c128_48 = arith.constant 128 : index
    %62 = vector.load %arg12[%c31_47, %c128_48] : memref<388x192xf32, #tpu.memory_space<vmem>>, vector<324x64xf32>
    tpu.vector_store %arg12[%c31_47, %c128_48], %59 {strides = array<i32>} : memref<388x192xf32, #tpu.memory_space<vmem>>, vector<324x64xf32>,
    %c14_49 = arith.constant 14 : index
    %c0_50 = arith.constant 0 : index
    %63 = vector.load %arg12[%c14_49, %c0_50] : memref<388x192xf32, #tpu.memory_space<vmem>>, vector<324x192xf32>
    %64 = arith.truncf %63 : vector<324x192xf32> to vector<324x192xbf16>
    %c0_51 = arith.constant 0 : index
    %c0_52 = arith.constant 0 : index
    %c0_53 = arith.constant 0 : index
    %65 = vector.load %arg9[%c0_51, %c0_52, %c0_53] : memref<3x192x128xbf16, #tpu.memory_space<vmem>>, vector<1x192x128xbf16>
    %66 = vector.shape_cast %65 : vector<1x192x128xbf16> to vector<192x128xbf16>
    %cst_54 = arith.constant dense<0.000000e+00> : vector<324x128xf32>
    %67 = tpu.matmul %64, %66, %cst_54 {dimension_numbers = #tpu.dot_dimension_numbers<[1], [0], [0], [1], [0, 0, 1, 1], [], []>} : vector<324x192xbf16>, vector<192x128xbf16>, vector<324x128xf32> -> vector<324x128xf32>
    %c32_55 = arith.constant 32 : index
    %c0_56 = arith.constant 0 : index
    %68 = vector.load %arg12[%c32_55, %c0_56] : memref<388x192xf32, #tpu.memory_space<vmem>>, vector<324x192xf32>
    %69 = arith.truncf %68 : vector<324x192xf32> to vector<324x192xbf16>
    %c1_57 = arith.constant 1 : index
    %c0_58 = arith.constant 0 : index
    %c0_59 = arith.constant 0 : index
    %70 = vector.load %arg9[%c1_57, %c0_58, %c0_59] : memref<3x192x128xbf16, #tpu.memory_space<vmem>>, vector<1x192x128xbf16>
    %71 = vector.shape_cast %70 : vector<1x192x128xbf16> to vector<192x128xbf16>
    %cst_60 = arith.constant dense<0.000000e+00> : vector<324x128xf32>
    %72 = tpu.matmul %69, %71, %cst_60 {dimension_numbers = #tpu.dot_dimension_numbers<[1], [0], [0], [1], [0, 0, 1, 1], [], []>} : vector<324x192xbf16>, vector<192x128xbf16>, vector<324x128xf32> -> vector<324x128xf32>
    %73 = arith.addf %67, %72 : vector<324x128xf32>
    %c50_61 = arith.constant 50 : index
    %c0_62 = arith.constant 0 : index
    %74 = vector.load %arg12[%c50_61, %c0_62] : memref<388x192xf32, #tpu.memory_space<vmem>>, vector<324x192xf32>
    %75 = arith.truncf %74 : vector<324x192xf32> to vector<324x192xbf16>
    %c2_63 = arith.constant 2 : index
    %c0_64 = arith.constant 0 : index
    %c0_65 = arith.constant 0 : index
    %76 = vector.load %arg9[%c2_63, %c0_64, %c0_65] : memref<3x192x128xbf16, #tpu.memory_space<vmem>>, vector<1x192x128xbf16>
    %77 = vector.shape_cast %76 : vector<1x192x128xbf16> to vector<192x128xbf16>
    %cst_66 = arith.constant dense<0.000000e+00> : vector<324x128xf32>
    %78 = tpu.matmul %75, %77, %cst_66 {dimension_numbers = #tpu.dot_dimension_numbers<[1], [0], [0], [1], [0, 0, 1, 1], [], []>} : vector<324x192xbf16>, vector<192x128xbf16>, vector<324x128xf32> -> vector<324x128xf32>
    %79 = arith.addf %73, %78 : vector<324x128xf32>
    %c0_67 = arith.constant 0 : index
    %c0_68 = arith.constant 0 : index
    %80 = vector.load %arg10[%c0_67, %c0_68] : memref<1x128xf32, #tpu.memory_space<vmem>>, vector<1x128xf32>
    %81 = vector.broadcast %80 : vector<1x128xf32> to vector<324x128xf32>
    %82 = arith.addf %79, %81 : vector<324x128xf32>
    %cst_69 = arith.constant 1.000000e-01 : f32
    %83 = vector.broadcast %cst_69 : f32 to vector<324x128xf32>
    %84 = arith.mulf %83, %82 : vector<324x128xf32>
    %85 = arith.maximumf %82, %84 : vector<324x128xf32>
    %cst_70 = arith.constant 0.000000e+00 : f32
    %86 = vector.broadcast %cst_70 : f32 to vector<324x1xf32>
    %87 = arith.cmpf ogt, %0, %86 : vector<324x1xf32>
    %c0_71 = arith.constant 0 : index
    %c0_72 = arith.constant 0 : index
    %c0_73 = arith.constant 0 : index
    %88 = vector.load %arg11[%c0_71, %c0_72, %c0_73] : memref<1x324x128xbf16, #tpu.memory_space<vmem>>, vector<1x324x128xbf16>
    %89 = vector.shape_cast %88 : vector<1x324x128xbf16> to vector<324x128xbf16>
    %90 = arith.extf %89 : vector<324x128xbf16> to vector<324x128xf32>
    %91 = arith.addf %90, %85 : vector<324x128xf32>
    %cst_74 = arith.constant 0.000000e+00 : f32
    %92 = vector.shape_cast %87 : vector<324x1xi1> to vector<324x1xi1>
    %93 = vector.broadcast %92 : vector<324x1xi1> to vector<324x128xi1>
    %94 = vector.broadcast %cst_74 : f32 to vector<324x128xf32>
    %95 = arith.select %93, %91, %94 : vector<324x128xi1>, vector<324x128xf32>
    %96 = arith.truncf %95 : vector<324x128xf32> to vector<324x128xbf16>
    %c0_75 = arith.constant 0 : index
    %c0_76 = arith.constant 0 : index
    %c0_77 = arith.constant 0 : index
    %97 = vector.load %arg11[%c0_75, %c0_76, %c0_77] : memref<1x324x128xbf16, #tpu.memory_space<vmem>>, vector<1x324x128xbf16>
    %98 = vector.shape_cast %97 : vector<1x324x128xbf16> to vector<324x128xbf16>
    %99 = vector.shape_cast %96 : vector<324x128xbf16> to vector<1x324x128xbf16>
    tpu.vector_store %arg11[%c0_75, %c0_76, %c0_77], %99 {strides = array<i32>} : memref<1x324x128xbf16, #tpu.memory_space<vmem>>, vector<1x324x128xbf16>,
    return
  }
  func.func @transform_0(%arg0: i32) -> (i32, i32, i32) {
    %c0_i32 = arith.constant 0 : i32
    %c0_i32_0 = arith.constant 0 : i32
    %c0_i32_1 = arith.constant 0 : i32
    return %arg0, %c0_i32, %c0_i32_0 : i32, i32, i32
  }
  func.func @transform_1(%arg0: i32) -> (i32, i32) {
    %c0_i32 = arith.constant 0 : i32
    %c0_i32_0 = arith.constant 0 : i32
    %c0_i32_1 = arith.constant 0 : i32
    return %c0_i32, %c0_i32_0 : i32, i32
  }
  func.func @transform_2(%arg0: i32) -> (i32, i32) {
    %c0_i32 = arith.constant 0 : i32
    %c0_i32_0 = arith.constant 0 : i32
    %c0_i32_1 = arith.constant 0 : i32
    return %c0_i32, %c0_i32_0 : i32, i32
  }
  func.func @transform_3(%arg0: i32) -> (i32, i32) {
    %c0_i32 = arith.constant 0 : i32
    %c0_i32_0 = arith.constant 0 : i32
    %c0_i32_1 = arith.constant 0 : i32
    return %c0_i32, %c0_i32_0 : i32, i32
  }
  func.func @transform_4(%arg0: i32) -> (i32, i32, i32) {
    %c0_i32 = arith.constant 0 : i32
    %c0_i32_0 = arith.constant 0 : i32
    %c0_i32_1 = arith.constant 0 : i32
    %c0_i32_2 = arith.constant 0 : i32
    return %c0_i32, %c0_i32_0, %c0_i32_1 : i32, i32, i32
  }
  func.func @transform_5(%arg0: i32) -> (i32, i32) {
    %c0_i32 = arith.constant 0 : i32
    %c0_i32_0 = arith.constant 0 : i32
    %c0_i32_1 = arith.constant 0 : i32
    return %c0_i32, %c0_i32_0 : i32, i32
  }
  func.func @transform_6(%arg0: i32) -> (i32, i32) {
    %c0_i32 = arith.constant 0 : i32
    %c0_i32_0 = arith.constant 0 : i32
    %c0_i32_1 = arith.constant 0 : i32
    return %c0_i32, %c0_i32_0 : i32, i32
  }
  func.func @transform_7(%arg0: i32) -> (i32, i32) {
    %c0_i32 = arith.constant 0 : i32
    %c0_i32_0 = arith.constant 0 : i32
    %c0_i32_1 = arith.constant 0 : i32
    return %c0_i32, %c0_i32_0 : i32, i32
  }
  func.func @transform_8(%arg0: i32) -> (i32, i32, i32) {
    %c0_i32 = arith.constant 0 : i32
    %c0_i32_0 = arith.constant 0 : i32
    %c0_i32_1 = arith.constant 0 : i32
    %c0_i32_2 = arith.constant 0 : i32
    return %c0_i32, %c0_i32_0, %c0_i32_1 : i32, i32, i32
  }
  func.func @transform_9(%arg0: i32) -> (i32, i32) {
    %c0_i32 = arith.constant 0 : i32
    %c0_i32_0 = arith.constant 0 : i32
    %c0_i32_1 = arith.constant 0 : i32
    return %c0_i32, %c0_i32_0 : i32, i32
  }
  func.func @transform_10(%arg0: i32) -> (i32, i32, i32) {
    %c0_i32 = arith.constant 0 : i32
    %c0_i32_0 = arith.constant 0 : i32
    %c0_i32_1 = arith.constant 0 : i32
    return %arg0, %c0_i32, %c0_i32_0 : i32, i32, i32
  }
}

module attributes {stable_mosaic.version = 11 : i64} {
  func.func @_matmul_bias_leaky_kernel(%arg0: i32, %arg1: i32, %arg2: i32, %arg3: memref<128x1152xbf16, #tpu.memory_space<vmem>>, %arg4: memref<1152x256xbf16, #tpu.memory_space<vmem>>, %arg5: memref<1x256xf32, #tpu.memory_space<vmem>>, %arg6: memref<128x256xf32, #tpu.memory_space<vmem>>, %arg7: memref<128x256xf32, #tpu.memory_space<vmem>>) attributes {dimension_semantics = [#tpu.dimension_semantics<parallel>, #tpu.dimension_semantics<parallel>, #tpu.dimension_semantics<arbitrary>], iteration_bounds = array<i64: 1, 1, 1>, scalar_prefetch = 0 : i64, scratch_operands = 1 : i64, tpu.core_type = #tpu.core_type<tc>, window_params = [{transform_indices = @transform_0, window_bounds = array<i64: 128, 1152>}, {transform_indices = @transform_1, window_bounds = array<i64: 1152, 256>}, {transform_indices = @transform_2, window_bounds = array<i64: 1, 256>}, {transform_indices = @transform_3, window_bounds = array<i64: 128, 256>}]} {
    %c0_i32 = arith.constant 0 : i32
    %0 = arith.cmpi eq, %arg2, %c0_i32 : i32
    %1 = arith.extui %0 : i1 to i32
    %c0_i32_0 = arith.constant 0 : i32
    %2 = arith.cmpi ne, %1, %c0_i32_0 : i32
    scf.if %2 {
      %cst_10 = arith.constant 0.000000e+00 : f32
      %12 = vector.broadcast %cst_10 : f32 to vector<128x256xf32>
      %c0_11 = arith.constant 0 : index
      %c0_12 = arith.constant 0 : index
      %13 = vector.load %arg7[%c0_11, %c0_12] : memref<128x256xf32, #tpu.memory_space<vmem>>, vector<128x256xf32>
      tpu.vector_store %arg7[%c0_11, %c0_12], %12 {strides = array<i32>} : memref<128x256xf32, #tpu.memory_space<vmem>>, vector<128x256xf32>,
    } else {
    }
    %c0 = arith.constant 0 : index
    %c0_1 = arith.constant 0 : index
    %3 = vector.load %arg7[%c0, %c0_1] : memref<128x256xf32, #tpu.memory_space<vmem>>, vector<128x256xf32>
    %c0_2 = arith.constant 0 : index
    %c0_3 = arith.constant 0 : index
    %4 = vector.load %arg3[%c0_2, %c0_3] : memref<128x1152xbf16, #tpu.memory_space<vmem>>, vector<128x1152xbf16>
    %c0_4 = arith.constant 0 : index
    %c0_5 = arith.constant 0 : index
    %5 = vector.load %arg4[%c0_4, %c0_5] : memref<1152x256xbf16, #tpu.memory_space<vmem>>, vector<1152x256xbf16>
    %cst = arith.constant dense<0.000000e+00> : vector<128x256xf32>
    %6 = tpu.matmul %4, %5, %cst {dimension_numbers = #tpu.dot_dimension_numbers<[1], [0], [0], [1], [0, 0, 1, 1], [], []>} : vector<128x1152xbf16>, vector<1152x256xbf16>, vector<128x256xf32> -> vector<128x256xf32>
    %7 = arith.addf %3, %6 : vector<128x256xf32>
    %c0_6 = arith.constant 0 : index
    %c0_7 = arith.constant 0 : index
    %8 = vector.load %arg7[%c0_6, %c0_7] : memref<128x256xf32, #tpu.memory_space<vmem>>, vector<128x256xf32>
    tpu.vector_store %arg7[%c0_6, %c0_7], %7 {strides = array<i32>} : memref<128x256xf32, #tpu.memory_space<vmem>>, vector<128x256xf32>,
    %c0_i32_8 = arith.constant 0 : i32
    %9 = arith.cmpi eq, %arg2, %c0_i32_8 : i32
    %10 = arith.extui %9 : i1 to i32
    %c0_i32_9 = arith.constant 0 : i32
    %11 = arith.cmpi ne, %10, %c0_i32_9 : i32
    scf.if %11 {
      %c0_10 = arith.constant 0 : index
      %c0_11 = arith.constant 0 : index
      %12 = vector.load %arg7[%c0_10, %c0_11] : memref<128x256xf32, #tpu.memory_space<vmem>>, vector<128x256xf32>
      %c0_12 = arith.constant 0 : index
      %c0_13 = arith.constant 0 : index
      %13 = vector.load %arg5[%c0_12, %c0_13] : memref<1x256xf32, #tpu.memory_space<vmem>>, vector<1x256xf32>
      %14 = vector.broadcast %13 : vector<1x256xf32> to vector<128x256xf32>
      %15 = arith.addf %12, %14 : vector<128x256xf32>
      %cst_14 = arith.constant 1.000000e-01 : f32
      %16 = vector.broadcast %cst_14 : f32 to vector<128x256xf32>
      %17 = arith.mulf %16, %15 : vector<128x256xf32>
      %18 = arith.maximumf %15, %17 : vector<128x256xf32>
      %c0_15 = arith.constant 0 : index
      %c0_16 = arith.constant 0 : index
      %19 = vector.load %arg6[%c0_15, %c0_16] : memref<128x256xf32, #tpu.memory_space<vmem>>, vector<128x256xf32>
      tpu.vector_store %arg6[%c0_15, %c0_16], %18 {strides = array<i32>} : memref<128x256xf32, #tpu.memory_space<vmem>>, vector<128x256xf32>,
    } else {
    }
    return
  }
  func.func @transform_0(%arg0: i32, %arg1: i32, %arg2: i32) -> (i32, i32) {
    %c0_i32 = arith.constant 0 : i32
    return %arg0, %arg2 : i32, i32
  }
  func.func @transform_1(%arg0: i32, %arg1: i32, %arg2: i32) -> (i32, i32) {
    %c0_i32 = arith.constant 0 : i32
    return %arg2, %arg1 : i32, i32
  }
  func.func @transform_2(%arg0: i32, %arg1: i32, %arg2: i32) -> (i32, i32) {
    %c0_i32 = arith.constant 0 : i32
    %c0_i32_0 = arith.constant 0 : i32
    return %c0_i32, %arg1 : i32, i32
  }
  func.func @transform_3(%arg0: i32, %arg1: i32, %arg2: i32) -> (i32, i32) {
    %c0_i32 = arith.constant 0 : i32
    return %arg0, %arg1 : i32, i32
  }
}

</mosaic_0001>

<bundles_post_ra>
// kernel: resblock2_forward.3
= control target key start
LH: loop header
LB: loop body
LE: loop exit
PB: predicated region body
PF: predicated region fallthrough
CT: control target
= control target key end

     0   :  { %s3910_s0 = inlined_call_operand.vmem [shape: bf16[128,1152], index: 0, kind: input, shape index: {}]   ;;  %s3911_s1 = inlined_call_operand.vmem [shape: bf16[1152,256], index: 1, kind: input, shape index: {}]   ;;  %s3912_s2 = inlined_call_operand.vmem [shape: f32[1,256], index: 2, kind: input, shape index: {}]   ;;  %s3913_s3 = inlined_call_operand.hbm [shape: f32[128,256], index: 3, kind: output, shape index: {}]  }
   0x1   :  { %v2596_v0 = vld [vmem:[%s3911_s1 + $0x4] ss:$8 sps:$4 sm:$0xff]   ;;  %v2600_v2 = vld [vmem:[%s3911_s1] ss:$8 sps:$4 sm:$0xff]   ;;  %v2602_v4 = vld [vmem:[%s3911_s1 + $0x14] ss:$8 sps:$4 sm:$0xff]  }
   0x2   :  { %v2598_v1 = vld [vmem:[%s3911_s1 + $0x204] ss:$8 sps:$4 sm:$0xff]   ;;  %1396 = vmatprep.subr.bf16.mxu1 %v2596_v0  ;;  %v2601_v3 = vld [vmem:[%s3911_s1 + $0x200] ss:$8 sps:$4 sm:$0xff]   ;;  %v2604_v5 = vld [vmem:[%s3911_s1 + $0x214] ss:$8 sps:$4 sm:$0xff]  }
   0x3   :  { %1622 = vmatprep.subr.bf16.mxu0 %v2598_v1  ;;  %1397 = vmatpush1.bf16.msra.mxu1 %v2600_v2  ;;  %v2606_v6 = vld [vmem:[%s3911_s1 + $0x10] ss:$8 sps:$4 sm:$0xff]   ;;  %v2608_v8 = vld [vmem:[%s3911_s1 + $0x24] ss:$8 sps:$4 sm:$0xff]   ;;  %v2612_v10 = vld [vmem:[%s3911_s1 + $0x20] ss:$8 sps:$4 sm:$0xff]  }
   0x4   :  { %1623 = vmatpush1.bf16.msra.mxu0 %v2601_v3  ;;  %1398 = vmatprep.subr.bf16.mxu1 %v2602_v4  ;;  %v2607_v7 = vld [vmem:[%s3911_s1 + $0x210] ss:$8 sps:$4 sm:$0xff]   ;;  %v2610_v9 = vld [vmem:[%s3911_s1 + $0x224] ss:$8 sps:$4 sm:$0xff]   ;;  %v2613_v11 = vld [vmem:[%s3911_s1 + $0x220] ss:$8 sps:$4 sm:$0xff]  }
   0x5   :  { %1624 = vmatprep.subr.bf16.mxu0 %v2604_v5  ;;  %v2614_v12 = vld [vmem:[%s3911_s1 + $0x34] ss:$8 sps:$4 sm:$0xff]   ;;  %v2618_v14 = vld [vmem:[%s3911_s1 + $0x30] ss:$8 sps:$4 sm:$0xff]   ;;  %v2620_v16 = vld [vmem:[%s3911_s1 + $0x44] ss:$8 sps:$4 sm:$0xff]  }
   0x6   :  { %v2616_v13 = vld [vmem:[%s3911_s1 + $0x234] ss:$8 sps:$4 sm:$0xff]   ;;  %v2619_v15 = vld [vmem:[%s3911_s1 + $0x230] ss:$8 sps:$4 sm:$0xff]   ;;  %v2622_v17 = vld [vmem:[%s3911_s1 + $0x244] ss:$8 sps:$4 sm:$0xff]  }
   0x7   :  { %1399 = vmatpush1.bf16.msra.mxu1 %v2606_v6  ;;  %v2624_v18 = vld [vmem:[%s3911_s1 + $0x40] ss:$8 sps:$4 sm:$0xff]   ;;  %v2626_v20 = vld [vmem:[%s3911_s1 + $0x54] ss:$8 sps:$4 sm:$0xff]   ;;  %v2630_v22 = vld [vmem:[%s3911_s1 + $0x50] ss:$8 sps:$4 sm:$0xff]  }
   0x8   :  { %1625 = vmatpush1.bf16.msra.mxu0 %v2607_v7  ;;  %1400 = vmatprep.subr.bf16.mxu1 %v2608_v8  ;;  %v2625_v19 = vld [vmem:[%s3911_s1 + $0x240] ss:$8 sps:$4 sm:$0xff]   ;;  %v2628_v21 = vld [vmem:[%s3911_s1 + $0x254] ss:$8 sps:$4 sm:$0xff]   ;;  %v2631_v23 = vld [vmem:[%s3911_s1 + $0x250] ss:$8 sps:$4 sm:$0xff]  }
   0x9   :  { %1626 = vmatprep.subr.bf16.mxu0 %v2610_v9  ;;  %v2632_v24 = vld [vmem:[%s3911_s1 + $0x64] ss:$8 sps:$4 sm:$0xff]   ;;  %v2636_v26 = vld [vmem:[%s3911_s1 + $0x60] ss:$8 sps:$4 sm:$0xff]   ;;  %v2638_v28 = vld [vmem:[%s3911_s1 + $0x74] ss:$8 sps:$4 sm:$0xff]  }
   0xa   :  { %v2634_v25 = vld [vmem:[%s3911_s1 + $0x264] ss:$8 sps:$4 sm:$0xff]   ;;  %v2637_v27 = vld [vmem:[%s3911_s1 + $0x260] ss:$8 sps:$4 sm:$0xff]   ;;  %v2640_v29 = vld [vmem:[%s3911_s1 + $0x274] ss:$8 sps:$4 sm:$0xff]  }
   0xb   :  { %1401 = vmatpush1.bf16.msra.mxu1 %v2612_v10  ;;  %v2642_v30 = vld [vmem:[%s3911_s1 + $0x70] ss:$8 sps:$4 sm:$0xff]   ;;  %v2644_v32 = vld [vmem:[%s3911_s1 + $0x84] ss:$8 sps:$4 sm:$0xff]   ;;  %v2648_v34 = vld [vmem:[%s3911_s1 + $0x80] ss:$8 sps:$4 sm:$0xff]  }
   0xc   :  { %1627 = vmatpush1.bf16.msra.mxu0 %v2613_v11  ;;  %1402 = vmatprep.subr.bf16.mxu1 %v2614_v12  ;;  %v2643_v31 = vld [vmem:[%s3911_s1 + $0x270] ss:$8 sps:$4 sm:$0xff]   ;;  %v2646_v33 = vld [vmem:[%s3911_s1 + $0x284] ss:$8 sps:$4 sm:$0xff]   ;;  %v2649_v35 = vld [vmem:[%s3911_s1 + $0x280] ss:$8 sps:$4 sm:$0xff]  }
   0xd   :  { %1628 = vmatprep.subr.bf16.mxu0 %v2616_v13  ;;  %v2650_v36 = vld [vmem:[%s3911_s1 + $0x94] ss:$8 sps:$4 sm:$0xff]   ;;  %v2654_v38 = vld [vmem:[%s3911_s1 + $0x90] ss:$8 sps:$4 sm:$0xff]   ;;  %v2656_v40 = vld [vmem:[%s3911_s1 + $0xa4] ss:$8 sps:$4 sm:$0xff]  }
   0xe   :  { %v2652_v37 = vld [vmem:[%s3911_s1 + $0x294] ss:$8 sps:$4 sm:$0xff]   ;;  %v2655_v39 = vld [vmem:[%s3911_s1 + $0x290] ss:$8 sps:$4 sm:$0xff]   ;;  %v2658_v41 = vld [vmem:[%s3911_s1 + $0x2a4] ss:$8 sps:$4 sm:$0xff]  }
   0xf   :  { %1403 = vmatpush1.bf16.msra.mxu1 %v2618_v14  ;;  %v2660_v42 = vld [vmem:[%s3911_s1 + $0xa0] ss:$8 sps:$4 sm:$0xff]   ;;  %v2662_v44 = vld [vmem:[%s3911_s1 + $0xb4] ss:$8 sps:$4 sm:$0xff]   ;;  %v2666_v46 = vld [vmem:[%s3911_s1 + $0xb0] ss:$8 sps:$4 sm:$0xff]  }
  0x10   :  { %1629 = vmatpush1.bf16.msra.mxu0 %v2619_v15  ;;  %1404 = vmatprep.subr.bf16.mxu1 %v2620_v16  ;;  %v2661_v43 = vld [vmem:[%s3911_s1 + $0x2a0] ss:$8 sps:$4 sm:$0xff]   ;;  %v2664_v45 = vld [vmem:[%s3911_s1 + $0x2b4] ss:$8 sps:$4 sm:$0xff]   ;;  %v2667_v47 = vld [vmem:[%s3911_s1 + $0x2b0] ss:$8 sps:$4 sm:$0xff]  }
  0x11   :  { %1630 = vmatprep.subr.bf16.mxu0 %v2622_v17  ;;  %v2668_v48 = vld [vmem:[%s3911_s1 + $0xc4] ss:$8 sps:$4 sm:$0xff]   ;;  %v2697_v51 = vld [vmem:[%s3910_s0 + $0x14] ss:$36 sps:$4 sm:$0xff]   ;;  %v2672_v52 = vld [vmem:[%s3911_s1 + $0xc0] ss:$8 sps:$4 sm:$0xff]  }
  0x12   :  { %v2694_v49 = vld [vmem:[%s3910_s0 + $0x4] ss:$36 sps:$4 sm:$0xff]   ;;  %1654 = vmatprep.mubr.bf16.mxu0 %v2697_v51  ;;  %v2674_v54 = vld [vmem:[%s3911_s1 + $0xd4] ss:$8 sps:$4 sm:$0xff]   ;;  %v2678_v56 = vld [vmem:[%s3911_s1 + $0xd0] ss:$8 sps:$4 sm:$0xff]  }
  0x13   :  { %1405 = vmatpush1.bf16.msra.mxu1 %v2624_v18  ;;  %v2670_v50 = vld [vmem:[%s3911_s1 + $0x2c4] ss:$8 sps:$4 sm:$0xff]   ;;  %1428 = vmatprep.mubr.bf16.mxu1 %v2694_v49  ;;  %v2673_v53 = vld [vmem:[%s3911_s1 + $0x2c0] ss:$8 sps:$4 sm:$0xff]   ;;  %v2676_v55 = vld [vmem:[%s3911_s1 + $0x2d4] ss:$8 sps:$4 sm:$0xff]  }
  0x14   :  { %1631 = vmatpush1.bf16.msra.mxu0 %v2625_v19  ;;  %1406 = vmatprep.subr.bf16.mxu1 %v2626_v20  ;;  %v2679_v57 = vld [vmem:[%s3911_s1 + $0x2d0] ss:$8 sps:$4 sm:$0xff]   ;;  %v2680_v58 = vld [vmem:[%s3911_s1 + $0xe4] ss:$8 sps:$4 sm:$0xff]   ;;  %v2684_v60 = vld [vmem:[%s3911_s1 + $0xe0] ss:$8 sps:$4 sm:$0xff]  }
  0x15   :  { %1632 = vmatprep.subr.bf16.mxu0 %v2628_v21  ;;  %v2682_v59 = vld [vmem:[%s3911_s1 + $0x2e4] ss:$8 sps:$4 sm:$0xff]   ;;  %v2685_v61 = vld [vmem:[%s3911_s1 + $0x2e0] ss:$8 sps:$4 sm:$0xff]   ;;  %v2686_v62 = vld [vmem:[%s3911_s1 + $0xf4] ss:$8 sps:$4 sm:$0xff]  }
  0x16   :  { %v2688_v63 = vld [vmem:[%s3911_s1 + $0x2f4] ss:$8 sps:$4 sm:$0xff]   ;;  %v2690_v0 = vld [vmem:[%s3911_s1 + $0xf0] ss:$8 sps:$4 sm:$0xff]   ;;  %v2700_v2 = vld [vmem:[%s3911_s1 + $0x104] ss:$8 sps:$4 sm:$0xff]  }
  0x17   :  { %1407 = vmatpush1.bf16.msra.mxu1 %v2630_v22  ;;  %v2691_v1 = vld [vmem:[%s3911_s1 + $0x2f0] ss:$8 sps:$4 sm:$0xff]   ;;  %v3168_v3 = vld [vmem:[%s3911_s1 + $0x304] ss:$8 sps:$4 sm:$0xff]   ;;  %v2698_v6 = vld [vmem:[%s3911_s1 + $0x100] ss:$8 sps:$4 sm:$0xff]  }
  0x18   :  { %1633 = vmatpush1.bf16.msra.mxu0 %v2631_v23  ;;  %1408 = vmatprep.subr.bf16.mxu1 %v2632_v24  ;;  %v2692_v4 = vld [vmem:[%s3910_s0] ss:$36 sps:$4 sm:$0xff]   ;;  %v2695_v5 = vld [vmem:[%s3910_s0 + $0x10] ss:$36 sps:$4 sm:$0xff]   ;;  %v2714_v16 = vld [vmem:[%s3910_s0 + $0x48] ss:$36 sps:$4 sm:$0xff]  }
  0x19   :  { %1634 = vmatprep.subr.bf16.mxu0 %v2634_v25  ;;  %v3182_v7 = vld [vmem:[%s3911_s1 + $0x300] ss:$8 sps:$4 sm:$0xff]   ;;  %v2706_v8 = vld [vmem:[%s3911_s1 + $0x114] ss:$8 sps:$4 sm:$0xff]   ;;  %v2710_v10 = vld [vmem:[%s3910_s0 + $0x4c] ss:$36 sps:$4 sm:$0xff]  }
  0x1a   :  { %v3191_v9 = vld [vmem:[%s3911_s1 + $0x314] ss:$8 sps:$4 sm:$0xff]   ;;  %v2704_v12 = vld [vmem:[%s3911_s1 + $0x110] ss:$8 sps:$4 sm:$0xff]   ;;  %v2717_v14 = vld [vmem:[%s3911_s1 + $0x124] ss:$8 sps:$4 sm:$0xff]  }
  0x1b   :  { %1409 = vmatpush1.bf16.msra.mxu1 %v2636_v26  ;;  %v2712_v11 = vld [vmem:[%s3910_s0 + $0x5c] ss:$36 sps:$4 sm:$0xff]   ;;  %v3206_v13 = vld [vmem:[%s3911_s1 + $0x310] ss:$8 sps:$4 sm:$0xff]   ;;  %v3215_v15 = vld [vmem:[%s3911_s1 + $0x324] ss:$8 sps:$4 sm:$0xff]  }
  0x1c   :  { %1635 = vmatpush1.bf16.msra.mxu0 %v2637_v27  ;;  %1410 = vmatprep.subr.bf16.mxu1 %v2638_v28  ;;  %v2715_v17 = vld [vmem:[%s3911_s1 + $0x120] ss:$8 sps:$4 sm:$0xff]   ;;  %v2718_v18 = vld [vmem:[%s3910_s0 + $0x58] ss:$36 sps:$4 sm:$0xff]   ;;  %v2735_v26 = vld [vmem:[%s3911_s1 + $0x144] ss:$8 sps:$4 sm:$0xff]  }
  0x1d   :  { %1636 = vmatprep.subr.bf16.mxu0 %v2640_v29  ;;  %v3229_v19 = vld [vmem:[%s3911_s1 + $0x320] ss:$8 sps:$4 sm:$0xff]   ;;  %v2724_v20 = vld [vmem:[%s3911_s1 + $0x134] ss:$8 sps:$4 sm:$0xff]   ;;  %v2722_v24 = vld [vmem:[%s3911_s1 + $0x130] ss:$8 sps:$4 sm:$0xff]  }
  0x1e   :  { %v3239_v21 = vld [vmem:[%s3911_s1 + $0x334] ss:$8 sps:$4 sm:$0xff]   ;;  %v2730_v23 = vld [vmem:[%s3910_s0 + $0xa4] ss:$36 sps:$4 sm:$0xff]   ;;  %v3254_v25 = vld [vmem:[%s3911_s1 + $0x330] ss:$8 sps:$4 sm:$0xff]  }
  0x1f   :  { %1411 = vmatpush1.bf16.msra.mxu1 %v2642_v30  ;;  %v2728_v22 = vld [vmem:[%s3910_s0 + $0x94] ss:$36 sps:$4 sm:$0xff]   ;;  %v3263_v27 = vld [vmem:[%s3911_s1 + $0x344] ss:$8 sps:$4 sm:$0xff]   ;;  %v2733_v29 = vld [vmem:[%s3911_s1 + $0x140] ss:$8 sps:$4 sm:$0xff]  }
  0x20   :  { %1637 = vmatpush1.bf16.msra.mxu0 %v2643_v31  ;;  %1412 = vmatprep.subr.bf16.mxu1 %v2644_v32  ;;  %v2732_v28 = vld [vmem:[%s3910_s0 + $0x90] ss:$36 sps:$4 sm:$0xff]   ;;  %v2736_v30 = vld [vmem:[%s3910_s0 + $0xa0] ss:$36 sps:$4 sm:$0xff]  }
  0x21   :  { %1638 = vmatprep.subr.bf16.mxu0 %v2646_v33  ;;  %v3277_v31 = vld [vmem:[%s3911_s1 + $0x340] ss:$8 sps:$4 sm:$0xff]   ;;  %v2742_v32 = vld [vmem:[%s3911_s1 + $0x154] ss:$8 sps:$4 sm:$0xff]   ;;  %v3350_v49 = vld [vmem:[%s3911_s1 + $0x370] ss:$8 sps:$4 sm:$0xff]  }
  0x22   :  { %v3287_v33 = vld [vmem:[%s3911_s1 + $0x354] ss:$8 sps:$4 sm:$0xff]   ;;  %v3359_v51 = vld [vmem:[%s3911_s1 + $0x384] ss:$8 sps:$4 sm:$0xff]  }
  0x23   :  { %1413 = vmatpush1.bf16.msra.mxu1 %v2648_v34  ;;  %v2746_v34 = vld [vmem:[%s3910_s0 + $0xdc] ss:$36 sps:$4 sm:$0xff]  }
  0x24   :  { %1639 = vmatpush1.bf16.msra.mxu0 %v2649_v35  ;;  %1414 = vmatprep.subr.bf16.mxu1 %v2650_v36  ;;  %v2748_v35 = vld [vmem:[%s3910_s0 + $0xec] ss:$36 sps:$4 sm:$0xff]  }
  0x25   :  { %1640 = vmatprep.subr.bf16.mxu0 %v2652_v37  ;;  %v2740_v36 = vld [vmem:[%s3911_s1 + $0x150] ss:$8 sps:$4 sm:$0xff]  }
  0x26   :  { %v3302_v37 = vld [vmem:[%s3911_s1 + $0x350] ss:$8 sps:$4 sm:$0xff]  }
  0x27   :  { %1415 = vmatpush1.bf16.msra.mxu1 %v2654_v38  ;;  %v2753_v38 = vld [vmem:[%s3911_s1 + $0x164] ss:$8 sps:$4 sm:$0xff]  }
  0x28   :  { %1641 = vmatpush1.bf16.msra.mxu0 %v2655_v39  ;;  %1416 = vmatprep.subr.bf16.mxu1 %v2656_v40  ;;  %v3311_v39 = vld [vmem:[%s3911_s1 + $0x364] ss:$8 sps:$4 sm:$0xff]   ;;  %v2750_v40 = vld [vmem:[%s3910_s0 + $0xd8] ss:$36 sps:$4 sm:$0xff]  }
  0x29   :  { %1642 = vmatprep.subr.bf16.mxu0 %v2658_v41  ;;  %v2751_v41 = vld [vmem:[%s3911_s1 + $0x160] ss:$8 sps:$4 sm:$0xff]  }
  0x2b   :  { %1417 = vmatpush1.bf16.msra.mxu1 %v2660_v42  ;;  %v2754_v42 = vld [vmem:[%s3910_s0 + $0xe8] ss:$36 sps:$4 sm:$0xff]  }
  0x2c   :  { %1643 = vmatpush1.bf16.msra.mxu0 %v2661_v43  ;;  %1418 = vmatprep.subr.bf16.mxu1 %v2662_v44  ;;  %v3325_v43 = vld [vmem:[%s3911_s1 + $0x360] ss:$8 sps:$4 sm:$0xff]   ;;  %v2760_v44 = vld [vmem:[%s3911_s1 + $0x174] ss:$8 sps:$4 sm:$0xff]  }
  0x2d   :  { %1644 = vmatprep.subr.bf16.mxu0 %v2664_v45  ;;  %v3335_v45 = vld [vmem:[%s3911_s1 + $0x374] ss:$8 sps:$4 sm:$0xff]  }
  0x2f   :  { %1419 = vmatpush1.bf16.msra.mxu1 %v2666_v46  ;;  %v2764_v46 = vld [vmem:[%s3910_s0 + $0x124] ss:$36 sps:$4 sm:$0xff]  }
  0x30   :  { %1645 = vmatpush1.bf16.msra.mxu0 %v2667_v47  ;;  %1420 = vmatprep.subr.bf16.mxu1 %v2668_v48  ;;  %v2766_v47 = vld [vmem:[%s3910_s0 + $0x134] ss:$36 sps:$4 sm:$0xff]  }
  0x31   :  { %1646 = vmatprep.subr.bf16.mxu0 %v2670_v50  ;;  %v2758_v48 = vld [vmem:[%s3911_s1 + $0x170] ss:$8 sps:$4 sm:$0xff]   ;;  %v2771_v50 = vld [vmem:[%s3911_s1 + $0x184] ss:$8 sps:$4 sm:$0xff]  }
  0x33   :  { %1421 = vmatpush1.bf16.msra.mxu1 %v2672_v52  ;;  %v2768_v52 = vld [vmem:[%s3910_s0 + $0x120] ss:$36 sps:$4 sm:$0xff]  }
  0x34   :  { %1647 = vmatpush1.bf16.msra.mxu0 %v2673_v53  ;;  %1422 = vmatprep.subr.bf16.mxu1 %v2674_v54  ;;  %v2769_v53 = vld [vmem:[%s3911_s1 + $0x180] ss:$8 sps:$4 sm:$0xff]   ;;  %v2772_v54 = vld [vmem:[%s3910_s0 + $0x130] ss:$36 sps:$4 sm:$0xff]  }
  0x35   :  { %1648 = vmatprep.subr.bf16.mxu0 %v2676_v55  ;;  %v3373_v55 = vld [vmem:[%s3911_s1 + $0x380] ss:$8 sps:$4 sm:$0xff]  }
  0x37   :  { %1423 = vmatpush1.bf16.msra.mxu1 %v2678_v56  ;;  %v2778_v56 = vld [vmem:[%s3911_s1 + $0x194] ss:$8 sps:$4 sm:$0xff]  }
  0x38   :  { %1649 = vmatpush1.bf16.msra.mxu0 %v2679_v57  ;;  %1424 = vmatprep.subr.bf16.mxu1 %v2680_v58  ;;  %v3383_v57 = vld [vmem:[%s3911_s1 + $0x394] ss:$8 sps:$4 sm:$0xff]   ;;  %v2782_v58 = vld [vmem:[%s3910_s0 + $0x16c] ss:$36 sps:$4 sm:$0xff]  }
  0x39   :  { %1650 = vmatprep.subr.bf16.mxu0 %v2682_v59  ;;  %v2784_v59 = vld [vmem:[%s3910_s0 + $0x17c] ss:$36 sps:$4 sm:$0xff]  }
  0x3b   :  { %1425 = vmatpush1.bf16.msra.mxu1 %v2684_v60  ;;  %v2776_v60 = vld [vmem:[%s3911_s1 + $0x190] ss:$8 sps:$4 sm:$0xff]  }
  0x3c   :  { %1651 = vmatpush1.bf16.msra.mxu0 %v2685_v61  ;;  %1426 = vmatprep.subr.bf16.mxu1 %v2686_v62  ;;  %v3398_v61 = vld [vmem:[%s3911_s1 + $0x390] ss:$8 sps:$4 sm:$0xff]   ;;  %v2789_v62 = vld [vmem:[%s3911_s1 + $0x1a4] ss:$8 sps:$4 sm:$0xff]  }
  0x3d   :  { %1652 = vmatprep.subr.bf16.mxu0 %v2688_v63  ;;  %v3407_v63 = vld [vmem:[%s3911_s1 + $0x3a4] ss:$8 sps:$4 sm:$0xff]  }
  0x3f   :  { %1427 = vmatpush1.bf16.msra.mxu1 %v2690_v0  ;;  %v2786_v0 = vld [vmem:[%s3910_s0 + $0x168] ss:$36 sps:$4 sm:$0xff]  }
  0x40   :  { %1653 = vmatpush1.bf16.msra.mxu0 %v2691_v1  ;;  %1509 = vmatprep.subr.bf16.mxu1 %v2700_v2  ;;  %v2787_v1 = vld [vmem:[%s3911_s1 + $0x1a0] ss:$8 sps:$4 sm:$0xff]   ;;  %v2790_v2 = vld [vmem:[%s3910_s0 + $0x178] ss:$36 sps:$4 sm:$0xff]  }
  0x41   :  { %1735 = vmatprep.subr.bf16.mxu0 %v3168_v3 }
  0x42   :  { %1429 = vmatmul.mubr.bf16.vlgmr.msra.gmra.mrb[0].mxu1 %v2692_v4  ;;  %v3421_v4 = vld [vmem:[%s3911_s1 + $0x3a0] ss:$8 sps:$4 sm:$0xff]  }
  0x43   :  { %1655 = vmatmul.mubr.bf16.vlgmr.msra.gmra.mrb[0].mxu0 %v2695_v5  ;;  %1510 = vmatpush1.bf16.msra.mxu1 %v2698_v6  ;;  %v2796_v5 = vld [vmem:[%s3911_s1 + $0x1b4] ss:$8 sps:$4 sm:$0xff]  }
  0x44   :  { %1736 = vmatpush1.bf16.msra.mxu0 %v3182_v7  ;;  %1511 = vmatprep.subr.bf16.mxu1 %v2706_v8  ;;  %v3431_v6 = vld [vmem:[%s3911_s1 + $0x3b4] ss:$8 sps:$4 sm:$0xff]  }
  0x45   :  { %1737 = vmatprep.subr.bf16.mxu0 %v3191_v9  ;;  %1438 = vmatprep.mubr.bf16.mxu1 %v2710_v10  ;;  %v2800_v8 = vld [vmem:[%s3910_s0 + $0x1b4] ss:$36 sps:$4 sm:$0xff]   ;;  %v2802_v10 = vld [vmem:[%s3910_s0 + $0x1c4] ss:$36 sps:$4 sm:$0xff]  }
  0x46   :  { %1664 = vmatprep.mubr.bf16.mxu0 %v2712_v11  ;;  %v2794_v11 = vld [vmem:[%s3911_s1 + $0x1b0] ss:$8 sps:$4 sm:$0xff]  }
  0x47   :  { %1512 = vmatpush1.bf16.msra.mxu1 %v2704_v12  ;;  %v3445_v12 = vld [vmem:[%s3911_s1 + $0x3b0] ss:$8 sps:$4 sm:$0xff]  }
  0x48   :  { %1738 = vmatpush1.bf16.msra.mxu0 %v3206_v13  ;;  %1513 = vmatprep.subr.bf16.mxu1 %v2717_v14  ;;  %v2807_v14 = vld [vmem:[%s3911_s1 + $0x1c4] ss:$8 sps:$4 sm:$0xff]  }
  0x49   :  { %1739 = vmatprep.subr.bf16.mxu0 %v3215_v15 }
  0x4a   :  { %1439 = vmatmul.mubr.bf16.gmra.mrb[4].mxu1 %v2714_v16  ;;  %v3455_v16 = vld [vmem:[%s3911_s1 + $0x3c4] ss:$8 sps:$4 sm:$0xff]  }
  0x4b   :  { %1665 = vmatmul.mubr.bf16.gmra.mrb[4].mxu0 %v2718_v18  ;;  %1514 = vmatpush1.bf16.msra.mxu1 %v2715_v17  ;;  %v2804_v17 = vld [vmem:[%s3910_s0 + $0x1b0] ss:$36 sps:$4 sm:$0xff]   ;;  %v2805_v18 = vld [vmem:[%s3911_s1 + $0x1c0] ss:$8 sps:$4 sm:$0xff]  }
  0x4c   :  { %1740 = vmatpush1.bf16.msra.mxu0 %v3229_v19  ;;  %1515 = vmatprep.subr.bf16.mxu1 %v2724_v20  ;;  %v2808_v20 = vld [vmem:[%s3910_s0 + $0x1c0] ss:$36 sps:$4 sm:$0xff]  }
  0x4d   :  { %1741 = vmatprep.subr.bf16.mxu0 %v3239_v21  ;;  %1448 = vmatprep.mubr.bf16.mxu1 %v2728_v22  ;;  %v3469_v22 = vld [vmem:[%s3911_s1 + $0x3c0] ss:$8 sps:$4 sm:$0xff]  }
  0x4e   :  { %1674 = vmatprep.mubr.bf16.mxu0 %v2730_v23  ;;  %v2814_v23 = vld [vmem:[%s3911_s1 + $0x1d4] ss:$8 sps:$4 sm:$0xff]  }
  0x4f   :  { %1516 = vmatpush1.bf16.msra.mxu1 %v2722_v24  ;;  %v3479_v24 = vld [vmem:[%s3911_s1 + $0x3d4] ss:$8 sps:$4 sm:$0xff]  }
  0x50   :  { %1742 = vmatpush1.bf16.msra.mxu0 %v3254_v25  ;;  %1517 = vmatprep.subr.bf16.mxu1 %v2735_v26  ;;  %v2818_v26 = vld [vmem:[%s3910_s0 + $0x1fc] ss:$36 sps:$4 sm:$0xff]  }
  0x51   :  { %1743 = vmatprep.subr.bf16.mxu0 %v3263_v27 }
  0x52   :  { %1449 = vmatmul.mubr.bf16.gmra.mrb[8].mxu1 %v2732_v28  ;;  %v2820_v28 = vld [vmem:[%s3910_s0 + $0x20c] ss:$36 sps:$4 sm:$0xff]  }
  0x53   :  { %1675 = vmatmul.mubr.bf16.gmra.mrb[8].mxu0 %v2736_v30  ;;  %1518 = vmatpush1.bf16.msra.mxu1 %v2733_v29  ;;  %v2812_v29 = vld [vmem:[%s3911_s1 + $0x1d0] ss:$8 sps:$4 sm:$0xff]  }
  0x54   :  { %1744 = vmatpush1.bf16.msra.mxu0 %v3277_v31  ;;  %1519 = vmatprep.subr.bf16.mxu1 %v2742_v32  ;;  %v3493_v30 = vld [vmem:[%s3911_s1 + $0x3d0] ss:$8 sps:$4 sm:$0xff]   ;;  %v2825_v32 = vld [vmem:[%s3911_s1 + $0x1e4] ss:$8 sps:$4 sm:$0xff]  }
  0x55   :  { %1745 = vmatprep.subr.bf16.mxu0 %v3287_v33  ;;  %1458 = vmatprep.mubr.bf16.mxu1 %v2746_v34  ;;  %v3503_v34 = vld [vmem:[%s3911_s1 + $0x3e4] ss:$8 sps:$4 sm:$0xff]  }
  0x56   :  { %1684 = vmatprep.mubr.bf16.mxu0 %v2748_v35  ;;  %v2822_v35 = vld [vmem:[%s3910_s0 + $0x1f8] ss:$36 sps:$4 sm:$0xff]  }
  0x57   :  { %1520 = vmatpush1.bf16.msra.mxu1 %v2740_v36  ;;  %v2823_v36 = vld [vmem:[%s3911_s1 + $0x1e0] ss:$8 sps:$4 sm:$0xff]  }
  0x58   :  { %1746 = vmatpush1.bf16.msra.mxu0 %v3302_v37  ;;  %1521 = vmatprep.subr.bf16.mxu1 %v2753_v38  ;;  %v2826_v38 = vld [vmem:[%s3910_s0 + $0x208] ss:$36 sps:$4 sm:$0xff]  }
  0x59   :  { %1747 = vmatprep.subr.bf16.mxu0 %v3311_v39 }
  0x5a   :  { %1459 = vmatmul.mubr.bf16.gmra.mrb[12].mxu1 %v2750_v40  ;;  %v3517_v40 = vld [vmem:[%s3911_s1 + $0x3e0] ss:$8 sps:$4 sm:$0xff]  }
  0x5b   :  { %1685 = vmatmul.mubr.bf16.gmra.mrb[12].mxu0 %v2754_v42  ;;  %1522 = vmatpush1.bf16.msra.mxu1 %v2751_v41  ;;  %v2832_v41 = vld [vmem:[%s3911_s1 + $0x1f4] ss:$8 sps:$4 sm:$0xff]  }
  0x5c   :  { %1748 = vmatpush1.bf16.msra.mxu0 %v3325_v43  ;;  %1523 = vmatprep.subr.bf16.mxu1 %v2760_v44  ;;  %v3527_v42 = vld [vmem:[%s3911_s1 + $0x3f4] ss:$8 sps:$4 sm:$0xff]   ;;  %v2838_v44 = vld [vmem:[%s3910_s0 + $0xc] ss:$36 sps:$4 sm:$0xff]  }
  0x5d   :  { %1749 = vmatprep.subr.bf16.mxu0 %v3335_v45  ;;  %1468 = vmatprep.mubr.bf16.mxu1 %v2764_v46  ;;  %v2841_v46 = vld [vmem:[%s3910_s0 + $0x1c] ss:$36 sps:$4 sm:$0xff]  }
  0x5e   :  { %1694 = vmatprep.mubr.bf16.mxu0 %v2766_v47  ;;  %v2830_v47 = vld [vmem:[%s3911_s1 + $0x1f0] ss:$8 sps:$4 sm:$0xff]  }
  0x5f   :  { %1524 = vmatpush1.bf16.msra.mxu1 %v2758_v48  ;;  %v3542_v48 = vld [vmem:[%s3911_s1 + $0x3f0] ss:$8 sps:$4 sm:$0xff]  }
  0x60   :  { %1750 = vmatpush1.bf16.msra.mxu0 %v3350_v49  ;;  %1525 = vmatprep.subr.bf16.mxu1 %v2771_v50  ;;  %v2844_v50 = vld [vmem:[%s3911_s1 + $0x404] ss:$8 sps:$4 sm:$0xff]  }
  0x61   :  { %1751 = vmatprep.subr.bf16.mxu0 %v3359_v51 }
  0x62   :  { %1469 = vmatmul.mubr.bf16.gmra.mrb[16].mxu1 %v2768_v52  ;;  %v2836_v52 = vld [vmem:[%s3910_s0 + $0x8] ss:$36 sps:$4 sm:$0xff]  }
  0x63   :  { %1695 = vmatmul.mubr.bf16.gmra.mrb[16].mxu0 %v2772_v54  ;;  %1526 = vmatpush1.bf16.msra.mxu1 %v2769_v53  ;;  %v2839_v53 = vld [vmem:[%s3910_s0 + $0x18] ss:$36 sps:$4 sm:$0xff]   ;;  %v2842_v54 = vld [vmem:[%s3911_s1 + $0x400] ss:$8 sps:$4 sm:$0xff]  }
  0x64   :  { %1752 = vmatpush1.bf16.msra.mxu0 %v3373_v55  ;;  %1527 = vmatprep.subr.bf16.mxu1 %v2778_v56  ;;  %v2847_v56 = vld [vmem:[%s3911_s1 + $0x414] ss:$8 sps:$4 sm:$0xff]  }
  0x65   :  { %1753 = vmatprep.subr.bf16.mxu0 %v3383_v57  ;;  %1478 = vmatprep.mubr.bf16.mxu1 %v2782_v58  ;;  %v2848_v58 = vld [vmem:[%s3910_s0 + $0x54] ss:$36 sps:$4 sm:$0xff]  }
  0x66   :  { %1704 = vmatprep.mubr.bf16.mxu0 %v2784_v59  ;;  %v2850_v59 = vld [vmem:[%s3910_s0 + $0x64] ss:$36 sps:$4 sm:$0xff]  }
  0x67   :  { %1528 = vmatpush1.bf16.msra.mxu1 %v2776_v60  ;;  %v2845_v60 = vld [vmem:[%s3911_s1 + $0x410] ss:$8 sps:$4 sm:$0xff]  }
  0x68   :  { %1754 = vmatpush1.bf16.msra.mxu0 %v3398_v61  ;;  %1529 = vmatprep.subr.bf16.mxu1 %v2789_v62  ;;  %v2852_v62 = vld [vmem:[%s3910_s0 + $0x50] ss:$36 sps:$4 sm:$0xff]  }
  0x69   :  { %1755 = vmatprep.subr.bf16.mxu0 %v3407_v63 }
  0x6a   :  { %1479 = vmatmul.mubr.bf16.gmra.mrb[20].mxu1 %v2786_v0  ;;  %v2859_v0 = vld [vmem:[%s3911_s1 + $0x434] ss:$8 sps:$4 sm:$0xff]  }
  0x6b   :  { %1705 = vmatmul.mubr.bf16.gmra.mrb[20].mxu0 %v2790_v2  ;;  %1530 = vmatpush1.bf16.msra.mxu1 %v2787_v1  ;;  %v2860_v1 = vld [vmem:[%s3910_s0 + $0x9c] ss:$36 sps:$4 sm:$0xff]   ;;  %v2868_v2 = vld [vmem:[%s3911_s1 + $0x444] ss:$8 sps:$4 sm:$0xff]  }
  0x6c   :  { %1756 = vmatpush1.bf16.msra.mxu0 %v3421_v4  ;;  %1531 = vmatprep.subr.bf16.mxu1 %v2796_v5  ;;  %v2864_v5 = vld [vmem:[%s3910_s0 + $0x98] ss:$36 sps:$4 sm:$0xff]  }
  0x6d   :  { %1757 = vmatprep.subr.bf16.mxu0 %v3431_v6  ;;  %1488 = vmatprep.mubr.bf16.mxu1 %v2800_v8  ;;  %v2871_v8 = vld [vmem:[%s3911_s1 + $0x454] ss:$8 sps:$4 sm:$0xff]  }
  0x6e   :  { %1714 = vmatprep.mubr.bf16.mxu0 %v2802_v10  ;;  %v2872_v10 = vld [vmem:[%s3910_s0 + $0xe4] ss:$36 sps:$4 sm:$0xff]  }
  0x6f   :  { %1532 = vmatpush1.bf16.msra.mxu1 %v2794_v11 }
  0x70   :  { %1758 = vmatpush1.bf16.msra.mxu0 %v3445_v12  ;;  %1533 = vmatprep.subr.bf16.mxu1 %v2807_v14 }
  0x71   :  { %1759 = vmatprep.subr.bf16.mxu0 %v3455_v16 }
  0x72   :  { %1489 = vmatmul.mubr.bf16.gmra.mrb[24].mxu1 %v2804_v17 }
  0x73   :  { %1715 = vmatmul.mubr.bf16.gmra.mrb[24].mxu0 %v2808_v20  ;;  %1534 = vmatpush1.bf16.msra.mxu1 %v2805_v18 }
  0x74   :  { %1760 = vmatpush1.bf16.msra.mxu0 %v3469_v22  ;;  %1535 = vmatprep.subr.bf16.mxu1 %v2814_v23 }
  0x75   :  { %1761 = vmatprep.subr.bf16.mxu0 %v3479_v24  ;;  %1498 = vmatprep.mubr.bf16.mxu1 %v2818_v26 }
  0x76   :  { %1724 = vmatprep.mubr.bf16.mxu0 %v2820_v28 }
  0x77   :  { %1536 = vmatpush1.bf16.msra.mxu1 %v2812_v29 }
  0x78   :  { %1762 = vmatpush1.bf16.msra.mxu0 %v3493_v30  ;;  %1537 = vmatprep.subr.bf16.mxu1 %v2825_v32 }
  0x79   :  { %1763 = vmatprep.subr.bf16.mxu0 %v3503_v34 }
  0x7a   :  { %1499 = vmatmul.mubr.bf16.gmra.mrb[28].mxu1 %v2822_v35 }
  0x7b   :  { %1725 = vmatmul.mubr.bf16.gmra.mrb[28].mxu0 %v2826_v38  ;;  %1538 = vmatpush1.bf16.msra.mxu1 %v2823_v36 }
  0x7c   :  { %1764 = vmatpush1.bf16.msra.mxu0 %v3517_v40  ;;  %1539 = vmatprep.subr.bf16.mxu1 %v2832_v41 }
  0x7d   :  { %1765 = vmatprep.subr.bf16.mxu0 %v3527_v42  ;;  %1541 = vmatprep.mubr.bf16.mxu1 %v2838_v44 }
  0x7e   :  { %1767 = vmatprep.mubr.bf16.mxu0 %v2841_v46 }
  0x7f   :  { %1540 = vmatpush1.bf16.msra.mxu1 %v2830_v47 }
  0x80   :  { %1766 = vmatpush1.bf16.msra.mxu0 %v3542_v48  ;;  %2432 = vmatprep.subr.bf16.mxu1 %v3168_v3  ;;  %v2856_v3 = vld [vmem:[%s3911_s1 + $0x424] ss:$8 sps:$4 sm:$0xff]  }
  0x81   :  { %1848 = vmatprep.subr.bf16.mxu0 %v2844_v50 }
  0x82   :  { %1542 = vmatmul.mubr.bf16.vlgmr.msra.gmra.mrb[0].mxu1 %v2836_v52 }
  0x83   :  { %1768 = vmatmul.mubr.bf16.vlgmr.msra.gmra.mrb[0].mxu0 %v2839_v53  ;;  %2448 = vmatpush1.bf16.msra.mxu1 %v3182_v7  ;;  %v2853_v7 = vld [vmem:[%s3910_s0 + $0x60] ss:$36 sps:$4 sm:$0xff]  }
  0x84   :  { %1849 = vmatpush1.bf16.msra.mxu0 %v2842_v54  ;;  %2433 = vmatprep.subr.bf16.mxu1 %v3191_v9  ;;  %v2854_v9 = vld [vmem:[%s3911_s1 + $0x420] ss:$8 sps:$4 sm:$0xff]  }
  0x85   :  { %1850 = vmatprep.subr.bf16.mxu0 %v2847_v56  ;;  %1551 = vmatprep.mubr.bf16.mxu1 %v2848_v58 }
  0x86   :  { %1777 = vmatprep.mubr.bf16.mxu0 %v2850_v59 }
  0x87   :  { %2449 = vmatpush1.bf16.msra.mxu1 %v3206_v13  ;;  %v2862_v13 = vld [vmem:[%s3910_s0 + $0xac] ss:$36 sps:$4 sm:$0xff]  }
  0x88   :  { %1851 = vmatpush1.bf16.msra.mxu0 %v2845_v60  ;;  %2434 = vmatprep.subr.bf16.mxu1 %v3215_v15  ;;  %v2857_v15 = vld [vmem:[%s3911_s1 + $0x430] ss:$8 sps:$4 sm:$0xff]  }
  0x89   :  { %1852 = vmatprep.subr.bf16.mxu0 %v2856_v3 }
  0x8a   :  { %1552 = vmatmul.mubr.bf16.gmra.mrb[4].mxu1 %v2852_v62 }
  0x8b   :  { %1778 = vmatmul.mubr.bf16.gmra.mrb[4].mxu0 %v2853_v7  ;;  %2450 = vmatpush1.bf16.msra.mxu1 %v3229_v19  ;;  %v2865_v19 = vld [vmem:[%s3910_s0 + $0xa8] ss:$36 sps:$4 sm:$0xff]  }
  0x8c   :  { %1853 = vmatpush1.bf16.msra.mxu0 %v2854_v9  ;;  %2435 = vmatprep.subr.bf16.mxu1 %v3239_v21  ;;  %v2866_v21 = vld [vmem:[%s3911_s1 + $0x440] ss:$8 sps:$4 sm:$0xff]  }
  0x8d   :  { %1854 = vmatprep.subr.bf16.mxu0 %v2859_v0  ;;  %1561 = vmatprep.mubr.bf16.mxu1 %v2860_v1 }
  0x8e   :  { %1787 = vmatprep.mubr.bf16.mxu0 %v2862_v13 }
  0x8f   :  { %2451 = vmatpush1.bf16.msra.mxu1 %v3254_v25  ;;  %v2874_v25 = vld [vmem:[%s3910_s0 + $0xf4] ss:$36 sps:$4 sm:$0xff]  }
  0x90   :  { %1855 = vmatpush1.bf16.msra.mxu0 %v2857_v15  ;;  %2436 = vmatprep.subr.bf16.mxu1 %v3263_v27 }
  0x91   :  { %1856 = vmatprep.subr.bf16.mxu0 %v2868_v2 }
  0x92   :  { %8 = vsyncpa [#allocation4], 0  ;;  %1562 = vmatmul.mubr.bf16.gmra.mrb[8].mxu1 %v2864_v5  ;;  %v2869_v27 = vld [vmem:[%s3911_s1 + $0x450] ss:$8 sps:$4 sm:$0xff]   ;;  %v2880_v11 = vld [vmem:[%s3911_s1 + $0x464] ss:$8 sps:$4 sm:$0xff]  }
  0x93   :  { %1788 = vmatmul.mubr.bf16.gmra.mrb[8].mxu0 %v2865_v19  ;;  %2452 = vmatpush1.bf16.msra.mxu1 %v3277_v31  ;;  %v2876_v14 = vld [vmem:[%s3910_s0 + $0xe0] ss:$36 sps:$4 sm:$0xff]   ;;  %v2877_v31 = vld [vmem:[%s3910_s0 + $0xf0] ss:$36 sps:$4 sm:$0xff]   ;;  %v2886_v20 = vld [vmem:[%s3910_s0 + $0x128] ss:$36 sps:$4 sm:$0xff]  }
  0x94   :  { %1857 = vmatpush1.bf16.msra.mxu0 %v2866_v21  ;;  %2437 = vmatprep.subr.bf16.mxu1 %v3287_v33  ;;  %v2878_v33 = vld [vmem:[%s3911_s1 + $0x460] ss:$8 sps:$4 sm:$0xff]   ;;  %v2883_v17 = vld [vmem:[%s3911_s1 + $0x474] ss:$8 sps:$4 sm:$0xff]   ;;  %v2884_v18 = vld [vmem:[%s3910_s0 + $0x12c] ss:$36 sps:$4 sm:$0xff]   ;;  %v2062_v21 = vlaneseq }
  0x95   :  { %1858 = vmatprep.subr.bf16.mxu0 %v2871_v8  ;;  %1571 = vmatprep.mubr.bf16.mxu1 %v2872_v10  ;;  %v2891_v23 = vld [vmem:[%s3910_s0 + $0x68] ss:$36 sps:$4 sm:$0xff]   ;;  %v2912_v32 = vld [vmem:[%s3910_s0 + $0x214] ss:$36 sps:$4 sm:$0xff]  }
  0x96   :  { %1797 = vmatprep.mubr.bf16.mxu0 %v2874_v25  ;;  %v2907_v26 = vld [vmem:[%s3910_s0 + $0x188] ss:$36 sps:$4 sm:$0xff]   ;;  %v2915_v35 = vld [vmem:[%s3910_s0 + $0x218] ss:$36 sps:$4 sm:$0xff]   ;;  %v2063_v8 = vshrl.u32 %v2062_v21, 7 }
  0x97   :  { %2453 = vmatpush1.bf16.msra.mxu1 %v3302_v37  ;;  %v2881_v37 = vld [vmem:[%s3911_s1 + $0x470] ss:$8 sps:$4 sm:$0xff]   ;;  %v2910_v29 = vld [vmem:[%s3910_s0 + $0x1c8] ss:$36 sps:$4 sm:$0xff]  }
  0x98   :  { %1859 = vmatpush1.bf16.msra.mxu0 %v2869_v27  ;;  %2438 = vmatprep.subr.bf16.mxu1 %v3311_v39  ;;  %v2940_v39 = vmov 0   ;;  %v2908_v28 = vld [vmem:[%s3910_s0 + $0x1cc] ss:$36 sps:$4 sm:$0xff]  }
  0x99   :  { %1860 = vmatprep.subr.bf16.mxu0 %v2880_v11 }
  0x9a   :  { %1572 = vmatmul.mubr.bf16.gmra.mrb[12].mxu1 %v2876_v14  ;;  %v2064_v14 = vsub.s32 0, %v2063_v8 }
  0x9b   :  { %1798 = vmatmul.mubr.bf16.gmra.mrb[12].mxu0 %v2877_v31  ;;  %2454 = vmatpush1.bf16.msra.mxu1 %v3325_v43  ;;  %v2887_v43 = vld [vmem:[%s3910_s0 + $0x20] ss:$36 sps:$4 sm:$0xff]  }
  0x9c   :  { %1861 = vmatpush1.bf16.msra.mxu0 %v2878_v33  ;;  %2439 = vmatprep.subr.bf16.mxu1 %v3335_v45  ;;  %v2888_v45 = vld [vmem:[%s3910_s0 + $0x174] ss:$36 sps:$4 sm:$0xff]   ;;  %v2060_v31 = vld [vmem:[%s3912_s2] sm:$0x3]  ;;  %v2068_v33 = vsub.s32 1, %v2063_v8  ;;  %s2941_s2 = smov [#allocation3]  }
  0x9d   :  { %1862 = vmatprep.subr.bf16.mxu0 %v2883_v17  ;;  %1581 = vmatprep.mubr.bf16.mxu1 %v2884_v18  ;;  %v3793_v17 = vrot.slane %v2060_v31, %v2064_v14  ;;  %s2205_s11 = sshll.u32 %s2941_s2, 4  ;;  %s2206_s11 = int_to_ptr.vmem [resolvable:$true] %s2205_s11 }
  0x9e   :  { %1880 = vmatprep.mubr.bf16.mxu0 %v2940_v39  ;;  %s2916_s12 = scalar_lea.vmem %s2206_s11, 4096  ;;  %p2921_p1 = scmp.lt.s32.totalorder %s2206_s11, %s2206_s11 }
  0x9f   :  { %2455 = vmatpush1.bf16.msra.mxu1 %v3350_v49  ;;  %v2890_v49 = vld [vmem:[%s3910_s0 + $0x170] ss:$36 sps:$4 sm:$0xff]   ;;  %p2917_p0 = scmp.ne.s32.totalorder %s2206_s11, %s2916_s12  ;;  %p2922_p2 = scmp.lt.s32.totalorder %s2916_s12, %s2916_s12 }
  0xa0   :  { %1863 = vmatpush1.bf16.msra.mxu0 %v2881_v37  ;;  %2440 = vmatprep.subr.bf16.mxu1 %v3359_v51  ;;  %v2892_v51 = vld [vmem:[%s3910_s0 + $0x1bc] ss:$36 sps:$4 sm:$0xff]  }
  0xa1   :  { %p2923_p3 = por %p2922_p2, %p2921_p1 }
  0xa2   :  { %1582 = vmatmul.mubr.bf16.gmra.mrb[16].mxu1 %v2886_v20 }
  0xa3   :  { %1881 = vmatmul.mubr.bf16.vlgmr.msra.gmra.mrb[0].mxu0 %v2887_v43  ;;  %2456 = vmatpush1.bf16.msra.mxu1 %v3373_v55  ;;  %v2894_v55 = vld [vmem:[%s3910_s0 + $0x1b8] ss:$36 sps:$4 sm:$0xff]   ;;  %p2924_p4 = pnand %p2923_p3, %p2917_p0 }
  0xa4   :  { %1591 = vmatprep.mubr.bf16.mxu1 %v2888_v45  ;;  %2441 = vmatprep.subr.bf16.mxu1 %v3383_v57  ;;  %v2895_v57 = vld [vmem:[%s3910_s0 + $0xb0] ss:$36 sps:$4 sm:$0xff]  }
  0xa5   :  { %1890 = vmatprep.mubr.bf16.mxu0 %v2940_v39 }
  0xa7   :  { %2457 = vmatpush1.bf16.msra.mxu1 %v3398_v61  ;;  %v2896_v61 = vld [vmem:[%s3910_s0 + $0x204] ss:$36 sps:$4 sm:$0xff]  }
  0xa8   :  { %2442 = vmatprep.subr.bf16.mxu1 %v3407_v63  ;;  %v2898_v63 = vld [vmem:[%s3910_s0 + $0x200] ss:$36 sps:$4 sm:$0xff]  }
  0xaa   :  { %1592 = vmatmul.mubr.bf16.gmra.mrb[20].mxu1 %v2890_v49 }
  0xab   :  { %1891 = vmatmul.mubr.bf16.gmra.mrb[4].mxu0 %v2891_v23  ;;  %2458 = vmatpush1.bf16.msra.mxu1 %v3421_v4  ;;  %v2899_v4 = vld [vmem:[%s3910_s0 + $0xf8] ss:$36 sps:$4 sm:$0xff]  }
  0xac   :  { %1601 = vmatprep.mubr.bf16.mxu1 %v2892_v51  ;;  %2443 = vmatprep.subr.bf16.mxu1 %v3431_v6  ;;  %v2902_v6 = vld [vmem:[%s3910_s0 + $0x13c] ss:$36 sps:$4 sm:$0xff]  }
  0xad   :  { %1900 = vmatprep.mubr.bf16.mxu0 %v2940_v39 }
  0xaf   :  { %2459 = vmatpush1.bf16.msra.mxu1 %v3445_v12  ;;  %v2900_v12 = vld [vmem:[%s3910_s0 + $0x138] ss:$36 sps:$4 sm:$0xff]  }
  0xb0   :  { %2444 = vmatprep.subr.bf16.mxu1 %v3455_v16  ;;  %v2903_v16 = vld [vmem:[%s3910_s0 + $0x140] ss:$36 sps:$4 sm:$0xff]  }
  0xb2   :  { %1602 = vmatmul.mubr.bf16.gmra.mrb[24].mxu1 %v2894_v55 }
  0xb3   :  { %1901 = vmatmul.mubr.bf16.gmra.mrb[8].mxu0 %v2895_v57  ;;  %2460 = vmatpush1.bf16.msra.mxu1 %v3469_v22  ;;  %v2904_v22 = vld [vmem:[%s3910_s0 + $0x184] ss:$36 sps:$4 sm:$0xff]  }
  0xb4   :  { %1611 = vmatprep.mubr.bf16.mxu1 %v2896_v61  ;;  %2445 = vmatprep.subr.bf16.mxu1 %v3479_v24  ;;  %v2906_v24 = vld [vmem:[%s3910_s0 + $0x180] ss:$36 sps:$4 sm:$0xff]  }
  0xb5   :  { %1910 = vmatprep.mubr.bf16.mxu0 %v2940_v39 }
  0xb7   :  { %2461 = vmatpush1.bf16.msra.mxu1 %v3493_v30  ;;  %v2911_v30 = vld [vmem:[%s3910_s0 + $0x1d0] ss:$36 sps:$4 sm:$0xff]  }
  0xb8   :  { %2446 = vmatprep.subr.bf16.mxu1 %v3503_v34  ;;  %v2914_v34 = vld [vmem:[%s3910_s0 + $0x210] ss:$36 sps:$4 sm:$0xff]  }
  0xba   :  { %1612 = vmatmul.mubr.bf16.gmra.mrb[28].mxu1 %v2898_v63 }
  0xbb   :  { %1911 = vmatmul.mubr.bf16.gmra.mrb[12].mxu0 %v2899_v4  ;;  %2462 = vmatpush1.bf16.msra.mxu1 %v3517_v40 }
  0xbc   :  { %1807 = vmatprep.mubr.bf16.mxu1 %v2902_v6  ;;  %2447 = vmatprep.subr.bf16.mxu1 %v3527_v42 }
  0xbd   :  { %1920 = vmatprep.mubr.bf16.mxu0 %v2940_v39 }
  0xbf   :  { %2463 = vmatpush1.bf16.msra.mxu1 %v3542_v48 }
  0xc2   :  { %1808 = vmatmul.mubr.bf16.vlgmr.msra.gmra.mrb[32].mxu1 %v2900_v12 }
  0xc3   :  { %1921 = vmatmul.mubr.bf16.gmra.mrb[32].mxu0 %v2903_v16  ;;  %1817 = vmatprep.mubr.bf16.mxu1 %v2904_v22 }
  0xc4   :  { %1930 = vmatprep.mubr.bf16.mxu0 %v2940_v39 }
  0xca   :  { %1818 = vmatmul.mubr.bf16.gmra.mrb[36].mxu1 %v2906_v24 }
  0xcb   :  { %1931 = vmatmul.mubr.bf16.gmra.mrb[36].mxu0 %v2907_v26  ;;  %1827 = vmatprep.mubr.bf16.mxu1 %v2908_v28 }
  0xcc   :  { %1940 = vmatprep.mubr.bf16.mxu0 %v2940_v39 }
  0xd2   :  { %1828 = vmatmul.mubr.bf16.gmra.mrb[40].mxu1 %v2910_v29 }
  0xd3   :  { %1941 = vmatmul.mubr.bf16.gmra.mrb[40].mxu0 %v2911_v30  ;;  %1837 = vmatprep.mubr.bf16.mxu1 %v2912_v32 }
  0xd4   :  { %1950 = vmatprep.mubr.bf16.mxu0 %v2940_v39  ;;  %v3795_v39 = vrot.slane %v2060_v31, %v2068_v33 }
  0xda   :  { %1838 = vmatmul.mubr.bf16.gmra.mrb[44].mxu1 %v2914_v34 }
  0xdb   :  { %1951 = vmatmul.mubr.bf16.gmra.mrb[44].mxu0 %v2915_v35 }
 0x136   :  { %v1696_v36 = vpop.f32.mrb[16].mxu0 }
 0x137   :  { %v1698_v38 = vpop.f32.mrb[17].mxu0 }
 0x138   :  { %v1700_v40 = vpop.f32.mrb[18].mxu0 }
 0x139   :  { %v1702_v41 = vpop.f32.mrb[19].mxu0 }
 0x13e   :  { %v3748_v42 = vpop.f32.mrb[20].mxu0 }
 0x13f   :  { %v3750_v44 = vpop.f32.mrb[21].mxu0 }
 0x140   :  { %v3752_v46 = vpop.f32.mrb[22].mxu0 }
 0x141   :  { %v3754_v47 = vpop.f32.mrb[23].mxu0 }
 0x146   :  { %v3756_v48 = vpop.f32.mrb[24].mxu0 }
 0x147   :  { %v3758_v50 = vpop.f32.mrb[25].mxu0 }
 0x148   :  { %v3760_v52 = vpop.f32.mrb[26].mxu0 }
 0x149   :  { %v3762_v53 = vpop.f32.mrb[27].mxu0 }
 0x14e   :  { %v3764_v54 = vpop.f32.mrb[28].mxu0 }
 0x14f   :  { %v3766_v56 = vpop.f32.mrb[29].mxu0 }
 0x150   :  { %v3768_v58 = vpop.f32.mrb[30].mxu0 }
 0x151   :  { %v3770_v59 = vpop.f32.mrb[31].mxu0 }
 0x155   :  { %v1543_v60 = vpop.f32.mrb[0].mxu1 }
 0x156   :  { %v1545_v3 = vpop.f32.mrb[1].mxu1 }
 0x157   :  { %v1547_v62 = vpop.f32.mrb[2].mxu1 }
 0x158   :  { %v1549_v7 = vpop.f32.mrb[3].mxu1 }
 0x15d   :  { %v1553_v9 = vpop.f32.mrb[4].mxu1 }
 0x15e   :  { %v1555_v0 = vpop.f32.mrb[5].mxu1 }
 0x15f   :  { %v1557_v1 = vpop.f32.mrb[6].mxu1 }
 0x160   :  { %v3772_v13 = vpop.f32.mrb[7].mxu1 }
 0x165   :  { %v3774_v15 = vpop.f32.mrb[8].mxu1 }
 0x166   :  { %v3776_v2 = vpop.f32.mrb[9].mxu1 }
 0x167   :  { %v3778_v5 = vpop.f32.mrb[10].mxu1 }
 0x168   :  { %v3780_v19 = vpop.f32.mrb[11].mxu1 }
 0x16d   :  { %v3782_v10 = vpop.f32.mrb[12].mxu1 }
 0x16e   :  { %v3784_v25 = vpop.f32.mrb[13].mxu1 }
 0x16f   :  { %v3786_v27 = vpop.f32.mrb[14].mxu1 }
 0x170   :  { %v3788_v11 = vpop.f32.mrb[15].mxu1 }
 0x175   :  { %v1583_v18 = vpop.f32.mrb[16].mxu1 }
 0x176   :  { %v1882_v37 = vpop.f32.mrb[0].mxu0  ;;  %v3797_v20 = vadd.f32 %v1696_v36, %v1583_v18  ;;  %v1585_v45 = vpop.f32.mrb[17].mxu1 }
 0x177   :  { %v2464_v43 = vadd.f32 %v1882_v37, %v1543_v60  ;;  %v1884_v49 = vpop.f32.mrb[1].mxu0  ;;  %v3799_v23 = vadd.f32 %v1698_v38, %v1585_v45  ;;  %v1587_v55 = vpop.f32.mrb[18].mxu1 }
 0x178   :  { %v2465_v51 = vadd.f32 %v1884_v49, %v1545_v3  ;;  %v1886_v57 = vpop.f32.mrb[2].mxu0  ;;  %v3802_v63 = vadd.f32 %v1700_v40, %v1587_v55  ;;  %v1589_v6 = vpop.f32.mrb[19].mxu1 }
 0x179   :  { %v2072_v61 = vadd.f32 %v2464_v43, %v3793_v17  ;;  %v2466_v4 = vadd.f32 %v1886_v57, %v1547_v62  ;;  %v1888_v12 = vpop.f32.mrb[3].mxu0  ;;  %v3805_v22 = vadd.f32 %v1702_v41, %v1589_v6 }
 0x17a   :  { %v2073_v16 = vadd.f32 %v2465_v51, %v3795_v39  ;;  %v2467_v24 = vadd.f32 %v1888_v12, %v1549_v7 }
 0x17b   :  { %v2104_v26 = vmul.f32 0.1, %v2072_v61  ;;  %v2074_v28 = vadd.f32 %v2466_v4, %v3793_v17 }
 0x17c   :  { %v2105_v29 = vmul.f32 0.1, %v2073_v16  ;;  %v2075_v30 = vadd.f32 %v2467_v24, %v3795_v39 }
 0x17d   :  { %v2136_v32 = vmax.f32 %v2072_v61, %v2104_v26  ;;  %v2106_v34 = vmul.f32 0.1, %v2074_v28  ;;  %v1593_v38 = vpop.f32.mrb[20].mxu1 }
 0x17e   :  { %v2137_v35 = vmax.f32 %v2073_v16, %v2105_v29  ;;  %v2107_v36 = vmul.f32 0.1, %v2075_v30  ;;  %v1892_v40 = vpop.f32.mrb[4].mxu0  ;;  %v3810_v3 = vadd.f32 %v3748_v42, %v1593_v38  ;;  %v1595_v62 = vpop.f32.mrb[21].mxu1 }
 0x17f   :  { %2168 = vst [vmem:[#allocation3] sm:$0xff] %v2136_v32  ;;  %v2138_v60 = vmax.f32 %v2074_v28, %v2106_v34  ;;  %v2468_v41 = vadd.f32 %v1892_v40, %v1553_v9  ;;  %v1894_v7 = vpop.f32.mrb[5].mxu0  ;;  %v3813_v8 = vadd.f32 %v3750_v44, %v1595_v62  ;;  %v1597_v31 = vpop.f32.mrb[22].mxu1 }
 0x180   :  { %2169 = vst [vmem:[#allocation3 + $0x8] sm:$0xff] %v2137_v35  ;;  %v2139_v21 = vmax.f32 %v2075_v30, %v2107_v36  ;;  %v2469_v14 = vadd.f32 %v1894_v7, %v1555_v0  ;;  %v1896_v33 = vpop.f32.mrb[6].mxu0  ;;  %v3817_v37 = vadd.f32 %v3752_v46, %v1597_v31  ;;  %v1599_v42 = vpop.f32.mrb[23].mxu1 }
 0x181   :  { %2170 = vst [vmem:[#allocation3 + $0x10] sm:$0xff] %v2138_v60  ;;  %v2076_v18 = vadd.f32 %v2468_v41, %v3793_v17  ;;  %v2470_v43 = vadd.f32 %v1896_v33, %v1557_v1  ;;  %v1898_v45 = vpop.f32.mrb[7].mxu0  ;;  %v3821_v49 = vadd.f32 %v3754_v47, %v1599_v42 }
 0x182   :  { %2171 = vst [vmem:[#allocation3 + $0x18] sm:$0xff] %v2139_v21  ;;  %v2077_v9 = vadd.f32 %v2469_v14, %v3795_v39  ;;  %v2471_v44 = vadd.f32 %v1898_v45, %v3772_v13 }
 0x183   :  { %v2108_v0 = vmul.f32 0.1, %v2076_v18  ;;  %v2078_v51 = vadd.f32 %v2470_v43, %v3793_v17 }
 0x184   :  { %v2109_v55 = vmul.f32 0.1, %v2077_v9  ;;  %v2079_v57 = vadd.f32 %v2471_v44, %v3795_v39 }
 0x185   :  { %v2140_v61 = vmax.f32 %v2076_v18, %v2108_v0  ;;  %v2110_v46 = vmul.f32 0.1, %v2078_v51  ;;  %v1603_v6 = vpop.f32.mrb[24].mxu1 }
 0x186   :  { %v2141_v4 = vmax.f32 %v2077_v9, %v2109_v55  ;;  %v2111_v1 = vmul.f32 0.1, %v2079_v57  ;;  %v1902_v12 = vpop.f32.mrb[8].mxu0  ;;  %v3827_v24 = vadd.f32 %v3756_v48, %v1603_v6  ;;  %v1605_v13 = vpop.f32.mrb[25].mxu1 }
 0x187   :  { %2172 = vst [vmem:[#allocation3 + $0x20] sm:$0xff] %v2140_v61  ;;  %v2142_v16 = vmax.f32 %v2078_v51, %v2110_v46  ;;  %v2472_v47 = vadd.f32 %v1902_v12, %v3774_v15  ;;  %v1904_v26 = vpop.f32.mrb[9].mxu0  ;;  %v3831_v29 = vadd.f32 %v3758_v50, %v1605_v13  ;;  %v1607_v32 = vpop.f32.mrb[26].mxu1 }
 0x188   :  { %2173 = vst [vmem:[#allocation3 + $0x28] sm:$0xff] %v2141_v4  ;;  %v2143_v28 = vmax.f32 %v2079_v57, %v2111_v1  ;;  %v2473_v30 = vadd.f32 %v1904_v26, %v3776_v2  ;;  %v1906_v34 = vpop.f32.mrb[10].mxu0  ;;  %v3836_v36 = vadd.f32 %v3760_v52, %v1607_v32  ;;  %v1609_v15 = vpop.f32.mrb[27].mxu1 }
 0x189   :  { %2174 = vst [vmem:[#allocation3 + $0x30] sm:$0xff] %v2142_v16  ;;  %v2080_v35 = vadd.f32 %v2472_v47, %v3793_v17  ;;  %v2474_v48 = vadd.f32 %v1906_v34, %v3778_v5  ;;  %v1908_v38 = vpop.f32.mrb[11].mxu0  ;;  %v3841_v50 = vadd.f32 %v3762_v53, %v1609_v15 }
 0x18a   :  { %2175 = vst [vmem:[#allocation3 + $0x38] sm:$0xff] %v2143_v28  ;;  %v2081_v40 = vadd.f32 %v2473_v30, %v3795_v39  ;;  %v2475_v2 = vadd.f32 %v1908_v38, %v3780_v19 }
 0x18b   :  { %v2112_v60 = vmul.f32 0.1, %v2080_v35  ;;  %v2082_v41 = vadd.f32 %v2474_v48, %v3793_v17 }
 0x18c   :  { %v2113_v62 = vmul.f32 0.1, %v2081_v40  ;;  %v2083_v7 = vadd.f32 %v2475_v2, %v3795_v39 }
 0x18d   :  { %v2144_v52 = vmax.f32 %v2080_v35, %v2112_v60  ;;  %v2114_v21 = vmul.f32 0.1, %v2082_v41  ;;  %v1613_v31 = vpop.f32.mrb[28].mxu1 }
 0x18e   :  { %v2145_v14 = vmax.f32 %v2081_v40, %v2113_v62  ;;  %v2115_v5 = vmul.f32 0.1, %v2083_v7  ;;  %v1912_v33 = vpop.f32.mrb[12].mxu0  ;;  %v3847_v43 = vadd.f32 %v3764_v54, %v1613_v31  ;;  %v1615_v19 = vpop.f32.mrb[29].mxu1 }
 0x18f   :  { %2176 = vst [vmem:[#allocation3 + $0x40] sm:$0xff] %v2144_v52  ;;  %v2146_v18 = vmax.f32 %v2082_v41, %v2114_v21  ;;  %v2476_v53 = vadd.f32 %v1912_v33, %v3782_v10  ;;  %v1914_v42 = vpop.f32.mrb[13].mxu0  ;;  %v3851_v9 = vadd.f32 %v3766_v56, %v1615_v19  ;;  %v1617_v0 = vpop.f32.mrb[30].mxu1 }
 0x190   :  { %2177 = vst [vmem:[#allocation3 + $0x48] sm:$0xff] %v2145_v14  ;;  %v2147_v45 = vmax.f32 %v2083_v7, %v2115_v5  ;;  %v2477_v44 = vadd.f32 %v1914_v42, %v3784_v25  ;;  %v1916_v51 = vpop.f32.mrb[14].mxu0  ;;  %v3856_v57 = vadd.f32 %v3768_v58, %v1617_v0  ;;  %v1619_v10 = vpop.f32.mrb[31].mxu1 }
 0x191   :  { %2178 = vst [vmem:[#allocation3 + $0x50] sm:$0xff] %v2146_v18  ;;  %v2084_v55 = vadd.f32 %v2476_v53, %v3793_v17  ;;  %v2478_v54 = vadd.f32 %v1916_v51, %v3786_v27  ;;  %v1918_v61 = vpop.f32.mrb[15].mxu0  ;;  %v3861_v56 = vadd.f32 %v3770_v59, %v1619_v10 }
 0x192   :  { %2179 = vst [vmem:[#allocation3 + $0x58] sm:$0xff] %v2147_v45  ;;  %v2085_v46 = vadd.f32 %v2477_v44, %v3795_v39  ;;  %v2479_v25 = vadd.f32 %v1918_v61, %v3788_v11 }
 0x193   :  { %v2116_v4 = vmul.f32 0.1, %v2084_v55  ;;  %v2086_v1 = vadd.f32 %v2478_v54, %v3793_v17 }
 0x194   :  { %v2117_v6 = vmul.f32 0.1, %v2085_v46  ;;  %v2087_v12 = vadd.f32 %v2479_v25, %v3795_v39 }
 0x195   :  { %v2148_v58 = vmax.f32 %v2084_v55, %v2116_v4  ;;  %v2118_v16 = vmul.f32 0.1, %v2086_v1  ;;  %v1809_v13 = vpop.f32.mrb[32].mxu1 }
 0x196   :  { %v2149_v47 = vmax.f32 %v2085_v46, %v2117_v6  ;;  %v2119_v27 = vmul.f32 0.1, %v2087_v12  ;;  %v1922_v26 = vpop.f32.mrb[32].mxu0  ;;  %v2481_v30 = vadd.f32 %v3797_v20, %v1809_v13  ;;  %v1811_v59 = vpop.f32.mrb[33].mxu1 }
 0x197   :  { %2180 = vst [vmem:[#allocation3 + $0x60] sm:$0xff] %v2148_v58  ;;  %v2150_v28 = vmax.f32 %v2086_v1, %v2118_v16  ;;  %v1924_v32 = vpop.f32.mrb[33].mxu0  ;;  %v2484_v34 = vadd.f32 %v3799_v23, %v1811_v59  ;;  %v1813_v35 = vpop.f32.mrb[34].mxu1 }
 0x198   :  { %2181 = vst [vmem:[#allocation3 + $0x68] sm:$0xff] %v2149_v47  ;;  %v2151_v11 = vmax.f32 %v2087_v12, %v2119_v27  ;;  %v1926_v48 = vpop.f32.mrb[34].mxu0  ;;  %v2482_v15 = vadd.f32 %v2481_v30, %v1922_v26  ;;  %v2487_v38 = vadd.f32 %v3802_v63, %v1813_v35  ;;  %v1815_v40 = vpop.f32.mrb[35].mxu1 }
 0x199   :  { %2182 = vst [vmem:[#allocation3 + $0x70] sm:$0xff] %v2150_v28  ;;  %v1928_v2 = vpop.f32.mrb[35].mxu0  ;;  %v2485_v60 = vadd.f32 %v2484_v34, %v1924_v32  ;;  %v2490_v41 = vadd.f32 %v3805_v22, %v1815_v40 }
 0x19a   :  { %2183 = vst [vmem:[#allocation3 + $0x78] sm:$0xff] %v2151_v11  ;;  %v2088_v20 = vadd.f32 %v2482_v15, %v3793_v17  ;;  %v2488_v62 = vadd.f32 %v2487_v38, %v1926_v48 }
 0x19b   :  { %v2089_v7 = vadd.f32 %v2485_v60, %v3795_v39  ;;  %v2491_v52 = vadd.f32 %v2490_v41, %v1928_v2 }
 0x19c   :  { %v2120_v21 = vmul.f32 0.1, %v2088_v20  ;;  %v2090_v23 = vadd.f32 %v2488_v62, %v3793_v17 }
 0x19d   :  { %v2121_v14 = vmul.f32 0.1, %v2089_v7  ;;  %v2091_v5 = vadd.f32 %v2491_v52, %v3795_v39  ;;  %v1819_v31 = vpop.f32.mrb[36].mxu1 }
 0x19e   :  { %v1932_v63 = vpop.f32.mrb[36].mxu0  ;;  %v2152_v33 = vmax.f32 %v2088_v20, %v2120_v21  ;;  %v2122_v18 = vmul.f32 0.1, %v2090_v23  ;;  %v2493_v53 = vadd.f32 %v3810_v3, %v1819_v31  ;;  %v1821_v19 = vpop.f32.mrb[37].mxu1 }
 0x19f   :  { %v1934_v22 = vpop.f32.mrb[37].mxu0  ;;  %v2153_v42 = vmax.f32 %v2089_v7, %v2121_v14  ;;  %v2123_v45 = vmul.f32 0.1, %v2091_v5  ;;  %v2496_v44 = vadd.f32 %v3813_v8, %v1821_v19  ;;  %v1823_v0 = vpop.f32.mrb[38].mxu1 }
 0x1a0   :  { %v1936_v51 = vpop.f32.mrb[38].mxu0  ;;  %2184 = vst [vmem:[#allocation3 + $0x80] sm:$0xff] %v2152_v33  ;;  %v2154_v55 = vmax.f32 %v2090_v23, %v2122_v18  ;;  %v2494_v54 = vadd.f32 %v2493_v53, %v1932_v63  ;;  %v2499_v10 = vadd.f32 %v3817_v37, %v1823_v0  ;;  %v1825_v61 = vpop.f32.mrb[39].mxu1 }
 0x1a1   :  { %v1938_v46 = vpop.f32.mrb[39].mxu0  ;;  %2185 = vst [vmem:[#allocation3 + $0x88] sm:$0xff] %v2153_v42  ;;  %v2155_v25 = vmax.f32 %v2091_v5, %v2123_v45  ;;  %v2497_v4 = vadd.f32 %v2496_v44, %v1934_v22  ;;  %v2502_v3 = vadd.f32 %v3821_v49, %v1825_v61 }
 0x1a2   :  { %2186 = vst [vmem:[#allocation3 + $0x90] sm:$0xff] %v2154_v55  ;;  %v2092_v1 = vadd.f32 %v2494_v54, %v3793_v17  ;;  %v2500_v6 = vadd.f32 %v2499_v10, %v1936_v51 }
 0x1a3   :  { %2187 = vst [vmem:[#allocation3 + $0x98] sm:$0xff] %v2155_v25  ;;  %v2093_v8 = vadd.f32 %v2497_v4, %v3795_v39  ;;  %v2503_v12 = vadd.f32 %v2502_v3, %v1938_v46 }
 0x1a4   :  { %v2124_v58 = vmul.f32 0.1, %v2092_v1  ;;  %v2094_v16 = vadd.f32 %v2500_v6, %v3793_v17 }
 0x1a5   :  { %v2125_v47 = vmul.f32 0.1, %v2093_v8  ;;  %v2095_v37 = vadd.f32 %v2503_v12, %v3795_v39  ;;  %v1829_v27 = vpop.f32.mrb[40].mxu1 }
 0x1a6   :  { %v1942_v13 = vpop.f32.mrb[40].mxu0  ;;  %v2156_v26 = vmax.f32 %v2092_v1, %v2124_v58  ;;  %v2126_v28 = vmul.f32 0.1, %v2094_v16  ;;  %v2505_v49 = vadd.f32 %v3827_v24, %v1829_v27  ;;  %v1831_v30 = vpop.f32.mrb[41].mxu1 }
 0x1a7   :  { %v1944_v59 = vpop.f32.mrb[41].mxu0  ;;  %v2157_v32 = vmax.f32 %v2093_v8, %v2125_v47  ;;  %v2127_v11 = vmul.f32 0.1, %v2095_v37  ;;  %v2508_v34 = vadd.f32 %v3831_v29, %v1831_v30  ;;  %v1833_v35 = vpop.f32.mrb[42].mxu1 }
 0x1a8   :  { %v1946_v48 = vpop.f32.mrb[42].mxu0  ;;  %2188 = vst [vmem:[#allocation3 + $0xa0] sm:$0xff] %v2156_v26  ;;  %v2158_v15 = vmax.f32 %v2094_v16, %v2126_v28  ;;  %v2506_v38 = vadd.f32 %v2505_v49, %v1942_v13  ;;  %v2511_v40 = vadd.f32 %v3836_v36, %v1833_v35  ;;  %v1835_v2 = vpop.f32.mrb[43].mxu1 }
 0x1a9   :  { %v1948_v60 = vpop.f32.mrb[43].mxu0  ;;  %2189 = vst [vmem:[#allocation3 + $0xa8] sm:$0xff] %v2157_v32  ;;  %v2159_v41 = vmax.f32 %v2095_v37, %v2127_v11  ;;  %v2509_v20 = vadd.f32 %v2508_v34, %v1944_v59  ;;  %v2514_v24 = vadd.f32 %v3841_v50, %v1835_v2 }
 0x1aa   :  { %2190 = vst [vmem:[#allocation3 + $0xb0] sm:$0xff] %v2158_v15  ;;  %v2096_v62 = vadd.f32 %v2506_v38, %v3793_v17  ;;  %v2512_v7 = vadd.f32 %v2511_v40, %v1946_v48 }
 0x1ab   :  { %2191 = vst [vmem:[#allocation3 + $0xb8] sm:$0xff] %v2159_v41  ;;  %v2097_v29 = vadd.f32 %v2509_v20, %v3795_v39  ;;  %v2515_v52 = vadd.f32 %v2514_v24, %v1948_v60 }
 0x1ac   :  { %v2128_v21 = vmul.f32 0.1, %v2096_v62  ;;  %v2098_v23 = vadd.f32 %v2512_v7, %v3793_v17 }
 0x1ad   :  { %v2129_v14 = vmul.f32 0.1, %v2097_v29  ;;  %v2099_v36 = vadd.f32 %v2515_v52, %v3795_v39  ;;  %v1839_v5 = vpop.f32.mrb[44].mxu1 }
 0x1ae   :  { %v1952_v31 = vpop.f32.mrb[44].mxu0  ;;  %v2160_v63 = vmax.f32 %v2096_v62, %v2128_v21  ;;  %v2130_v33 = vmul.f32 0.1, %v2098_v23  ;;  %v2517_v50 = vadd.f32 %v3847_v43, %v1839_v5  ;;  %v1841_v18 = vpop.f32.mrb[45].mxu1 }
 0x1af   :  { %v1954_v53 = vpop.f32.mrb[45].mxu0  ;;  %v2161_v19 = vmax.f32 %v2097_v29, %v2129_v14  ;;  %v2131_v22 = vmul.f32 0.1, %v2099_v36  ;;  %v2520_v42 = vadd.f32 %v3851_v9, %v1841_v18  ;;  %v1843_v45 = vpop.f32.mrb[46].mxu1 }
 0x1b0   :  { %v1956_v44 = vpop.f32.mrb[46].mxu0  ;;  %2192 = vst [vmem:[#allocation3 + $0xc0] sm:$0xff] %v2160_v63  ;;  %v2162_v0 = vmax.f32 %v2098_v23, %v2130_v33  ;;  %v2518_v51 = vadd.f32 %v2517_v50, %v1952_v31  ;;  %v2523_v55 = vadd.f32 %v3856_v57, %v1843_v45  ;;  %v1845_v54 = vpop.f32.mrb[47].mxu1 }
 0x1b1   :  { %v1958_v10 = vpop.f32.mrb[47].mxu0  ;;  %2193 = vst [vmem:[#allocation3 + $0xc8] sm:$0xff] %v2161_v19  ;;  %v2163_v61 = vmax.f32 %v2099_v36, %v2131_v22  ;;  %v2521_v46 = vadd.f32 %v2520_v42, %v1954_v53  ;;  %v2526_v43 = vadd.f32 %v3861_v56, %v1845_v54 }
 0x1b2   :  { %2194 = vst [vmem:[#allocation3 + $0xd0] sm:$0xff] %v2162_v0  ;;  %v2100_v25 = vadd.f32 %v2518_v51, %v3793_v17  ;;  %v2524_v4 = vadd.f32 %v2523_v55, %v1956_v44 }
 0x1b3   :  { %2195 = vst [vmem:[#allocation3 + $0xd8] sm:$0xff] %v2163_v61  ;;  %v2101_v9 = vadd.f32 %v2521_v46, %v3795_v39  ;;  %v2527_v3 = vadd.f32 %v2526_v43, %v1958_v10 }
 0x1b4   :  { %v2132_v1 = vmul.f32 0.1, %v2100_v25  ;;  %v2102_v6 = vadd.f32 %v2524_v4, %v3793_v17 }
 0x1b5   :  { %v2133_v8 = vmul.f32 0.1, %v2101_v9  ;;  %v2103_v57 = vadd.f32 %v2527_v3, %v3795_v39 }
 0x1b6   :  { %v2164_v12 = vmax.f32 %v2100_v25, %v2132_v1  ;;  %v2134_v58 = vmul.f32 0.1, %v2102_v6 }
 0x1b7   :  { %v2165_v16 = vmax.f32 %v2101_v9, %v2133_v8  ;;  %v2135_v56 = vmul.f32 0.1, %v2103_v57 }
 0x1b8   :  { %2196 = vst [vmem:[#allocation3 + $0xe0] sm:$0xff] %v2164_v12  ;;  %v2166_v47 = vmax.f32 %v2102_v6, %v2134_v58 }
 0x1b9   :  { %2197 = vst [vmem:[#allocation3 + $0xe8] sm:$0xff] %v2165_v16  ;;  %v2167_v37 = vmax.f32 %v2103_v57, %v2135_v56 }
 0x1ba   :  { %2198 = vst [vmem:[#allocation3 + $0xf0] sm:$0xff] %v2166_v47 }
 0x1bb   :  { %2199 = vst [vmem:[#allocation3 + $0xf8] sm:$0xff] %v2167_v37 }
 0x1bc   :  { %2927 = shalt.err (!%p2924_p4)
}
 0x1bd   :  { %s2928_s15 = scalar_lea.hbm %s3913_s3, 4096 }
 0x1be   :  { %p2929_p5 = scmp.ne.s32.totalorder %s3913_s3, %s2928_s15  ;;  %p2932_p6 = scmp.lt.u32.totalorder %s2928_s15, %s3913_s3 }
 0x1c0   :  { %p2934_p7 = pnand %p2932_p6, %p2929_p5 }
 0x1c2   :  { %2937 = shalt.err (!%p2934_p7)
}
 0x1c3   :  { %s2942_s20 = smov 256   ;;  %s2943_s21 = smov 16  }
 0x1c4   :  { %2211 = dma.vmem_to_hbm [thread:$0]  %s2206_s11, 4096, %s3913_s3, [#allocation4], %s2942_s20, %s2942_s20, %s2943_s21  }
 0x1c5   :  { %2938 = dma.done.wait [#allocation4], 4096  }
 0x1c6   :  { %2939 = vsyncadd [#allocation4], 4294963200 }
 0x1c7   :  { %2215 = vsyncpa [#allocation4], 1 }

// kernel: resblock2_forward.2
= control target key start
LH: loop header
LB: loop body
LE: loop exit
PB: predicated region body
PF: predicated region fallthrough
CT: control target
= control target key end

     0   :  { %s8909_s13 = smov 0   ;;  %s11869_s0 = inlined_call_operand.vmem [shape: bf16[2,324,128], index: 0, kind: input, shape index: {}]   ;;  %s11870_s1 = inlined_call_operand.vmem [shape: f32[324,1], index: 1, kind: input, shape index: {}]   ;;  %s11871_s2 = inlined_call_operand.vmem [shape: bf16[128,64], index: 2, kind: input, shape index: {}]   ;;  %s11872_s3 = inlined_call_operand.vmem [shape: f32[1,64], index: 3, kind: input, shape index: {}]   ;;  %s11873_s4 = inlined_call_operand.vmem [shape: bf16[3,192,128], index: 4, kind: input, shape index: {}]   ;;  %s11874_s5 = inlined_call_operand.vmem [shape: f32[1,128], index: 5, kind: input, shape index: {}]   ;;  %s11875_s6 = inlined_call_operand.vmem [shape: bf16[128,64], index: 6, kind: input, shape index: {}]   ;;  %s11876_s7 = inlined_call_operand.vmem [shape: f32[1,64], index: 7, kind: input, shape index: {}]   ;;  %s11877_s8 = inlined_call_operand.vmem [shape: bf16[3,192,128], index: 8, kind: input, shape index: {}]   ;;  %s11878_s9 = inlined_call_operand.vmem [shape: f32[1,128], index: 9, kind: input, shape index: {}]   ;;  %s11879_s10 = inlined_call_operand.vmem [shape: bf16[2,324,128], index: 10, kind: output, shape index: {}]  }
   0x1 LB: > { %s7460_s14 = sadd.s32 4294967295, %s8848_s13   ;;  %p7464_p0 = scmp.ge.s32.totalorder %s8848_s13, 1  ;;  %s8848_s13 = sphi %s8909_s13, %s20_s13  }
   0x2   : > { %p312_p1 = scmp.lt.s32.totalorder %s8848_s13, 3 }
   0x4   : > { %p313_p2 = pnand %p7464_p0, %p312_p1 }
   0x6   : > { %316 = sbr.rel (%p313_p2) target bundleno = 1814 (0x716), region = 60 }
   0xd   : > { %v8850_v0 = vmov 0.0   ;;  %v8623_v1 = vld [vmem:[%s11871_s2] sm:$0xff]   ;;  %vm8851_vm0 = vmmov 0   ;;  %v8624_v2 = vld [vmem:[%s11871_s2 + $0x8] sm:$0xff]   ;;  %v11880_v3 = vmov 0   ;;  %v8625_v4 = vld [vmem:[%s11871_s2 + $0x10] sm:$0xff]  }
   0xe   : > { %402 = vst [vmem:[#allocation2] sm:$0xff] %v8850_v0  ;;  %8384 = vmatprep.subr.bf16.mxu0 %v8850_v0  ;;  %405 = vst [vmem:[#allocation2 + $0x10] sm:$0xff] %v8850_v0  ;;  %8400 = vmatprep.mubr.msk.bf16.mxu0 %vm8851_vm0, %v8850_v0  ;;  %v361_v5 = vld [vmem:[%s11870_s1] sm:$0xff]  ;;  %p350_p3 = scmp.lt.s32.totalorder %s7460_s14, 1  ;;  %v362_v6 = vld [vmem:[%s11870_s1 + $0x8] sm:$0xff]  ;;  %vm403_vm1 = vcmask 523264  }
   0xf   : > { %411 = vst [vmem:[#allocation2 + $0x40] sm:$0x1] %v8850_v0  ;;  %414 = vst [vmem:[#allocation2 + $0x2c0] sm:$0xf8] %v8850_v0  ;;  %8385 = vmatpush3.bf16.msra.mxu0 %v8623_v1  ;;  %8621 = vset.pattern.permute.xlu0 %v11880_v3  ;;  %v8626_v7 = vld [vmem:[%s11871_s2 + $0x18] sm:$0xff]   ;;  %v363_v8 = vld [vmem:[%s11870_s1 + $0x10] sm:$0xff] }
  0x10   : > { %419 = vst [vmem:[#allocation2 + $0x2e0] sm:$0xff] %v8850_v0  ;;  %8386 = vmatprep.subr.bf16.mxu0 %v8850_v0  ;;  %8622 = vset.pattern.permute.xlu1 %v11880_v3  ;;  %v364_v9 = vld [vmem:[%s11870_s1 + $0x18] sm:$0xff]  ;;  %s12017_s14 = smov (!%p350_p3, %s7460_s14), 1  ;;  %v365_v10 = vld [vmem:[%s11870_s1 + $0x20] sm:$0xff]  ;;  %v366_v12 = vld [vmem:[%s11870_s1 + $0x28] sm:$0xff]  ;;  %vm412_vm2 = vcmask 516096  }
  0x11   : > { %2089 = vmatprep.subr.bf16.mxu1 %v11880_v3  ;;  %946 = vperm.xlu0 %8621, %v361_v5   ;;  %v8627_v11 = vld [vmem:[%s11871_s2 + $0x20] sm:$0xff]   ;;  %s8608_s19 = smul.u32 164, %s12017_s14  ;;  %v367_v13 = vld [vmem:[%s11870_s1 + $0x30] sm:$0xff]  ;;  %v8628_v14 = vld [vmem:[%s11871_s2 + $0x28] sm:$0xff]   ;;  %410 = vst.msk [vmem:[#allocation2 + $0x38] sm:$0xff] %vm403_vm1, %v8850_v0  ;;  %vm1687_vm3 = vcmask 523271  }
  0x12   : > { %956 = vperm.xlu1 %8622, %v363_v8   ;;  %v369_v15 = vld [vmem:[%s11870_s1 + $0x40] sm:$0xff]  ;;  %v8629_v16 = vld [vmem:[%s11871_s2 + $0x30] sm:$0xff]   ;;  %v368_v17 = vld [vmem:[%s11870_s1 + $0x38] sm:$0xff]  ;;  %406 = vst.msk [vmem:[#allocation2 + $0x18] sm:$0xff] %vm403_vm1, %v8850_v0  ;;  %vm1354_vm4 = vcmask 523265   ;;  %s8853_s22 = smov 64  }
  0x13   : > { %8387 = vmatpush3.bf16.msra.mxu0 %v8624_v2  ;;  %s8993_s12 = scalar_lea.vmem %s11869_s0, %s8608_s19  ;;  %v370_v18 = vld [vmem:[%s11870_s1 + $0x48] sm:$0xff]  ;;  %v371_v19 = vld [vmem:[%s11870_s1 + $0x50] sm:$0xff]  ;;  %v8630_v20 = vld [vmem:[%s11871_s2 + $0x38] sm:$0xff]   ;;  %408 = vst.msk [vmem:[#allocation2 + $0x28] sm:$0xff] %vm403_vm1, %v8850_v0  ;;  %vm1563_vm5 = vcmask 1046528   ;;  %vm1231_vm6 = vcmask 1040384   ;;  %s10400_s25 = scalar_lea.vmem %s11879_s10, %s8608_s19 }
  0x14   : > { %8388 = vmatprep.subr.bf16.mxu0 %v8850_v0  ;;  %v426_v21 = vld [vmem:[%s8993_s12] sm:$0xff]   ;;  %v372_v22 = vld [vmem:[%s11870_s1 + $0x58] sm:$0xff]  ;;  %v374_v24 = vld [vmem:[%s11870_s1 + $0x68] sm:$0xff]  ;;  %418 = vst.msk [vmem:[#allocation2 + $0x2d8] sm:$0xff] %vm403_vm1, %v8850_v0  ;;  %vm2331_vm7 = vcmask 1044480   ;;  %vm1520_vm8 = vcmask 1048064  }
  0x15   : > { %951 = vperm.xlu0 %8621, %v362_v6   ;;  %v373_v23 = vld [vmem:[%s11870_s1 + $0x60] sm:$0xff]  ;;  %v375_v25 = vld [vmem:[%s11870_s1 + $0x70] sm:$0xff]  ;;  %v428_v26 = vld [vmem:[%s8993_s12 + $0x8] sm:$0xff]   ;;  %420 = vst.msk [vmem:[#allocation2 + $0x2e8] sm:$0xff] %vm403_vm1, %v8850_v0  ;;  %vm415_vm9 = vcmask 523267   ;;  %vm1729_vm10 = vcmask 518144  }
  0x16   : > { %961 = vperm.xlu1 %8622, %v364_v9   ;;  %v376_v27 = vld [vmem:[%s11870_s1 + $0x78] sm:$0xff]  ;;  %v377_v28 = vld [vmem:[%s11870_s1 + $0x80] sm:$0xff]  ;;  %v378_v29 = vld [vmem:[%s11870_s1 + $0x88] sm:$0xff]  ;;  %413 = vst.msk [vmem:[#allocation2 + $0x48] sm:$0x1] %vm412_vm2, %v8850_v0  ;;  %vm1395_vm11 = vcmask 520192  }
  0x17   : > { %8389 = vmatpush3.bf16.msra.mxu0 %v8625_v4  ;;  %v430_v30 = vld [vmem:[%s8993_s12 + $0x10] sm:$0xff]   ;;  %v432_v31 = vld [vmem:[%s8993_s12 + $0x18] sm:$0xff]   ;;  %v434_v32 = vld [vmem:[%s8993_s12 + $0x20] sm:$0xff]   ;;  %vm1561_vm12 = vcmask 1043968  }
  0x18   : > { %8390 = vmatprep.subr.bf16.mxu0 %v8850_v0  ;;  %v436_v33 = vld [vmem:[%s8993_s12 + $0x28] sm:$0xff]   ;;  %v438_v34 = vld [vmem:[%s8993_s12 + $0x30] sm:$0xff]   ;;  %v440_v35 = vld [vmem:[%s8993_s12 + $0x38] sm:$0xff]  }
  0x19   : > { %966 = vperm.xlu0 %8621, %v365_v10   ;;  %v442_v36 = vld [vmem:[%s8993_s12 + $0x40] sm:$0xff]   ;;  %v444_v37 = vld [vmem:[%s8993_s12 + $0x48] sm:$0xff]   ;;  %v446_v38 = vld [vmem:[%s8993_s12 + $0x50] sm:$0xff]  }
  0x1a   : > { %971 = vperm.xlu1 %8622, %v366_v12   ;;  %v448_v39 = vld [vmem:[%s8993_s12 + $0x58] sm:$0xff]   ;;  %v450_v40 = vld [vmem:[%s8993_s12 + $0x60] sm:$0xff]   ;;  %v452_v41 = vld [vmem:[%s8993_s12 + $0x68] sm:$0xff]  }
  0x1b   : > { %8391 = vmatpush3.bf16.msra.mxu0 %v8626_v7  ;;  %v454_v42 = vld [vmem:[%s8993_s12 + $0x70] sm:$0xff]   ;;  %v456_v43 = vld [vmem:[%s8993_s12 + $0x78] sm:$0xff]   ;;  %v458_v44 = vld [vmem:[%s8993_s12 + $0x80] sm:$0xff]  }
  0x1c   : > { %8392 = vmatprep.subr.bf16.mxu0 %v8850_v0  ;;  %v460_v45 = vld [vmem:[%s8993_s12 + $0x88] sm:$0xff]   ;;  %v462_v46 = vld [vmem:[%s8993_s12 + $0x90] sm:$0xff]   ;;  %v464_v47 = vld [vmem:[%s8993_s12 + $0x98] sm:$0xff]  }
  0x1d   : > { %976 = vperm.xlu0 %8621, %v367_v13   ;;  %v466_v48 = vld [vmem:[%s8993_s12 + $0xa0] sm:$0x3]  ;;  %v8654_v52 = vld [vmem:[%s11873_s4 + $0x68] sm:$0xff]   ;;  %v8656_v54 = vld [vmem:[%s11873_s4 + $0x70] sm:$0xff]  }
  0x1e   : > { %981 = vperm.xlu1 %8622, %v368_v17   ;;  %v7488_v49 = vcombine.low %v466_v48, %v466_v48  ;;  %v8652_v50 = vld [vmem:[%s11873_s4 + $0x60] sm:$0xff]   ;;  %v8655_v53 = vld [vmem:[%s11873_s4 + $0x8] sm:$0xff]   ;;  %v8657_v55 = vld [vmem:[%s11873_s4 + $0x10] sm:$0xff]  }
  0x1f   : > { %8393 = vmatpush3.bf16.msra.mxu0 %v8627_v11  ;;  %v8653_v51 = vld [vmem:[%s11873_s4] sm:$0xff]   ;;  %2090 = vmatpush1.bf16.msra.mxu1 %v8652_v50  ;;  %v8658_v56 = vld [vmem:[%s11873_s4 + $0x78] sm:$0xff]   ;;  %v8662_v60 = vld [vmem:[%s11873_s4 + $0x88] sm:$0xff]  }
  0x20   : > { %8394 = vmatprep.subr.bf16.mxu0 %v8850_v0  ;;  %2091 = vmatprep.subr.bf16.mxu1 %v11880_v3  ;;  %v8659_v57 = vld [vmem:[%s11873_s4 + $0x18] sm:$0xff]   ;;  %v8660_v58 = vld [vmem:[%s11873_s4 + $0x80] sm:$0xff]   ;;  %v8663_v61 = vld [vmem:[%s11873_s4 + $0x28] sm:$0xff]  }
  0x21   : > { %986 = vperm.xlu0 %8621, %v369_v15   ;;  %v8661_v59 = vld [vmem:[%s11873_s4 + $0x20] sm:$0xff]   ;;  %v8664_v62 = vld [vmem:[%s11873_s4 + $0x90] sm:$0xff]   ;;  %v8666_v1 = vld [vmem:[%s11873_s4 + $0x98] sm:$0xff]  }
  0x22   : > { %991 = vperm.xlu1 %8622, %v370_v18   ;;  %v8665_v63 = vld [vmem:[%s11873_s4 + $0x30] sm:$0xff]   ;;  %v8667_v2 = vld [vmem:[%s11873_s4 + $0x38] sm:$0xff]   ;;  %v8668_v4 = vld [vmem:[%s11873_s4 + $0xa0] sm:$0xff]  }
  0x23   : > { %8395 = vmatpush3.bf16.msra.mxu0 %v8628_v14  ;;  %2092 = vmatpush1.bf16.msra.mxu1 %v8654_v52  ;;  %v8669_v5 = vld [vmem:[%s11873_s4 + $0x40] sm:$0xff]   ;;  %v8670_v6 = vld [vmem:[%s11873_s4 + $0xa8] sm:$0xff]   ;;  %v8672_v9 = vld [vmem:[%s11873_s4 + $0xb0] sm:$0xff]  }
  0x24   : > { %8396 = vmatprep.subr.bf16.mxu0 %v8850_v0  ;;  %2093 = vmatprep.subr.bf16.mxu1 %v11880_v3  ;;  %v8671_v7 = vld [vmem:[%s11873_s4 + $0x48] sm:$0xff]   ;;  %v9181_v8 = vld [vmem:[%s11872_s3] ss:$0 sm:$0xff]  ;;  %v8673_v10 = vld [vmem:[%s11873_s4 + $0x50] sm:$0xff]  }
  0x25   : > { %996 = vperm.xlu0 %8621, %v371_v19  }
  0x26   : > { %1001 = vperm.xlu1 %8622, %v372_v22  }
  0x27   : > { %8397 = vmatpush3.bf16.msra.mxu0 %v8629_v16  ;;  %2094 = vmatpush1.bf16.msra.mxu1 %v8656_v54  ;;  %v8674_v16 = vld [vmem:[%s11873_s4 + $0xb8] sm:$0xff]  }
  0x28   : > { %8398 = vmatprep.subr.bf16.mxu0 %v8850_v0  ;;  %2095 = vmatprep.subr.bf16.mxu1 %v11880_v3 }
  0x29   : > { %1006 = vperm.xlu0 %8621, %v373_v23  }
  0x2a   : > { %1011 = vperm.xlu1 %8622, %v374_v24  }
  0x2b   : > { %8399 = vmatpush3.bf16.msra.mxu0 %v8630_v20  ;;  %2096 = vmatpush1.bf16.msra.mxu1 %v8658_v56  ;;  %v8675_v20 = vld [vmem:[%s11873_s4 + $0x58] sm:$0xff]   ;;  %v381_v56 = vld [vmem:[%s11870_s1 + $0xa0] sm:$0xff] }
  0x2c   : > { %2570 = vmatprep.subr.bf16.mxu0 %v11880_v3  ;;  %2097 = vmatprep.subr.bf16.mxu1 %v11880_v3 }
  0x2d   : > { %1016 = vperm.xlu0 %8621, %v375_v25  }
  0x2e   : > { %8401 = vmatmul.mubr.bf16.vlgmr.msra.gmra.mrb[0].mxu0 %v426_v21  ;;  %1021 = vperm.xlu1 %8622, %v376_v27  }
  0x2f   : > { %8404 = vmatprep.mubr.msk.bf16.mxu0 %vm8851_vm0, %v8850_v0  ;;  %2571 = vmatpush1.bf16.msra.mxu0 %v8653_v51 }
  0x30   : > { %2572 = vmatprep.subr.bf16.mxu0 %v11880_v3  ;;  %2098 = vmatpush1.bf16.msra.mxu1 %v8660_v58 }
  0x31   : > { %1026 = vperm.xlu0 %8621, %v377_v28   ;;  %2099 = vmatprep.subr.bf16.mxu1 %v11880_v3 }
  0x32   : > { %1031 = vperm.xlu1 %8622, %v378_v29  }
  0x33   : > { %2573 = vmatpush1.bf16.msra.mxu0 %v8655_v53 }
  0x34   : > { %2574 = vmatprep.subr.bf16.mxu0 %v11880_v3  ;;  %2100 = vmatpush1.bf16.msra.mxu1 %v8662_v60 }
  0x35   : > { %2101 = vmatprep.subr.bf16.mxu1 %v11880_v3 }
  0x36   : > { %8405 = vmatmul.mubr.bf16.gmra.mrb[4].mxu0 %v428_v26 }
  0x37   : > { %8408 = vmatprep.mubr.msk.bf16.mxu0 %vm8851_vm0, %v8850_v0  ;;  %2575 = vmatpush1.bf16.msra.mxu0 %v8657_v55 }
  0x38   : > { %2576 = vmatprep.subr.bf16.mxu0 %v11880_v3  ;;  %2102 = vmatpush1.bf16.msra.mxu1 %v8664_v62 }
  0x39   : > { %2103 = vmatprep.subr.bf16.mxu1 %v11880_v3 }
  0x3b   : > { %2577 = vmatpush1.bf16.msra.mxu0 %v8659_v57 }
  0x3c   : > { %2578 = vmatprep.subr.bf16.mxu0 %v11880_v3  ;;  %2104 = vmatpush1.bf16.msra.mxu1 %v8666_v1  ;;  %v382_v1 = vld [vmem:[%s11870_s1 + $0xa8] sm:$0xff] }
  0x3d   : > { %2105 = vmatprep.subr.bf16.mxu1 %v11880_v3 }
  0x3e   : > { %8409 = vmatmul.mubr.bf16.gmra.mrb[8].mxu0 %v430_v30 }
  0x3f   : > { %8412 = vmatprep.mubr.msk.bf16.mxu0 %vm8851_vm0, %v8850_v0  ;;  %2579 = vmatpush1.bf16.msra.mxu0 %v8661_v59 }
  0x40   : > { %2580 = vmatprep.subr.bf16.mxu0 %v11880_v3  ;;  %2106 = vmatpush1.bf16.msra.mxu1 %v8668_v4 }
  0x41   : > { %2107 = vmatprep.subr.bf16.mxu1 %v11880_v3 }
  0x43   : > { %2581 = vmatpush1.bf16.msra.mxu0 %v8663_v61 }
  0x44   : > { %2582 = vmatprep.subr.bf16.mxu0 %v11880_v3  ;;  %2108 = vmatpush1.bf16.msra.mxu1 %v8670_v6 }
  0x45   : > { %2109 = vmatprep.subr.bf16.mxu1 %v11880_v3 }
  0x46   : > { %8413 = vmatmul.mubr.bf16.gmra.mrb[12].mxu0 %v432_v31 }
  0x47   : > { %8416 = vmatprep.mubr.msk.bf16.mxu0 %vm8851_vm0, %v8850_v0  ;;  %2583 = vmatpush1.bf16.msra.mxu0 %v8665_v63 }
  0x48   : > { %2584 = vmatprep.subr.bf16.mxu0 %v11880_v3  ;;  %2110 = vmatpush1.bf16.msra.mxu1 %v8672_v9 }
  0x49   : > { %2111 = vmatprep.subr.bf16.mxu1 %v11880_v3 }
  0x4b   : > { %2585 = vmatpush1.bf16.msra.mxu0 %v8667_v2 }
  0x4c   : > { %2586 = vmatprep.subr.bf16.mxu0 %v11880_v3  ;;  %2112 = vmatpush1.bf16.msra.mxu1 %v8674_v16 }
  0x4d   : > { %3200 = vmatprep.subr.bf16.mxu1 %v11880_v3 }
  0x4e   : > { %8417 = vmatmul.mubr.bf16.gmra.mrb[16].mxu0 %v434_v32 }
  0x4f   : > { %8420 = vmatprep.mubr.msk.bf16.mxu0 %vm8851_vm0, %v8850_v0  ;;  %2587 = vmatpush1.bf16.msra.mxu0 %v8669_v5 }
  0x50   : > { %2588 = vmatprep.subr.bf16.mxu0 %v11880_v3 }
  0x53   : > { %2589 = vmatpush1.bf16.msra.mxu0 %v8671_v7 }
  0x54   : > { %2590 = vmatprep.subr.bf16.mxu0 %v11880_v3 }
  0x56   : > { %8421 = vmatmul.mubr.bf16.gmra.mrb[20].mxu0 %v436_v33 }
  0x57   : > { %8424 = vmatprep.mubr.msk.bf16.mxu0 %vm8851_vm0, %v8850_v0  ;;  %2591 = vmatpush1.bf16.msra.mxu0 %v8673_v10 }
  0x58   : > { %2592 = vmatprep.subr.bf16.mxu0 %v11880_v3 }
  0x5b   : > { %2593 = vmatpush1.bf16.msra.mxu0 %v8675_v20 }
  0x5c   : > { %8484 = vmatprep.subr.bf16.mxu0 %v8850_v0 }
  0x5e   : > { %8425 = vmatmul.mubr.bf16.gmra.mrb[24].mxu0 %v438_v34  ;;  %v379_v34 = vld [vmem:[%s11870_s1 + $0x90] sm:$0xff] }
  0x5f   : > { %8428 = vmatprep.mubr.msk.bf16.mxu0 %vm8851_vm0, %v8850_v0 }
  0x66   : > { %8429 = vmatmul.mubr.bf16.gmra.mrb[28].mxu0 %v440_v35 }
  0x67   : > { %8432 = vmatprep.mubr.msk.bf16.mxu0 %vm8851_vm0, %v8850_v0 }
  0x6e   : > { %8433 = vmatmul.mubr.bf16.gmra.mrb[32].mxu0 %v442_v36 }
  0x6f   : > { %8436 = vmatprep.mubr.msk.bf16.mxu0 %vm8851_vm0, %v8850_v0 }
  0x76   : > { %8437 = vmatmul.mubr.bf16.gmra.mrb[36].mxu0 %v444_v37 }
  0x77   : > { %8440 = vmatprep.mubr.msk.bf16.mxu0 %vm8851_vm0, %v8850_v0 }
  0x7e   : > { %8441 = vmatmul.mubr.bf16.gmra.mrb[40].mxu0 %v446_v38 }
  0x7f   : > { %8444 = vmatprep.mubr.msk.bf16.mxu0 %vm8851_vm0, %v8850_v0 }
  0x86   : > { %8445 = vmatmul.mubr.bf16.gmra.mrb[44].mxu0 %v448_v39  ;;  %v380_v39 = vld [vmem:[%s11870_s1 + $0x98] sm:$0xff] }
  0x87   : > { %8448 = vmatprep.mubr.msk.bf16.mxu0 %vm8851_vm0, %v8850_v0 }
  0x8e   : > { %8449 = vmatmul.mubr.bf16.gmra.mrb[48].mxu0 %v450_v40 }
  0x8f   : > { %8452 = vmatprep.mubr.msk.bf16.mxu0 %vm8851_vm0, %v8850_v0 }
  0x90   : > { %v9192_v14 = vpop.permute.xlu0 %946 }
  0x91   : > { %v9211_v32 = vpop.permute.xlu1 %956 }
  0x92   : > { %11926 = vst [vmem:[#allocation3_spill] sm:$0xff] %v9211_v32 }
  0x94   : > { %v9205_v25 = vpop.permute.xlu0 %951 }
  0x95   : > { %v9228_v48 = vpop.permute.xlu1 %961 }
  0x96   : > { %8453 = vmatmul.mubr.bf16.gmra.mrb[52].mxu0 %v452_v41  ;;  %11927 = vst [vmem:[#allocation4_spill] sm:$0xff] %v9228_v48 }
  0x97   : > { %8456 = vmatprep.mubr.msk.bf16.mxu0 %vm8851_vm0, %v8850_v0 }
  0x98   : > { %v9246_v10 = vpop.permute.xlu0 %966 }
  0x99   : > { %11928 = vst [vmem:[#allocation5_spill] sm:$0xff] %v9246_v10 }
  0x9e   : > { %8457 = vmatmul.mubr.bf16.gmra.mrb[56].mxu0 %v454_v42 }
  0x9f   : > { %8460 = vmatprep.mubr.msk.bf16.mxu0 %vm8851_vm0, %v8850_v0 }
  0xa6   : > { %8461 = vmatmul.mubr.bf16.gmra.mrb[60].mxu0 %v456_v43 }
  0xa7   : > { %8464 = vmatprep.mubr.msk.bf16.mxu0 %vm8851_vm0, %v8850_v0 }
  0xae   : > { %8465 = vmatmul.mubr.bf16.gmra.mrb[64].mxu0 %v458_v44 }
  0xaf   : > { %8468 = vmatprep.mubr.msk.bf16.mxu0 %vm8851_vm0, %v8850_v0 }
  0xb6   : > { %8469 = vmatmul.mubr.bf16.gmra.mrb[68].mxu0 %v460_v45 }
  0xb7   : > { %8472 = vmatprep.mubr.msk.bf16.mxu0 %vm8851_vm0, %v8850_v0 }
  0xbe   : > { %8473 = vmatmul.mubr.bf16.gmra.mrb[72].mxu0 %v462_v46  ;;  %v1732_v46 = vld [vmem:[#allocation2 + $0x18] sm:$0xc0] }
  0xbf   : > { %8476 = vmatprep.mubr.msk.bf16.mxu0 %vm8851_vm0, %v8850_v0 }
  0xc6   : > { %8477 = vmatmul.mubr.bf16.gmra.mrb[76].mxu0 %v464_v47  ;;  %v1734_v47 = vld [vmem:[#allocation2 + $0x28] sm:$0xff] }
  0xc7   : > { %8480 = vmatprep.mubr.msk.bf16.mxu0 %vm8851_vm0, %v8850_v0  ;;  %v1816_v57 = vpack.c.bf16 %v1734_v47, %v1732_v46 }
  0xce   : > { %8481 = vmatmul.mubr.bf16.gmra.mrb[80].mxu0 %v7488_v49 }
 0x101   : > { %v696_v11 = vpop.f32.mrb[0].mxu0 }
 0x102   : > { %v697_v12 = vadd.f32 %v9181_v8, %v696_v11  ;;  %v8402_v13 = vpop.f32.mrb[1].mxu0 }
 0x103   : > { %v699_v15 = vpop.f32.mrb[2].mxu0  ;;  %v2335_v13 = vrot.slane %v1816_v57, 3 }
 0x104   : > { %v862_v17 = vmul.f32 0.1, %v697_v12  ;;  %v700_v18 = vadd.f32 %v9181_v8, %v699_v15  ;;  %v8403_v19 = vpop.f32.mrb[3].mxu0 }
 0x106   : > { %v903_v21 = vmax.f32 %v697_v12, %v862_v17  ;;  %v863_v22 = vmul.f32 0.1, %v700_v18  ;;  %v9252_v17 = vpop.permute.xlu1 %971 }
 0x107   : > { %11929 = vst [vmem:[#allocation6_spill] sm:$0xff] %v9252_v17 }
 0x108   : > { %v904_v23 = vmax.f32 %v700_v18, %v863_v22  ;;  %v1149_v24 = vmul.f32 %v9192_v14, %v903_v21 }
 0x109   : > { %v704_v26 = vpop.f32.mrb[4].mxu0 }
 0x10a   : > { %v705_v27 = vadd.f32 %v9181_v8, %v704_v26  ;;  %1397 = vrot.lane.b32.xlu0 %v1149_v24, %s8853_s22  ;;  %v1232_v28 = vrot.slane %v1149_v24, 7  ;;  %v1564_v29 = vrot.slane %v1149_v24, 1  ;;  %v8406_v30 = vpop.f32.mrb[5].mxu0  ;;  %v1150_v31 = vmul.f32 %v9205_v25, %v904_v23  ;;  %v9285_v47 = vpop.permute.xlu1 %981 }
 0x10b   : > { %v707_v33 = vpop.f32.mrb[6].mxu0  ;;  %11931 = vst [vmem:[#allocation8_spill] sm:$0xff] %v9285_v47 }
 0x10c   : > { %v864_v0 = vmul.f32 0.1, %v705_v27  ;;  %1688 = vst.msk [vmem:[#allocation2 + $0x38] sm:$0x80] %vm1687_vm3, %v1564_v29  ;;  %v708_v35 = vadd.f32 %v9181_v8, %v707_v33  ;;  %1399 = vrot.lane.b32.xlu1 %v1150_v31, %s8853_s22  ;;  %v1233_v36 = vrot.slane %v1150_v31, 7  ;;  %v1565_v37 = vrot.slane %v1150_v31, 1 }
 0x10d   : > { %v8407_v38 = vpop.f32.mrb[7].mxu0  ;;  %1355 = vst.msk [vmem:[#allocation2 + $0x40] sm:$0xfe] %vm1354_vm4, %v1232_v28 }
 0x10e   : > { %v905_v40 = vmax.f32 %v705_v27, %v864_v0  ;;  %v865_v41 = vmul.f32 0.1, %v708_v35  ;;  %v1566_v42 = vsel %vm1563_vm5, %v1564_v29, %v1565_v37  ;;  %1036 = vperm.xlu0 %8621, %v379_v34   ;;  %v1234_v43 = vsel %vm1231_vm6, %v1232_v28, %v1233_v36  ;;  %v383_v28 = vld [vmem:[%s11870_s1 + $0xb0] sm:$0xff] }
 0x10f   : > { %1689 = vst.msk [vmem:[#allocation2 + $0x48] sm:$0xff] %vm403_vm1, %v1566_v42  ;;  %1356 = vst.msk [vmem:[#allocation2 + $0x50] sm:$0xff] %vm403_vm1, %v1234_v43  ;;  %v9278_v42 = vpop.permute.xlu0 %976 }
 0x110   : > { %v906_v44 = vmax.f32 %v708_v35, %v865_v41  ;;  %1041 = vperm.xlu1 %8622, %v380_v39   ;;  %v1151_v45 = vmul.f32 %v9211_v32, %v905_v40  ;;  %11930 = vst [vmem:[#allocation7_spill] sm:$0xff] %v9278_v42 }
 0x111   : > { %v712_v49 = vpop.f32.mrb[8].mxu0 }
 0x112   : > { %v713_v50 = vadd.f32 %v9181_v8, %v712_v49  ;;  %1401 = vrot.lane.b32.xlu0 %v1151_v45, %s8853_s22  ;;  %v1235_v51 = vrot.slane %v1151_v45, 7  ;;  %v1567_v52 = vrot.slane %v1151_v45, 1  ;;  %v8410_v53 = vpop.f32.mrb[9].mxu0  ;;  %v1152_v54 = vmul.f32 %v9228_v48, %v906_v44 }
 0x113   : > { %v715_v55 = vpop.f32.mrb[10].mxu0  ;;  %v1736_v6 = vld [vmem:[#allocation2 + $0x38] sm:$0xff] }
 0x114   : > { %v866_v58 = vmul.f32 0.1, %v713_v50  ;;  %v1568_v59 = vsel %vm1563_vm5, %v1565_v37, %v1567_v52  ;;  %v716_v60 = vadd.f32 %v9181_v8, %v715_v55  ;;  %1403 = vrot.lane.b32.xlu1 %v1152_v54, %s8853_s22  ;;  %v1237_v61 = vrot.slane %v1152_v54, 7  ;;  %v8411_v62 = vpop.f32.mrb[11].mxu0  ;;  %v384_v37 = vld [vmem:[%s11870_s1 + $0xb8] sm:$0xff]  ;;  %v385_v55 = vld [vmem:[%s11870_s1 + $0xc0] sm:$0xff] }
 0x115   : > { %1690 = vst.msk [vmem:[#allocation2 + $0x58] sm:$0xff] %vm403_vm1, %v1568_v59  ;;  %v1569_v63 = vrot.slane %v1152_v54, 1  ;;  %v1236_v2 = vsel %vm1231_vm6, %v1233_v36, %v1235_v51 }
 0x116   : > { %v907_v4 = vmax.f32 %v713_v50, %v866_v58  ;;  %v867_v5 = vmul.f32 0.1, %v716_v60  ;;  %1046 = vperm.xlu0 %8621, %v381_v56   ;;  %v1738_v7 = vld [vmem:[#allocation2 + $0x48] sm:$0xff]  ;;  %1357 = vst.msk [vmem:[#allocation2 + $0x60] sm:$0xff] %vm403_vm1, %v1236_v2  ;;  %v1238_v9 = vsel %vm1231_vm6, %v1235_v51, %v1237_v61 }
 0x117   : > { %v1570_v11 = vsel %vm1563_vm5, %v1567_v52, %v1569_v63  ;;  %v1818_v12 = vpack.c.bf16 %v1738_v7, %v1736_v6  ;;  %1358 = vst.msk [vmem:[#allocation2 + $0x70] sm:$0xff] %vm403_vm1, %v1238_v9  ;;  %v386_v2 = vld [vmem:[%s11870_s1 + $0xc8] sm:$0xff] }
 0x118   : > { %v908_v15 = vmax.f32 %v716_v60, %v867_v5  ;;  %1691 = vst.msk [vmem:[#allocation2 + $0x68] sm:$0xff] %vm403_vm1, %v1570_v11  ;;  %1051 = vperm.xlu1 %8622, %v382_v1   ;;  %v1153_v16 = vmul.f32 %v9246_v10, %v907_v4  ;;  %v9302_v4 = vpop.permute.xlu0 %986  ;;  %v9309_v11 = vpop.permute.xlu1 %991 }
 0x119   : > { %v720_v18 = vpop.f32.mrb[12].mxu0  ;;  %v9254_v19 = vrot.slane %v1818_v12, 3  ;;  %11932 = vst [vmem:[#allocation9_spill] sm:$0xff] %v9302_v4  ;;  %11933 = vst [vmem:[#allocation10_spill] sm:$0xff] %v9309_v11 }
 0x11a   : > { %v721_v20 = vadd.f32 %v9181_v8, %v720_v18  ;;  %1405 = vrot.lane.b32.xlu0 %v1153_v16, %s8853_s22  ;;  %v1239_v21 = vrot.slane %v1153_v16, 7  ;;  %v1571_v22 = vrot.slane %v1153_v16, 1  ;;  %v8414_v23 = vpop.f32.mrb[13].mxu0  ;;  %v1154_v24 = vmul.f32 %v9252_v17, %v908_v15 }
 0x11b   : > { %v723_v26 = vpop.f32.mrb[14].mxu0  ;;  %v2337_v27 = vsel %vm2331_vm7, %v2335_v13, %v9254_v19 }
 0x11c   : > { %v868_v29 = vmul.f32 0.1, %v721_v20  ;;  %v1572_v30 = vsel %vm1563_vm5, %v1569_v63, %v1571_v22  ;;  %v724_v31 = vadd.f32 %v9181_v8, %v723_v26  ;;  %7566 = vmatprep.mubr.msk.bf16.mxu0 %vm403_vm1, %v2337_v27  ;;  %1407 = vrot.lane.b32.xlu1 %v1154_v24, %s8853_s22  ;;  %v1241_v33 = vrot.slane %v1154_v24, 7  ;;  %v9268_v34 = vld [vmem:[#allocation2 + $0x58] sm:$0xff]  ;;  %v8415_v0 = vpop.f32.mrb[15].mxu0 }
 0x11d   : > { %1692 = vst.msk [vmem:[#allocation2 + $0x78] sm:$0xff] %vm403_vm1, %v1572_v30  ;;  %v1573_v35 = vrot.slane %v1154_v24, 1  ;;  %v1888_v36 = vpack.c.bf16 %v9268_v34, %v1738_v7  ;;  %v1240_v38 = vsel %vm1231_vm6, %v1237_v61, %v1239_v21  ;;  %v388_v0 = vld [vmem:[%s11870_s1 + $0xd8] sm:$0xff] }
 0x11e   : > { %v909_v39 = vmax.f32 %v721_v20, %v868_v29  ;;  %v869_v40 = vmul.f32 0.1, %v724_v31  ;;  %1056 = vperm.xlu0 %8621, %v383_v28   ;;  %1359 = vst.msk [vmem:[#allocation2 + $0x80] sm:$0xff] %vm403_vm1, %v1240_v38  ;;  %v1242_v41 = vsel %vm1231_vm6, %v1239_v21, %v1241_v33 }
 0x11f   : > { %v1574_v43 = vsel %vm1563_vm5, %v1571_v22, %v1573_v35  ;;  %7533 = vmatprep.mubr.msk.bf16.mxu1 %vm403_vm1, %v1888_v36  ;;  %1360 = vst.msk [vmem:[#allocation2 + $0x90] sm:$0xff] %vm403_vm1, %v1242_v41  ;;  %v387_v22 = vld [vmem:[%s11870_s1 + $0xd0] sm:$0xff]  ;;  %v9327_v36 = vpop.permute.xlu0 %996 }
 0x120   : > { %v910_v44 = vmax.f32 %v724_v31, %v869_v40  ;;  %1693 = vst.msk [vmem:[#allocation2 + $0x88] sm:$0xff] %vm403_vm1, %v1574_v43  ;;  %1061 = vperm.xlu1 %8622, %v384_v37   ;;  %v1155_v45 = vmul.f32 %v9278_v42, %v909_v39  ;;  %11934 = vst [vmem:[#allocation11_spill] sm:$0xff] %v9327_v36  ;;  %v9333_v40 = vpop.permute.xlu1 %1001 }
 0x121   : > { %v728_v46 = vpop.f32.mrb[16].mxu0  ;;  %11935 = vst [vmem:[#allocation12_spill] sm:$0xff] %v9333_v40 }
 0x122   : > { %v729_v49 = vadd.f32 %v9181_v8, %v728_v46  ;;  %1409 = vrot.lane.b32.xlu0 %v1155_v45, %s8853_s22  ;;  %v1243_v50 = vrot.slane %v1155_v45, 7  ;;  %v1575_v51 = vrot.slane %v1155_v45, 1  ;;  %v8418_v52 = vpop.f32.mrb[17].mxu0  ;;  %v1156_v54 = vmul.f32 %v9285_v47, %v910_v44 }
 0x123   : > { %v731_v53 = vpop.f32.mrb[18].mxu0 }
 0x124   : > { %v870_v56 = vmul.f32 0.1, %v729_v49  ;;  %v1576_v57 = vsel %vm1563_vm5, %v1573_v35, %v1575_v51  ;;  %v732_v58 = vadd.f32 %v9181_v8, %v731_v53  ;;  %v8419_v59 = vpop.f32.mrb[19].mxu0  ;;  %1411 = vrot.lane.b32.xlu1 %v1156_v54, %s8853_s22  ;;  %v1245_v60 = vrot.slane %v1156_v54, 7 }
 0x125   : > { %1694 = vst.msk [vmem:[#allocation2 + $0x98] sm:$0xff] %vm403_vm1, %v1576_v57  ;;  %v1577_v61 = vrot.slane %v1156_v54, 1  ;;  %v1244_v62 = vsel %vm1231_vm6, %v1241_v33, %v1243_v50 }
 0x126   : > { %v911_v63 = vmax.f32 %v729_v49, %v870_v56  ;;  %v871_v1 = vmul.f32 0.1, %v732_v58  ;;  %1066 = vperm.xlu0 %8621, %v385_v55   ;;  %1361 = vst.msk [vmem:[#allocation2 + $0xa0] sm:$0xff] %vm403_vm1, %v1244_v62  ;;  %v1246_v6 = vsel %vm1231_vm6, %v1243_v50, %v1245_v60 }
 0x127   : > { %v1578_v5 = vsel %vm1563_vm5, %v1575_v51, %v1577_v61  ;;  %1362 = vst.msk [vmem:[#allocation2 + $0xb0] sm:$0xff] %vm403_vm1, %v1246_v6  ;;  %v389_v51 = vld [vmem:[%s11870_s1 + $0xe0] sm:$0xff]  ;;  %v9357_v6 = vpop.permute.xlu1 %1011 }
 0x128   : > { %v912_v7 = vmax.f32 %v732_v58, %v871_v1  ;;  %1695 = vst.msk [vmem:[#allocation2 + $0xa8] sm:$0xff] %vm403_vm1, %v1578_v5  ;;  %v1157_v9 = vmul.f32 %v9302_v4, %v911_v63  ;;  %1071 = vperm.xlu1 %8622, %v386_v2   ;;  %v9351_v63 = vpop.permute.xlu0 %1006  ;;  %11937 = vst [vmem:[#allocation14_spill] sm:$0xff] %v9357_v6 }
 0x129   : > { %v736_v12 = vpop.f32.mrb[20].mxu0  ;;  %11936 = vst [vmem:[#allocation13_spill] sm:$0xff] %v9351_v63 }
 0x12a   : > { %v737_v13 = vadd.f32 %v9181_v8, %v736_v12  ;;  %1413 = vrot.lane.b32.xlu0 %v1157_v9, %s8853_s22  ;;  %v1247_v15 = vrot.slane %v1157_v9, 7  ;;  %v1579_v16 = vrot.slane %v1157_v9, 1  ;;  %v8422_v18 = vpop.f32.mrb[21].mxu0  ;;  %v1158_v20 = vmul.f32 %v9309_v11, %v912_v7 }
 0x12b   : > { %v739_v21 = vpop.f32.mrb[22].mxu0 }
 0x12c   : > { %v872_v23 = vmul.f32 0.1, %v737_v13  ;;  %v1580_v24 = vsel %vm1563_vm5, %v1577_v61, %v1579_v16  ;;  %v740_v26 = vadd.f32 %v9181_v8, %v739_v21  ;;  %v1249_v27 = vrot.slane %v1158_v20, 7  ;;  %v8423_v28 = vpop.f32.mrb[23].mxu0  ;;  %1415 = vrot.lane.b32.xlu1 %v1158_v20, %s8853_s22  ;;  %v390_v61 = vld [vmem:[%s11870_s1 + $0xe8] sm:$0xff] }
 0x12d   : > { %1696 = vst.msk [vmem:[#allocation2 + $0xb8] sm:$0xff] %vm403_vm1, %v1580_v24  ;;  %v1581_v29 = vrot.slane %v1158_v20, 1  ;;  %v1248_v30 = vsel %vm1231_vm6, %v1245_v60, %v1247_v15  ;;  %v391_v20 = vld [vmem:[%s11870_s1 + $0xf0] sm:$0xff] }
 0x12e   : > { %v913_v31 = vmax.f32 %v737_v13, %v872_v23  ;;  %v873_v33 = vmul.f32 0.1, %v740_v26  ;;  %1076 = vperm.xlu0 %8621, %v387_v22   ;;  %1363 = vst.msk [vmem:[#allocation2 + $0xc0] sm:$0xff] %vm403_vm1, %v1248_v30  ;;  %v1250_v35 = vsel %vm1231_vm6, %v1247_v15, %v1249_v27 }
 0x12f   : > { %v1582_v37 = vsel %vm1563_vm5, %v1579_v16, %v1581_v29  ;;  %1364 = vst.msk [vmem:[#allocation2 + $0xd0] sm:$0xff] %vm403_vm1, %v1250_v35  ;;  %v2779_v17 = vld [vmem:[#allocation2 + $0xa8] sm:$0xff] }
 0x130   : > { %v914_v38 = vmax.f32 %v740_v26, %v873_v33  ;;  %1697 = vst.msk [vmem:[#allocation2 + $0xc8] sm:$0xff] %vm403_vm1, %v1582_v37  ;;  %v1159_v39 = vmul.f32 %v9327_v36, %v913_v31  ;;  %1081 = vperm.xlu1 %8622, %v388_v0   ;;  %v392_v31 = vld [vmem:[%s11870_s1 + $0xf8] sm:$0xff]  ;;  %v9375_v0 = vpop.permute.xlu0 %1016 }
 0x131   : > { %v744_v41 = vpop.f32.mrb[24].mxu0  ;;  %11938 = vst [vmem:[#allocation15_spill] sm:$0xff] %v9375_v0 }
 0x132   : > { %v745_v43 = vadd.f32 %v9181_v8, %v744_v41  ;;  %1417 = vrot.lane.b32.xlu0 %v1159_v39, %s8853_s22  ;;  %v1251_v44 = vrot.slane %v1159_v39, 7  ;;  %v1583_v45 = vrot.slane %v1159_v39, 1  ;;  %v8426_v46 = vpop.f32.mrb[25].mxu0  ;;  %v1160_v49 = vmul.f32 %v9333_v40, %v914_v38  ;;  %v9381_v39 = vpop.permute.xlu1 %1021 }
 0x133   : > { %v747_v50 = vpop.f32.mrb[26].mxu0  ;;  %11939 = vst [vmem:[#allocation16_spill] sm:$0xff] %v9381_v39 }
 0x134   : > { %v874_v52 = vmul.f32 0.1, %v745_v43  ;;  %v1584_v53 = vsel %vm1563_vm5, %v1581_v29, %v1583_v45  ;;  %v748_v54 = vadd.f32 %v9181_v8, %v747_v50  ;;  %v1253_v55 = vrot.slane %v1160_v49, 7  ;;  %v8427_v56 = vpop.f32.mrb[27].mxu0  ;;  %1419 = vrot.lane.b32.xlu1 %v1160_v49, %s8853_s22 }
 0x135   : > { %1698 = vst.msk [vmem:[#allocation2 + $0xd8] sm:$0xff] %vm403_vm1, %v1584_v53  ;;  %v1585_v57 = vrot.slane %v1160_v49, 1  ;;  %v1252_v58 = vsel %vm1231_vm6, %v1249_v27, %v1251_v44 }
 0x136   : > { %v915_v59 = vmax.f32 %v745_v43, %v874_v52  ;;  %v875_v60 = vmul.f32 0.1, %v748_v54  ;;  %1086 = vperm.xlu0 %8621, %v389_v51   ;;  %1365 = vst.msk [vmem:[#allocation2 + $0xe0] sm:$0xff] %vm403_vm1, %v1252_v58  ;;  %v1254_v62 = vsel %vm1231_vm6, %v1251_v44, %v1253_v55  ;;  %v393_v51 = vld [vmem:[%s11870_s1 + $0x100] sm:$0xff] }
 0x137   : > { %v1586_v1 = vsel %vm1563_vm5, %v1583_v45, %v1585_v57  ;;  %1366 = vst.msk [vmem:[#allocation2 + $0xf0] sm:$0xff] %vm403_vm1, %v1254_v62 }
 0x138   : > { %v916_v2 = vmax.f32 %v748_v54, %v875_v60  ;;  %1699 = vst.msk [vmem:[#allocation2 + $0xe8] sm:$0xff] %vm403_vm1, %v1586_v1  ;;  %v1161_v5 = vmul.f32 %v9351_v63, %v915_v59  ;;  %1091 = vperm.xlu1 %8622, %v390_v61   ;;  %v394_v61 = vld [vmem:[%s11870_s1 + $0x108] sm:$0xff]  ;;  %v9399_v1 = vpop.permute.xlu0 %1026 }
 0x139   : > { %v752_v7 = vpop.f32.mrb[28].mxu0  ;;  %11940 = vst [vmem:[#allocation17_spill] sm:$0xff] %v9399_v1 }
 0x13a   : > { %v753_v9 = vadd.f32 %v9181_v8, %v752_v7  ;;  %1421 = vrot.lane.b32.xlu0 %v1161_v5, %s8853_s22  ;;  %v1255_v12 = vrot.slane %v1161_v5, 7  ;;  %v1587_v13 = vrot.slane %v1161_v5, 1  ;;  %v8430_v15 = vpop.f32.mrb[29].mxu0  ;;  %v1162_v16 = vmul.f32 %v9357_v6, %v916_v2 }
 0x13b   : > { %v755_v18 = vpop.f32.mrb[30].mxu0 }
 0x13c   : > { %v876_v21 = vmul.f32 0.1, %v753_v9  ;;  %v1588_v22 = vsel %vm1563_vm5, %v1585_v57, %v1587_v13  ;;  %v756_v23 = vadd.f32 %v9181_v8, %v755_v18  ;;  %v1257_v24 = vrot.slane %v1162_v16, 7  ;;  %v8431_v26 = vpop.f32.mrb[31].mxu0  ;;  %1423 = vrot.lane.b32.xlu1 %v1162_v16, %s8853_s22 }
 0x13d   : > { %1700 = vst.msk [vmem:[#allocation2 + $0xf8] sm:$0xff] %vm403_vm1, %v1588_v22  ;;  %v1589_v27 = vrot.slane %v1162_v16, 1  ;;  %v1256_v28 = vsel %vm1231_vm6, %v1253_v55, %v1255_v12 }
 0x13e   : > { %v917_v29 = vmax.f32 %v753_v9, %v876_v21  ;;  %v877_v30 = vmul.f32 0.1, %v756_v23  ;;  %1096 = vperm.xlu0 %8621, %v391_v20   ;;  %1367 = vst.msk [vmem:[#allocation2 + $0x100] sm:$0xff] %vm403_vm1, %v1256_v28  ;;  %v1258_v33 = vsel %vm1231_vm6, %v1255_v12, %v1257_v24  ;;  %v9405_v9 = vpop.permute.xlu1 %1031  ;;  %v395_v20 = vld [vmem:[%s11870_s1 + $0x110] sm:$0xff] }
 0x13f   : > { %v1590_v35 = vsel %vm1563_vm5, %v1587_v13, %v1589_v27  ;;  %1368 = vst.msk [vmem:[#allocation2 + $0x110] sm:$0xff] %vm403_vm1, %v1258_v33  ;;  %11941 = vst [vmem:[#allocation18_spill] sm:$0xff] %v9405_v9 }
 0x140   : > { %v918_v37 = vmax.f32 %v756_v23, %v877_v30  ;;  %1701 = vst.msk [vmem:[#allocation2 + $0x108] sm:$0xff] %vm403_vm1, %v1590_v35  ;;  %v1163_v38 = vmul.f32 %v9375_v0, %v917_v29  ;;  %1101 = vperm.xlu1 %8622, %v392_v31   ;;  %v396_v29 = vld [vmem:[%s11870_s1 + $0x118] sm:$0xff] }
 0x141   : > { %v760_v41 = vpop.f32.mrb[32].mxu0 }
 0x142   : > { %v761_v43 = vadd.f32 %v9181_v8, %v760_v41  ;;  %1425 = vrot.lane.b32.xlu0 %v1163_v38, %s8853_s22  ;;  %v1259_v44 = vrot.slane %v1163_v38, 7  ;;  %v1591_v45 = vrot.slane %v1163_v38, 1  ;;  %v8434_v46 = vpop.f32.mrb[33].mxu0  ;;  %v1164_v49 = vmul.f32 %v9381_v39, %v918_v37 }
 0x143   : > { %v763_v50 = vpop.f32.mrb[34].mxu0 }
 0x144   : > { %v878_v52 = vmul.f32 0.1, %v761_v43  ;;  %v1592_v53 = vsel %vm1563_vm5, %v1589_v27, %v1591_v45  ;;  %v764_v54 = vadd.f32 %v9181_v8, %v763_v50  ;;  %v1261_v55 = vrot.slane %v1164_v49, 7  ;;  %v8435_v56 = vpop.f32.mrb[35].mxu0  ;;  %1427 = vrot.lane.b32.xlu1 %v1164_v49, %s8853_s22 }
 0x145   : > { %1702 = vst.msk [vmem:[#allocation2 + $0x118] sm:$0xff] %vm403_vm1, %v1592_v53  ;;  %v1593_v57 = vrot.slane %v1164_v49, 1  ;;  %v1260_v58 = vsel %vm1231_vm6, %v1257_v24, %v1259_v44 }
 0x146   : > { %v919_v59 = vmax.f32 %v761_v43, %v878_v52  ;;  %v879_v60 = vmul.f32 0.1, %v764_v54  ;;  %1106 = vperm.xlu0 %8621, %v393_v51   ;;  %1369 = vst.msk [vmem:[#allocation2 + $0x120] sm:$0xff] %vm403_vm1, %v1260_v58  ;;  %v1262_v62 = vsel %vm1231_vm6, %v1259_v44, %v1261_v55 }
 0x147   : > { %v1594_v2 = vsel %vm1563_vm5, %v1591_v45, %v1593_v57  ;;  %1370 = vst.msk [vmem:[#allocation2 + $0x130] sm:$0xff] %vm403_vm1, %v1262_v62 }
 0x148   : > { %v920_v5 = vmax.f32 %v764_v54, %v879_v60  ;;  %1703 = vst.msk [vmem:[#allocation2 + $0x128] sm:$0xff] %vm403_vm1, %v1594_v2  ;;  %v1165_v7 = vmul.f32 %v9399_v1, %v919_v59  ;;  %1111 = vperm.xlu1 %8622, %v394_v61  }
 0x149   : > { %v768_v12 = vpop.f32.mrb[36].mxu0 }
 0x14a   : > { %1429 = vrot.lane.b32.xlu0 %v1165_v7, %s8853_s22  ;;  %v1263_v13 = vrot.slane %v1165_v7, 7  ;;  %v1595_v15 = vrot.slane %v1165_v7, 1  ;;  %v9409_v16 = vmul.f32 %v9405_v9, %v920_v5  ;;  %v8438_v18 = vpop.f32.mrb[37].mxu0  ;;  %v1731_v7 = vld [vmem:[#allocation2 + $0x10] sm:$0xc0] }
 0x14b   : > { %v771_v21 = vpop.f32.mrb[38].mxu0 }
 0x14c   : > { %v1596_v22 = vsel %vm1563_vm5, %v1593_v57, %v1595_v15  ;;  %v1265_v23 = vrot.slane %v9409_v16, 7  ;;  %v1597_v24 = vrot.slane %v9409_v16, 1  ;;  %v8439_v26 = vpop.f32.mrb[39].mxu0  ;;  %1431 = vrot.lane.b32.xlu1 %v9409_v16, %s8853_s22  ;;  %v1264_v27 = vsel %vm1231_vm6, %v1261_v55, %v1263_v13 }
 0x14d   : > { %1704 = vst.msk [vmem:[#allocation2 + $0x138] sm:$0xff] %vm403_vm1, %v1596_v22  ;;  %1371 = vst.msk [vmem:[#allocation2 + $0x140] sm:$0xff] %vm403_vm1, %v1264_v27 }
 0x14e   : > { %v1598_v28 = vsel %vm1563_vm5, %v1595_v15, %v1597_v24  ;;  %1116 = vperm.xlu0 %8621, %v395_v20   ;;  %v1266_v30 = vsel %vm1231_vm6, %v1263_v13, %v1265_v23  ;;  %v1742_v13 = vld [vmem:[#allocation2 + $0x68] sm:$0xff]  ;;  %v9457_v15 = vld [vmem:[#allocation2] sm:$0xff] }
 0x14f   : > { %1705 = vst.msk [vmem:[#allocation2 + $0x148] sm:$0xff] %vm403_vm1, %v1598_v28  ;;  %1372 = vst.msk [vmem:[#allocation2 + $0x150] sm:$0xff] %vm403_vm1, %v1266_v30  ;;  %v1815_v18 = vpack.c.bf16 %v9457_v15, %v1731_v7  ;;  %v1820_v22 = vpack.c.bf16 %v1742_v13, %v9268_v34  ;;  %v769_v28 = vadd.f32 %v9181_v8, %v768_v12  ;;  %v8676_v12 = vld [vmem:[%s11873_s4 + $0xc0] sm:$0xff]  }
 0x150   : > { %1121 = vperm.xlu1 %8622, %v396_v29   ;;  %416 = vst.msk [vmem:[#allocation2 + $0x2c8] sm:$0xf8] %vm415_vm9, %v9457_v15 }
 0x151   : > { %v776_v31 = vpop.f32.mrb[40].mxu0 }
 0x152   : > { %v8442_v33 = vpop.f32.mrb[41].mxu0  ;;  %v777_v7 = vadd.f32 %v9181_v8, %v776_v31 }
 0x153   : > { %v9433_v35 = vpop.f32.mrb[42].mxu0  ;;  %v9466_v33 = vld [vmem:[#allocation2 + $0x78] sm:$0xff] }
 0x154   : > { %v8443_v37 = vpop.f32.mrb[43].mxu0 }
 0x159   : > { %v9435_v38 = vpop.f32.mrb[44].mxu0 }
 0x15a   : > { %v8446_v41 = vpop.f32.mrb[45].mxu0 }
 0x15b   : > { %v9437_v43 = vpop.f32.mrb[46].mxu0  ;;  %v2332_v41 = vrot.slane %v1815_v18, 3 }
 0x15c   : > { %v8447_v44 = vpop.f32.mrb[47].mxu0 }
 0x15d   : > { %v9469_v44 = vrot.slane %v1820_v22, 3 }
 0x161   : > { %v9439_v45 = vpop.f32.mrb[48].mxu0 }
 0x162   : > { %v8450_v46 = vpop.f32.mrb[49].mxu0 }
 0x163   : > { %v9441_v49 = vpop.f32.mrb[50].mxu0  ;;  %v772_v46 = vadd.f32 %v9181_v8, %v771_v21 }
 0x164   : > { %v8451_v50 = vpop.f32.mrb[51].mxu0 }
 0x165   : > { %v881_v21 = vmul.f32 0.1, %v772_v46 }
 0x169   : > { %v9443_v51 = vpop.f32.mrb[52].mxu0 }
 0x16a   : > { %v8454_v52 = vpop.f32.mrb[53].mxu0 }
 0x16b   : > { %v9445_v53 = vpop.f32.mrb[54].mxu0 }
 0x16c   : > { %v8455_v54 = vpop.f32.mrb[55].mxu0 }
 0x16d   : > { %v880_v54 = vmul.f32 0.1, %v769_v28 }
 0x171   : > { %v9447_v55 = vpop.f32.mrb[56].mxu0 }
 0x172   : > { %v8458_v56 = vpop.f32.mrb[57].mxu0 }
 0x173   : > { %v9449_v57 = vpop.f32.mrb[58].mxu0  ;;  %v1890_v56 = vpack.c.bf16 %v9466_v33, %v1742_v13  ;;  %v921_v13 = vmax.f32 %v769_v28, %v880_v54  ;;  %v397_v54 = vld [vmem:[%s11870_s1 + $0x120] sm:$0xff] }
 0x174   : > { %v8459_v58 = vpop.f32.mrb[59].mxu0 }
 0x179   : > { %v9451_v59 = vpop.f32.mrb[60].mxu0 }
 0x17a   : > { %v8462_v60 = vpop.f32.mrb[61].mxu0 }
 0x17b   : > { %v9453_v61 = vpop.f32.mrb[62].mxu0 }
 0x17c   : > { %v1398_v62 = vpop.permute.xlu0 %1397  ;;  %v8463_v2 = vpop.f32.mrb[63].mxu0 }
 0x17d   : > { %1521 = vst.msk [vmem:[#allocation2 + $0x40] sm:$0xff] %vm1520_vm8, %v1398_v62  ;;  %v2341_v62 = vsel %vm2331_vm7, %v9254_v19, %v9469_v44  ;;  %v922_v19 = vmax.f32 %v772_v46, %v881_v21 }
 0x17e   : > { %v1400_v5 = vpop.permute.xlu1 %1399 }
 0x17f   : > { %1522 = vst.msk [vmem:[#allocation2 + $0x50] sm:$0xff] %vm1520_vm8, %v1400_v5 }
 0x181   : > { %v9460_v20 = vpop.f32.mrb[64].mxu0 }
 0x182   : > { %v8466_v26 = vpop.f32.mrb[65].mxu0 }
 0x183   : > { %v9463_v27 = vpop.f32.mrb[66].mxu0  ;;  %v780_v26 = vadd.f32 %v9181_v8, %v9433_v35  ;;  %v9510_v35 = vadd.f32 %v9181_v8, %v9435_v38 }
 0x184   : > { %v1737_v29 = vld [vmem:[#allocation2 + $0x40] sm:$0xff]  ;;  %v8467_v30 = vpop.f32.mrb[67].mxu0 }
 0x185   : > { %v1817_v37 = vpack.c.bf16 %v1737_v29, %v9457_v15  ;;  %v883_v31 = vmul.f32 0.1, %v780_v26 }
 0x186   : > { %v9472_v50 = vld [vmem:[#allocation2 + $0x50] sm:$0xff] }
 0x187   : > { %v1887_v34 = vpack.c.bf16 %v9472_v50, %v1737_v29  ;;  %v9475_v52 = vrot.slane %v1817_v37, 3  ;;  %v882_v37 = vmul.f32 0.1, %v777_v7 }
 0x189   : > { %2122 = vmatmul.mubr.bf16.vlgmr.msra.gmra.mrb[0].mxu1 %v1887_v34  ;;  %v2334_v58 = vsel %vm2331_vm7, %v2332_v41, %v9475_v52  ;;  %v9483_v60 = vpop.f32.mrb[68].mxu0  ;;  %v923_v16 = vmax.f32 %v777_v7, %v882_v37  ;;  %v924_v37 = vmax.f32 %v780_v26, %v883_v31 }
 0x18a   : > { %7534 = vmatprep.mubr.msk.bf16.mxu1 %vm403_vm1, %v1890_v56  ;;  %2603 = vmatmul.mubr.bf16.vlgmr.msra.gmra.mrb[84].mxu0 %v2334_v58  ;;  %v8470_v2 = vpop.f32.mrb[69].mxu0  ;;  %v8677_v56 = vld [vmem:[%s11873_s4 + $0xc8] sm:$0xff]  }
 0x18b   : > { %7567 = vmatprep.mubr.msk.bf16.mxu0 %vm403_vm1, %v2341_v62  ;;  %v9490_v5 = vpop.f32.mrb[70].mxu0  ;;  %3201 = vmatpush1.bf16.msra.mxu1 %v8676_v12 }
 0x18c   : > { %v8471_v18 = vpop.f32.mrb[71].mxu0  ;;  %3202 = vmatprep.subr.bf16.mxu1 %v11880_v3 }
 0x18d   : > { %v9494_v22 = vpop.permute.xlu0 %1036 }
 0x18e   : > { %11942 = vst [vmem:[#allocation19_spill] sm:$0xff] %v9494_v22  ;;  %v1167_v29 = vmul.f32 %v9494_v22, %v921_v13 }
 0x18f   : > { %v9499_v30 = vpop.permute.xlu1 %1041  ;;  %3203 = vmatpush1.bf16.msra.mxu1 %v8677_v56 }
 0x190   : > { %11943 = vst [vmem:[#allocation20_spill] sm:$0xff] %v9499_v30  ;;  %v1267_v41 = vrot.slane %v1167_v29, 7  ;;  %v1599_v34 = vrot.slane %v1167_v29, 1  ;;  %v9502_v12 = vmul.f32 %v9499_v30, %v922_v19  ;;  %1433 = vrot.lane.b32.xlu0 %v1167_v29, %s8853_s22  ;;  %3204 = vmatprep.subr.bf16.mxu1 %v11880_v3 }
 0x191   : > { %v1402_v28 = vpop.permute.xlu0 %1401  ;;  %v9512_v46 = vpop.f32.mrb[72].mxu0 }
 0x192   : > { %v1600_v58 = vsel %vm1563_vm5, %v1597_v24, %v1599_v34  ;;  %v1269_v21 = vrot.slane %v9502_v12, 7  ;;  %v1601_v62 = vrot.slane %v9502_v12, 1  ;;  %1523 = vst.msk [vmem:[#allocation2 + $0x60] sm:$0xff] %vm1520_vm8, %v1402_v28  ;;  %1435 = vrot.lane.b32.xlu1 %v9502_v12, %s8853_s22  ;;  %v1268_v38 = vsel %vm1231_vm6, %v1265_v23, %v1267_v41  ;;  %v8474_v2 = vpop.f32.mrb[73].mxu0  ;;  %v398_v24 = vld [vmem:[%s11870_s1 + $0x128] sm:$0xff] }
 0x193   : > { %1706 = vst.msk [vmem:[#allocation2 + $0x158] sm:$0xff] %vm403_vm1, %v1600_v58  ;;  %v1404_v13 = vpop.permute.xlu1 %1403  ;;  %1373 = vst.msk [vmem:[#allocation2 + $0x160] sm:$0xff] %vm403_vm1, %v1268_v38  ;;  %v9533_v18 = vpop.f32.mrb[74].mxu0  ;;  %v9537_v23 = vld [vmem:[#allocation2 + $0x88] sm:$0xff]  ;;  %v884_v58 = vmul.f32 0.1, %v9510_v35 }
 0x194   : > { %v1602_v29 = vsel %vm1563_vm5, %v1599_v34, %v1601_v62  ;;  %1524 = vst.msk [vmem:[#allocation2 + $0x70] sm:$0xff] %vm1520_vm8, %v1404_v13  ;;  %1126 = vperm.xlu0 %8621, %v397_v54   ;;  %v1270_v19 = vsel %vm1231_vm6, %v1267_v41, %v1269_v21  ;;  %v8475_v12 = vpop.f32.mrb[75].mxu0  ;;  %v788_v34 = vadd.f32 %v9181_v8, %v9437_v43 }
 0x195   : > { %1707 = vst.msk [vmem:[#allocation2 + $0x168] sm:$0xff] %vm403_vm1, %v1602_v29  ;;  %v9542_v28 = vpop.permute.xlu0 %1046  ;;  %1374 = vst.msk [vmem:[#allocation2 + $0x170] sm:$0xff] %vm403_vm1, %v1270_v19  ;;  %v1822_v41 = vpack.c.bf16 %v9537_v23, %v9466_v33  ;;  %v399_v29 = vld [vmem:[%s11870_s1 + $0x130] sm:$0xff]  ;;  %v925_v26 = vmax.f32 %v9510_v35, %v884_v58  ;;  %v1748_v58 = vld [vmem:[#allocation2 + $0x98] sm:$0xff] }
 0x196   : > { %11944 = vst [vmem:[#allocation21_spill] sm:$0xff] %v9542_v28  ;;  %v1169_v7 = vmul.f32 %v9542_v28, %v923_v16  ;;  %1131 = vperm.xlu1 %8622, %v398_v24   ;;  %v885_v13 = vmul.f32 0.1, %v788_v34  ;;  %v9563_v24 = vadd.f32 %v9181_v8, %v9439_v45 }
 0x197   : > { %v9549_v54 = vpop.permute.xlu1 %1051  ;;  %v9580_v3 = vrot.slane %v1822_v41, 3 }
 0x198   : > { %11945 = vst [vmem:[#allocation22_spill] sm:$0xff] %v9549_v54  ;;  %v1271_v56 = vrot.slane %v1169_v7, 7  ;;  %v1603_v38 = vrot.slane %v1169_v7, 1  ;;  %v9554_v2 = vmul.f32 %v9549_v54, %v924_v37  ;;  %1437 = vrot.lane.b32.xlu0 %v1169_v7, %s8853_s22 }
 0x199   : > { %v1406_v43 = vpop.permute.xlu0 %1405  ;;  %v1741_v31 = vld [vmem:[#allocation2 + $0x60] sm:$0xff]  ;;  %v9565_v33 = vpop.f32.mrb[76].mxu0 }
 0x19a   : > { %v1604_v16 = vsel %vm1563_vm5, %v1601_v62, %v1603_v38  ;;  %v1605_v12 = vrot.slane %v9554_v2, 1  ;;  %1525 = vst.msk [vmem:[#allocation2 + $0x80] sm:$0xff] %vm1520_vm8, %v1406_v43  ;;  %1439 = vrot.lane.b32.xlu1 %v9554_v2, %s8853_s22  ;;  %v1819_v35 = vpack.c.bf16 %v1741_v31, %v9472_v50  ;;  %v8478_v7 = vpop.f32.mrb[77].mxu0  ;;  %v400_v62 = vld [vmem:[%s11870_s1 + $0x138] sm:$0xff]  ;;  %v1272_v43 = vsel %vm1231_vm6, %v1269_v21, %v1271_v56  ;;  %v2770_v48 = vld [vmem:[#allocation2 + $0x60] sm:$0xfc] }
 0x19b   : > { %1708 = vst.msk [vmem:[#allocation2 + $0x178] sm:$0xff] %vm403_vm1, %v1604_v16  ;;  %v1408_v45 = vpop.permute.xlu1 %1407  ;;  %v9575_v37 = vld [vmem:[#allocation2 + $0x70] sm:$0xff]  ;;  %v9582_v19 = vpop.f32.mrb[78].mxu0  ;;  %v9590_v7 = vld [vmem:[#allocation2 + $0xa8] sm:$0xff]  ;;  %1375 = vst.msk [vmem:[#allocation2 + $0x180] sm:$0xff] %vm403_vm1, %v1272_v43 }
 0x19c   : > { %v1606_v54 = vsel %vm1563_vm5, %v1603_v38, %v1605_v12  ;;  %1526 = vst.msk [vmem:[#allocation2 + $0x90] sm:$0xff] %vm1520_vm8, %v1408_v45  ;;  %1136 = vperm.xlu0 %8621, %v399_v29   ;;  %v1889_v50 = vpack.c.bf16 %v9575_v37, %v1741_v31  ;;  %v9588_v16 = vrot.slane %v1819_v35, 3  ;;  %v8479_v28 = vpop.f32.mrb[79].mxu0  ;;  %v886_v21 = vmul.f32 0.1, %v9563_v24 }
 0x19d   : > { %1709 = vst.msk [vmem:[#allocation2 + $0x188] sm:$0xff] %vm403_vm1, %v1606_v54  ;;  %v9594_v41 = vpop.permute.xlu0 %1056  ;;  %v1892_v38 = vpack.c.bf16 %v1748_v58, %v9537_v23  ;;  %v9600_v29 = vadd.f32 %v9181_v8, %v9441_v49  ;;  %v11947_v31 = vrot.slane %v9554_v2, 7  ;;  %v926_v45 = vmax.f32 %v788_v34, %v885_v13  ;;  %v401_v13 = vld [vmem:[%s11870_s1 + $0x140] sm:$0xf] }
 0x19e   : > { %11946 = vst [vmem:[#allocation23_spill] sm:$0xff] %v9594_v41  ;;  %v1171_v28 = vmul.f32 %v9594_v41, %v925_v26  ;;  %2130 = vmatmul.mubr.bf16.gmra.mrb[4].mxu1 %v1889_v50  ;;  %1141 = vperm.xlu1 %8622, %v400_v62   ;;  %v2339_v54 = vsel %vm2331_vm7, %v9475_v52, %v9588_v16  ;;  %v9660_v41 = vld [vmem:[#allocation2 + $0xc8] sm:$0xff] }
 0x19f   : > { %v1274_v35 = vsel %vm1231_vm6, %v1271_v56, %v11947_v31  ;;  %2611 = vmatmul.mubr.bf16.gmra.mrb[88].mxu0 %v2339_v54  ;;  %v9610_v23 = vpop.permute.xlu1 %1061  ;;  %7535 = vmatprep.mubr.msk.bf16.mxu1 %vm403_vm1, %v1892_v38  ;;  %v2345_v49 = vsel %vm2331_vm7, %v9469_v44, %v9580_v3  ;;  %v1824_v56 = vpack.c.bf16 %v9590_v7, %v1748_v58  ;;  %v887_v34 = vmul.f32 0.1, %v9600_v29 }
 0x1a0   : > { %1376 = vst.msk [vmem:[#allocation2 + $0x190] sm:$0xff] %vm403_vm1, %v1274_v35  ;;  %11948 = vst [vmem:[#allocation24_spill] sm:$0xff] %v9610_v23  ;;  %v1275_v26 = vrot.slane %v1171_v28, 7  ;;  %v1607_v62 = vrot.slane %v1171_v28, 1  ;;  %v9618_v43 = vmul.f32 %v9610_v23, %v926_v45  ;;  %7568 = vmatprep.mubr.msk.bf16.mxu0 %vm403_vm1, %v2345_v49  ;;  %1441 = vrot.lane.b32.xlu0 %v1171_v28, %s8853_s22 }
 0x1a1   : > { %v1410_v52 = vpop.permute.xlu0 %1409  ;;  %v927_v44 = vmax.f32 %v9563_v24, %v886_v21  ;;  %v1745_v50 = vld [vmem:[#allocation2 + $0x80] sm:$0xff]  ;;  %v9629_v58 = vadd.f32 %v9181_v8, %v9443_v51  ;;  %v9631_v38 = vpop.f32.mrb[80].mxu0  ;;  %v1752_v21 = vld [vmem:[#allocation2 + $0xb8] sm:$0xff]  ;;  %v9641_v45 = vrot.slane %v1824_v56, 3 }
 0x1a2   : > { %v1608_v31 = vsel %vm1563_vm5, %v1605_v12, %v1607_v62  ;;  %v1277_v35 = vrot.slane %v9618_v43, 7  ;;  %v1609_v28 = vrot.slane %v9618_v43, 1  ;;  %1527 = vst.msk [vmem:[#allocation2 + $0xa0] sm:$0xff] %vm1520_vm8, %v1410_v52  ;;  %1443 = vrot.lane.b32.xlu1 %v9618_v43, %s8853_s22  ;;  %v1821_v24 = vpack.c.bf16 %v1745_v50, %v9575_v37  ;;  %v8482_v54 = vpop.f32.mrb[81].mxu0  ;;  %v9646_v12 = vld [vmem:[%s11872_s3] ss:$0 sm:$0xff] }
 0x1a3   : > { %1710 = vst.msk [vmem:[#allocation2 + $0x198] sm:$0xff] %vm403_vm1, %v1608_v31  ;;  %v1412_v8 = vpop.permute.xlu1 %1411  ;;  %v1747_v51 = vld [vmem:[#allocation2 + $0x90] sm:$0xff]  ;;  %v9650_v49 = vadd.f32 %v9646_v12, %v9445_v53  ;;  %v859_v43 = vpop.f32.mrb[82].mxu0  ;;  %v11949_v37 = vrot.slane %v9554_v2, 7 }
 0x1a4   : > { %v8678_v31 = vld [vmem:[%s11873_s4 + $0xd0] sm:$0xff]   ;;  %v1610_v56 = vsel %vm1563_vm5, %v1607_v62, %v1609_v28  ;;  %1528 = vst.msk [vmem:[#allocation2 + $0xb0] sm:$0xff] %vm1520_vm8, %v1412_v8  ;;  %1146 = vperm.xlu0 %8621, %v401_v13   ;;  %v1891_v54 = vpack.c.bf16 %v1747_v51, %v1745_v50  ;;  %v2342_v23 = vrot.slane %v1821_v24, 3  ;;  %v8483_v53 = vpop.f32.mrb[83].mxu0  ;;  %v1278_v2 = vsel %vm1231_vm6, %v1275_v26, %v1277_v35 }
 0x1a5   : > { %v1276_v52 = vsel %vm1231_vm6, %v11949_v37, %v1275_v26  ;;  %1711 = vst.msk [vmem:[#allocation2 + $0x1a8] sm:$0xff] %vm403_vm1, %v1610_v56  ;;  %v9665_v43 = vpop.permute.xlu0 %1066  ;;  %v928_v37 = vmax.f32 %v9600_v29, %v887_v34  ;;  %v1894_v62 = vpack.c.bf16 %v1752_v21, %v9590_v7  ;;  %3205 = vmatpush1.bf16.msra.mxu1 %v8678_v31  ;;  %1378 = vst.msk [vmem:[#allocation2 + $0x1b0] sm:$0xff] %vm403_vm1, %v1278_v2  ;;  %v11951_v26 = vmov 0  }
 0x1a6   : > { %1377 = vst.msk [vmem:[#allocation2 + $0x1a0] sm:$0xff] %vm403_vm1, %v1276_v52  ;;  %11950 = vst [vmem:[#allocation25_spill] sm:$0xff] %v9665_v43  ;;  %v1173_v13 = vmul.f32 %v9665_v43, %v927_v44  ;;  %2138 = vmatmul.mubr.bf16.gmra.mrb[8].mxu1 %v1891_v54  ;;  %v2343_v50 = vsel %vm2331_vm7, %v9588_v16, %v2342_v23  ;;  %v888_v24 = vmul.f32 0.1, %v9629_v58  ;;  %3206 = vmatprep.subr.bf16.mxu1 %v11951_v26 }
 0x1a7   : > { %2619 = vmatmul.mubr.bf16.gmra.mrb[92].mxu0 %v2343_v50  ;;  %7536 = vmatprep.mubr.msk.bf16.mxu1 %vm403_vm1, %v1894_v62  ;;  %v2349_v7 = vsel %vm2331_vm7, %v9580_v3, %v9641_v45  ;;  %v1826_v29 = vpack.c.bf16 %v9660_v41, %v1752_v21  ;;  %v9680_v44 = vpop.permute.xlu1 %1071  ;;  %v889_v16 = vmul.f32 0.1, %v9650_v49  ;;  %v9688_v54 = vadd.f32 %v9646_v12, %v9447_v55  ;;  %v1756_v3 = vld [vmem:[#allocation2 + $0xd8] sm:$0xff] }
 0x1a8   : > { %v1279_v34 = vrot.slane %v1173_v13, 7  ;;  %v1611_v8 = vrot.slane %v1173_v13, 1  ;;  %11952 = vst [vmem:[#allocation26_spill] sm:$0xff] %v9680_v44  ;;  %7569 = vmatprep.mubr.msk.bf16.mxu0 %vm403_vm1, %v2349_v7  ;;  %1445 = vrot.lane.b32.xlu1 %v1173_v13, %s8853_s22  ;;  %v1174_v52 = vmul.f32 %v9680_v44, %v928_v37  ;;  %v929_v53 = vmax.f32 %v9629_v58, %v888_v24 }
 0x1a9   : > { %v1414_v31 = vpop.permute.xlu0 %1413  ;;  %v1749_v56 = vld [vmem:[#allocation2 + $0xa0] sm:$0xff]  ;;  %v9697_v50 = vrot.slane %v1826_v29, 3  ;;  %v930_v58 = vmax.f32 %v9650_v49, %v889_v16  ;;  %v890_v29 = vmul.f32 0.1, %v9688_v54 }
 0x1aa   : > { %v1612_v21 = vsel %vm1563_vm5, %v1609_v28, %v1611_v8  ;;  %1529 = vst.msk [vmem:[#allocation2 + $0xc0] sm:$0xff] %vm1520_vm8, %v1414_v31  ;;  %v1823_v2 = vpack.c.bf16 %v1749_v56, %v1747_v51  ;;  %v1280_v62 = vsel %vm1231_vm6, %v1277_v35, %v1279_v34  ;;  %v1281_v37 = vrot.slane %v1174_v52, 7  ;;  %1447 = vrot.lane.b32.xlu0 %v1174_v52, %s8853_s22  ;;  %v9702_v51 = vld [vmem:[#allocation2 + $0xe8] sm:$0xff] }
 0x1ab   : > { %1712 = vst.msk [vmem:[#allocation2 + $0x1b8] sm:$0xff] %vm403_vm1, %v1612_v21  ;;  %v1613_v13 = vrot.slane %v1174_v52, 1  ;;  %v1751_v55 = vld [vmem:[#allocation2 + $0xb0] sm:$0xff]  ;;  %1379 = vst.msk [vmem:[#allocation2 + $0x1c0] sm:$0xff] %vm403_vm1, %v1280_v62  ;;  %v1416_v28 = vpop.permute.xlu1 %1415  ;;  %v1896_v35 = vpack.c.bf16 %v1756_v3, %v9660_v41  ;;  %v9711_v52 = vadd.f32 %v9646_v12, %v9449_v57  ;;  %v2353_v57 = vsel %vm2331_vm7, %v9641_v45, %v9697_v50 }
 0x1ac   : > { %v1893_v7 = vpack.c.bf16 %v1751_v55, %v1749_v56  ;;  %v2346_v31 = vrot.slane %v1823_v2, 3  ;;  %1530 = vst.msk [vmem:[#allocation2 + $0xd0] sm:$0xff] %vm1520_vm8, %v1416_v28  ;;  %v1282_v56 = vsel %vm1231_vm6, %v1279_v34, %v1281_v37  ;;  %v1828_v34 = vpack.c.bf16 %v9702_v51, %v1756_v3 }
 0x1ad   : > { %v1614_v15 = vsel %vm1563_vm5, %v1611_v8, %v1613_v13  ;;  %v9706_v24 = vpop.permute.xlu0 %1076  ;;  %1380 = vst.msk [vmem:[#allocation2 + $0x1d0] sm:$0xff] %vm403_vm1, %v1282_v56  ;;  %v8679_v8 = vld [vmem:[%s11873_s4 + $0xd8] sm:$0xff]   ;;  %v891_v62 = vmul.f32 0.1, %v9711_v52  ;;  %v931_v28 = vmax.f32 %v9688_v54, %v890_v29 }
 0x1ae   : > { %11953 = vst [vmem:[#allocation27_spill] sm:$0xff] %v9706_v24  ;;  %1713 = vst.msk [vmem:[#allocation2 + $0x1c8] sm:$0xff] %vm403_vm1, %v1614_v15  ;;  %v1175_v41 = vmul.f32 %v9706_v24, %v929_v53  ;;  %2146 = vmatmul.mubr.bf16.gmra.mrb[12].mxu1 %v1893_v7  ;;  %v2347_v49 = vsel %vm2331_vm7, %v2342_v23, %v2346_v31  ;;  %v1760_v54 = vld [vmem:[#allocation2 + $0xf8] sm:$0xff]  ;;  %v9743_v29 = vrot.slane %v1828_v34, 3 }
 0x1af   : > { %2627 = vmatmul.mubr.bf16.gmra.mrb[96].mxu0 %v2347_v49  ;;  %7537 = vmatprep.mubr.msk.bf16.mxu1 %vm403_vm1, %v1896_v35  ;;  %v9726_v53 = vpop.permute.xlu1 %1081  ;;  %v9737_v35 = vadd.f32 %v9646_v12, %v9451_v59  ;;  %v9748_v59 = vadd.f32 %v9646_v12, %v9453_v61  ;;  %v932_v34 = vmax.f32 %v9711_v52, %v891_v62 }
 0x1b0   : > { %v1283_v16 = vrot.slane %v1175_v41, 7  ;;  %v1615_v21 = vrot.slane %v1175_v41, 1  ;;  %11954 = vst [vmem:[#allocation28_spill] sm:$0xff] %v9726_v53  ;;  %7570 = vmatprep.mubr.msk.bf16.mxu0 %vm403_vm1, %v2353_v57  ;;  %1449 = vrot.lane.b32.xlu1 %v1175_v41, %s8853_s22  ;;  %v1176_v23 = vmul.f32 %v9726_v53, %v930_v58  ;;  %v2357_v52 = vsel %vm2331_vm7, %v9697_v50, %v9743_v29 }
 0x1b1   : > { %v1418_v2 = vpop.permute.xlu0 %1417  ;;  %v1753_v7 = vld [vmem:[#allocation2 + $0xc0] sm:$0xff]  ;;  %3207 = vmatpush1.bf16.msra.mxu1 %v8679_v8  ;;  %v9777_v50 = vadd.f32 %v9646_v12, %v9460_v20 }
 0x1b2   : > { %v1616_v45 = vsel %vm1563_vm5, %v1613_v13, %v1615_v21  ;;  %1531 = vst.msk [vmem:[#allocation2 + $0xe0] sm:$0xff] %vm1520_vm8, %v1418_v2  ;;  %v1825_v3 = vpack.c.bf16 %v1753_v7, %v1751_v55  ;;  %v1284_v15 = vsel %vm1231_vm6, %v1281_v37, %v1283_v16  ;;  %3208 = vmatprep.subr.bf16.mxu1 %v11951_v26  ;;  %v1285_v58 = vrot.slane %v1176_v23, 7  ;;  %v9750_v37 = vld [vmem:[#allocation2 + $0x108] sm:$0xff] }
 0x1b3   : > { %1714 = vst.msk [vmem:[#allocation2 + $0x1d8] sm:$0xff] %vm403_vm1, %v1616_v45  ;;  %v1617_v56 = vrot.slane %v1176_v23, 1  ;;  %1451 = vrot.lane.b32.xlu0 %v1176_v23, %s8853_s22  ;;  %1381 = vst.msk [vmem:[#allocation2 + $0x1e0] sm:$0xff] %vm403_vm1, %v1284_v15  ;;  %v1420_v13 = vpop.permute.xlu1 %1419  ;;  %v1755_v55 = vld [vmem:[#allocation2 + $0xd0] sm:$0xff]  ;;  %v892_v45 = vmul.f32 0.1, %v9737_v35 }
 0x1b4   : > { %v2350_v41 = vrot.slane %v1825_v3, 3  ;;  %1532 = vst.msk [vmem:[#allocation2 + $0xf0] sm:$0xff] %vm1520_vm8, %v1420_v13  ;;  %v1895_v57 = vpack.c.bf16 %v1755_v55, %v1753_v7  ;;  %v1286_v23 = vsel %vm1231_vm6, %v1283_v16, %v1285_v58  ;;  %v1898_v3 = vpack.c.bf16 %v1760_v54, %v9702_v51 }
 0x1b5   : > { %v1618_v49 = vsel %vm1563_vm5, %v1615_v21, %v1617_v56  ;;  %v9754_v8 = vpop.permute.xlu0 %1086  ;;  %1382 = vst.msk [vmem:[#allocation2 + $0x1f0] sm:$0xff] %vm403_vm1, %v1286_v23  ;;  %v1830_v16 = vpack.c.bf16 %v9750_v37, %v1760_v54  ;;  %v933_v13 = vmax.f32 %v9737_v35, %v892_v45  ;;  %v9791_v35 = vadd.f32 %v9646_v12, %v9463_v27 }
 0x1b6   : > { %11955 = vst [vmem:[#allocation29_spill] sm:$0xff] %v9754_v8  ;;  %1715 = vst.msk [vmem:[#allocation2 + $0x1e8] sm:$0xff] %vm403_vm1, %v1618_v49  ;;  %v1177_v2 = vmul.f32 %v9754_v8, %v931_v28  ;;  %v2351_v61 = vsel %vm2331_vm7, %v2346_v31, %v2350_v41  ;;  %2154 = vmatmul.mubr.bf16.gmra.mrb[16].mxu1 %v1895_v57  ;;  %v893_v31 = vmul.f32 0.1, %v9748_v59 }
 0x1b7   : > { %2635 = vmatmul.mubr.bf16.gmra.mrb[100].mxu0 %v2351_v61  ;;  %v9768_v7 = vpop.permute.xlu1 %1091  ;;  %7538 = vmatprep.mubr.msk.bf16.mxu1 %vm403_vm1, %v1898_v3  ;;  %v9785_v61 = vrot.slane %v1830_v16, 3 }
 0x1b8   : > { %v1287_v21 = vrot.slane %v1177_v2, 7  ;;  %v1619_v62 = vrot.slane %v1177_v2, 1  ;;  %11956 = vst [vmem:[#allocation30_spill] sm:$0xff] %v9768_v7  ;;  %7571 = vmatprep.mubr.msk.bf16.mxu0 %vm403_vm1, %v2357_v52  ;;  %v1178_v51 = vmul.f32 %v9768_v7, %v932_v34  ;;  %1453 = vrot.lane.b32.xlu1 %v1177_v2, %s8853_s22  ;;  %v1764_v2 = vld [vmem:[#allocation2 + $0x118] sm:$0xff]  ;;  %v934_v52 = vmax.f32 %v9748_v59, %v893_v31 }
 0x1b9   : > { %v1422_v28 = vpop.permute.xlu0 %1421  ;;  %v1757_v15 = vld [vmem:[#allocation2 + $0xe0] sm:$0xff]  ;;  %v1900_v31 = vpack.c.bf16 %v1764_v2, %v9750_v37 }
 0x1ba   : > { %v1620_v54 = vsel %vm1563_vm5, %v1617_v56, %v1619_v62  ;;  %1533 = vst.msk [vmem:[#allocation2 + $0x100] sm:$0xff] %vm1520_vm8, %v1422_v28  ;;  %v1827_v49 = vpack.c.bf16 %v1757_v15, %v1755_v55  ;;  %v1288_v57 = vsel %vm1231_vm6, %v1285_v58, %v1287_v21  ;;  %v1289_v34 = vrot.slane %v1178_v51, 7  ;;  %1455 = vrot.lane.b32.xlu0 %v1178_v51, %s8853_s22  ;;  %v9793_v58 = vld [vmem:[#allocation2 + $0x128] sm:$0xff] }
 0x1bb   : > { %1716 = vst.msk [vmem:[#allocation2 + $0x1f8] sm:$0xff] %vm403_vm1, %v1620_v54  ;;  %v1621_v23 = vrot.slane %v1178_v51, 1  ;;  %1383 = vst.msk [vmem:[#allocation2 + $0x200] sm:$0xff] %vm403_vm1, %v1288_v57  ;;  %v1424_v20 = vpop.permute.xlu1 %1423  ;;  %v1759_v56 = vld [vmem:[#allocation2 + $0xf0] sm:$0xff]  ;;  %v894_v51 = vmul.f32 0.1, %v9777_v50 }
 0x1bc   : > { %v2354_v3 = vrot.slane %v1827_v49, 3  ;;  %1534 = vst.msk [vmem:[#allocation2 + $0x110] sm:$0xff] %vm1520_vm8, %v1424_v20  ;;  %v1897_v16 = vpack.c.bf16 %v1759_v56, %v1757_v15  ;;  %v1290_v28 = vsel %vm1231_vm6, %v1287_v21, %v1289_v34  ;;  %v2361_v21 = vsel %vm2331_vm7, %v9743_v29, %v9785_v61 }
 0x1bd   : > { %v1622_v55 = vsel %vm1563_vm5, %v1619_v62, %v1621_v23  ;;  %v9797_v45 = vpop.permute.xlu0 %1096  ;;  %1384 = vst.msk [vmem:[#allocation2 + $0x210] sm:$0xff] %vm403_vm1, %v1290_v28  ;;  %v8680_v62 = vld [vmem:[%s11873_s4 + $0xe0] sm:$0xff]   ;;  %v1832_v15 = vpack.c.bf16 %v9793_v58, %v1764_v2  ;;  %v935_v20 = vmax.f32 %v9777_v50, %v894_v51  ;;  %v1768_v50 = vld [vmem:[#allocation2 + $0x138] sm:$0xff] }
 0x1be   : > { %11957 = vst [vmem:[#allocation31_spill] sm:$0xff] %v9797_v45  ;;  %1717 = vst.msk [vmem:[#allocation2 + $0x208] sm:$0xff] %vm403_vm1, %v1622_v55  ;;  %v1179_v59 = vmul.f32 %v9797_v45, %v933_v13  ;;  %v2355_v27 = vsel %vm2331_vm7, %v2350_v41, %v2354_v3  ;;  %2162 = vmatmul.mubr.bf16.gmra.mrb[20].mxu1 %v1897_v16  ;;  %v895_v41 = vmul.f32 0.1, %v9791_v35 }
 0x1bf   : > { %2643 = vmatmul.mubr.bf16.gmra.mrb[104].mxu0 %v2355_v27  ;;  %v9813_v49 = vpop.permute.xlu1 %1101  ;;  %7539 = vmatprep.mubr.msk.bf16.mxu1 %vm403_vm1, %v1900_v31  ;;  %v9825_v16 = vadd.f32 %v9646_v12, %v9483_v60  ;;  %v9831_v51 = vrot.slane %v1832_v15, 3  ;;  %v9835_v31 = vld [vmem:[#allocation2 + $0x148] sm:$0xff]  ;;  %v836_v15 = vadd.f32 %v9646_v12, %v9490_v5 }
 0x1c0   : > { %v1291_v54 = vrot.slane %v1179_v59, 7  ;;  %v1623_v13 = vrot.slane %v1179_v59, 1  ;;  %11958 = vst [vmem:[#allocation32_spill] sm:$0xff] %v9813_v49  ;;  %7572 = vmatprep.mubr.msk.bf16.mxu0 %vm403_vm1, %v2361_v21  ;;  %v1180_v37 = vmul.f32 %v9813_v49, %v934_v52  ;;  %1457 = vrot.lane.b32.xlu1 %v1179_v59, %s8853_s22  ;;  %v936_v60 = vmax.f32 %v9791_v35, %v895_v41 }
 0x1c1   : > { %v1426_v57 = vpop.permute.xlu0 %1425  ;;  %v1761_v29 = vld [vmem:[#allocation2 + $0x100] sm:$0xff]  ;;  %3209 = vmatpush1.bf16.msra.mxu1 %v8680_v62  ;;  %v896_v41 = vmul.f32 0.1, %v9825_v16  ;;  %v2365_v5 = vsel %vm2331_vm7, %v9785_v61, %v9831_v51 }
 0x1c2   : > { %v1624_v2 = vsel %vm1563_vm5, %v1621_v23, %v1623_v13  ;;  %1535 = vst.msk [vmem:[#allocation2 + $0x120] sm:$0xff] %vm1520_vm8, %v1426_v57  ;;  %v1829_v55 = vpack.c.bf16 %v1761_v29, %v1759_v56  ;;  %v1292_v28 = vsel %vm1231_vm6, %v1289_v34, %v1291_v54  ;;  %3210 = vmatprep.subr.bf16.mxu1 %v11951_v26  ;;  %v1293_v52 = vrot.slane %v1180_v37, 7 }
 0x1c3   : > { %1718 = vst.msk [vmem:[#allocation2 + $0x218] sm:$0xff] %vm403_vm1, %v1624_v2  ;;  %v1625_v59 = vrot.slane %v1180_v37, 1  ;;  %1459 = vrot.lane.b32.xlu0 %v1180_v37, %s8853_s22  ;;  %1385 = vst.msk [vmem:[#allocation2 + $0x220] sm:$0xff] %vm403_vm1, %v1292_v28  ;;  %v1428_v23 = vpop.permute.xlu1 %1427  ;;  %v1763_v56 = vld [vmem:[#allocation2 + $0x110] sm:$0xff]  ;;  %v897_v28 = vmul.f32 0.1, %v836_v15 }
 0x1c4   : > { %v2358_v27 = vrot.slane %v1829_v55, 3  ;;  %1536 = vst.msk [vmem:[#allocation2 + $0x130] sm:$0xff] %vm1520_vm8, %v1428_v23  ;;  %v1899_v21 = vpack.c.bf16 %v1763_v56, %v1761_v29  ;;  %v1294_v37 = vsel %vm1231_vm6, %v1291_v54, %v1293_v52  ;;  %v8681_v29 = vld [vmem:[%s11873_s4 + $0xe8] sm:$0xff]   ;;  %v1834_v54 = vpack.c.bf16 %v9835_v31, %v1768_v50 }
 0x1c5   : > { %v1626_v34 = vsel %vm1563_vm5, %v1623_v13, %v1625_v59  ;;  %v9839_v62 = vpop.permute.xlu0 %1106  ;;  %v1902_v13 = vpack.c.bf16 %v1768_v50, %v9793_v58  ;;  %1386 = vst.msk [vmem:[#allocation2 + $0x230] sm:$0xff] %vm403_vm1, %v1294_v37  ;;  %3211 = vmatpush1.bf16.msra.mxu1 %v8681_v29  ;;  %v937_v50 = vmax.f32 %v9825_v16, %v896_v41 }
 0x1c6   : > { %11959 = vst [vmem:[#allocation33_spill] sm:$0xff] %v9839_v62  ;;  %1719 = vst.msk [vmem:[#allocation2 + $0x228] sm:$0xff] %vm403_vm1, %v1626_v34  ;;  %v1181_v57 = vmul.f32 %v9839_v62, %v935_v20  ;;  %v2359_v35 = vsel %vm2331_vm7, %v2354_v3, %v2358_v27  ;;  %2170 = vmatmul.mubr.bf16.gmra.mrb[24].mxu1 %v1899_v21  ;;  %3212 = vmatprep.subr.bf16.mxu1 %v11951_v26 }
 0x1c7   : > { %2651 = vmatmul.mubr.bf16.gmra.mrb[108].mxu0 %v2359_v35  ;;  %v9857_v2 = vpop.permute.xlu1 %1111  ;;  %7540 = vmatprep.mubr.msk.bf16.mxu1 %vm403_vm1, %v1902_v13  ;;  %v2368_v35 = vrot.slane %v1834_v54, 3  ;;  %v938_v41 = vmax.f32 %v836_v15, %v897_v28 }
 0x1c8   : > { %v1295_v20 = vrot.slane %v1181_v57, 7  ;;  %v1627_v3 = vrot.slane %v1181_v57, 1  ;;  %11960 = vst [vmem:[#allocation34_spill] sm:$0xff] %v9857_v2  ;;  %7573 = vmatprep.mubr.msk.bf16.mxu0 %vm403_vm1, %v2365_v5  ;;  %v1182_v58 = vmul.f32 %v9857_v2, %v936_v60  ;;  %1461 = vrot.lane.b32.xlu1 %v1181_v57, %s8853_s22  ;;  %v1772_v57 = vld [vmem:[#allocation2 + $0x158] sm:$0xff]  ;;  %v1774_v5 = vld [vmem:[#allocation2 + $0x168] sm:$0xff] }
 0x1c9   : > { %v1430_v55 = vpop.permute.xlu0 %1429  ;;  %v1765_v23 = vld [vmem:[#allocation2 + $0x120] sm:$0xff] }
 0x1ca   : > { %v1628_v61 = vsel %vm1563_vm5, %v1625_v59, %v1627_v3  ;;  %1537 = vst.msk [vmem:[#allocation2 + $0x140] sm:$0xff] %vm1520_vm8, %v1430_v55  ;;  %v1831_v34 = vpack.c.bf16 %v1765_v23, %v1763_v56  ;;  %v1296_v21 = vsel %vm1231_vm6, %v1293_v52, %v1295_v20  ;;  %v1297_v60 = vrot.slane %v1182_v58, 7  ;;  %1463 = vrot.lane.b32.xlu0 %v1182_v58, %s8853_s22 }
 0x1cb   : > { %1720 = vst.msk [vmem:[#allocation2 + $0x238] sm:$0xff] %vm403_vm1, %v1628_v61  ;;  %v1629_v37 = vrot.slane %v1182_v58, 1  ;;  %1387 = vst.msk [vmem:[#allocation2 + $0x240] sm:$0xff] %vm403_vm1, %v1296_v21  ;;  %v1432_v59 = vpop.permute.xlu1 %1431  ;;  %v1767_v13 = vld [vmem:[#allocation2 + $0x130] sm:$0xff]  ;;  %v1904_v61 = vpack.c.bf16 %v1772_v57, %v9835_v31 }
 0x1cc   : > { %v2362_v29 = vrot.slane %v1831_v34, 3  ;;  %1538 = vst.msk [vmem:[#allocation2 + $0x150] sm:$0xff] %vm1520_vm8, %v1432_v59  ;;  %v1901_v56 = vpack.c.bf16 %v1767_v13, %v1765_v23  ;;  %v1298_v55 = vsel %vm1231_vm6, %v1295_v20, %v1297_v60  ;;  %v1836_v34 = vpack.c.bf16 %v1774_v5, %v1772_v57  ;;  %v1776_v59 = vld [vmem:[#allocation2 + $0x178] sm:$0xff] }
 0x1cd   : > { %v1630_v16 = vsel %vm1563_vm5, %v1627_v3, %v1629_v37  ;;  %v9873_v52 = vpop.permute.xlu0 %1116  ;;  %1388 = vst.msk [vmem:[#allocation2 + $0x250] sm:$0xff] %vm403_vm1, %v1298_v55  ;;  %v2369_v3 = vsel %vm2331_vm7, %v9831_v51, %v2368_v35  ;;  %v1906_v55 = vpack.c.bf16 %v1776_v59, %v1774_v5  ;;  %v8684_v5 = vld [vmem:[%s11873_s4 + $0x100] sm:$0xff]   ;;  %v1798_v62 = vld [vmem:[#allocation2 + $0x228] sm:$0xff] }
 0x1ce   : > { %11961 = vst [vmem:[#allocation35_spill] sm:$0xff] %v9873_v52  ;;  %1721 = vst.msk [vmem:[#allocation2 + $0x248] sm:$0xff] %vm403_vm1, %v1630_v16  ;;  %v1183_v54 = vmul.f32 %v9873_v52, %v937_v50  ;;  %v2363_v58 = vsel %vm2331_vm7, %v2358_v27, %v2362_v29  ;;  %2178 = vmatmul.mubr.bf16.gmra.mrb[28].mxu1 %v1901_v56  ;;  %v2372_v16 = vrot.slane %v1836_v34, 3 }
 0x1cf   : > { %2659 = vmatmul.mubr.bf16.gmra.mrb[112].mxu0 %v2363_v58  ;;  %v9883_v28 = vpop.permute.xlu1 %1121  ;;  %7541 = vmatprep.mubr.msk.bf16.mxu1 %vm403_vm1, %v1904_v61  ;;  %v8682_v58 = vld [vmem:[%s11873_s4 + $0xf0] sm:$0xff]  }
 0x1d0   : > { %v1299_v23 = vrot.slane %v1183_v54, 7  ;;  %v1631_v15 = vrot.slane %v1183_v54, 1  ;;  %11962 = vst [vmem:[#allocation36_spill] sm:$0xff] %v9883_v28  ;;  %7574 = vmatprep.mubr.msk.bf16.mxu0 %vm403_vm1, %v2369_v3  ;;  %v9888_v27 = vmul.f32 %v9883_v28, %v938_v41  ;;  %1465 = vrot.lane.b32.xlu1 %v1183_v54, %s8853_s22  ;;  %v2373_v61 = vsel %vm2331_vm7, %v2368_v35, %v2372_v16  ;;  %v8685_v3 = vld [vmem:[%s11873_s4 + $0x108] sm:$0xff]  }
 0x1d1   : > { %v1769_v31 = vld [vmem:[#allocation2 + $0x140] sm:$0xff]  ;;  %3213 = vmatpush1.bf16.msra.mxu1 %v8682_v58 }
 0x1d2   : > { %v1632_v20 = vsel %vm1563_vm5, %v1629_v37, %v1631_v15  ;;  %v1833_v50 = vpack.c.bf16 %v1769_v31, %v1767_v13  ;;  %v1300_v51 = vsel %vm1231_vm6, %v1297_v60, %v1299_v23  ;;  %v1301_v21 = vrot.slane %v9888_v27, 7  ;;  %1467 = vrot.lane.b32.xlu0 %v9888_v27, %s8853_s22  ;;  %3214 = vmatprep.subr.bf16.mxu1 %v11951_v26 }
 0x1d3   : > { %1722 = vst.msk [vmem:[#allocation2 + $0x258] sm:$0xff] %vm403_vm1, %v1632_v20  ;;  %v1633_v57 = vrot.slane %v9888_v27, 1  ;;  %1389 = vst.msk [vmem:[#allocation2 + $0x260] sm:$0xff] %vm403_vm1, %v1300_v51  ;;  %v1771_v56 = vld [vmem:[#allocation2 + $0x150] sm:$0xff] }
 0x1d4   : > { %v2366_v41 = vrot.slane %v1833_v50, 3  ;;  %v1903_v60 = vpack.c.bf16 %v1771_v56, %v1769_v31  ;;  %v1302_v13 = vsel %vm1231_vm6, %v1299_v23, %v1301_v21  ;;  %v1778_v23 = vld [vmem:[#allocation2 + $0x188] sm:$0xff]  ;;  %v841_v31 = vadd.f32 %v9646_v12, %v9512_v46  ;;  %v9931_v50 = vld [vmem:[#allocation2 + $0x198] sm:$0xff] }
 0x1d5   : > { %v1634_v37 = vsel %vm1563_vm5, %v1631_v15, %v1633_v57  ;;  %1390 = vst.msk [vmem:[#allocation2 + $0x270] sm:$0xff] %vm403_vm1, %v1302_v13  ;;  %v1838_v15 = vpack.c.bf16 %v1778_v23, %v1776_v59  ;;  %v1908_v59 = vpack.c.bf16 %v9931_v50, %v1778_v23 }
 0x1d6   : > { %1723 = vst.msk [vmem:[#allocation2 + $0x268] sm:$0xff] %vm403_vm1, %v1634_v37  ;;  %v2367_v54 = vsel %vm2331_vm7, %v2362_v29, %v2366_v41  ;;  %2186 = vmatmul.mubr.bf16.gmra.mrb[32].mxu1 %v1903_v60  ;;  %v8683_v29 = vld [vmem:[%s11873_s4 + $0xf8] sm:$0xff]   ;;  %v844_v37 = vadd.f32 %v9646_v12, %v9533_v18  ;;  %v898_v58 = vmul.f32 0.1, %v841_v31 }
 0x1d7   : > { %2667 = vmatmul.mubr.bf16.gmra.mrb[116].mxu0 %v2367_v54  ;;  %7542 = vmatprep.mubr.msk.bf16.mxu1 %vm403_vm1, %v1906_v55  ;;  %v9937_v13 = vrot.slane %v1838_v15, 3 }
 0x1d8   : > { %7575 = vmatprep.mubr.msk.bf16.mxu0 %vm403_vm1, %v2373_v61  ;;  %3215 = vmatpush1.bf16.msra.mxu1 %v8683_v29  ;;  %v899_v61 = vmul.f32 0.1, %v844_v37  ;;  %v939_v29 = vmax.f32 %v841_v31, %v898_v58 }
 0x1d9   : > { %3216 = vmatprep.subr.bf16.mxu1 %v11951_v26  ;;  %v2377_v18 = vsel %vm2331_vm7, %v2372_v16, %v9937_v13 }
 0x1dc   : > { %3217 = vmatpush1.bf16.msra.mxu1 %v8684_v5  ;;  %v8686_v5 = vld [vmem:[%s11873_s4 + $0x110] sm:$0xff]  }
 0x1dd   : > { %3218 = vmatprep.subr.bf16.mxu1 %v11951_v26 }
 0x1e0   : > { %3219 = vmatpush1.bf16.msra.mxu1 %v8685_v3 }
 0x1e1   : > { %3220 = vmatprep.subr.bf16.mxu1 %v11951_v26 }
 0x1e4   : > { %3221 = vmatpush1.bf16.msra.mxu1 %v8686_v5 }
 0x1e5   : > { %3222 = vmatprep.subr.bf16.mxu1 %v11951_v26 }
 0x202   : > { %v1434_v35 = vpop.permute.xlu0 %1433 }
 0x203   : > { %1539 = vst.msk [vmem:[#allocation2 + $0x160] sm:$0xff] %vm1520_vm8, %v1434_v35 }
 0x204   : > { %v1436_v34 = vpop.permute.xlu1 %1435 }
 0x205   : > { %1540 = vst.msk [vmem:[#allocation2 + $0x170] sm:$0xff] %vm1520_vm8, %v1436_v34  ;;  %v940_v34 = vmax.f32 %v844_v37, %v899_v61 }
 0x20a   : > { %v1773_v20 = vld [vmem:[#allocation2 + $0x160] sm:$0xff] }
 0x20b   : > { %v1835_v51 = vpack.c.bf16 %v1773_v20, %v1771_v56  ;;  %v849_v56 = vadd.f32 %v9646_v12, %v9565_v33 }
 0x20c   : > { %v9935_v60 = vld [vmem:[#allocation2 + $0x170] sm:$0xff] }
 0x20d   : > { %v1905_v55 = vpack.c.bf16 %v9935_v60, %v1773_v20  ;;  %v9940_v54 = vrot.slane %v1835_v51, 3  ;;  %v900_v23 = vmul.f32 0.1, %v849_v56 }
 0x20f   : > { %2194 = vmatmul.mubr.bf16.gmra.mrb[36].mxu1 %v1905_v55  ;;  %v2371_v46 = vsel %vm2331_vm7, %v2366_v41, %v9940_v54  ;;  %v852_v41 = vadd.f32 %v9646_v12, %v9582_v19  ;;  %v857_v19 = vadd.f32 %v9646_v12, %v9631_v38  ;;  %v941_v12 = vmax.f32 %v849_v56, %v900_v23 }
 0x210   : > { %7543 = vmatprep.mubr.msk.bf16.mxu1 %vm403_vm1, %v1908_v59  ;;  %2675 = vmatmul.mubr.bf16.gmra.mrb[120].mxu0 %v2371_v46 }
 0x211   : > { %7576 = vmatprep.mubr.msk.bf16.mxu0 %vm403_vm1, %v2377_v18  ;;  %v901_v20 = vmul.f32 0.1, %v852_v41  ;;  %v902_v27 = vmul.f32 0.1, %v857_v19 }
 0x213   : > { %v9954_v35 = vpop.permute.xlu0 %1126 }
 0x214   : > { %11963 = vst [vmem:[#allocation37_spill] sm:$0xff] %v9954_v35  ;;  %v1185_v3 = vmul.f32 %v9954_v35, %v939_v29  ;;  %v942_v29 = vmax.f32 %v852_v41, %v901_v20 }
 0x215   : > { %v9959_v16 = vpop.permute.xlu1 %1131 }
 0x216   : > { %11964 = vst [vmem:[#allocation38_spill] sm:$0xff] %v9959_v16  ;;  %v1303_v33 = vrot.slane %v1185_v3, 7  ;;  %v1635_v15 = vrot.slane %v1185_v3, 1  ;;  %v1186_v31 = vmul.f32 %v9959_v16, %v940_v34  ;;  %1469 = vrot.lane.b32.xlu1 %v1185_v3, %s8853_s22 }
 0x217   : > { %v1438_v51 = vpop.permute.xlu0 %1437 }
 0x218   : > { %v1636_v37 = vsel %vm1563_vm5, %v1633_v57, %v1635_v15  ;;  %v1305_v55 = vrot.slane %v1186_v31, 7  ;;  %v1637_v58 = vrot.slane %v1186_v31, 1  ;;  %1541 = vst.msk [vmem:[#allocation2 + $0x180] sm:$0xff] %vm1520_vm8, %v1438_v51  ;;  %1471 = vrot.lane.b32.xlu0 %v1186_v31, %s8853_s22  ;;  %v1304_v59 = vsel %vm1231_vm6, %v1301_v21, %v1303_v33  ;;  %v1782_v57 = vld [vmem:[#allocation2 + $0x1a8] sm:$0xff]  ;;  %v8687_v51 = vld [vmem:[%s11873_s4 + $0x118] sm:$0xff]  }
 0x219   : > { %1724 = vst.msk [vmem:[#allocation2 + $0x278] sm:$0xff] %vm403_vm1, %v1636_v37  ;;  %v1440_v46 = vpop.permute.xlu1 %1439  ;;  %1391 = vst.msk [vmem:[#allocation2 + $0x280] sm:$0xff] %vm403_vm1, %v1304_v59  ;;  %v1840_v3 = vpack.c.bf16 %v1782_v57, %v9931_v50  ;;  %v1784_v59 = vld [vmem:[#allocation2 + $0x1b8] sm:$0xff]  ;;  %3223 = vmatpush1.bf16.msra.mxu1 %v8687_v51 }
 0x21a   : > { %v1638_v38 = vsel %vm1563_vm5, %v1635_v15, %v1637_v58  ;;  %1542 = vst.msk [vmem:[#allocation2 + $0x190] sm:$0xff] %vm1520_vm8, %v1440_v46  ;;  %v1306_v61 = vsel %vm1231_vm6, %v1303_v33, %v1305_v55  ;;  %v943_v33 = vmax.f32 %v857_v19, %v902_v27  ;;  %5309 = vmatprep.subr.bf16.mxu1 %v11951_v26 }
 0x21b   : > { %1725 = vst.msk [vmem:[#allocation2 + $0x288] sm:$0xff] %vm403_vm1, %v1638_v38  ;;  %v9980_v18 = vpop.permute.xlu0 %1136  ;;  %1392 = vst.msk [vmem:[#allocation2 + $0x290] sm:$0xff] %vm403_vm1, %v1306_v61  ;;  %v9997_v38 = vrot.slane %v1840_v3, 3 }
 0x21c   : > { %11965 = vst [vmem:[#allocation39_spill] sm:$0xff] %v9980_v18  ;;  %v1187_v21 = vmul.f32 %v9980_v18, %v941_v12 }
 0x21d   : > { %v9984_v5 = vpop.permute.xlu1 %1141 }
 0x21e   : > { %11966 = vst [vmem:[#allocation40_spill] sm:$0xff] %v9984_v5  ;;  %v1307_v34 = vrot.slane %v1187_v21, 7  ;;  %v1639_v15 = vrot.slane %v1187_v21, 1  ;;  %v1188_v56 = vmul.f32 %v9984_v5, %v942_v29  ;;  %1473 = vrot.lane.b32.xlu1 %v1187_v21, %s8853_s22  ;;  %v1786_v21 = vld [vmem:[#allocation2 + $0x1c8] sm:$0xff]  ;;  %v1792_v5 = vld [vmem:[#allocation2 + $0x1f8] sm:$0xff] }
 0x21f   : > { %v1442_v23 = vpop.permute.xlu0 %1441  ;;  %v1777_v31 = vld [vmem:[#allocation2 + $0x180] sm:$0xff] }
 0x220   : > { %v1640_v37 = vsel %vm1563_vm5, %v1637_v58, %v1639_v15  ;;  %v1309_v41 = vrot.slane %v1188_v56, 7  ;;  %v1641_v20 = vrot.slane %v1188_v56, 1  ;;  %1543 = vst.msk [vmem:[#allocation2 + $0x1a0] sm:$0xff] %vm1520_vm8, %v1442_v23  ;;  %1475 = vrot.lane.b32.xlu0 %v1188_v56, %s8853_s22  ;;  %v1837_v50 = vpack.c.bf16 %v1777_v31, %v9935_v60  ;;  %v10017_v56 = vld [vmem:[#allocation2 + $0x278] sm:$0xff] }
 0x221   : > { %1726 = vst.msk [vmem:[#allocation2 + $0x298] sm:$0xff] %vm403_vm1, %v1640_v37  ;;  %v1444_v46 = vpop.permute.xlu1 %1443  ;;  %v1779_v19 = vld [vmem:[#allocation2 + $0x190] sm:$0xff]  ;;  %v1308_v12 = vsel %vm1231_vm6, %v1305_v55, %v1307_v34  ;;  %v10010_v55 = vpack.c.bf16 %v1784_v59, %v1782_v57  ;;  %v2381_v57 = vsel %vm2331_vm7, %v9937_v13, %v9997_v38  ;;  %v1842_v23 = vpack.c.bf16 %v1786_v21, %v1784_v59  ;;  %v1788_v59 = vld [vmem:[#allocation2 + $0x1d8] sm:$0xff] }
 0x222   : > { %v1642_v58 = vsel %vm1563_vm5, %v1639_v15, %v1641_v20  ;;  %1544 = vst.msk [vmem:[#allocation2 + $0x1b0] sm:$0xff] %vm1520_vm8, %v1444_v46  ;;  %v10002_v61 = vpack.c.bf16 %v1779_v19, %v1777_v31  ;;  %v2374_v27 = vrot.slane %v1837_v50, 3  ;;  %v1310_v60 = vsel %vm1231_vm6, %v1307_v34, %v1309_v41 }
 0x223   : > { %1393 = vst.msk [vmem:[#allocation2 + $0x2a0] sm:$0xff] %vm403_vm1, %v1308_v12  ;;  %1727 = vst.msk [vmem:[#allocation2 + $0x2a8] sm:$0xff] %vm403_vm1, %v1642_v58  ;;  %v10008_v29 = vpop.permute.xlu0 %1146  ;;  %v10036_v12 = vld [vmem:[#allocation2 + $0x288] sm:$0xff] }
 0x224   : > { %11967 = vst [vmem:[#allocation41_spill] sm:$0xff] %v10008_v29  ;;  %1394 = vst.msk [vmem:[#allocation2 + $0x2b0] sm:$0xff] %vm403_vm1, %v1310_v60  ;;  %v1189_v3 = vmul.f32 %v10008_v29, %v943_v33  ;;  %2202 = vmatmul.mubr.bf16.gmra.mrb[40].mxu1 %v10002_v61  ;;  %v2375_v15 = vsel %vm2331_vm7, %v9940_v54, %v2374_v27  ;;  %v10027_v54 = vld [vmem:[#allocation2 + $0x268] sm:$0xff]  ;;  %v10048_v29 = vpack.c.bf16 %v1788_v59, %v1786_v21 }
 0x225   : > { %2683 = vmatmul.mubr.bf16.gmra.mrb[124].mxu0 %v2375_v15  ;;  %v1446_v34 = vpop.permute.xlu1 %1445  ;;  %7544 = vmatprep.mubr.msk.bf16.mxu1 %vm403_vm1, %v10010_v55  ;;  %v10031_v50 = vpack.c.bf16 %v10017_v56, %v10027_v54 }
 0x226   : > { %v1311_v31 = vrot.slane %v1189_v3, 7  ;;  %v1643_v33 = vrot.slane %v1189_v3, 1  ;;  %1545 = vst.msk [vmem:[#allocation2 + $0x1c0] sm:$0xff] %vm1520_vm8, %v1446_v34  ;;  %7577 = vmatprep.mubr.msk.bf16.mxu0 %vm403_vm1, %v2381_v57  ;;  %1477 = vrot.lane.b32.xlu1 %v1189_v3, %s8853_s22  ;;  %v2384_v34 = vrot.slane %v1842_v23, 3 }
 0x227   : > { %v1448_v51 = vpop.permute.xlu0 %1447  ;;  %v1781_v37 = vld [vmem:[#allocation2 + $0x1a0] sm:$0xff] }
 0x228   : > { %v1644_v13 = vsel %vm1563_vm5, %v1641_v20, %v1643_v33  ;;  %1730 = vst.msk [vmem:[#allocation2 + $0x2c8] sm:$0x7] %vm1729_vm10, %v1643_v33  ;;  %v1839_v46 = vpack.c.bf16 %v1781_v37, %v1779_v19  ;;  %v10038_v58 = vld [vmem:[#allocation2 + $0x298] sm:$0xff]  ;;  %v1312_v60 = vsel %vm1231_vm6, %v1309_v41, %v1311_v31  ;;  %v1790_v33 = vld [vmem:[#allocation2 + $0x1e8] sm:$0xff]  ;;  %v11891_v41 = vrot.slane %v10031_v50, 1 }
 0x229   : > { %1546 = vst.msk [vmem:[#allocation2 + $0x1d0] sm:$0xff] %vm1520_vm8, %v1448_v51  ;;  %v1450_v3 = vpop.permute.xlu1 %1449  ;;  %v1783_v15 = vld [vmem:[#allocation2 + $0x1b0] sm:$0xff]  ;;  %v10044_v20 = vpack.c.bf16 %v10038_v58, %v10036_v12  ;;  %v2385_v21 = vsel %vm2331_vm7, %v9997_v38, %v2384_v34  ;;  %v10074_v28 = vpack.c.bf16 %v1792_v5, %v1790_v33 }
 0x22a   : > { %1728 = vst.msk [vmem:[#allocation2 + $0x2b8] sm:$0xff] %vm403_vm1, %v1644_v13  ;;  %v1909_v19 = vpack.c.bf16 %v1783_v15, %v1781_v37  ;;  %v2378_v57 = vrot.slane %v1839_v46, 3  ;;  %v11894_v13 = vrot.slane %v10002_v61, 1 }
 0x22b   : > { %1396 = vst.msk [vmem:[#allocation2 + $0x2c0] sm:$0x1f] %vm1395_vm11, %v1312_v60  ;;  %v1452_v51 = vpop.permute.xlu0 %1451  ;;  %v11890_v31 = vrot.slane %v10044_v20, 1 }
 0x22c   : > { %1547 = vst.msk [vmem:[#allocation2 + $0x1e0] sm:$0xff] %vm1520_vm8, %v1450_v3  ;;  %1548 = vst.msk [vmem:[#allocation2 + $0x1f0] sm:$0xff] %vm1520_vm8, %v1452_v51  ;;  %2210 = vmatmul.mubr.bf16.gmra.mrb[44].mxu1 %v1909_v19  ;;  %v2379_v23 = vsel %vm2331_vm7, %v2374_v27, %v2378_v57  ;;  %v3000_v60 = vrot.slane %v1909_v19, 1  ;;  %v1844_v3 = vpack.c.bf16 %v1790_v33, %v1788_v59 }
 0x22d   : > { %7545 = vmatprep.mubr.msk.bf16.mxu1 %vm403_vm1, %v10048_v29  ;;  %2691 = vmatmul.mubr.bf16.gmra.mrb[128].mxu0 %v2379_v23  ;;  %v1454_v37 = vpop.permute.xlu1 %1453  ;;  %v1785_v46 = vld [vmem:[#allocation2 + $0x1c0] sm:$0xff]  ;;  %v10064_v51 = vsel %vm1563_vm5, %v11891_v41, %v11890_v31  ;;  %v1794_v41 = vld [vmem:[#allocation2 + $0x208] sm:$0xff] }
 0x22e   : > { %1549 = vst.msk [vmem:[#allocation2 + $0x200] sm:$0xff] %vm1520_vm8, %v1454_v37  ;;  %7578 = vmatprep.mubr.msk.bf16.mxu0 %vm403_vm1, %v2385_v21  ;;  %v1841_v27 = vpack.c.bf16 %v1785_v46, %v1783_v15  ;;  %v10071_v19 = vsel %vm1563_vm5, %v11894_v13, %v3000_v60  ;;  %v2388_v16 = vrot.slane %v1844_v3, 3  ;;  %v1846_v33 = vpack.c.bf16 %v1794_v41, %v1792_v5 }
 0x22f   : > { %v1456_v38 = vpop.permute.xlu0 %1455 }
 0x230   : > { %v1787_v23 = vld [vmem:[#allocation2 + $0x1d0] sm:$0xff]  ;;  %1550 = vst.msk [vmem:[#allocation2 + $0x210] sm:$0xff] %vm1520_vm8, %v1456_v38  ;;  %v2382_v18 = vrot.slane %v1841_v27, 3  ;;  %v2389_v3 = vsel %vm2331_vm7, %v2384_v34, %v2388_v16  ;;  %v2392_v2 = vrot.slane %v1846_v33, 3 }
 0x231   : > { %v1911_v59 = vpack.c.bf16 %v1787_v23, %v1785_v46 }
 0x232   : > { %v1458_v37 = vpop.permute.xlu1 %1457  ;;  %v2383_v21 = vsel %vm2331_vm7, %v2378_v57, %v2382_v18 }
 0x233   : > { %v1789_v31 = vld [vmem:[#allocation2 + $0x1e0] sm:$0xff]  ;;  %v3004_v35 = vrot.slane %v1911_v59, 1  ;;  %v1791_v15 = vld [vmem:[#allocation2 + $0x1f0] sm:$0xff]  ;;  %1551 = vst.msk [vmem:[#allocation2 + $0x220] sm:$0xff] %vm1520_vm8, %v1458_v37  ;;  %v1796_v37 = vld [vmem:[#allocation2 + $0x218] sm:$0xff] }
 0x234   : > { %2218 = vmatmul.mubr.bf16.gmra.mrb[48].mxu1 %v1911_v59  ;;  %v1913_v13 = vpack.c.bf16 %v1791_v15, %v1789_v31  ;;  %v1843_v52 = vpack.c.bf16 %v1789_v31, %v1787_v23  ;;  %v10089_v45 = vpack.c.bf16 %v1796_v37, %v1794_v41 }
 0x235   : > { %v10079_v38 = vsel %vm1563_vm5, %v3000_v60, %v3004_v35  ;;  %v1460_v46 = vpop.permute.xlu0 %1459  ;;  %7546 = vmatprep.mubr.msk.bf16.mxu1 %vm403_vm1, %v10074_v28  ;;  %2699 = vmatmul.mubr.bf16.gmra.mrb[132].mxu0 %v2383_v21  ;;  %v1793_v59 = vld [vmem:[#allocation2 + $0x200] sm:$0xff] }
 0x236   : > { %1552 = vst.msk [vmem:[#allocation2 + $0x230] sm:$0xff] %vm1520_vm8, %v1460_v46  ;;  %7579 = vmatprep.mubr.msk.bf16.mxu0 %vm403_vm1, %v2389_v3  ;;  %v3008_v27 = vrot.slane %v1913_v13, 1  ;;  %v2386_v31 = vrot.slane %v1843_v52, 3  ;;  %v1845_v34 = vpack.c.bf16 %v1793_v59, %v1791_v15  ;;  %v1848_v3 = vpack.c.bf16 %v1798_v62, %v1796_v37 }
 0x237   : > { %v1795_v57 = vld [vmem:[#allocation2 + $0x210] sm:$0xff] }
 0x238   : > { %v1915_v23 = vpack.c.bf16 %v1795_v57, %v1793_v59  ;;  %v10087_v60 = vsel %vm1563_vm5, %v3004_v35, %v3008_v27  ;;  %v2387_v5 = vsel %vm2331_vm7, %v2382_v18, %v2386_v31  ;;  %v2393_v35 = vsel %vm2331_vm7, %v2388_v16, %v2392_v2  ;;  %v1800_v18 = vld [vmem:[#allocation2 + $0x238] sm:$0xff] }
 0x239   : > { %v2390_v15 = vrot.slane %v1845_v34, 3 }
 0x23a   : > { %v3012_v49 = vrot.slane %v1915_v23, 1  ;;  %v1462_v21 = vpop.permute.xlu1 %1461  ;;  %v1797_v33 = vld [vmem:[#allocation2 + $0x220] sm:$0xff] }
 0x23b   : > { %1553 = vst.msk [vmem:[#allocation2 + $0x240] sm:$0xff] %vm1520_vm8, %v1462_v21  ;;  %v1802_v21 = vld [vmem:[#allocation2 + $0x248] sm:$0xff]  ;;  %v2391_v16 = vsel %vm2331_vm7, %v2386_v31, %v2390_v15  ;;  %v1847_v37 = vpack.c.bf16 %v1797_v33, %v1795_v57 }
 0x23c   : > { %2226 = vmatmul.mubr.bf16.gmra.mrb[52].mxu1 %v1913_v13  ;;  %v10094_v46 = vsel %vm1563_vm5, %v3008_v27, %v3012_v49  ;;  %v1464_v52 = vpop.permute.xlu0 %1463  ;;  %v2396_v27 = vrot.slane %v1848_v3, 3 }
 0x23d   : > { %7547 = vmatprep.mubr.msk.bf16.mxu1 %vm403_vm1, %v10089_v45  ;;  %2707 = vmatmul.mubr.bf16.gmra.mrb[136].mxu0 %v2387_v5  ;;  %v1799_v41 = vld [vmem:[#allocation2 + $0x230] sm:$0xff]  ;;  %1554 = vst.msk [vmem:[#allocation2 + $0x250] sm:$0xff] %vm1520_vm8, %v1464_v52  ;;  %v10104_v5 = vpack.c.bf16 %v1800_v18, %v1798_v62 }
 0x23e   : > { %7580 = vmatprep.mubr.msk.bf16.mxu0 %vm403_vm1, %v2393_v35  ;;  %v1917_v13 = vpack.c.bf16 %v1799_v41, %v1797_v33  ;;  %v2397_v34 = vsel %vm2331_vm7, %v2392_v2, %v2396_v27  ;;  %v1850_v35 = vpack.c.bf16 %v1802_v21, %v1800_v18 }
 0x240   : > { %v3016_v59 = vrot.slane %v1917_v13, 1  ;;  %v2400_v31 = vrot.slane %v1850_v35, 3 }
 0x242   : > { %v10102_v7 = vsel %vm1563_vm5, %v3012_v49, %v3016_v59  ;;  %v1466_v8 = vpop.permute.xlu1 %1465  ;;  %v1801_v3 = vld [vmem:[#allocation2 + $0x240] sm:$0xff] }
 0x243   : > { %1555 = vst.msk [vmem:[#allocation2 + $0x260] sm:$0xff] %vm1520_vm8, %v1466_v8  ;;  %v1804_v8 = vld [vmem:[#allocation2 + $0x258] sm:$0xff]  ;;  %v1849_v18 = vpack.c.bf16 %v1801_v3, %v1799_v41 }
 0x244   : > { %2234 = vmatmul.mubr.bf16.gmra.mrb[56].mxu1 %v1915_v23  ;;  %v1468_v52 = vpop.permute.xlu0 %1467  ;;  %v1803_v49 = vld [vmem:[#allocation2 + $0x250] sm:$0xff]  ;;  %v2394_v23 = vrot.slane %v1847_v37, 3  ;;  %v10116_v33 = vpack.c.bf16 %v1804_v8, %v1802_v21 }
 0x245   : > { %7548 = vmatprep.mubr.msk.bf16.mxu1 %vm403_vm1, %v10104_v5  ;;  %2715 = vmatmul.mubr.bf16.gmra.mrb[140].mxu0 %v2391_v16  ;;  %1556 = vst.msk [vmem:[#allocation2 + $0x270] sm:$0xff] %vm1520_vm8, %v1468_v52  ;;  %v1919_v62 = vpack.c.bf16 %v1803_v49, %v1801_v3  ;;  %v2401_v16 = vsel %vm2331_vm7, %v2396_v27, %v2400_v31 }
 0x246   : > { %7581 = vmatprep.mubr.msk.bf16.mxu0 %vm403_vm1, %v2397_v34  ;;  %v2395_v2 = vsel %vm2331_vm7, %v2390_v15, %v2394_v23  ;;  %v1852_v52 = vpack.c.bf16 %v10027_v54, %v1804_v8  ;;  %v1854_v3 = vpack.c.bf16 %v10036_v12, %v10017_v56 }
 0x247   : > { %v3020_v53 = vrot.slane %v1919_v62, 1 }
 0x248   : > { %v2404_v41 = vrot.slane %v1852_v52, 3 }
 0x249   : > { %v10114_v57 = vsel %vm1563_vm5, %v3016_v59, %v3020_v53 }
 0x24a   : > { %v1805_v37 = vld [vmem:[#allocation2 + $0x260] sm:$0xff]  ;;  %v2405_v35 = vsel %vm2331_vm7, %v2400_v31, %v2404_v41 }
 0x24b   : > { %v1851_v27 = vpack.c.bf16 %v1805_v37, %v1803_v49 }
 0x24c   : > { %2242 = vmatmul.mubr.bf16.gmra.mrb[60].mxu1 %v1917_v13  ;;  %v10123_v34 = vld [vmem:[#allocation2 + $0x270] sm:$0xff]  ;;  %v2398_v13 = vrot.slane %v1849_v18, 3 }
 0x24d   : > { %7549 = vmatprep.mubr.msk.bf16.mxu1 %vm403_vm1, %v10116_v33  ;;  %2723 = vmatmul.mubr.bf16.gmra.mrb[144].mxu0 %v2395_v2  ;;  %v10127_v59 = vpack.c.bf16 %v10123_v34, %v1805_v37  ;;  %v10142_v8 = vrot.slane %v1851_v27, 3  ;;  %v10144_v2 = vrot.slane %v1854_v3, 3 }
 0x24e   : > { %7582 = vmatprep.mubr.msk.bf16.mxu0 %vm403_vm1, %v2401_v16  ;;  %v2399_v54 = vsel %vm2331_vm7, %v2394_v23, %v2398_v13 }
 0x24f   : > { %v11903_v15 = vrot.slane %v10127_v59, 1  ;;  %v2403_v49 = vsel %vm2331_vm7, %v2398_v13, %v10142_v8  ;;  %v2409_v56 = vsel %vm2331_vm7, %v2404_v41, %v10144_v2 }
 0x251   : > { %v10133_v21 = vsel %vm1563_vm5, %v3020_v53, %v11903_v15 }
 0x254   : > { %2250 = vmatmul.mubr.bf16.gmra.mrb[64].mxu1 %v1919_v62 }
 0x255   : > { %7550 = vmatprep.mubr.msk.bf16.mxu1 %vm403_vm1, %v10031_v50  ;;  %2731 = vmatmul.mubr.bf16.gmra.mrb[148].mxu0 %v2399_v54  ;;  %v8688_v54 = vld [vmem:[%s11875_s6] sm:$0xff]  }
 0x256   : > { %7583 = vmatprep.mubr.msk.bf16.mxu0 %vm403_vm1, %v2405_v35  ;;  %8485 = vmatpush3.bf16.msra.mxu0 %v8688_v54  ;;  %v10161_v35 = vld [vmem:[#allocation2] sm:$0xff] }
 0x257   : > { %8486 = vmatprep.subr.bf16.mxu0 %v10161_v35 }
 0x25c   : > { %v2123_v53 = vpop.f32.mrb[0].mxu1  ;;  %2258 = vmatmul.mubr.bf16.gmra.mrb[68].mxu1 %v10127_v59 }
 0x25d   : > { %v2125_v62 = vpop.f32.mrb[1].mxu1  ;;  %7551 = vmatprep.mubr.msk.bf16.mxu1 %vm403_vm1, %v10044_v20  ;;  %v2604_v23 = vpop.f32.mrb[84].mxu0  ;;  %2739 = vmatmul.mubr.bf16.gmra.mrb[152].mxu0 %v2403_v49 }
 0x25e   : > { %v10153_v12 = vadd.f32 %v2604_v23, %v2123_v53  ;;  %v2126_v31 = vpop.f32.mrb[2].mxu1  ;;  %v2606_v18 = vpop.f32.mrb[85].mxu0  ;;  %7584 = vmatprep.mubr.msk.bf16.mxu0 %vm403_vm1, %v2409_v56 }
 0x25f   : > { %v2128_v16 = vpop.f32.mrb[3].mxu1  ;;  %v2607_v52 = vpop.f32.mrb[86].mxu0 }
 0x260   : > { %v10156_v37 = vadd.f32 %v2607_v52, %v2126_v31  ;;  %v2609_v13 = vpop.f32.mrb[87].mxu0 }
 0x271   : > { %v2131_v27 = vpop.f32.mrb[4].mxu1 }
 0x272   : > { %v2133_v41 = vpop.f32.mrb[5].mxu1  ;;  %v2612_v3 = vpop.f32.mrb[88].mxu0 }
 0x273   : > { %v10164_v53 = vadd.f32 %v2612_v3, %v2131_v27  ;;  %v2134_v49 = vpop.f32.mrb[6].mxu1  ;;  %v2614_v62 = vpop.f32.mrb[89].mxu0 }
 0x274   : > { %v2136_v23 = vpop.f32.mrb[7].mxu1  ;;  %v2615_v56 = vpop.f32.mrb[90].mxu0 }
 0x275   : > { %v10166_v31 = vadd.f32 %v2615_v56, %v2134_v49  ;;  %v2617_v18 = vpop.f32.mrb[91].mxu0 }
 0x279   : > { %v2139_v16 = vpop.f32.mrb[8].mxu1 }
 0x27a   : > { %v2141_v52 = vpop.f32.mrb[9].mxu1  ;;  %v2620_v13 = vpop.f32.mrb[92].mxu0 }
 0x27b   : > { %v10168_v54 = vadd.f32 %v2620_v13, %v2139_v16  ;;  %v2142_v15 = vpop.f32.mrb[10].mxu1  ;;  %v2622_v24 = vpop.f32.mrb[93].mxu0 }
 0x27c   : > { %v2144_v44 = vpop.f32.mrb[11].mxu1  ;;  %v2623_v43 = vpop.f32.mrb[94].mxu0 }
 0x27d   : > { %v10170_v41 = vadd.f32 %v2623_v43, %v2142_v15  ;;  %v2625_v27 = vpop.f32.mrb[95].mxu0  ;;  %v8689_v44 = vld [vmem:[%s11875_s6 + $0x8] sm:$0xff]  }
 0x27e   : > { %8487 = vmatpush3.bf16.msra.mxu0 %v8689_v44  ;;  %v1814_v27 = vld [vmem:[#allocation2 + $0x2a8] sm:$0x3] }
 0x27f   : > { %8488 = vmatprep.subr.bf16.mxu0 %v10161_v35  ;;  %v1856_v44 = vpack.c.bf16 %v1814_v27, %v10038_v58 }
 0x281   : > { %v2147_v3 = vpop.f32.mrb[12].mxu1 }
 0x282   : > { %v2149_v30 = vpop.f32.mrb[13].mxu1  ;;  %v2628_v62 = vpop.f32.mrb[96].mxu0 }
 0x283   : > { %v10172_v23 = vadd.f32 %v2628_v62, %v2147_v3  ;;  %v2150_v49 = vpop.f32.mrb[14].mxu1  ;;  %v2630_v56 = vpop.f32.mrb[97].mxu0 }
 0x284   : > { %v2152_v18 = vpop.f32.mrb[15].mxu1  ;;  %v2631_v22 = vpop.f32.mrb[98].mxu0 }
 0x285   : > { %v10174_v52 = vadd.f32 %v2631_v22, %v2150_v49  ;;  %v2633_v16 = vpop.f32.mrb[99].mxu0 }
 0x288   : > { %v1470_v24 = vpop.permute.xlu1 %1469 }
 0x289   : > { %1557 = vst.msk [vmem:[#allocation2 + $0x280] sm:$0xff] %vm1520_vm8, %v1470_v24  ;;  %v2155_v30 = vpop.f32.mrb[16].mxu1 }
 0x28a   : > { %v1472_v43 = vpop.permute.xlu0 %1471  ;;  %v2157_v15 = vpop.f32.mrb[17].mxu1 }
 0x28b   : > { %1558 = vst.msk [vmem:[#allocation2 + $0x290] sm:$0xff] %vm1520_vm8, %v1472_v43  ;;  %v2636_v13 = vpop.f32.mrb[100].mxu0  ;;  %v2158_v3 = vpop.f32.mrb[18].mxu1  ;;  %v1884_v15 = vld [vmem:[#allocation2 + $0x2b8] sm:$0xff] }
 0x28c   : > { %v10182_v22 = vadd.f32 %v2636_v13, %v2155_v30  ;;  %v2638_v62 = vpop.f32.mrb[101].mxu0  ;;  %v2160_v49 = vpop.f32.mrb[19].mxu1  ;;  %v2412_v13 = vrot.slane %v1856_v44, 3 }
 0x28d   : > { %v2639_v56 = vpop.f32.mrb[102].mxu0  ;;  %v1882_v49 = vld [vmem:[#allocation2 + $0x2a8] sm:$0xff] }
 0x28e   : > { %v10184_v18 = vadd.f32 %v2639_v56, %v2158_v3  ;;  %v2641_v16 = vpop.f32.mrb[103].mxu0  ;;  %v10192_v6 = vpack.c.bf16 %v1884_v15, %v1882_v49 }
 0x290   : > { %v1474_v24 = vpop.permute.xlu1 %1473  ;;  %v1809_v9 = vld [vmem:[#allocation2 + $0x280] sm:$0xff] }
 0x291   : > { %1559 = vst.msk [vmem:[#allocation2 + $0x2a0] sm:$0xff] %vm1520_vm8, %v1474_v24  ;;  %v1853_v43 = vpack.c.bf16 %v1809_v9, %v10123_v34  ;;  %v2163_v1 = vpop.f32.mrb[20].mxu1 }
 0x292   : > { %v1476_v39 = vpop.permute.xlu0 %1475  ;;  %v1811_v30 = vld [vmem:[#allocation2 + $0x290] sm:$0xff]  ;;  %v2165_v0 = vpop.f32.mrb[21].mxu1 }
 0x293   : > { %1560 = vst.msk [vmem:[#allocation2 + $0x2b0] sm:$0xff] %vm1520_vm8, %v1476_v39  ;;  %v2644_v62 = vpop.f32.mrb[104].mxu0  ;;  %v1923_v3 = vpack.c.bf16 %v1811_v30, %v1809_v9  ;;  %v2406_v56 = vrot.slane %v1853_v43, 3  ;;  %v2166_v58 = vpop.f32.mrb[22].mxu1  ;;  %v11968_v9 = vrot.slane %v10127_v59, 1 }
 0x294   : > { %v10190_v16 = vadd.f32 %v2644_v62, %v2163_v1  ;;  %v2646_v27 = vpop.f32.mrb[105].mxu0  ;;  %v2168_v24 = vpop.f32.mrb[23].mxu1  ;;  %v2413_v1 = vsel %vm2331_vm7, %v10144_v2, %v2412_v13 }
 0x295   : > { %v2647_v63 = vpop.f32.mrb[106].mxu0  ;;  %2266 = vmatmul.mubr.bf16.gmra.mrb[72].mxu1 %v1923_v3  ;;  %v2407_v34 = vsel %vm2331_vm7, %v10142_v8, %v2406_v56  ;;  %v3028_v44 = vrot.slane %v1923_v3, 1  ;;  %v2777_v24 = vld [vmem:[#allocation2 + $0x98] sm:$0xff] }
 0x296   : > { %v10196_v0 = vadd.f32 %v2647_v63, %v2166_v58  ;;  %v2649_v39 = vpop.f32.mrb[107].mxu0  ;;  %7552 = vmatprep.mubr.msk.bf16.mxu1 %vm403_vm1, %v10192_v6  ;;  %2747 = vmatmul.mubr.bf16.gmra.mrb[156].mxu0 %v2407_v34  ;;  %v1886_v63 = vld [vmem:[#allocation2 + $0x2c8] sm:$0xf] }
 0x297   : > { %7585 = vmatprep.mubr.msk.bf16.mxu0 %vm403_vm1, %v2413_v1  ;;  %v10206_v15 = vsel %vm1563_vm5, %v11968_v9, %v3028_v44  ;;  %v8690_v9 = vld [vmem:[%s11875_s6 + $0x10] sm:$0xff]   ;;  %v1928_v36 = vpack.c.bf16 %v1886_v63, %v1886_v63 }
 0x298   : > { %v1478_v8 = vpop.permute.xlu1 %1477  ;;  %v1813_v43 = vld [vmem:[#allocation2 + $0x2a0] sm:$0x3]  ;;  %8489 = vmatpush3.bf16.msra.mxu0 %v8690_v9  ;;  %v2781_v9 = vld [vmem:[#allocation2 + $0xb8] sm:$0xff] }
 0x299   : > { %1562 = vst.msk [vmem:[#allocation2 + $0x2c0] sm:$0xf] %vm1561_vm12, %v1478_v8  ;;  %v1855_v62 = vpack.c.bf16 %v1813_v43, %v1811_v30  ;;  %v2171_v3 = vpop.f32.mrb[24].mxu1  ;;  %v1881_v58 = vld [vmem:[#allocation2 + $0x2a0] sm:$0xff]  ;;  %v2773_v30 = vld [vmem:[#allocation2 + $0x78] sm:$0xff]  ;;  %v2775_v43 = vld [vmem:[#allocation2 + $0x88] sm:$0xff]  ;;  %8490 = vmatprep.subr.bf16.mxu0 %v10161_v35 }
 0x29a   : > { %v2652_v49 = vpop.f32.mrb[108].mxu0  ;;  %v1883_v27 = vld [vmem:[#allocation2 + $0x2b0] sm:$0xff]  ;;  %v2173_v2 = vpop.f32.mrb[25].mxu1 }
 0x29b   : > { %v10209_v34 = vadd.f32 %v2652_v49, %v2171_v3  ;;  %v2654_v39 = vpop.f32.mrb[109].mxu0  ;;  %v10211_v1 = vpack.c.bf16 %v1883_v27, %v1881_v58  ;;  %v2410_v59 = vrot.slane %v1855_v62, 3  ;;  %v2174_v40 = vpop.f32.mrb[26].mxu1  ;;  %v2855_v58 = vpack.c.bf16 %v2777_v24, %v2775_v43  ;;  %v2771_v27 = vld [vmem:[#allocation2 + $0x68] sm:$0xfc]  ;;  %v2776_v24 = vld [vmem:[#allocation2 + $0x90] sm:$0xff] }
 0x29c   : > { %v2655_v8 = vpop.f32.mrb[110].mxu0  ;;  %v2176_v11 = vpop.f32.mrb[27].mxu1  ;;  %v2853_v63 = vpack.c.bf16 %v2773_v30, %v2771_v27  ;;  %v2772_v30 = vld [vmem:[#allocation2 + $0x70] sm:$0xff] }
 0x29d   : > { %v10216_v4 = vadd.f32 %v2655_v8, %v2174_v40  ;;  %2274 = vmatmul.mubr.bf16.gmra.mrb[76].mxu1 %v10211_v1  ;;  %v2657_v3 = vpop.f32.mrb[111].mxu0  ;;  %v2411_v49 = vsel %vm2331_vm7, %v2406_v56, %v2410_v59  ;;  %v11922_v62 = vrot.slane %v10211_v1, 1  ;;  %v2966_v56 = vrot.slane %v2855_v58, 1 }
 0x29e   : > { %7553 = vmatprep.mubr.msk.bf16.mxu1 %vm403_vm1, %v1928_v36  ;;  %2755 = vmatmul.mubr.bf16.gmra.mrb[160].mxu0 %v2411_v49  ;;  %v2774_v49 = vld [vmem:[#allocation2 + $0x80] sm:$0xff] }
 0x29f   : > { %7586 = vmatprep.mubr.msk.bf16.mxu0 %vm403_vm1, %v2412_v13  ;;  %v10227_v11 = vsel %vm1563_vm5, %v3028_v44, %v11922_v62  ;;  %v2965_v13 = vrot.slane %v2853_v63, 1  ;;  %v2854_v42 = vpack.c.bf16 %v2776_v24, %v2774_v49  ;;  %v2780_v24 = vld [vmem:[#allocation2 + $0xb0] sm:$0xff]  ;;  %v2785_v49 = vld [vmem:[#allocation2 + $0xd8] sm:$0xff] }
 0x2a0   : > { %v1885_v40 = vld [vmem:[#allocation2 + $0x2c0] sm:$0xf] }
 0x2a1   : > { %v2179_v2 = vpop.f32.mrb[28].mxu1  ;;  %v1927_v3 = vpack.c.bf16 %v1885_v40, %v1885_v40  ;;  %v2967_v10 = vsel %vm1563_vm5, %v2965_v13, %v2966_v56  ;;  %v2852_v40 = vpack.c.bf16 %v2772_v30, %v2770_v48  ;;  %v2963_v63 = vrot.slane %v2854_v42, 1 }
 0x2a2   : > { %v2660_v39 = vpop.f32.mrb[112].mxu0  ;;  %v2181_v8 = vpop.f32.mrb[29].mxu1 }
 0x2a3   : > { %v10229_v36 = vadd.f32 %v2660_v39, %v2179_v2  ;;  %v2662_v43 = vpop.f32.mrb[113].mxu0  ;;  %v2182_v27 = vpop.f32.mrb[30].mxu1  ;;  %v2857_v8 = vpack.c.bf16 %v2781_v9, %v2779_v17  ;;  %v2783_v9 = vld [vmem:[#allocation2 + $0xc8] sm:$0xff] }
 0x2a4   : > { %v2663_v47 = vpop.f32.mrb[114].mxu0  ;;  %v2184_v44 = vpop.f32.mrb[31].mxu1 }
 0x2a5   : > { %v10231_v62 = vadd.f32 %v2663_v47, %v2182_v27  ;;  %2282 = vmatmul.mubr.bf16.gmra.mrb[80].mxu1 %v1927_v3  ;;  %v2665_v58 = vpop.f32.mrb[115].mxu0  ;;  %v2970_v2 = vrot.slane %v2857_v8, 1  ;;  %v2962_v47 = vrot.slane %v2852_v40, 1  ;;  %v2778_v44 = vld [vmem:[#allocation2 + $0xa0] sm:$0xff]  ;;  %v2859_v40 = vpack.c.bf16 %v2785_v49, %v2783_v9  ;;  %v2788_v9 = vld [vmem:[#allocation2 + $0xf0] sm:$0xff] }
 0x2a6   : > { %2763 = vmatmul.mubr.bf16.gmra.mrb[164].mxu0 %v2410_v59  ;;  %7623 = vmatprep.mubr.msk.bf16.mxu1 %vm403_vm1, %v2967_v10  ;;  %v2856_v48 = vpack.c.bf16 %v2780_v24, %v2778_v44  ;;  %v2782_v24 = vld [vmem:[#allocation2 + $0xc0] sm:$0xff] }
 0x2a7   : > { %8500 = vmatprep.mubr.msk.bf16.mxu0 %vm8851_vm0, %v10161_v35  ;;  %v2964_v10 = vsel %vm1563_vm5, %v2962_v47, %v2963_v63  ;;  %v2971_v8 = vsel %vm1563_vm5, %v2966_v56, %v2970_v2  ;;  %v2789_v47 = vld [vmem:[#allocation2 + $0xf8] sm:$0xff] }
 0x2a9   : > { %v2187_v39 = vpop.f32.mrb[32].mxu1 }
 0x2aa   : > { %v2668_v43 = vpop.f32.mrb[116].mxu0  ;;  %v2189_v3 = vpop.f32.mrb[33].mxu1 }
 0x2ab   : > { %v10237_v27 = vadd.f32 %v2668_v43, %v2187_v39  ;;  %v2670_v13 = vpop.f32.mrb[117].mxu0  ;;  %v2190_v17 = vpop.f32.mrb[34].mxu1  ;;  %v2968_v39 = vrot.slane %v2856_v48, 1  ;;  %v2974_v43 = vrot.slane %v2859_v40, 1  ;;  %v2784_v3 = vld [vmem:[#allocation2 + $0xd0] sm:$0xff] }
 0x2ac   : > { %v2671_v59 = vpop.f32.mrb[118].mxu0  ;;  %v2192_v30 = vpop.f32.mrb[35].mxu1  ;;  %v8691_v13 = vld [vmem:[%s11875_s6 + $0x18] sm:$0xff]  }
 0x2ad   : > { %v10240_v58 = vadd.f32 %v2671_v59, %v2190_v17  ;;  %v2673_v42 = vpop.f32.mrb[119].mxu0  ;;  %3233 = vmatmul.mubr.bf16.vlgmr.msra.gmra.mrb[84].mxu1 %v2964_v10  ;;  %8491 = vmatpush3.bf16.msra.mxu0 %v8691_v13  ;;  %v2969_v44 = vsel %vm1563_vm5, %v2963_v63, %v2968_v39  ;;  %v2858_v17 = vpack.c.bf16 %v2784_v3, %v2782_v24  ;;  %v2787_v59 = vld [vmem:[#allocation2 + $0xe8] sm:$0xff]  ;;  %v2793_v30 = vld [vmem:[#allocation2 + $0x118] sm:$0xff] }
 0x2ae   : > { %7624 = vmatprep.mubr.msk.bf16.mxu1 %vm403_vm1, %v2971_v8  ;;  %8492 = vmatprep.subr.bf16.mxu0 %v10161_v35  ;;  %v2975_v56 = vsel %vm1563_vm5, %v2970_v2, %v2974_v43  ;;  %v2861_v49 = vpack.c.bf16 %v2789_v47, %v2787_v59  ;;  %v2786_v42 = vld [vmem:[#allocation2 + $0xe0] sm:$0xff]  ;;  %v2791_v13 = vld [vmem:[#allocation2 + $0x108] sm:$0xff]  ;;  %v2792_v47 = vld [vmem:[#allocation2 + $0x110] sm:$0xff] }
 0x2af   : > { %v2972_v10 = vrot.slane %v2858_v17, 1  ;;  %v2860_v40 = vpack.c.bf16 %v2788_v9, %v2786_v42  ;;  %v2863_v3 = vpack.c.bf16 %v2793_v30, %v2791_v13  ;;  %v2790_v59 = vld [vmem:[#allocation2 + $0x100] sm:$0xff] }
 0x2b0   : > { %v2978_v48 = vrot.slane %v2861_v49, 1  ;;  %v2795_v49 = vld [vmem:[#allocation2 + $0x128] sm:$0xff] }
 0x2b1   : > { %v2973_v8 = vsel %vm1563_vm5, %v2968_v39, %v2972_v10  ;;  %v2976_v24 = vrot.slane %v2860_v40, 1  ;;  %v2982_v2 = vrot.slane %v2863_v3, 1  ;;  %v2801_v40 = vld [vmem:[#allocation2 + $0x158] sm:$0xff]  ;;  %v2799_v3 = vld [vmem:[#allocation2 + $0x148] sm:$0xff] }
 0x2b2   : > { %v2979_v63 = vsel %vm1563_vm5, %v2974_v43, %v2978_v48  ;;  %v8692_v43 = vld [vmem:[%s11875_s6 + $0x20] sm:$0xff]  }
 0x2b3   : > { %v2977_v17 = vsel %vm1563_vm5, %v2972_v10, %v2976_v24  ;;  %v2983_v39 = vsel %vm1563_vm5, %v2978_v48, %v2982_v2  ;;  %8493 = vmatpush3.bf16.msra.mxu0 %v8692_v43  ;;  %v2794_v10 = vld [vmem:[#allocation2 + $0x120] sm:$0xff]  ;;  %v2803_v43 = vld [vmem:[#allocation2 + $0x168] sm:$0xff] }
 0x2b4   : > { %8494 = vmatprep.subr.bf16.mxu0 %v10161_v35 }
 0x2b5   : > { %3241 = vmatmul.mubr.bf16.gmra.mrb[88].mxu1 %v2969_v44  ;;  %v2797_v44 = vld [vmem:[#allocation2 + $0x138] sm:$0xff] }
 0x2b6   : > { %7625 = vmatprep.mubr.msk.bf16.mxu1 %vm403_vm1, %v2975_v56  ;;  %v2862_v56 = vpack.c.bf16 %v2792_v47, %v2790_v59  ;;  %v2865_v9 = vpack.c.bf16 %v2797_v44, %v2795_v49  ;;  %v2867_v47 = vpack.c.bf16 %v2801_v40, %v2799_v3  ;;  %v8693_v44 = vld [vmem:[%s11875_s6 + $0x28] sm:$0xff]   ;;  %v2805_v49 = vld [vmem:[#allocation2 + $0x178] sm:$0xff]  ;;  %v2802_v3 = vld [vmem:[#allocation2 + $0x160] sm:$0xff] }
 0x2b7   : > { %8495 = vmatpush3.bf16.msra.mxu0 %v8693_v44  ;;  %v2807_v44 = vld [vmem:[#allocation2 + $0x188] sm:$0xff] }
 0x2b8   : > { %v2980_v30 = vrot.slane %v2862_v56, 1  ;;  %v2986_v42 = vrot.slane %v2865_v9, 1  ;;  %8496 = vmatprep.subr.bf16.mxu0 %v10161_v35  ;;  %v2800_v56 = vld [vmem:[#allocation2 + $0x150] sm:$0xff] }
 0x2ba   : > { %v2981_v13 = vsel %vm1563_vm5, %v2976_v24, %v2980_v30  ;;  %v2987_v48 = vsel %vm1563_vm5, %v2982_v2, %v2986_v42  ;;  %v2798_v24 = vld [vmem:[#allocation2 + $0x140] sm:$0xff] }
 0x2bb   : > { %v2866_v9 = vpack.c.bf16 %v2800_v56, %v2798_v24 }
 0x2bd   : > { %3249 = vmatmul.mubr.bf16.gmra.mrb[92].mxu1 %v2973_v8  ;;  %v2796_v8 = vld [vmem:[#allocation2 + $0x130] sm:$0xff]  ;;  %v2988_v40 = vrot.slane %v2866_v9, 1 }
 0x2be   : > { %7626 = vmatprep.mubr.msk.bf16.mxu1 %vm403_vm1, %v2979_v63  ;;  %v2864_v63 = vpack.c.bf16 %v2796_v8, %v2794_v10  ;;  %v2869_v8 = vpack.c.bf16 %v2805_v49, %v2803_v43 }
 0x2c0   : > { %v2984_v59 = vrot.slane %v2864_v63, 1  ;;  %v2994_v10 = vrot.slane %v2869_v8, 1  ;;  %v2809_v63 = vld [vmem:[#allocation2 + $0x198] sm:$0xff] }
 0x2c1   : > { %v2871_v56 = vpack.c.bf16 %v2809_v63, %v2807_v44 }
 0x2c5   : > { %3257 = vmatmul.mubr.bf16.gmra.mrb[96].mxu1 %v2977_v17  ;;  %v2990_v17 = vrot.slane %v2867_v47, 1 }
 0x2c6   : > { %7627 = vmatprep.mubr.msk.bf16.mxu1 %vm403_vm1, %v2983_v39  ;;  %v2985_v39 = vsel %vm1563_vm5, %v2980_v30, %v2984_v59 }
 0x2c7   : > { %v2991_v2 = vsel %vm1563_vm5, %v2986_v42, %v2990_v17  ;;  %v2995_v30 = vsel %vm1563_vm5, %v2990_v17, %v2994_v10  ;;  %v2998_v42 = vrot.slane %v2871_v56, 1 }
 0x2cd   : > { %3265 = vmatmul.mubr.bf16.gmra.mrb[100].mxu1 %v2981_v13  ;;  %v2804_v13 = vld [vmem:[#allocation2 + $0x170] sm:$0xff] }
 0x2ce   : > { %7628 = vmatprep.mubr.msk.bf16.mxu1 %vm403_vm1, %v2987_v48  ;;  %v2989_v48 = vsel %vm1563_vm5, %v2984_v59, %v2988_v40  ;;  %v2868_v47 = vpack.c.bf16 %v2804_v13, %v2802_v3  ;;  %v2999_v3 = vsel %vm1563_vm5, %v2994_v10, %v2998_v42  ;;  %v3006_v10 = vrot.slane %v10048_v29, 1 }
 0x2d0   : > { %v2992_v24 = vrot.slane %v2868_v47, 1  ;;  %v11969_v47 = vrot.slane %v10002_v61, 1 }
 0x2d2   : > { %v2993_v32 = vsel %vm1563_vm5, %v2988_v40, %v2992_v24  ;;  %v2997_v44 = vsel %vm1563_vm5, %v2992_v24, %v11969_v47  ;;  %v8694_v40 = vld [vmem:[%s11875_s6 + $0x30] sm:$0xff]  }
 0x2d3   : > { %8497 = vmatpush3.bf16.msra.mxu0 %v8694_v40 }
 0x2d4   : > { %8498 = vmatprep.subr.bf16.mxu0 %v10161_v35 }
 0x2d5   : > { %3273 = vmatmul.mubr.bf16.gmra.mrb[104].mxu1 %v2985_v39 }
 0x2d6   : > { %7629 = vmatprep.mubr.msk.bf16.mxu1 %vm403_vm1, %v2991_v2 }
 0x2dd   : > { %3281 = vmatmul.mubr.bf16.gmra.mrb[108].mxu1 %v2989_v48  ;;  %v3002_v48 = vrot.slane %v10010_v55, 1 }
 0x2de   : > { %7630 = vmatprep.mubr.msk.bf16.mxu1 %vm403_vm1, %v2995_v30 }
 0x2df   : > { %v3007_v61 = vsel %vm1563_vm5, %v3002_v48, %v3006_v10 }
 0x2e2   : > { %v2195_v49 = vpop.f32.mrb[36].mxu1 }
 0x2e3   : > { %v2197_v39 = vpop.f32.mrb[37].mxu1  ;;  %v2676_v43 = vpop.f32.mrb[120].mxu0 }
 0x2e4   : > { %v10274_v9 = vadd.f32 %v2676_v43, %v2195_v49  ;;  %v2198_v2 = vpop.f32.mrb[38].mxu1  ;;  %v2678_v8 = vpop.f32.mrb[121].mxu0  ;;  %v3010_v39 = vrot.slane %v10074_v28, 1  ;;  %v3014_v28 = vrot.slane %v10089_v45, 1  ;;  %v3018_v45 = vrot.slane %v10104_v5, 1 }
 0x2e5   : > { %v2200_v59 = vpop.f32.mrb[39].mxu1  ;;  %v2679_v13 = vpop.f32.mrb[122].mxu0  ;;  %3289 = vmatmul.mubr.bf16.gmra.mrb[112].mxu1 %v2993_v32  ;;  %v3003_v32 = vsel %vm1563_vm5, %v2998_v42, %v3002_v48 }
 0x2e6   : > { %v10278_v17 = vadd.f32 %v2679_v13, %v2198_v2  ;;  %v2681_v63 = vpop.f32.mrb[123].mxu0  ;;  %7631 = vmatprep.mubr.msk.bf16.mxu1 %vm403_vm1, %v2999_v3 }
 0x2ed   : > { %3297 = vmatmul.mubr.bf16.gmra.mrb[116].mxu1 %v2997_v44 }
 0x2ee   : > { %7632 = vmatprep.mubr.msk.bf16.mxu1 %vm403_vm1, %v3003_v32 }
 0x2f5   : > { %3305 = vmatmul.mubr.bf16.gmra.mrb[120].mxu1 %v10071_v19  ;;  %v3011_v19 = vsel %vm1563_vm5, %v3006_v10, %v3010_v39 }
 0x2f6   : > { %7633 = vmatprep.mubr.msk.bf16.mxu1 %vm403_vm1, %v3007_v61 }
 0x2f7   : > { %v2203_v55 = vpop.f32.mrb[40].mxu1 }
 0x2f8   : > { %v2205_v30 = vpop.f32.mrb[41].mxu1  ;;  %v2684_v56 = vpop.f32.mrb[124].mxu0 }
 0x2f9   : > { %v10295_v24 = vadd.f32 %v2684_v56, %v2203_v55  ;;  %v2206_v49 = vpop.f32.mrb[42].mxu1  ;;  %v2686_v42 = vpop.f32.mrb[125].mxu0 }
 0x2fa   : > { %v2208_v43 = vpop.f32.mrb[43].mxu1  ;;  %v2687_v2 = vpop.f32.mrb[126].mxu0 }
 0x2fb   : > { %v10298_v8 = vadd.f32 %v2687_v2, %v2206_v49  ;;  %v2689_v29 = vpop.f32.mrb[127].mxu0 }
 0x2fd   : > { %3313 = vmatmul.mubr.bf16.gmra.mrb[124].mxu1 %v10079_v38  ;;  %v3015_v38 = vsel %vm1563_vm5, %v3010_v39, %v3014_v28 }
 0x2fe   : > { %7634 = vmatprep.mubr.msk.bf16.mxu1 %vm403_vm1, %v3011_v19 }
 0x2ff   : > { %v2211_v59 = vpop.f32.mrb[44].mxu1 }
 0x300   : > { %v2213_v13 = vpop.f32.mrb[45].mxu1  ;;  %v2692_v3 = vpop.f32.mrb[128].mxu0 }
 0x301   : > { %v10303_v63 = vadd.f32 %v2692_v3, %v2211_v59  ;;  %v2214_v48 = vpop.f32.mrb[46].mxu1  ;;  %v2694_v47 = vpop.f32.mrb[129].mxu0  ;;  %v8695_v59 = vld [vmem:[%s11875_s6 + $0x38] sm:$0xff]  }
 0x302   : > { %v2216_v44 = vpop.f32.mrb[47].mxu1  ;;  %v2695_v40 = vpop.f32.mrb[130].mxu0  ;;  %8499 = vmatpush3.bf16.msra.mxu0 %v8695_v59 }
 0x303   : > { %v10306_v32 = vadd.f32 %v2695_v40, %v2214_v48  ;;  %v2697_v61 = vpop.f32.mrb[131].mxu0  ;;  %v3022_v44 = vrot.slane %v10116_v33, 1  ;;  %5789 = vmatprep.subr.bf16.mxu0 %v11951_v26 }
 0x305   : > { %3321 = vmatmul.mubr.bf16.gmra.mrb[128].mxu1 %v10087_v60  ;;  %v3019_v60 = vsel %vm1563_vm5, %v3014_v28, %v3018_v45 }
 0x306   : > { %7635 = vmatprep.mubr.msk.bf16.mxu1 %vm403_vm1, %v3015_v38  ;;  %v3023_v38 = vsel %vm1563_vm5, %v3018_v45, %v3022_v44 }
 0x307   : > { %v2219_v10 = vpop.f32.mrb[48].mxu1 }
 0x308   : > { %v2221_v55 = vpop.f32.mrb[49].mxu1  ;;  %v2700_v30 = vpop.f32.mrb[132].mxu0 }
 0x309   : > { %v10311_v56 = vadd.f32 %v2700_v30, %v2219_v10  ;;  %v2222_v49 = vpop.f32.mrb[50].mxu1  ;;  %v2702_v42 = vpop.f32.mrb[133].mxu0 }
 0x30a   : > { %v2224_v43 = vpop.f32.mrb[51].mxu1  ;;  %v2703_v2 = vpop.f32.mrb[134].mxu0 }
 0x30b   : > { %v10314_v29 = vadd.f32 %v2703_v2, %v2222_v49  ;;  %v2705_v19 = vpop.f32.mrb[135].mxu0 }
 0x30d   : > { %3329 = vmatmul.mubr.bf16.gmra.mrb[132].mxu1 %v10094_v46 }
 0x30e   : > { %7636 = vmatprep.mubr.msk.bf16.mxu1 %vm403_vm1, %v3019_v60 }
 0x30f   : > { %v2227_v39 = vpop.f32.mrb[52].mxu1 }
 0x310   : > { %v2229_v13 = vpop.f32.mrb[53].mxu1  ;;  %v2708_v3 = vpop.f32.mrb[136].mxu0 }
 0x311   : > { %v10322_v48 = vadd.f32 %v2708_v3, %v2227_v39  ;;  %v2230_v5 = vpop.f32.mrb[54].mxu1  ;;  %v2710_v47 = vpop.f32.mrb[137].mxu0 }
 0x312   : > { %v2232_v40 = vpop.f32.mrb[55].mxu1  ;;  %v2711_v46 = vpop.f32.mrb[138].mxu0 }
 0x313   : > { %v10326_v28 = vadd.f32 %v2711_v46, %v2230_v5  ;;  %v2713_v61 = vpop.f32.mrb[139].mxu0 }
 0x315   : > { %3337 = vmatmul.mubr.bf16.gmra.mrb[136].mxu1 %v10102_v7  ;;  %v11970_v7 = vrot.slane %v10031_v50, 1 }
 0x316   : > { %7637 = vmatprep.mubr.msk.bf16.mxu1 %vm403_vm1, %v3023_v38 }
 0x317   : > { %v2235_v10 = vpop.f32.mrb[56].mxu1  ;;  %v3027_v45 = vsel %vm1563_vm5, %v3022_v44, %v11970_v7 }
 0x318   : > { %v2237_v55 = vpop.f32.mrb[57].mxu1  ;;  %v2716_v30 = vpop.f32.mrb[140].mxu0 }
 0x319   : > { %v10331_v49 = vadd.f32 %v2716_v30, %v2235_v10  ;;  %v2238_v33 = vpop.f32.mrb[58].mxu1  ;;  %v2718_v42 = vpop.f32.mrb[141].mxu0 }
 0x31a   : > { %v2240_v43 = vpop.f32.mrb[59].mxu1  ;;  %v2719_v2 = vpop.f32.mrb[142].mxu0 }
 0x31b   : > { %v10333_v19 = vadd.f32 %v2719_v2, %v2238_v33  ;;  %v2721_v60 = vpop.f32.mrb[143].mxu0  ;;  %v3034_v33 = vrot.slane %v10192_v6, 1  ;;  %v2847_v2 = vld [vmem:[#allocation2 + $0x2c8] sm:$0xff] }
 0x31c   : > { %v2849_v60 = vld [vmem:[#allocation2 + $0x2d8] sm:$0xff] }
 0x31d   : > { %3345 = vmatmul.mubr.bf16.gmra.mrb[140].mxu1 %v10114_v57 }
 0x31e   : > { %7638 = vmatprep.mubr.msk.bf16.mxu1 %vm403_vm1, %v3027_v45 }
 0x31f   : > { %v2243_v39 = vpop.f32.mrb[60].mxu1 }
 0x320   : > { %v2245_v59 = vpop.f32.mrb[61].mxu1  ;;  %v2724_v13 = vpop.f32.mrb[144].mxu0 }
 0x321   : > { %v10340_v3 = vadd.f32 %v2724_v13, %v2243_v39  ;;  %v2246_v5 = vpop.f32.mrb[62].mxu1  ;;  %v2726_v47 = vpop.f32.mrb[145].mxu0  ;;  %v2891_v39 = vpack.c.bf16 %v2849_v60, %v2847_v2  ;;  %v2850_v60 = vld [vmem:[#allocation2 + $0x2e0] sm:$0x3f] }
 0x322   : > { %v2248_v40 = vpop.f32.mrb[63].mxu1  ;;  %v2727_v46 = vpop.f32.mrb[146].mxu0 }
 0x323   : > { %v10342_v61 = vadd.f32 %v2727_v46, %v2246_v5  ;;  %v2729_v38 = vpop.f32.mrb[147].mxu0  ;;  %v3038_v46 = vrot.slane %v2891_v39, 1 }
 0x324   : > { %v2846_v38 = vld [vmem:[#allocation2 + $0x2c0] sm:$0xff] }
 0x325   : > { %3353 = vmatmul.mubr.bf16.gmra.mrb[144].mxu1 %v10133_v21 }
 0x326   : > { %7639 = vmatprep.mubr.msk.bf16.mxu1 %vm403_vm1, %v10064_v51  ;;  %v11971_v51 = vrot.slane %v10044_v20, 1 }
 0x327   : > { %v2251_v50 = vpop.f32.mrb[64].mxu1 }
 0x328   : > { %v2253_v57 = vpop.f32.mrb[65].mxu1  ;;  %v2732_v44 = vpop.f32.mrb[148].mxu0  ;;  %v3035_v21 = vsel %vm1563_vm5, %v11971_v51, %v3034_v33 }
 0x329   : > { %v10347_v10 = vadd.f32 %v2732_v44, %v2251_v50  ;;  %v2254_v55 = vpop.f32.mrb[66].mxu1  ;;  %v2734_v30 = vpop.f32.mrb[149].mxu0  ;;  %v2851_v44 = vld [vmem:[#allocation2 + $0x2e8] sm:$0x3f] }
 0x32a   : > { %v2256_v42 = vpop.f32.mrb[67].mxu1  ;;  %v2735_v43 = vpop.f32.mrb[150].mxu0  ;;  %v3039_v30 = vsel %vm1563_vm5, %v3034_v33, %v3038_v46 }
 0x32b   : > { %v10350_v7 = vadd.f32 %v2735_v43, %v2254_v55  ;;  %v2737_v45 = vpop.f32.mrb[151].mxu0  ;;  %v2890_v55 = vpack.c.bf16 %v10161_v35, %v2846_v38  ;;  %v2893_v42 = vpack.c.bf16 %v2851_v44, %v2851_v44 }
 0x32c   : > { %v11972_v45 = vrot.slane %v10211_v1, 1 }
 0x32d   : > { %3361 = vmatmul.mubr.bf16.gmra.mrb[148].mxu1 %v10206_v15  ;;  %v3036_v43 = vrot.slane %v2890_v55, 1  ;;  %v3042_v2 = vrot.slane %v2893_v42, 1 }
 0x32e   : > { %7640 = vmatprep.mubr.msk.bf16.mxu1 %vm403_vm1, %v3035_v21  ;;  %v2892_v21 = vpack.c.bf16 %v2850_v60, %v2850_v60 }
 0x32f   : > { %v2259_v59 = vpop.f32.mrb[68].mxu1  ;;  %v3037_v51 = vsel %vm1563_vm5, %v11972_v45, %v3036_v43  ;;  %v3043_v39 = vsel %vm1563_vm5, %v3038_v46, %v3042_v2 }
 0x330   : > { %v2261_v13 = vpop.f32.mrb[69].mxu1  ;;  %v2740_v5 = vpop.f32.mrb[152].mxu0 }
 0x331   : > { %v10357_v6 = vadd.f32 %v2740_v5, %v2259_v59  ;;  %v2262_v47 = vpop.f32.mrb[70].mxu1  ;;  %v2742_v40 = vpop.f32.mrb[153].mxu0  ;;  %v3040_v59 = vrot.slane %v2892_v21, 1 }
 0x332   : > { %v2264_v50 = vpop.f32.mrb[71].mxu1  ;;  %v2743_v57 = vpop.f32.mrb[154].mxu0 }
 0x333   : > { %v10359_v15 = vadd.f32 %v2743_v57, %v2262_v47  ;;  %v2745_v20 = vpop.f32.mrb[155].mxu0 }
 0x335   : > { %3369 = vmatmul.mubr.bf16.gmra.mrb[152].mxu1 %v10227_v11  ;;  %v3041_v11 = vsel %vm1563_vm5, %v3036_v43, %v3040_v59 }
 0x336   : > { %7641 = vmatprep.mubr.msk.bf16.mxu1 %vm403_vm1, %v3039_v30 }
 0x33d   : > { %3377 = vmatmul.mubr.bf16.gmra.mrb[156].mxu1 %v3037_v51 }
 0x33e   : > { %7642 = vmatprep.mubr.msk.bf16.mxu1 %vm403_vm1, %v3043_v39 }
 0x345   : > { %3385 = vmatmul.mubr.bf16.gmra.mrb[160].mxu1 %v3041_v11 }
 0x346   : > { %7643 = vmatprep.mubr.msk.bf16.mxu1 %vm403_vm1, %v3042_v2 }
 0x34d   : > { %3393 = vmatmul.mubr.bf16.gmra.mrb[164].mxu1 %v3040_v59 }
 0x368   : > { %v2267_v33 = vpop.f32.mrb[72].mxu1 }
 0x369   : > { %v2269_v13 = vpop.f32.mrb[73].mxu1  ;;  %v2748_v5 = vpop.f32.mrb[156].mxu0 }
 0x36a   : > { %v10372_v47 = vadd.f32 %v2748_v5, %v2267_v33  ;;  %v2270_v1 = vpop.f32.mrb[74].mxu1  ;;  %v2750_v40 = vpop.f32.mrb[157].mxu0 }
 0x36b   : > { %v2272_v38 = vpop.f32.mrb[75].mxu1  ;;  %v2751_v50 = vpop.f32.mrb[158].mxu0 }
 0x36c   : > { %v10374_v57 = vadd.f32 %v2751_v50, %v2270_v1  ;;  %v2753_v46 = vpop.f32.mrb[159].mxu0  ;;  %v10385_v50 = vld [vmem:[%s11874_s5] ss:$0 sm:$0xff] }
 0x370   : > { %v2275_v44 = vpop.f32.mrb[76].mxu1 }
 0x371   : > { %v2277_v20 = vpop.f32.mrb[77].mxu1  ;;  %v2756_v55 = vpop.f32.mrb[160].mxu0 }
 0x372   : > { %v10376_v30 = vadd.f32 %v2756_v55, %v2275_v44  ;;  %v2278_v42 = vpop.f32.mrb[78].mxu1  ;;  %v2758_v43 = vpop.f32.mrb[161].mxu0 }
 0x373   : > { %v2280_v2 = vpop.f32.mrb[79].mxu1  ;;  %v2759_v60 = vpop.f32.mrb[162].mxu0 }
 0x374   : > { %v10378_v45 = vadd.f32 %v2759_v60, %v2278_v42  ;;  %v2761_v51 = vpop.f32.mrb[163].mxu0  ;;  %v8776_v2 = vld [vmem:[%s8993_s12] sm:$0xff]  }
 0x375   : > { %v3571_v60 = vunpack.c.l.bf16 %v8776_v2 }
 0x378   : > { %v2283_v21 = vpop.f32.mrb[80].mxu1 }
 0x379   : > { %v2285_v39 = vpop.f32.mrb[81].mxu1  ;;  %v2764_v59 = vpop.f32.mrb[164].mxu0 }
 0x37a   : > { %v10380_v11 = vadd.f32 %v2764_v59, %v2283_v21  ;;  %v2286_v33 = vpop.f32.mrb[82].mxu1  ;;  %v2766_v13 = vpop.f32.mrb[165].mxu0  ;;  %v3572_v39 = vunpack.c.h.bf16 %v8776_v2 }
 0x37b   : > { %v2287_v5 = vpop.f32.mrb[83].mxu1  ;;  %v2767_v1 = vpop.f32.mrb[166].mxu0 }
 0x37c   : > { %v2768_v40 = vpop.f32.mrb[167].mxu0 }
 0x380   : > { %v3234_v38 = vpop.f32.mrb[84].mxu1 }
 0x381   : > { %v3400_v46 = vadd.f32 %v3234_v38, %v10153_v12  ;;  %v3236_v44 = vpop.f32.mrb[85].mxu1 }
 0x382   : > { %v3237_v20 = vpop.f32.mrb[86].mxu1 }
 0x383   : > { %v3448_v55 = vadd.f32 %v10385_v50, %v3400_v46  ;;  %v3401_v42 = vadd.f32 %v3237_v20, %v10156_v37  ;;  %v3239_v43 = vpop.f32.mrb[87].mxu1 }
 0x385   : > { %v3489_v51 = vmul.f32 0.1, %v3448_v55  ;;  %v3449_v21 = vadd.f32 %v10385_v50, %v3401_v42 }
 0x387   : > { %v3530_v59 = vmax.f32 %v3448_v55, %v3489_v51  ;;  %v3490_v33 = vmul.f32 0.1, %v3449_v21  ;;  %v8777_v55 = vld [vmem:[%s8993_s12 + $0x8] sm:$0xff]  }
 0x388   : > { %v3242_v13 = vpop.f32.mrb[88].mxu1  ;;  %v3573_v42 = vunpack.c.l.bf16 %v8777_v55 }
 0x389   : > { %v3612_v5 = vadd.f32 %v3571_v60, %v3530_v59  ;;  %v3531_v12 = vmax.f32 %v3449_v21, %v3490_v33  ;;  %v3402_v1 = vadd.f32 %v3242_v13, %v10164_v53  ;;  %v3244_v40 = vpop.f32.mrb[89].mxu1  ;;  %v3574_v60 = vunpack.c.h.bf16 %v8777_v55 }
 0x38a   : > { %v3245_v38 = vpop.f32.mrb[90].mxu1 }
 0x38b   : > { %v3613_v46 = vadd.f32 %v3572_v39, %v3531_v12  ;;  %v3450_v37 = vadd.f32 %v10385_v50, %v3402_v1  ;;  %v3403_v44 = vadd.f32 %v3245_v38, %v10166_v31  ;;  %v3247_v20 = vpop.f32.mrb[91].mxu1 }
 0x38d   : > { %v7992_v43 = vpack.c.bf16 %v3613_v46, %v3612_v5  ;;  %v3491_v2 = vmul.f32 0.1, %v3450_v37  ;;  %v3451_v53 = vadd.f32 %v10385_v50, %v3403_v44  ;;  %v8778_v46 = vld [vmem:[%s8993_s12 + $0x10] sm:$0xff]  }
 0x38e   : > { %v3575_v44 = vunpack.c.l.bf16 %v8778_v46 }
 0x38f   : > { %7993 = vst [vmem:[%s10400_s25] sm:$0xff] %v7992_v43   ;;  %v3532_v51 = vmax.f32 %v3450_v37, %v3491_v2  ;;  %v3492_v21 = vmul.f32 0.1, %v3451_v53 }
 0x390   : > { %v3250_v31 = vpop.f32.mrb[92].mxu1 }
 0x391   : > { %v3614_v39 = vadd.f32 %v3573_v42, %v3532_v51  ;;  %v3533_v59 = vmax.f32 %v3451_v53, %v3492_v21  ;;  %v3404_v33 = vadd.f32 %v3250_v31, %v10168_v54  ;;  %v3252_v13 = vpop.f32.mrb[93].mxu1  ;;  %v3576_v42 = vunpack.c.h.bf16 %v8778_v46 }
 0x392   : > { %v3253_v12 = vpop.f32.mrb[94].mxu1 }
 0x393   : > { %v3615_v1 = vadd.f32 %v3574_v60, %v3533_v59  ;;  %v3452_v5 = vadd.f32 %v10385_v50, %v3404_v33  ;;  %v3405_v40 = vadd.f32 %v3253_v12, %v10170_v41  ;;  %v3255_v38 = vpop.f32.mrb[95].mxu1  ;;  %v8779_v12 = vld [vmem:[%s8993_s12 + $0x18] sm:$0xff]  }
 0x395   : > { %v7997_v20 = vpack.c.bf16 %v3615_v1, %v3614_v39  ;;  %v3493_v37 = vmul.f32 0.1, %v3452_v5  ;;  %v3453_v55 = vadd.f32 %v10385_v50, %v3405_v40  ;;  %v3577_v1 = vunpack.c.l.bf16 %v8779_v12 }
 0x396   : > { %v8696_v43 = vld [vmem:[%s10400_s25] sm:$0xff]  }
 0x397   : > { %8269 = vst [vmem:[%s10400_s25 + $0x8] sm:$0xff] %v7997_v20   ;;  %v3534_v2 = vmax.f32 %v3452_v5, %v3493_v37  ;;  %v3494_v54 = vmul.f32 0.1, %v3453_v55  ;;  %8501 = vmatmul.mubr.bf16.vlgmr.msra.gmra.mrb[168].mxu0 %v8696_v43 }
 0x398   : > { %v3258_v53 = vpop.f32.mrb[96].mxu1  ;;  %8504 = vmatprep.mubr.msk.bf16.mxu0 %vm8851_vm0, %v10161_v35 }
 0x399   : > { %v3616_v60 = vadd.f32 %v3575_v44, %v3534_v2  ;;  %v3535_v51 = vmax.f32 %v3453_v55, %v3494_v54  ;;  %v3406_v41 = vadd.f32 %v3258_v53, %v10172_v23  ;;  %v3260_v21 = vpop.f32.mrb[97].mxu1  ;;  %v3578_v44 = vunpack.c.h.bf16 %v8779_v12 }
 0x39a   : > { %v3261_v31 = vpop.f32.mrb[98].mxu1 }
 0x39b   : > { %v3617_v39 = vadd.f32 %v3576_v42, %v3535_v51  ;;  %v3454_v59 = vadd.f32 %v10385_v50, %v3406_v41  ;;  %v3407_v33 = vadd.f32 %v3261_v31, %v10174_v52  ;;  %v3263_v13 = vpop.f32.mrb[99].mxu1  ;;  %v10422_v42 = vld [vmem:[#allocation2] sm:$0xff] }
 0x39c   : > { %v8781_v41 = vld [vmem:[%s8993_s12 + $0x20] sm:$0xff]  }
 0x39d   : > { %v8002_v5 = vpack.c.bf16 %v3617_v39, %v3616_v60  ;;  %v3495_v40 = vmul.f32 0.1, %v3454_v59  ;;  %v3455_v38 = vadd.f32 %v10385_v50, %v3407_v33  ;;  %v3579_v21 = vunpack.c.l.bf16 %v8781_v41 }
 0x39e   : > { %v8697_v46 = vld [vmem:[%s10400_s25 + $0x8] sm:$0xff]   ;;  %v3580_v33 = vunpack.c.h.bf16 %v8781_v41 }
 0x39f   : > { %8270 = vst [vmem:[%s10400_s25 + $0x10] sm:$0xff] %v8002_v5   ;;  %v3536_v23 = vmax.f32 %v3454_v59, %v3495_v40  ;;  %v3496_v20 = vmul.f32 0.1, %v3455_v38  ;;  %8505 = vmatmul.mubr.bf16.gmra.mrb[172].mxu0 %v8697_v46 }
 0x3a0   : > { %v3266_v35 = vpop.f32.mrb[100].mxu1  ;;  %8508 = vmatprep.mubr.msk.bf16.mxu0 %vm8851_vm0, %v10422_v42 }
 0x3a1   : > { %v3618_v37 = vadd.f32 %v3577_v1, %v3536_v23  ;;  %v3537_v55 = vmax.f32 %v3455_v38, %v3496_v20  ;;  %v3408_v52 = vadd.f32 %v3266_v35, %v10182_v22  ;;  %v3268_v43 = vpop.f32.mrb[101].mxu1 }
 0x3a2   : > { %v3269_v2 = vpop.f32.mrb[102].mxu1 }
 0x3a3   : > { %v3619_v54 = vadd.f32 %v3578_v44, %v3537_v55  ;;  %v3456_v53 = vadd.f32 %v10385_v50, %v3408_v52  ;;  %v3409_v60 = vadd.f32 %v3269_v2, %v10184_v18  ;;  %v3271_v51 = vpop.f32.mrb[103].mxu1 }
 0x3a5   : > { %v8007_v31 = vpack.c.bf16 %v3619_v54, %v3618_v37  ;;  %v3497_v39 = vmul.f32 0.1, %v3456_v53  ;;  %v3457_v22 = vadd.f32 %v10385_v50, %v3409_v60  ;;  %v8782_v37 = vld [vmem:[%s8993_s12 + $0x28] sm:$0xff]  }
 0x3a6   : > { %v8698_v59 = vld [vmem:[%s10400_s25 + $0x10] sm:$0xff]   ;;  %v3581_v55 = vunpack.c.l.bf16 %v8782_v37 }
 0x3a7   : > { %8271 = vst [vmem:[%s10400_s25 + $0x18] sm:$0xff] %v8007_v31   ;;  %v3538_v13 = vmax.f32 %v3456_v53, %v3497_v39  ;;  %v3498_v12 = vmul.f32 0.1, %v3457_v22  ;;  %8509 = vmatmul.mubr.bf16.gmra.mrb[176].mxu0 %v8698_v59  ;;  %v3582_v53 = vunpack.c.h.bf16 %v8782_v37 }
 0x3a8   : > { %v3274_v1 = vpop.f32.mrb[104].mxu1  ;;  %8512 = vmatprep.mubr.msk.bf16.mxu0 %vm8851_vm0, %v10422_v42 }
 0x3a9   : > { %v3620_v5 = vadd.f32 %v3579_v21, %v3538_v13  ;;  %v3539_v40 = vmax.f32 %v3457_v22, %v3498_v12  ;;  %v3410_v18 = vadd.f32 %v3274_v1, %v10190_v16  ;;  %v3276_v38 = vpop.f32.mrb[105].mxu1  ;;  %v8783_v12 = vld [vmem:[%s8993_s12 + $0x30] sm:$0xff]  }
 0x3aa   : > { %v3277_v46 = vpop.f32.mrb[106].mxu1  ;;  %v3583_v1 = vunpack.c.l.bf16 %v8783_v12 }
 0x3ab   : > { %v3621_v44 = vadd.f32 %v3580_v33, %v3539_v40  ;;  %v3458_v23 = vadd.f32 %v10385_v50, %v3410_v18  ;;  %v3411_v20 = vadd.f32 %v3277_v46, %v10196_v0  ;;  %v3279_v35 = vpop.f32.mrb[107].mxu1  ;;  %v3584_v46 = vunpack.c.h.bf16 %v8783_v12 }
 0x3ad   : > { %v8012_v52 = vpack.c.bf16 %v3621_v44, %v3620_v5  ;;  %v3499_v43 = vmul.f32 0.1, %v3458_v23  ;;  %v3459_v2 = vadd.f32 %v10385_v50, %v3411_v20  ;;  %v8717_v20 = vld [vmem:[%s11877_s8 + $0x60] sm:$0xff]  }
 0x3ae   : > { %v8699_v54 = vld [vmem:[%s10400_s25 + $0x18] sm:$0xff]   ;;  %5310 = vmatpush1.bf16.msra.mxu1 %v8717_v20 }
 0x3af   : > { %8272 = vst [vmem:[%s10400_s25 + $0x20] sm:$0xff] %v8012_v52   ;;  %v3540_v16 = vmax.f32 %v3458_v23, %v3499_v43  ;;  %v3500_v60 = vmul.f32 0.1, %v3459_v2  ;;  %8513 = vmatmul.mubr.bf16.gmra.mrb[180].mxu0 %v8699_v54  ;;  %v8718_v43 = vld [vmem:[%s11877_s8 + $0x68] sm:$0xff]   ;;  %5311 = vmatprep.subr.bf16.mxu1 %v11951_v26 }
 0x3b0   : > { %v3282_v51 = vpop.f32.mrb[108].mxu1  ;;  %8516 = vmatprep.mubr.msk.bf16.mxu0 %vm8851_vm0, %v10422_v42 }
 0x3b1   : > { %v3622_v41 = vadd.f32 %v3581_v55, %v3540_v16  ;;  %v3541_v21 = vmax.f32 %v3459_v2, %v3500_v60  ;;  %v3412_v0 = vadd.f32 %v3282_v51, %v10209_v34  ;;  %v3284_v31 = vpop.f32.mrb[109].mxu1 }
 0x3b2   : > { %v3285_v39 = vpop.f32.mrb[110].mxu1  ;;  %5312 = vmatpush1.bf16.msra.mxu1 %v8718_v43 }
 0x3b3   : > { %v3623_v22 = vadd.f32 %v3582_v53, %v3541_v21  ;;  %v3460_v59 = vadd.f32 %v10385_v50, %v3412_v0  ;;  %v3413_v33 = vadd.f32 %v3285_v39, %v10216_v4  ;;  %v3287_v13 = vpop.f32.mrb[111].mxu1  ;;  %v8719_v0 = vld [vmem:[%s11877_s8 + $0x70] sm:$0xff]   ;;  %5313 = vmatprep.subr.bf16.mxu1 %v11951_v26 }
 0x3b5   : > { %v8017_v5 = vpack.c.bf16 %v3623_v22, %v3622_v41  ;;  %v3501_v40 = vmul.f32 0.1, %v3460_v59  ;;  %v3461_v18 = vadd.f32 %v10385_v50, %v3413_v33 }
 0x3b6   : > { %v8700_v38 = vld [vmem:[%s10400_s25 + $0x20] sm:$0xff]   ;;  %5314 = vmatpush1.bf16.msra.mxu1 %v8719_v0 }
 0x3b7   : > { %8273 = vst [vmem:[%s10400_s25 + $0x28] sm:$0xff] %v8017_v5   ;;  %v3542_v34 = vmax.f32 %v3460_v59, %v3501_v40  ;;  %v3502_v44 = vmul.f32 0.1, %v3461_v18  ;;  %8517 = vmatmul.mubr.bf16.gmra.mrb[184].mxu0 %v8700_v38  ;;  %5315 = vmatprep.subr.bf16.mxu1 %v11951_v26 }
 0x3b8   : > { %v3290_v23 = vpop.f32.mrb[112].mxu1  ;;  %8520 = vmatprep.mubr.msk.bf16.mxu0 %vm8851_vm0, %v10422_v42 }
 0x3b9   : > { %v3624_v4 = vadd.f32 %v3583_v1, %v3542_v34  ;;  %v3543_v35 = vmax.f32 %v3461_v18, %v3502_v44  ;;  %v3414_v37 = vadd.f32 %v3290_v23, %v10229_v36  ;;  %v3292_v55 = vpop.f32.mrb[113].mxu1  ;;  %v8784_v36 = vld [vmem:[%s8993_s12 + $0x38] sm:$0xff]   ;;  %v8785_v34 = vld [vmem:[%s8993_s12 + $0x40] sm:$0xff]  }
 0x3ba   : > { %v3293_v52 = vpop.f32.mrb[114].mxu1  ;;  %v3585_v60 = vunpack.c.l.bf16 %v8784_v36  ;;  %v3586_v39 = vunpack.c.h.bf16 %v8784_v36  ;;  %v3587_v44 = vunpack.c.l.bf16 %v8785_v34 }
 0x3bb   : > { %v3625_v2 = vadd.f32 %v3584_v46, %v3543_v35  ;;  %v3462_v54 = vadd.f32 %v10385_v50, %v3414_v37  ;;  %v3415_v53 = vadd.f32 %v3293_v52, %v10231_v62  ;;  %v3295_v16 = vpop.f32.mrb[115].mxu1  ;;  %v3588_v35 = vunpack.c.h.bf16 %v8785_v34  ;;  %v8787_v34 = vld [vmem:[%s8993_s12 + $0x50] sm:$0xff]  }
 0x3bd   : > { %v8022_v51 = vpack.c.bf16 %v3625_v2, %v3624_v4  ;;  %v3503_v41 = vmul.f32 0.1, %v3462_v54  ;;  %v3463_v21 = vadd.f32 %v10385_v50, %v3415_v53 }
 0x3be   : > { %v8701_v31 = vld [vmem:[%s10400_s25 + $0x28] sm:$0xff]  }
 0x3bf   : > { %8274 = vst [vmem:[%s10400_s25 + $0x30] sm:$0xff] %v8022_v51   ;;  %v3544_v22 = vmax.f32 %v3462_v54, %v3503_v41  ;;  %v3504_v59 = vmul.f32 0.1, %v3463_v21  ;;  %8521 = vmatmul.mubr.bf16.gmra.mrb[188].mxu0 %v8701_v31  ;;  %v8786_v41 = vld [vmem:[%s8993_s12 + $0x48] sm:$0xff]  }
 0x3c0   : > { %v3298_v62 = vpop.f32.mrb[116].mxu1  ;;  %8524 = vmatprep.mubr.msk.bf16.mxu0 %vm8851_vm0, %v10422_v42 }
 0x3c1   : > { %v3626_v33 = vadd.f32 %v3585_v60, %v3544_v22  ;;  %v3545_v13 = vmax.f32 %v3463_v21, %v3504_v59  ;;  %v3416_v12 = vadd.f32 %v3298_v62, %v10237_v27  ;;  %v3300_v1 = vpop.f32.mrb[117].mxu1  ;;  %v3589_v21 = vunpack.c.l.bf16 %v8786_v41 }
 0x3c2   : > { %v3301_v5 = vpop.f32.mrb[118].mxu1  ;;  %v3590_v59 = vunpack.c.h.bf16 %v8786_v41 }
 0x3c3   : > { %v3627_v40 = vadd.f32 %v3586_v39, %v3545_v13  ;;  %v3464_v18 = vadd.f32 %v10385_v50, %v3416_v12  ;;  %v3417_v38 = vadd.f32 %v3301_v5, %v10240_v58  ;;  %v3303_v46 = vpop.f32.mrb[119].mxu1 }
 0x3c5   : > { %v8027_v23 = vpack.c.bf16 %v3627_v40, %v3626_v33  ;;  %v3505_v20 = vmul.f32 0.1, %v3464_v18  ;;  %v3465_v27 = vadd.f32 %v10385_v50, %v3417_v38 }
 0x3c6   : > { %v8702_v4 = vld [vmem:[%s10400_s25 + $0x30] sm:$0xff]  }
 0x3c7   : > { %8275 = vst [vmem:[%s10400_s25 + $0x38] sm:$0xff] %v8027_v23   ;;  %v3546_v37 = vmax.f32 %v3464_v18, %v3505_v20  ;;  %v3506_v55 = vmul.f32 0.1, %v3465_v27  ;;  %8525 = vmatmul.mubr.bf16.gmra.mrb[192].mxu0 %v8702_v4 }
 0x3c8   : > { %v3306_v52 = vpop.f32.mrb[120].mxu1  ;;  %8528 = vmatprep.mubr.msk.bf16.mxu0 %vm8851_vm0, %v10422_v42 }
 0x3c9   : > { %v3628_v43 = vadd.f32 %v3587_v44, %v3546_v37  ;;  %v3547_v58 = vmax.f32 %v3465_v27, %v3506_v55  ;;  %v3418_v2 = vadd.f32 %v3306_v52, %v10274_v9  ;;  %v3308_v54 = vpop.f32.mrb[121].mxu1  ;;  %v3591_v44 = vunpack.c.l.bf16 %v8787_v34 }
 0x3ca   : > { %v3309_v53 = vpop.f32.mrb[122].mxu1 }
 0x3cb   : > { %v3629_v16 = vadd.f32 %v3588_v35, %v3547_v58  ;;  %v3466_v36 = vadd.f32 %v10385_v50, %v3418_v2  ;;  %v3419_v60 = vadd.f32 %v3309_v53, %v10278_v17  ;;  %v3311_v51 = vpop.f32.mrb[123].mxu1  ;;  %v3592_v35 = vunpack.c.h.bf16 %v8787_v34 }
 0x3cd   : > { %v8032_v0 = vpack.c.bf16 %v3629_v16, %v3628_v43  ;;  %v3507_v31 = vmul.f32 0.1, %v3466_v36  ;;  %v3467_v39 = vadd.f32 %v10385_v50, %v3419_v60  ;;  %v8788_v60 = vld [vmem:[%s8993_s12 + $0x58] sm:$0xff]  }
 0x3ce   : > { %v8703_v22 = vld [vmem:[%s10400_s25 + $0x38] sm:$0xff]   ;;  %v3593_v51 = vunpack.c.l.bf16 %v8788_v60 }
 0x3cf   : > { %8276 = vst [vmem:[%s10400_s25 + $0x40] sm:$0xff] %v8032_v0   ;;  %v3548_v9 = vmax.f32 %v3466_v36, %v3507_v31  ;;  %v3508_v62 = vmul.f32 0.1, %v3467_v39  ;;  %8529 = vmatmul.mubr.bf16.gmra.mrb[196].mxu0 %v8703_v22 }
 0x3d0   : > { %v3314_v33 = vpop.f32.mrb[124].mxu1  ;;  %8532 = vmatprep.mubr.msk.bf16.mxu0 %vm8851_vm0, %v10422_v42 }
 0x3d1   : > { %v3630_v13 = vadd.f32 %v3589_v21, %v3548_v9  ;;  %v3549_v12 = vmax.f32 %v3467_v39, %v3508_v62  ;;  %v3420_v17 = vadd.f32 %v3314_v33, %v10295_v24  ;;  %v3316_v1 = vpop.f32.mrb[125].mxu1  ;;  %v3594_v39 = vunpack.c.h.bf16 %v8788_v60 }
 0x3d2   : > { %v3317_v5 = vpop.f32.mrb[126].mxu1 }
 0x3d3   : > { %v3631_v40 = vadd.f32 %v3590_v59, %v3549_v12  ;;  %v3468_v18 = vadd.f32 %v10385_v50, %v3420_v17  ;;  %v3421_v38 = vadd.f32 %v3317_v5, %v10298_v8  ;;  %v3319_v46 = vpop.f32.mrb[127].mxu1 }
 0x3d5   : > { %v8037_v23 = vpack.c.bf16 %v3631_v40, %v3630_v13  ;;  %v3509_v20 = vmul.f32 0.1, %v3468_v18  ;;  %v3469_v27 = vadd.f32 %v10385_v50, %v3421_v38  ;;  %v8789_v40 = vld [vmem:[%s8993_s12 + $0x60] sm:$0xff]  }
 0x3d6   : > { %v8704_v4 = vld [vmem:[%s10400_s25 + $0x40] sm:$0xff]  }
 0x3d7   : > { %8277 = vst [vmem:[%s10400_s25 + $0x48] sm:$0xff] %v8037_v23   ;;  %v3550_v24 = vmax.f32 %v3468_v18, %v3509_v20  ;;  %v3510_v37 = vmul.f32 0.1, %v3469_v27  ;;  %8533 = vmatmul.mubr.bf16.gmra.mrb[200].mxu0 %v8704_v4  ;;  %v3595_v18 = vunpack.c.l.bf16 %v8789_v40  ;;  %v3596_v23 = vunpack.c.h.bf16 %v8789_v40 }
 0x3d8   : > { %v3322_v55 = vpop.f32.mrb[128].mxu1  ;;  %8536 = vmatprep.mubr.msk.bf16.mxu0 %vm8851_vm0, %v10422_v42 }
 0x3d9   : > { %v3632_v52 = vadd.f32 %v3591_v44, %v3550_v24  ;;  %v3551_v43 = vmax.f32 %v3469_v27, %v3510_v37  ;;  %v3422_v8 = vadd.f32 %v3322_v55, %v10303_v63  ;;  %v3324_v58 = vpop.f32.mrb[129].mxu1 }
 0x3da   : > { %v3325_v2 = vpop.f32.mrb[130].mxu1  ;;  %v8790_v58 = vld [vmem:[%s8993_s12 + $0x68] sm:$0xff]  }
 0x3db   : > { %v3633_v54 = vadd.f32 %v3592_v35, %v3551_v43  ;;  %v3470_v53 = vadd.f32 %v10385_v50, %v3422_v8  ;;  %v3423_v16 = vadd.f32 %v3325_v2, %v10306_v32  ;;  %v3327_v36 = vpop.f32.mrb[131].mxu1  ;;  %v3597_v2 = vunpack.c.l.bf16 %v8790_v58 }
 0x3dc   : > { %v3598_v60 = vunpack.c.h.bf16 %v8790_v58 }
 0x3dd   : > { %v8042_v41 = vpack.c.bf16 %v3633_v54, %v3632_v52  ;;  %v3511_v21 = vmul.f32 0.1, %v3470_v53  ;;  %v3471_v0 = vadd.f32 %v10385_v50, %v3423_v16 }
 0x3de   : > { %v8705_v31 = vld [vmem:[%s10400_s25 + $0x48] sm:$0xff]  }
 0x3df   : > { %8278 = vst [vmem:[%s10400_s25 + $0x50] sm:$0xff] %v8042_v41   ;;  %v3552_v63 = vmax.f32 %v3470_v53, %v3511_v21  ;;  %v3512_v22 = vmul.f32 0.1, %v3471_v0  ;;  %8537 = vmatmul.mubr.bf16.gmra.mrb[204].mxu0 %v8705_v31 }
 0x3e0   : > { %v3330_v59 = vpop.f32.mrb[132].mxu1  ;;  %8540 = vmatprep.mubr.msk.bf16.mxu0 %vm8851_vm0, %v10422_v42 }
 0x3e1   : > { %v3634_v9 = vadd.f32 %v3593_v51, %v3552_v63  ;;  %v3553_v62 = vmax.f32 %v3471_v0, %v3512_v22  ;;  %v3424_v32 = vadd.f32 %v3330_v59, %v10311_v56  ;;  %v3332_v33 = vpop.f32.mrb[133].mxu1 }
 0x3e2   : > { %v3333_v13 = vpop.f32.mrb[134].mxu1 }
 0x3e3   : > { %v3635_v12 = vadd.f32 %v3594_v39, %v3553_v62  ;;  %v3472_v17 = vadd.f32 %v10385_v50, %v3424_v32  ;;  %v3425_v1 = vadd.f32 %v3333_v13, %v10314_v29  ;;  %v3335_v5 = vpop.f32.mrb[135].mxu1  ;;  %v8791_v62 = vld [vmem:[%s8993_s12 + $0x70] sm:$0xff]  }
 0x3e4   : > { %v3599_v32 = vunpack.c.l.bf16 %v8791_v62 }
 0x3e5   : > { %v8047_v38 = vpack.c.bf16 %v3635_v12, %v3634_v9  ;;  %v3513_v46 = vmul.f32 0.1, %v3472_v17  ;;  %v3473_v34 = vadd.f32 %v10385_v50, %v3425_v1  ;;  %v3600_v1 = vunpack.c.h.bf16 %v8791_v62 }
 0x3e6   : > { %v8706_v44 = vld [vmem:[%s10400_s25 + $0x50] sm:$0xff]  }
 0x3e7   : > { %8279 = vst [vmem:[%s10400_s25 + $0x58] sm:$0xff] %v8047_v38   ;;  %v3554_v56 = vmax.f32 %v3472_v17, %v3513_v46  ;;  %v3514_v20 = vmul.f32 0.1, %v3473_v34  ;;  %8541 = vmatmul.mubr.bf16.gmra.mrb[208].mxu0 %v8706_v44  ;;  %v8720_v44 = vld [vmem:[%s11877_s8 + $0x78] sm:$0xff]  }
 0x3e8   : > { %v3338_v27 = vpop.f32.mrb[136].mxu1  ;;  %8544 = vmatprep.mubr.msk.bf16.mxu0 %vm8851_vm0, %v10422_v42  ;;  %5316 = vmatpush1.bf16.msra.mxu1 %v8720_v44 }
 0x3e9   : > { %v3636_v4 = vadd.f32 %v3595_v18, %v3554_v56  ;;  %v3555_v35 = vmax.f32 %v3473_v34, %v3514_v20  ;;  %v3426_v29 = vadd.f32 %v3338_v27, %v10322_v48  ;;  %v3340_v24 = vpop.f32.mrb[137].mxu1  ;;  %5317 = vmatprep.subr.bf16.mxu1 %v11951_v26 }
 0x3ea   : > { %v3341_v37 = vpop.f32.mrb[138].mxu1 }
 0x3eb   : > { %v3637_v55 = vadd.f32 %v3596_v23, %v3555_v35  ;;  %v3474_v52 = vadd.f32 %v10385_v50, %v3426_v29  ;;  %v3427_v43 = vadd.f32 %v3341_v37, %v10326_v28  ;;  %v3343_v8 = vpop.f32.mrb[139].mxu1 }
 0x3ed   : > { %v8052_v54 = vpack.c.bf16 %v3637_v55, %v3636_v4  ;;  %v3515_v53 = vmul.f32 0.1, %v3474_v52  ;;  %v3475_v16 = vadd.f32 %v10385_v50, %v3427_v43  ;;  %v8792_v4 = vld [vmem:[%s8993_s12 + $0x78] sm:$0xff]  }
 0x3ee   : > { %v8707_v36 = vld [vmem:[%s10400_s25 + $0x58] sm:$0xff]   ;;  %v3602_v55 = vunpack.c.h.bf16 %v8792_v4 }
 0x3ef   : > { %8280 = vst [vmem:[%s10400_s25 + $0x60] sm:$0xff] %v8052_v54   ;;  %v3556_v48 = vmax.f32 %v3474_v52, %v3515_v53  ;;  %v3516_v51 = vmul.f32 0.1, %v3475_v16  ;;  %8545 = vmatmul.mubr.bf16.gmra.mrb[212].mxu0 %v8707_v36 }
 0x3f0   : > { %v3346_v41 = vpop.f32.mrb[140].mxu1  ;;  %8548 = vmatprep.mubr.msk.bf16.mxu0 %vm8851_vm0, %v10422_v42 }
 0x3f1   : > { %v3638_v21 = vadd.f32 %v3597_v2, %v3556_v48  ;;  %v3557_v0 = vmax.f32 %v3475_v16, %v3516_v51  ;;  %v3428_v28 = vadd.f32 %v3346_v41, %v10331_v49  ;;  %v3348_v31 = vpop.f32.mrb[141].mxu1  ;;  %v8793_v51 = vld [vmem:[%s8993_s12 + $0x80] sm:$0xff]  }
 0x3f2   : > { %v3349_v39 = vpop.f32.mrb[142].mxu1  ;;  %v3603_v41 = vunpack.c.l.bf16 %v8793_v51 }
 0x3f3   : > { %v3639_v63 = vadd.f32 %v3598_v60, %v3557_v0  ;;  %v3476_v22 = vadd.f32 %v10385_v50, %v3428_v28  ;;  %v3429_v59 = vadd.f32 %v3349_v39, %v10333_v19  ;;  %v3351_v9 = vpop.f32.mrb[143].mxu1  ;;  %v3604_v39 = vunpack.c.h.bf16 %v8793_v51 }
 0x3f5   : > { %v8057_v33 = vpack.c.bf16 %v3639_v63, %v3638_v21  ;;  %v3517_v13 = vmul.f32 0.1, %v3476_v22  ;;  %v3477_v12 = vadd.f32 %v10385_v50, %v3429_v59  ;;  %v8721_v59 = vld [vmem:[%s11877_s8 + $0x80] sm:$0xff]  }
 0x3f6   : > { %v8708_v17 = vld [vmem:[%s10400_s25 + $0x60] sm:$0xff]   ;;  %5318 = vmatpush1.bf16.msra.mxu1 %v8721_v59 }
 0x3f7   : > { %8281 = vst [vmem:[%s10400_s25 + $0x68] sm:$0xff] %v8057_v33   ;;  %v3558_v49 = vmax.f32 %v3476_v22, %v3517_v13  ;;  %v3518_v5 = vmul.f32 0.1, %v3477_v12  ;;  %8549 = vmatmul.mubr.bf16.gmra.mrb[216].mxu0 %v8708_v17  ;;  %5319 = vmatprep.subr.bf16.mxu1 %v11951_v26 }
 0x3f8   : > { %v3354_v40 = vpop.f32.mrb[144].mxu1  ;;  %8552 = vmatprep.mubr.msk.bf16.mxu0 %vm8851_vm0, %v10422_v42 }
 0x3f9   : > { %v3640_v18 = vadd.f32 %v3599_v32, %v3558_v49  ;;  %v3559_v38 = vmax.f32 %v3477_v12, %v3518_v5  ;;  %v3430_v46 = vadd.f32 %v3354_v40, %v10340_v3  ;;  %v3356_v19 = vpop.f32.mrb[145].mxu1  ;;  %v3601_v3 = vunpack.c.l.bf16 %v8792_v4  ;;  %v8794_v49 = vld [vmem:[%s8993_s12 + $0x88] sm:$0xff]  }
 0x3fa   : > { %v3357_v34 = vpop.f32.mrb[146].mxu1  ;;  %v3605_v5 = vunpack.c.l.bf16 %v8794_v49  ;;  %v8722_v4 = vld [vmem:[%s11877_s8 + $0x88] sm:$0xff]  }
 0x3fb   : > { %v3641_v23 = vadd.f32 %v3600_v1, %v3559_v38  ;;  %v3478_v56 = vadd.f32 %v10385_v50, %v3430_v46  ;;  %v3431_v20 = vadd.f32 %v3357_v34, %v10342_v61  ;;  %v3359_v27 = vpop.f32.mrb[147].mxu1  ;;  %v3606_v46 = vunpack.c.h.bf16 %v8794_v49  ;;  %5320 = vmatpush1.bf16.msra.mxu1 %v8722_v4  ;;  %v8797_v49 = vld [vmem:[%s8993_s12 + $0xa0] sm:$0x3]  ;;  %v8733_v4 = vld [vmem:[%s11877_s8 + $0x28] sm:$0xff]  }
 0x3fc   : > { %5321 = vmatprep.subr.bf16.mxu1 %v11951_v26 }
 0x3fd   : > { %v8062_v35 = vpack.c.bf16 %v3641_v23, %v3640_v18  ;;  %v3519_v29 = vmul.f32 0.1, %v3478_v56  ;;  %v3479_v24 = vadd.f32 %v10385_v50, %v3431_v20 }
 0x3fe   : > { %v8709_v37 = vld [vmem:[%s10400_s25 + $0x68] sm:$0xff]  }
 0x3ff   : > { %8282 = vst [vmem:[%s10400_s25 + $0x70] sm:$0xff] %v8062_v35   ;;  %v3560_v52 = vmax.f32 %v3478_v56, %v3519_v29  ;;  %v3520_v43 = vmul.f32 0.1, %v3479_v24  ;;  %8553 = vmatmul.mubr.bf16.gmra.mrb[220].mxu0 %v8709_v37  ;;  %v8795_v37 = vld [vmem:[%s8993_s12 + $0x90] sm:$0xff]  }
 0x400   : > { %v3362_v8 = vpop.f32.mrb[148].mxu1  ;;  %8556 = vmatprep.mubr.msk.bf16.mxu0 %vm8851_vm0, %v10422_v42 }
 0x401   : > { %v3642_v61 = vadd.f32 %v3601_v3, %v3560_v52  ;;  %v3561_v58 = vmax.f32 %v3479_v24, %v3520_v43  ;;  %v3432_v2 = vadd.f32 %v3362_v8, %v10347_v10  ;;  %v3364_v54 = vpop.f32.mrb[149].mxu1 }
 0x402   : > { %v3365_v53 = vpop.f32.mrb[150].mxu1 }
 0x403   : > { %v3643_v16 = vadd.f32 %v3602_v55, %v3561_v58  ;;  %v3480_v36 = vadd.f32 %v10385_v50, %v3432_v2  ;;  %v3433_v60 = vadd.f32 %v3365_v53, %v10350_v7  ;;  %v3367_v48 = vpop.f32.mrb[151].mxu1 }
 0x405   : > { %v8067_v21 = vpack.c.bf16 %v3643_v16, %v3642_v61  ;;  %v3521_v0 = vmul.f32 0.1, %v3480_v36  ;;  %v3481_v28 = vadd.f32 %v10385_v50, %v3433_v60  ;;  %v3608_v61 = vunpack.c.h.bf16 %v8795_v37 }
 0x406   : > { %v8710_v31 = vld [vmem:[%s10400_s25 + $0x70] sm:$0xff]  }
 0x407   : > { %8283 = vst [vmem:[%s10400_s25 + $0x78] sm:$0xff] %v8067_v21   ;;  %v3562_v10 = vmax.f32 %v3480_v36, %v3521_v0  ;;  %v3522_v63 = vmul.f32 0.1, %v3481_v28  ;;  %8557 = vmatmul.mubr.bf16.gmra.mrb[224].mxu0 %v8710_v31  ;;  %v8796_v0 = vld [vmem:[%s8993_s12 + $0x98] sm:$0xff]  }
 0x408   : > { %v3370_v22 = vpop.f32.mrb[152].mxu1  ;;  %8560 = vmatprep.mubr.msk.bf16.mxu0 %vm8851_vm0, %v10422_v42 }
 0x409   : > { %v3644_v7 = vadd.f32 %v3603_v41, %v3562_v10  ;;  %v3563_v9 = vmax.f32 %v3481_v28, %v3522_v63  ;;  %v3434_v62 = vadd.f32 %v3370_v22, %v10357_v6  ;;  %v3372_v32 = vpop.f32.mrb[153].mxu1  ;;  %v3609_v28 = vunpack.c.l.bf16 %v8796_v0 }
 0x40a   : > { %v3373_v33 = vpop.f32.mrb[154].mxu1  ;;  %v3610_v22 = vunpack.c.h.bf16 %v8796_v0 }
 0x40b   : > { %v3645_v13 = vadd.f32 %v3604_v39, %v3563_v9  ;;  %v3482_v12 = vadd.f32 %v10385_v50, %v3434_v62  ;;  %v3435_v17 = vadd.f32 %v3373_v33, %v10359_v15  ;;  %v3375_v1 = vpop.f32.mrb[155].mxu1 }
 0x40d   : > { %v8072_v40 = vpack.c.bf16 %v3645_v13, %v3644_v7  ;;  %v3523_v18 = vmul.f32 0.1, %v3482_v12  ;;  %v3483_v6 = vadd.f32 %v10385_v50, %v3435_v17  ;;  %v8723_v13 = vld [vmem:[%s11877_s8 + $0x90] sm:$0xff]  }
 0x40e   : > { %v8711_v38 = vld [vmem:[%s10400_s25 + $0x78] sm:$0xff]   ;;  %5322 = vmatpush1.bf16.msra.mxu1 %v8723_v13  ;;  %v4954_v13 = vld [vmem:[#allocation2 + $0x28] sm:$0xff] }
 0x40f   : > { %8284 = vst [vmem:[%s10400_s25 + $0x80] sm:$0xff] %v8072_v40   ;;  %v3564_v19 = vmax.f32 %v3482_v12, %v3523_v18  ;;  %v3524_v34 = vmul.f32 0.1, %v3483_v6  ;;  %8561 = vmatmul.mubr.bf16.gmra.mrb[228].mxu0 %v8711_v38  ;;  %5323 = vmatprep.subr.bf16.mxu1 %v11951_v26 }
 0x410   : > { %v3378_v44 = vpop.f32.mrb[156].mxu1  ;;  %8564 = vmatprep.mubr.msk.bf16.mxu0 %vm8851_vm0, %v10422_v42 }
 0x411   : > { %v3646_v23 = vadd.f32 %v3605_v5, %v3564_v19  ;;  %v3565_v56 = vmax.f32 %v3483_v6, %v3524_v34  ;;  %v3436_v15 = vadd.f32 %v3378_v44, %v10372_v47  ;;  %v3380_v20 = vpop.f32.mrb[157].mxu1  ;;  %v3607_v47 = vunpack.c.l.bf16 %v8795_v37  ;;  %v8724_v34 = vld [vmem:[%s11877_s8 + $0x98] sm:$0xff]   ;;  %v8725_v44 = vld [vmem:[%s11877_s8 + $0xa0] sm:$0xff]  }
 0x412   : > { %v3381_v27 = vpop.f32.mrb[158].mxu1  ;;  %v3611_v5 = vunpack.c.l.bf16 %v8797_v49  ;;  %5324 = vmatpush1.bf16.msra.mxu1 %v8724_v34  ;;  %v8730_v20 = vld [vmem:[%s11877_s8 + $0x18] sm:$0xff]   ;;  %v10663_v37 = vld [vmem:[%s11876_s7] ss:$0 sm:$0xff] }
 0x413   : > { %v3647_v3 = vadd.f32 %v3606_v46, %v3565_v56  ;;  %v3484_v35 = vadd.f32 %v10385_v50, %v3436_v15  ;;  %v3437_v29 = vadd.f32 %v3381_v27, %v10374_v57  ;;  %v3383_v24 = vpop.f32.mrb[159].mxu1  ;;  %5325 = vmatprep.subr.bf16.mxu1 %v11951_v26  ;;  %v8729_v56 = vld [vmem:[%s11877_s8 + $0x10] sm:$0xff]   ;;  %v8727_v15 = vld [vmem:[%s11877_s8 + $0xa8] sm:$0xff]   ;;  %v8731_v27 = vld [vmem:[%s11877_s8 + $0x20] sm:$0xff]  }
 0x414   : > { %v8737_v24 = vld [vmem:[%s11877_s8 + $0x40] sm:$0xff]  }
 0x415   : > { %v8077_v55 = vpack.c.bf16 %v3647_v3, %v3646_v23  ;;  %v3525_v52 = vmul.f32 0.1, %v3484_v35  ;;  %v3485_v43 = vadd.f32 %v10385_v50, %v3437_v29  ;;  %v8726_v23 = vld [vmem:[%s11877_s8] sm:$0xff]   ;;  %v8734_v3 = vld [vmem:[%s11877_s8 + $0x30] sm:$0xff]   ;;  %v8735_v29 = vld [vmem:[%s11877_s8 + $0x38] sm:$0xff]  }
 0x416   : > { %v8712_v8 = vld [vmem:[%s10400_s25 + $0x80] sm:$0xff]   ;;  %5326 = vmatpush1.bf16.msra.mxu1 %v8725_v44  ;;  %5790 = vmatpush1.bf16.msra.mxu0 %v8726_v23 }
 0x417   : > { %8285 = vst [vmem:[%s10400_s25 + $0x88] sm:$0xff] %v8077_v55   ;;  %v3566_v58 = vmax.f32 %v3484_v35, %v3525_v52  ;;  %v3526_v2 = vmul.f32 0.1, %v3485_v43  ;;  %8565 = vmatmul.mubr.bf16.gmra.mrb[232].mxu0 %v8712_v8  ;;  %5327 = vmatprep.subr.bf16.mxu1 %v11951_v26  ;;  %v8732_v35 = vld [vmem:[%s11877_s8 + $0xb0] sm:$0xff]   ;;  %v8738_v55 = vld [vmem:[%s11877_s8 + $0x48] sm:$0xff]  }
 0x418   : > { %v3386_v54 = vpop.f32.mrb[160].mxu1  ;;  %8568 = vmatprep.mubr.msk.bf16.mxu0 %vm8851_vm0, %v10422_v42  ;;  %5791 = vmatprep.subr.bf16.mxu0 %v11951_v26 }
 0x419   : > { %v3648_v57 = vadd.f32 %v3607_v47, %v3566_v58  ;;  %v3567_v53 = vmax.f32 %v3485_v43, %v3526_v2  ;;  %v3438_v16 = vadd.f32 %v3386_v54, %v10376_v30  ;;  %v3388_v36 = vpop.f32.mrb[161].mxu1  ;;  %v8739_v54 = vld [vmem:[%s11877_s8 + $0x50] sm:$0xff]  }
 0x41a   : > { %v3389_v60 = vpop.f32.mrb[162].mxu1  ;;  %5328 = vmatpush1.bf16.msra.mxu1 %v8727_v15 }
 0x41b   : > { %v3649_v48 = vadd.f32 %v3608_v61, %v3567_v53  ;;  %v3486_v51 = vadd.f32 %v10385_v50, %v3438_v16  ;;  %v3439_v41 = vadd.f32 %v3389_v60, %v10378_v45  ;;  %v3391_v21 = vpop.f32.mrb[163].mxu1  ;;  %5329 = vmatprep.subr.bf16.mxu1 %v11951_v26  ;;  %v8736_v60 = vld [vmem:[%s11877_s8 + $0xb8] sm:$0xff]  }
 0x41d   : > { %v8082_v31 = vpack.c.bf16 %v3649_v48, %v3648_v57  ;;  %v3527_v39 = vmul.f32 0.1, %v3486_v51  ;;  %v3487_v10 = vadd.f32 %v10385_v50, %v3439_v41 }
 0x41e   : > { %v8713_v63 = vld [vmem:[%s10400_s25 + $0x88] sm:$0xff]   ;;  %5330 = vmatpush1.bf16.msra.mxu1 %v8732_v35 }
 0x41f   : > { %8286 = vst [vmem:[%s10400_s25 + $0x90] sm:$0xff] %v8082_v31   ;;  %v3568_v30 = vmax.f32 %v3486_v51, %v3527_v39  ;;  %v3528_v59 = vmul.f32 0.1, %v3487_v10  ;;  %8569 = vmatmul.mubr.bf16.gmra.mrb[236].mxu0 %v8713_v63  ;;  %5331 = vmatprep.subr.bf16.mxu1 %v11951_v26  ;;  %v8740_v51 = vld [vmem:[%s11877_s8 + $0x58] sm:$0xff]  }
 0x420   : > { %v3394_v7 = vpop.f32.mrb[164].mxu1  ;;  %8572 = vmatprep.mubr.msk.bf16.mxu0 %vm8851_vm0, %v10422_v42 }
 0x421   : > { %v3650_v9 = vadd.f32 %v3609_v28, %v3568_v30  ;;  %v3569_v62 = vmax.f32 %v3487_v10, %v3528_v59  ;;  %v3440_v45 = vadd.f32 %v3394_v7, %v10380_v11  ;;  %v3396_v32 = vpop.f32.mrb[165].mxu1 }
 0x422   : > { %v3397_v33 = vpop.f32.mrb[166].mxu1  ;;  %5332 = vmatpush1.bf16.msra.mxu1 %v8736_v60 }
 0x423   : > { %v3651_v12 = vadd.f32 %v3610_v22, %v3569_v62  ;;  %v3488_v17 = vadd.f32 %v10385_v50, %v3440_v45  ;;  %v3398_v1 = vpop.f32.mrb[167].mxu1  ;;  %8584 = vmatprep.subr.bf16.mxu1 %v11951_v26  ;;  %v11973_v45 = vld [vmem:[#allocation3_spill] sm:$0xff]  ;;  %v4952_v33 = vld [vmem:[#allocation2 + $0x18] sm:$0xc0] }
 0x425   : > { %v8087_v11 = vpack.c.bf16 %v3651_v12, %v3650_v9  ;;  %v3529_v40 = vmul.f32 0.1, %v3488_v17 }
 0x426   : > { %v8714_v18 = vld [vmem:[%s10400_s25 + $0x90] sm:$0xff]  }
 0x427   : > { %8287 = vst [vmem:[%s10400_s25 + $0x98] sm:$0xff] %v8087_v11   ;;  %v3570_v6 = vmax.f32 %v3488_v17, %v3529_v40  ;;  %8573 = vmatmul.mubr.bf16.gmra.mrb[240].mxu0 %v8714_v18  ;;  %v11974_v11 = vld [vmem:[#allocation4_spill] sm:$0xff] }
 0x428   : > { %8576 = vmatprep.mubr.msk.bf16.mxu0 %vm8851_vm0, %v10422_v42 }
 0x429   : > { %v3652_v38 = vadd.f32 %v3611_v5, %v3570_v6  ;;  %v5036_v6 = vpack.c.bf16 %v4954_v13, %v4952_v33  ;;  %v11978_v33 = vld [vmem:[#allocation8_spill] sm:$0xff] }
 0x42b   : > { %v7947_v46 = vpack.c.bf16 %v3652_v38, %v3652_v38 }
 0x42d   : > { %3858 = vst [vmem:[%s10400_s25 + $0xa0] sm:$0x3] %v7947_v46 }
 0x42e   : > { %v8715_v50 = vld [vmem:[%s10400_s25 + $0x98] sm:$0xff]  }
 0x42f   : > { %8577 = vmatmul.mubr.bf16.gmra.mrb[244].mxu0 %v8715_v50 }
 0x430   : > { %8580 = vmatprep.mubr.msk.bf16.mxu0 %vm8851_vm0, %v10422_v42  ;;  %v8728_v42 = vld [vmem:[%s11877_s8 + $0x8] sm:$0xff]  }
 0x431   : > { %5792 = vmatpush1.bf16.msra.mxu0 %v8728_v42 }
 0x432   : > { %5793 = vmatprep.subr.bf16.mxu0 %v11951_v26 }
 0x434   : > { %v8716_v19 = vld [vmem:[%s10400_s25 + $0xa0] ss:$0 sps:$4 sm:$0x33]  }
 0x435   : > { %5794 = vmatpush1.bf16.msra.mxu0 %v8729_v56 }
 0x436   : > { %5795 = vmatprep.subr.bf16.mxu0 %v11951_v26 }
 0x437   : > { %8581 = vmatmul.mubr.bf16.gmra.mrb[248].mxu0 %v8716_v19 }
 0x439   : > { %5796 = vmatpush1.bf16.msra.mxu0 %v8730_v20 }
 0x43a   : > { %5797 = vmatprep.subr.bf16.mxu0 %v11951_v26 }
 0x43d   : > { %5798 = vmatpush1.bf16.msra.mxu0 %v8731_v27 }
 0x43e   : > { %5799 = vmatprep.subr.bf16.mxu0 %v11951_v26 }
 0x441   : > { %5800 = vmatpush1.bf16.msra.mxu0 %v8733_v4 }
 0x442   : > { %5801 = vmatprep.subr.bf16.mxu0 %v11951_v26 }
 0x445   : > { %5802 = vmatpush1.bf16.msra.mxu0 %v8734_v3  ;;  %v5554_v3 = vrot.slane %v5036_v6, 3 }
 0x446   : > { %5803 = vmatprep.subr.bf16.mxu0 %v11951_v26 }
 0x449   : > { %5804 = vmatpush1.bf16.msra.mxu0 %v8735_v29 }
 0x44a   : > { %5805 = vmatprep.subr.bf16.mxu0 %v11951_v26 }
 0x44d   : > { %5806 = vmatpush1.bf16.msra.mxu0 %v8737_v24  ;;  %v11975_v24 = vld [vmem:[#allocation5_spill] sm:$0xff] }
 0x44e   : > { %5807 = vmatprep.subr.bf16.mxu0 %v11951_v26 }
 0x451   : > { %5808 = vmatpush1.bf16.msra.mxu0 %v8738_v55 }
 0x452   : > { %5809 = vmatprep.subr.bf16.mxu0 %v11951_v26 }
 0x455   : > { %5810 = vmatpush1.bf16.msra.mxu0 %v8739_v54 }
 0x456   : > { %5811 = vmatprep.subr.bf16.mxu0 %v11951_v26 }
 0x459   : > { %5812 = vmatpush1.bf16.msra.mxu0 %v8740_v51 }
 0x45a   : > { %6418 = vmatprep.subr.bf16.mxu0 %v11951_v26 }
 0x46a   : > { %v4129_v47 = vpop.f32.mrb[168].mxu0 }
 0x46b   : > { %v4130_v52 = vadd.f32 %v10663_v37, %v4129_v47  ;;  %v8502_v43 = vpop.f32.mrb[169].mxu0 }
 0x46c   : > { %v4132_v8 = vpop.f32.mrb[170].mxu0 }
 0x46d   : > { %v4295_v61 = vmul.f32 0.1, %v4130_v52  ;;  %v4133_v58 = vadd.f32 %v10663_v37, %v4132_v8  ;;  %v8503_v2 = vpop.f32.mrb[171].mxu0 }
 0x46e   : > { %v11976_v2 = vld [vmem:[#allocation6_spill] sm:$0xff] }
 0x46f   : > { %v4336_v57 = vmax.f32 %v4130_v52, %v4295_v61  ;;  %v4296_v53 = vmul.f32 0.1, %v4133_v58 }
 0x471   : > { %v4337_v16 = vmax.f32 %v4133_v58, %v4296_v53  ;;  %v4377_v36 = vmul.f32 %v4336_v57, %v9192_v14 }
 0x472   : > { %v4137_v48 = vpop.f32.mrb[172].mxu0 }
 0x473   : > { %v4138_v41 = vadd.f32 %v10663_v37, %v4137_v48  ;;  %4622 = vrot.lane.b32.xlu0 %v4377_v36, %s8853_s22  ;;  %v4459_v21 = vrot.slane %v4377_v36, 7  ;;  %v4786_v0 = vrot.slane %v4377_v36, 1  ;;  %v8506_v28 = vpop.f32.mrb[173].mxu0  ;;  %v4378_v14 = vmul.f32 %v4337_v16, %v9205_v25 }
 0x474   : > { %v4140_v31 = vpop.f32.mrb[174].mxu0 }
 0x475   : > { %v4297_v39 = vmul.f32 0.1, %v4138_v41  ;;  %4909 = vst.msk [vmem:[#allocation2 + $0x38] sm:$0x80] %vm1687_vm3, %v4786_v0  ;;  %v4141_v10 = vadd.f32 %v10663_v37, %v4140_v31  ;;  %4624 = vrot.lane.b32.xlu1 %v4378_v14, %s8853_s22  ;;  %v4460_v63 = vrot.slane %v4378_v14, 7  ;;  %v4787_v22 = vrot.slane %v4378_v14, 1 }
 0x476   : > { %4581 = vst.msk [vmem:[#allocation2 + $0x40] sm:$0xfe] %vm1354_vm4, %v4459_v21  ;;  %v8507_v30 = vpop.f32.mrb[175].mxu0 }
 0x477   : > { %v4338_v25 = vmax.f32 %v4138_v41, %v4297_v39  ;;  %v4298_v59 = vmul.f32 0.1, %v4141_v10  ;;  %v4788_v7 = vsel %vm1563_vm5, %v4786_v0, %v4787_v22  ;;  %v4461_v9 = vsel %vm1231_vm6, %v4459_v21, %v4460_v63  ;;  %v11977_v30 = vld [vmem:[#allocation7_spill] sm:$0xff] }
 0x478   : > { %4910 = vst.msk [vmem:[#allocation2 + $0x48] sm:$0xff] %vm403_vm1, %v4788_v7  ;;  %4582 = vst.msk [vmem:[#allocation2 + $0x50] sm:$0xff] %vm403_vm1, %v4461_v9 }
 0x479   : > { %v4339_v62 = vmax.f32 %v4141_v10, %v4298_v59  ;;  %v4379_v32 = vmul.f32 %v4338_v25, %v11973_v45 }
 0x47a   : > { %v4145_v12 = vpop.f32.mrb[176].mxu0 }
 0x47b   : > { %v4146_v17 = vadd.f32 %v10663_v37, %v4145_v12  ;;  %4626 = vrot.lane.b32.xlu0 %v4379_v32, %s8853_s22  ;;  %v4462_v1 = vrot.slane %v4379_v32, 7  ;;  %v4789_v49 = vrot.slane %v4379_v32, 1  ;;  %v8510_v5 = vpop.f32.mrb[177].mxu0  ;;  %v4380_v40 = vmul.f32 %v4339_v62, %v11974_v11 }
 0x47c   : > { %v4148_v18 = vpop.f32.mrb[178].mxu0  ;;  %v4956_v15 = vld [vmem:[#allocation2 + $0x38] sm:$0xff] }
 0x47d   : > { %v4299_v38 = vmul.f32 0.1, %v4146_v17  ;;  %v4463_v46 = vsel %vm1231_vm6, %v4460_v63, %v4462_v1  ;;  %v4790_v50 = vsel %vm1563_vm5, %v4787_v22, %v4789_v49  ;;  %v4149_v19 = vadd.f32 %v10663_v37, %v4148_v18  ;;  %4628 = vrot.lane.b32.xlu1 %v4380_v40, %s8853_s22  ;;  %v8511_v34 = vpop.f32.mrb[179].mxu0 }
 0x47e   : > { %4911 = vst.msk [vmem:[#allocation2 + $0x58] sm:$0xff] %vm403_vm1, %v4790_v50  ;;  %4583 = vst.msk [vmem:[#allocation2 + $0x60] sm:$0xff] %vm403_vm1, %v4463_v46  ;;  %v4464_v44 = vrot.slane %v4380_v40, 7  ;;  %v4791_v23 = vrot.slane %v4380_v40, 1 }
 0x47f   : > { %v4340_v42 = vmax.f32 %v4146_v17, %v4299_v38  ;;  %v4300_v56 = vmul.f32 0.1, %v4149_v19  ;;  %v4958_v20 = vld [vmem:[#allocation2 + $0x48] sm:$0xff] }
 0x480   : > { %v4792_v27 = vsel %vm1563_vm5, %v4789_v49, %v4791_v23  ;;  %v5038_v4 = vpack.c.bf16 %v4958_v20, %v4956_v15  ;;  %v4465_v35 = vsel %vm1231_vm6, %v4462_v1, %v4464_v44 }
 0x481   : > { %v4341_v29 = vmax.f32 %v4149_v19, %v4300_v56  ;;  %4912 = vst.msk [vmem:[#allocation2 + $0x68] sm:$0xff] %vm403_vm1, %v4792_v27  ;;  %v4381_v47 = vmul.f32 %v4340_v42, %v11975_v24  ;;  %4584 = vst.msk [vmem:[#allocation2 + $0x70] sm:$0xff] %vm403_vm1, %v4465_v35 }
 0x482   : > { %v4153_v55 = vpop.f32.mrb[180].mxu0  ;;  %v5555_v52 = vrot.slane %v5038_v4, 3 }
 0x483   : > { %v4154_v43 = vadd.f32 %v10663_v37, %v4153_v55  ;;  %4630 = vrot.lane.b32.xlu0 %v4381_v47, %s8853_s22  ;;  %v4466_v8 = vrot.slane %v4381_v47, 7  ;;  %v4793_v61 = vrot.slane %v4381_v47, 1  ;;  %v8514_v58 = vpop.f32.mrb[181].mxu0  ;;  %v4382_v54 = vmul.f32 %v4341_v29, %v11976_v2 }
 0x484   : > { %v4156_v57 = vpop.f32.mrb[182].mxu0  ;;  %v5556_v53 = vsel %vm2331_vm7, %v5554_v3, %v5555_v52  ;;  %v11980_v3 = vld [vmem:[#allocation10_spill] sm:$0xff] }
 0x485   : > { %v4301_v16 = vmul.f32 0.1, %v4154_v43  ;;  %v4794_v36 = vsel %vm1563_vm5, %v4791_v23, %v4793_v61  ;;  %v4157_v60 = vadd.f32 %v10663_v37, %v4156_v57  ;;  %7785 = vmatprep.mubr.msk.bf16.mxu0 %vm403_vm1, %v5556_v53  ;;  %4632 = vrot.lane.b32.xlu1 %v4382_v54, %s8853_s22  ;;  %v4468_v48 = vrot.slane %v4382_v54, 7  ;;  %v8515_v51 = vpop.f32.mrb[183].mxu0  ;;  %v4960_v41 = vld [vmem:[#allocation2 + $0x58] sm:$0xff]  ;;  %v11979_v23 = vld [vmem:[#allocation9_spill] sm:$0xff] }
 0x486   : > { %4913 = vst.msk [vmem:[#allocation2 + $0x78] sm:$0xff] %vm403_vm1, %v4794_v36  ;;  %v4795_v21 = vrot.slane %v4382_v54, 1  ;;  %v5108_v0 = vpack.c.bf16 %v4960_v41, %v4958_v20  ;;  %v4467_v28 = vsel %vm1231_vm6, %v4464_v44, %v4466_v8 }
 0x487   : > { %v4342_v14 = vmax.f32 %v4154_v43, %v4301_v16  ;;  %v4302_v31 = vmul.f32 0.1, %v4157_v60  ;;  %4585 = vst.msk [vmem:[#allocation2 + $0x80] sm:$0xff] %vm403_vm1, %v4467_v28  ;;  %v4469_v39 = vsel %vm1231_vm6, %v4466_v8, %v4468_v48  ;;  %v11981_v16 = vld [vmem:[#allocation11_spill] sm:$0xff] }
 0x488   : > { %v4796_v10 = vsel %vm1563_vm5, %v4793_v61, %v4795_v21  ;;  %7752 = vmatprep.mubr.msk.bf16.mxu1 %vm403_vm1, %v5108_v0  ;;  %v10725_v63 = vld [vmem:[#allocation2 + $0x68] sm:$0xff]  ;;  %4586 = vst.msk [vmem:[#allocation2 + $0x90] sm:$0xff] %vm403_vm1, %v4469_v39  ;;  %v11982_v0 = vld [vmem:[#allocation12_spill] sm:$0xff] }
 0x489   : > { %v4343_v22 = vmax.f32 %v4157_v60, %v4302_v31  ;;  %4914 = vst.msk [vmem:[#allocation2 + $0x88] sm:$0xff] %vm403_vm1, %v4796_v10  ;;  %v4383_v25 = vmul.f32 %v4342_v14, %v11977_v30  ;;  %v5040_v59 = vpack.c.bf16 %v10725_v63, %v4960_v41 }
 0x48a   : > { %v4161_v7 = vpop.f32.mrb[184].mxu0 }
 0x48b   : > { %v4162_v9 = vadd.f32 %v10663_v37, %v4161_v7  ;;  %4634 = vrot.lane.b32.xlu0 %v4383_v25, %s8853_s22  ;;  %v4470_v62 = vrot.slane %v4383_v25, 7  ;;  %v4797_v45 = vrot.slane %v4383_v25, 1  ;;  %v8518_v32 = vpop.f32.mrb[185].mxu0  ;;  %v4384_v13 = vmul.f32 %v4343_v22, %v11978_v33  ;;  %v11983_v33 = vld [vmem:[#allocation13_spill] sm:$0xff] }
 0x48c   : > { %v4164_v12 = vpop.f32.mrb[186].mxu0  ;;  %v10734_v17 = vrot.slane %v5040_v59, 3 }
 0x48d   : > { %v4303_v1 = vmul.f32 0.1, %v4162_v9  ;;  %v4798_v49 = vsel %vm1563_vm5, %v4795_v21, %v4797_v45  ;;  %v4165_v5 = vadd.f32 %v10663_v37, %v4164_v12  ;;  %4636 = vrot.lane.b32.xlu1 %v4384_v13, %s8853_s22  ;;  %v4472_v11 = vrot.slane %v4384_v13, 7  ;;  %v8519_v40 = vpop.f32.mrb[187].mxu0 }
 0x48e   : > { %4915 = vst.msk [vmem:[#allocation2 + $0x98] sm:$0xff] %vm403_vm1, %v4798_v49  ;;  %v4799_v18 = vrot.slane %v4384_v13, 1  ;;  %v10742_v6 = vsel %vm2331_vm7, %v5555_v52, %v10734_v17  ;;  %v4471_v38 = vsel %vm1231_vm6, %v4468_v48, %v4470_v62  ;;  %v11984_v40 = vld [vmem:[#allocation14_spill] sm:$0xff] }
 0x48f   : > { %v4344_v46 = vmax.f32 %v4162_v9, %v4303_v1  ;;  %v4304_v50 = vmul.f32 0.1, %v4165_v5  ;;  %4587 = vst.msk [vmem:[#allocation2 + $0xa0] sm:$0xff] %vm403_vm1, %v4471_v38  ;;  %v4473_v19 = vsel %vm1231_vm6, %v4470_v62, %v4472_v11 }
 0x490   : > { %v4800_v34 = vsel %vm1563_vm5, %v4797_v45, %v4799_v18  ;;  %4588 = vst.msk [vmem:[#allocation2 + $0xb0] sm:$0xff] %vm403_vm1, %v4473_v19 }
 0x491   : > { %v4345_v44 = vmax.f32 %v4165_v5, %v4304_v50  ;;  %4916 = vst.msk [vmem:[#allocation2 + $0xa8] sm:$0xff] %vm403_vm1, %v4800_v34  ;;  %v4385_v42 = vmul.f32 %v4344_v46, %v11979_v23 }
 0x492   : > { %v4169_v56 = vpop.f32.mrb[188].mxu0 }
 0x493   : > { %v4170_v15 = vadd.f32 %v10663_v37, %v4169_v56  ;;  %4638 = vrot.lane.b32.xlu0 %v4385_v42, %s8853_s22  ;;  %v4474_v20 = vrot.slane %v4385_v42, 7  ;;  %v4801_v27 = vrot.slane %v4385_v42, 1  ;;  %v8522_v4 = vpop.f32.mrb[189].mxu0  ;;  %v4386_v35 = vmul.f32 %v4345_v44, %v11980_v3  ;;  %v11985_v3 = vld [vmem:[#allocation15_spill] sm:$0xff] }
 0x494   : > { %v4172_v29 = vpop.f32.mrb[190].mxu0 }
 0x495   : > { %v4305_v24 = vmul.f32 0.1, %v4170_v15  ;;  %v4802_v47 = vsel %vm1563_vm5, %v4799_v18, %v4801_v27  ;;  %v4173_v55 = vadd.f32 %v10663_v37, %v4172_v29  ;;  %4640 = vrot.lane.b32.xlu1 %v4386_v35, %s8853_s22  ;;  %v4476_v52 = vrot.slane %v4386_v35, 7  ;;  %v8523_v43 = vpop.f32.mrb[191].mxu0 }
 0x496   : > { %4917 = vst.msk [vmem:[#allocation2 + $0xb8] sm:$0xff] %vm403_vm1, %v4802_v47  ;;  %v4803_v8 = vrot.slane %v4386_v35, 1  ;;  %v4475_v61 = vsel %vm1231_vm6, %v4472_v11, %v4474_v20  ;;  %v11986_v43 = vld [vmem:[#allocation16_spill] sm:$0xff] }
 0x497   : > { %v4346_v58 = vmax.f32 %v4170_v15, %v4305_v24  ;;  %v4306_v2 = vmul.f32 0.1, %v4173_v55  ;;  %4589 = vst.msk [vmem:[#allocation2 + $0xc0] sm:$0xff] %vm403_vm1, %v4475_v61  ;;  %v4477_v54 = vsel %vm1231_vm6, %v4474_v20, %v4476_v52 }
 0x498   : > { %v4804_v57 = vsel %vm1563_vm5, %v4801_v27, %v4803_v8  ;;  %4590 = vst.msk [vmem:[#allocation2 + $0xd0] sm:$0xff] %vm403_vm1, %v4477_v54 }
 0x499   : > { %v4347_v53 = vmax.f32 %v4173_v55, %v4306_v2  ;;  %4918 = vst.msk [vmem:[#allocation2 + $0xc8] sm:$0xff] %vm403_vm1, %v4804_v57  ;;  %v4387_v36 = vmul.f32 %v4346_v58, %v11981_v16 }
 0x49a   : > { %v4177_v60 = vpop.f32.mrb[192].mxu0 }
 0x49b   : > { %v4178_v48 = vadd.f32 %v10663_v37, %v4177_v60  ;;  %4642 = vrot.lane.b32.xlu0 %v4387_v36, %s8853_s22  ;;  %v4478_v51 = vrot.slane %v4387_v36, 7  ;;  %v4805_v41 = vrot.slane %v4387_v36, 1  ;;  %v8526_v21 = vpop.f32.mrb[193].mxu0  ;;  %v4388_v28 = vmul.f32 %v4347_v53, %v11982_v0 }
 0x49c   : > { %v4180_v14 = vpop.f32.mrb[194].mxu0  ;;  %v11987_v21 = vld [vmem:[#allocation17_spill] sm:$0xff] }
 0x49d   : > { %v4307_v31 = vmul.f32 0.1, %v4178_v48  ;;  %v4806_v39 = vsel %vm1563_vm5, %v4803_v8, %v4805_v41  ;;  %v4181_v10 = vadd.f32 %v10663_v37, %v4180_v14  ;;  %4644 = vrot.lane.b32.xlu1 %v4388_v28, %s8853_s22  ;;  %v4480_v22 = vrot.slane %v4388_v28, 7  ;;  %v8527_v30 = vpop.f32.mrb[195].mxu0 }
 0x49e   : > { %4919 = vst.msk [vmem:[#allocation2 + $0xd8] sm:$0xff] %vm403_vm1, %v4806_v39  ;;  %v4807_v25 = vrot.slane %v4388_v28, 1  ;;  %v4479_v59 = vsel %vm1231_vm6, %v4476_v52, %v4478_v51 }
 0x49f   : > { %v4348_v7 = vmax.f32 %v4178_v48, %v4307_v31  ;;  %v4308_v9 = vmul.f32 0.1, %v4181_v10  ;;  %4591 = vst.msk [vmem:[#allocation2 + $0xe0] sm:$0xff] %vm403_vm1, %v4479_v59  ;;  %v4481_v62 = vsel %vm1231_vm6, %v4478_v51, %v4480_v22 }
 0x4a0   : > { %v4808_v45 = vsel %vm1563_vm5, %v4805_v41, %v4807_v25  ;;  %4592 = vst.msk [vmem:[#allocation2 + $0xf0] sm:$0xff] %vm403_vm1, %v4481_v62 }
 0x4a1   : > { %v4349_v32 = vmax.f32 %v4181_v10, %v4308_v9  ;;  %4920 = vst.msk [vmem:[#allocation2 + $0xe8] sm:$0xff] %vm403_vm1, %v4808_v45  ;;  %v4389_v13 = vmul.f32 %v4348_v7, %v11983_v33  ;;  %v11988_v10 = vld [vmem:[#allocation18_spill] sm:$0xff] }
 0x4a2   : > { %v4185_v12 = vpop.f32.mrb[196].mxu0 }
 0x4a3   : > { %v4186_v1 = vadd.f32 %v10663_v37, %v4185_v12  ;;  %4646 = vrot.lane.b32.xlu0 %v4389_v13, %s8853_s22  ;;  %v4482_v49 = vrot.slane %v4389_v13, 7  ;;  %v4809_v5 = vrot.slane %v4389_v13, 1  ;;  %v8530_v11 = vpop.f32.mrb[197].mxu0  ;;  %v4390_v18 = vmul.f32 %v4349_v32, %v11984_v40 }
 0x4a4   : > { %v4188_v38 = vpop.f32.mrb[198].mxu0  ;;  %v11989_v11 = vld [vmem:[#allocation19_spill] sm:$0xff] }
 0x4a5   : > { %v4309_v46 = vmul.f32 0.1, %v4186_v1  ;;  %v4810_v50 = vsel %vm1563_vm5, %v4807_v25, %v4809_v5  ;;  %v4189_v19 = vadd.f32 %v10663_v37, %v4188_v38  ;;  %4648 = vrot.lane.b32.xlu1 %v4390_v18, %s8853_s22  ;;  %v4484_v34 = vrot.slane %v4390_v18, 7  ;;  %v8531_v44 = vpop.f32.mrb[199].mxu0 }
 0x4a6   : > { %4921 = vst.msk [vmem:[#allocation2 + $0xf8] sm:$0xff] %vm403_vm1, %v4810_v50  ;;  %v4811_v23 = vrot.slane %v4390_v18, 1  ;;  %v4483_v42 = vsel %vm1231_vm6, %v4480_v22, %v4482_v49  ;;  %v11990_v44 = vld [vmem:[#allocation20_spill] sm:$0xff] }
 0x4a7   : > { %v4350_v56 = vmax.f32 %v4186_v1, %v4309_v46  ;;  %v4310_v15 = vmul.f32 0.1, %v4189_v19  ;;  %4593 = vst.msk [vmem:[#allocation2 + $0x100] sm:$0xff] %vm403_vm1, %v4483_v42  ;;  %v4485_v20 = vsel %vm1231_vm6, %v4482_v49, %v4484_v34 }
 0x4a8   : > { %v4812_v27 = vsel %vm1563_vm5, %v4809_v5, %v4811_v23  ;;  %4594 = vst.msk [vmem:[#allocation2 + $0x110] sm:$0xff] %vm403_vm1, %v4485_v20 }
 0x4a9   : > { %v4351_v4 = vmax.f32 %v4189_v19, %v4310_v15  ;;  %4922 = vst.msk [vmem:[#allocation2 + $0x108] sm:$0xff] %vm403_vm1, %v4812_v27  ;;  %v4391_v35 = vmul.f32 %v4350_v56, %v11985_v3 }
 0x4aa   : > { %v4193_v29 = vpop.f32.mrb[200].mxu0 }
 0x4ab   : > { %v4194_v24 = vadd.f32 %v10663_v37, %v4193_v29  ;;  %4650 = vrot.lane.b32.xlu0 %v4391_v35, %s8853_s22  ;;  %v4486_v47 = vrot.slane %v4391_v35, 7  ;;  %v4813_v55 = vrot.slane %v4391_v35, 1  ;;  %v8534_v52 = vpop.f32.mrb[201].mxu0  ;;  %v4392_v8 = vmul.f32 %v4351_v4, %v11986_v43 }
 0x4ac   : > { %v4196_v61 = vpop.f32.mrb[202].mxu0  ;;  %v11991_v52 = vld [vmem:[#allocation21_spill] sm:$0xff] }
 0x4ad   : > { %v4311_v58 = vmul.f32 0.1, %v4194_v24  ;;  %v4814_v2 = vsel %vm1563_vm5, %v4811_v23, %v4813_v55  ;;  %v4197_v54 = vadd.f32 %v10663_v37, %v4196_v61  ;;  %4652 = vrot.lane.b32.xlu1 %v4392_v8, %s8853_s22  ;;  %v4488_v57 = vrot.slane %v4392_v8, 7  ;;  %v8535_v53 = vpop.f32.mrb[203].mxu0 }
 0x4ae   : > { %4923 = vst.msk [vmem:[#allocation2 + $0x118] sm:$0xff] %vm403_vm1, %v4814_v2  ;;  %v4815_v16 = vrot.slane %v4392_v8, 1  ;;  %v4487_v36 = vsel %vm1231_vm6, %v4484_v34, %v4486_v47 }
 0x4af   : > { %v4352_v60 = vmax.f32 %v4194_v24, %v4311_v58  ;;  %v4312_v48 = vmul.f32 0.1, %v4197_v54  ;;  %4595 = vst.msk [vmem:[#allocation2 + $0x120] sm:$0xff] %vm403_vm1, %v4487_v36  ;;  %v4489_v51 = vsel %vm1231_vm6, %v4486_v47, %v4488_v57 }
 0x4b0   : > { %v4816_v41 = vsel %vm1563_vm5, %v4813_v55, %v4815_v16  ;;  %4596 = vst.msk [vmem:[#allocation2 + $0x130] sm:$0xff] %vm403_vm1, %v4489_v51 }
 0x4b1   : > { %v4393_v0 = vmul.f32 %v4352_v60, %v11987_v21  ;;  %v4353_v28 = vmax.f32 %v4197_v54, %v4312_v48  ;;  %4924 = vst.msk [vmem:[#allocation2 + $0x128] sm:$0xff] %vm403_vm1, %v4816_v41  ;;  %v11992_v54 = vld [vmem:[#allocation22_spill] sm:$0xff] }
 0x4b2   : > { %v4201_v14 = vpop.f32.mrb[204].mxu0 }
 0x4b3   : > { %v4490_v31 = vrot.slane %v4393_v0, 7  ;;  %v4817_v39 = vrot.slane %v4393_v0, 1  ;;  %v4394_v22 = vmul.f32 %v4353_v28, %v11988_v10  ;;  %v4202_v30 = vadd.f32 %v10663_v37, %v4201_v14  ;;  %4654 = vrot.lane.b32.xlu0 %v4393_v0, %s8853_s22  ;;  %v8538_v25 = vpop.f32.mrb[205].mxu0 }
 0x4b4   : > { %v4204_v59 = vpop.f32.mrb[206].mxu0 }
 0x4b5   : > { %v4492_v7 = vrot.slane %v4394_v22, 7  ;;  %v4819_v9 = vrot.slane %v4394_v22, 1  ;;  %v4818_v62 = vsel %vm1563_vm5, %v4815_v16, %v4817_v39  ;;  %v4313_v45 = vmul.f32 0.1, %v4202_v30  ;;  %4656 = vrot.lane.b32.xlu1 %v4394_v22, %s8853_s22  ;;  %v8539_v32 = vpop.f32.mrb[207].mxu0  ;;  %v11993_v22 = vld [vmem:[#allocation23_spill] sm:$0xff] }
 0x4b6   : > { %4925 = vst.msk [vmem:[#allocation2 + $0x138] sm:$0xff] %vm403_vm1, %v4818_v62  ;;  %v4205_v33 = vadd.f32 %v10663_v37, %v4204_v59  ;;  %v4491_v13 = vsel %vm1231_vm6, %v4488_v57, %v4490_v31  ;;  %v11994_v32 = vld [vmem:[#allocation24_spill] sm:$0xff] }
 0x4b7   : > { %v4820_v12 = vsel %vm1563_vm5, %v4817_v39, %v4819_v9  ;;  %v4354_v1 = vmax.f32 %v4202_v30, %v4313_v45  ;;  %4597 = vst.msk [vmem:[#allocation2 + $0x140] sm:$0xff] %vm403_vm1, %v4491_v13  ;;  %v4493_v49 = vsel %vm1231_vm6, %v4490_v31, %v4492_v7 }
 0x4b8   : > { %4926 = vst.msk [vmem:[#allocation2 + $0x148] sm:$0xff] %vm403_vm1, %v4820_v12  ;;  %v4314_v5 = vmul.f32 0.1, %v4205_v33  ;;  %4598 = vst.msk [vmem:[#allocation2 + $0x150] sm:$0xff] %vm403_vm1, %v4493_v49 }
 0x4b9   : > { %v4395_v40 = vmul.f32 %v4354_v1, %v11989_v11 }
 0x4ba   : > { %v4355_v18 = vmax.f32 %v4205_v33, %v4314_v5  ;;  %v4209_v38 = vpop.f32.mrb[208].mxu0 }
 0x4bb   : > { %v4494_v46 = vrot.slane %v4395_v40, 7  ;;  %v4821_v50 = vrot.slane %v4395_v40, 1  ;;  %v4210_v19 = vadd.f32 %v10663_v37, %v4209_v38  ;;  %4658 = vrot.lane.b32.xlu0 %v4395_v40, %s8853_s22  ;;  %v8542_v34 = vpop.f32.mrb[209].mxu0 }
 0x4bc   : > { %v4396_v23 = vmul.f32 %v4355_v18, %v11990_v44  ;;  %v4212_v42 = vpop.f32.mrb[210].mxu0  ;;  %v11995_v34 = vld [vmem:[#allocation25_spill] sm:$0xff] }
 0x4bd   : > { %v4822_v56 = vsel %vm1563_vm5, %v4819_v9, %v4821_v50  ;;  %v4315_v15 = vmul.f32 0.1, %v4210_v19  ;;  %v4213_v20 = vadd.f32 %v10663_v37, %v4212_v42  ;;  %v8543_v27 = vpop.f32.mrb[211].mxu0  ;;  %v4495_v35 = vsel %vm1231_vm6, %v4492_v7, %v4494_v46 }
 0x4be   : > { %4927 = vst.msk [vmem:[#allocation2 + $0x158] sm:$0xff] %vm403_vm1, %v4822_v56  ;;  %v4496_v4 = vrot.slane %v4396_v23, 7  ;;  %v4823_v3 = vrot.slane %v4396_v23, 1  ;;  %4660 = vrot.lane.b32.xlu1 %v4396_v23, %s8853_s22  ;;  %4599 = vst.msk [vmem:[#allocation2 + $0x160] sm:$0xff] %vm403_vm1, %v4495_v35 }
 0x4bf   : > { %v4356_v29 = vmax.f32 %v4210_v19, %v4315_v15  ;;  %v4316_v24 = vmul.f32 0.1, %v4213_v20 }
 0x4c0   : > { %v4824_v47 = vsel %vm1563_vm5, %v4821_v50, %v4823_v3  ;;  %v4497_v55 = vsel %vm1231_vm6, %v4494_v46, %v4496_v4 }
 0x4c1   : > { %4928 = vst.msk [vmem:[#allocation2 + $0x168] sm:$0xff] %vm403_vm1, %v4824_v47  ;;  %v4397_v43 = vmul.f32 %v4356_v29, %v11991_v52  ;;  %v4357_v8 = vmax.f32 %v4213_v20, %v4316_v24  ;;  %4600 = vst.msk [vmem:[#allocation2 + $0x170] sm:$0xff] %vm403_vm1, %v4497_v55  ;;  %v11996_v20 = vld [vmem:[#allocation26_spill] sm:$0xff] }
 0x4c2   : > { %v4217_v61 = vpop.f32.mrb[212].mxu0 }
 0x4c3   : > { %v4498_v58 = vrot.slane %v4397_v43, 7  ;;  %v4825_v2 = vrot.slane %v4397_v43, 1  ;;  %v4398_v57 = vmul.f32 %v4357_v8, %v11992_v54  ;;  %v4218_v53 = vadd.f32 %v10663_v37, %v4217_v61  ;;  %4662 = vrot.lane.b32.xlu0 %v4397_v43, %s8853_s22  ;;  %v8546_v16 = vpop.f32.mrb[213].mxu0 }
 0x4c4   : > { %v4220_v36 = vpop.f32.mrb[214].mxu0 }
 0x4c5   : > { %v4826_v60 = vsel %vm1563_vm5, %v4823_v3, %v4825_v2  ;;  %v4500_v48 = vrot.slane %v4398_v57, 7  ;;  %v4827_v51 = vrot.slane %v4398_v57, 1  ;;  %v4317_v41 = vmul.f32 0.1, %v4218_v53  ;;  %4664 = vrot.lane.b32.xlu1 %v4398_v57, %s8853_s22  ;;  %v8547_v21 = vpop.f32.mrb[215].mxu0  ;;  %v11997_v57 = vld [vmem:[#allocation27_spill] sm:$0xff] }
 0x4c6   : > { %4929 = vst.msk [vmem:[#allocation2 + $0x178] sm:$0xff] %vm403_vm1, %v4826_v60  ;;  %v4221_v0 = vadd.f32 %v10663_v37, %v4220_v36  ;;  %v4499_v28 = vsel %vm1231_vm6, %v4496_v4, %v4498_v58  ;;  %v11998_v21 = vld [vmem:[#allocation28_spill] sm:$0xff] }
 0x4c7   : > { %v4828_v14 = vsel %vm1563_vm5, %v4825_v2, %v4827_v51  ;;  %v4358_v31 = vmax.f32 %v4218_v53, %v4317_v41  ;;  %4601 = vst.msk [vmem:[#allocation2 + $0x180] sm:$0xff] %vm403_vm1, %v4499_v28  ;;  %v4501_v39 = vsel %vm1231_vm6, %v4498_v58, %v4500_v48 }
 0x4c8   : > { %4930 = vst.msk [vmem:[#allocation2 + $0x188] sm:$0xff] %vm403_vm1, %v4828_v14  ;;  %v4318_v10 = vmul.f32 0.1, %v4221_v0  ;;  %4602 = vst.msk [vmem:[#allocation2 + $0x190] sm:$0xff] %vm403_vm1, %v4501_v39 }
 0x4c9   : > { %v4399_v30 = vmul.f32 %v4358_v31, %v11993_v22 }
 0x4ca   : > { %v4359_v25 = vmax.f32 %v4221_v0, %v4318_v10  ;;  %v4225_v59 = vpop.f32.mrb[216].mxu0 }
 0x4cb   : > { %v4502_v7 = vrot.slane %v4399_v30, 7  ;;  %v4829_v9 = vrot.slane %v4399_v30, 1  ;;  %v4226_v62 = vadd.f32 %v10663_v37, %v4225_v59  ;;  %4666 = vrot.lane.b32.xlu0 %v4399_v30, %s8853_s22  ;;  %v8550_v45 = vpop.f32.mrb[217].mxu0 }
 0x4cc   : > { %v4400_v33 = vmul.f32 %v4359_v25, %v11994_v32  ;;  %v4228_v13 = vpop.f32.mrb[218].mxu0  ;;  %v11999_v45 = vld [vmem:[#allocation29_spill] sm:$0xff] }
 0x4cd   : > { %v4830_v12 = vsel %vm1563_vm5, %v4827_v51, %v4829_v9  ;;  %v4319_v1 = vmul.f32 0.1, %v4226_v62  ;;  %v4229_v49 = vadd.f32 %v10663_v37, %v4228_v13  ;;  %v8551_v5 = vpop.f32.mrb[219].mxu0  ;;  %v4503_v18 = vsel %vm1231_vm6, %v4500_v48, %v4502_v7 }
 0x4ce   : > { %4931 = vst.msk [vmem:[#allocation2 + $0x198] sm:$0xff] %vm403_vm1, %v4830_v12  ;;  %v4504_v11 = vrot.slane %v4400_v33, 7  ;;  %v4831_v40 = vrot.slane %v4400_v33, 1  ;;  %4668 = vrot.lane.b32.xlu1 %v4400_v33, %s8853_s22  ;;  %4603 = vst.msk [vmem:[#allocation2 + $0x1a0] sm:$0xff] %vm403_vm1, %v4503_v18 }
 0x4cf   : > { %v4360_v38 = vmax.f32 %v4226_v62, %v4319_v1  ;;  %v4320_v46 = vmul.f32 0.1, %v4229_v49 }
 0x4d0   : > { %v4832_v50 = vsel %vm1563_vm5, %v4829_v9, %v4831_v40  ;;  %v4505_v19 = vsel %vm1231_vm6, %v4502_v7, %v4504_v11 }
 0x4d1   : > { %4932 = vst.msk [vmem:[#allocation2 + $0x1a8] sm:$0xff] %vm403_vm1, %v4832_v50  ;;  %v4401_v44 = vmul.f32 %v4360_v38, %v11995_v34  ;;  %v4361_v23 = vmax.f32 %v4229_v49, %v4320_v46  ;;  %4604 = vst.msk [vmem:[#allocation2 + $0x1b0] sm:$0xff] %vm403_vm1, %v4505_v19  ;;  %v12000_v49 = vld [vmem:[#allocation30_spill] sm:$0xff] }
 0x4d2   : > { %v4233_v42 = vpop.f32.mrb[220].mxu0 }
 0x4d3   : > { %v4506_v56 = vrot.slane %v4401_v44, 7  ;;  %v4833_v15 = vrot.slane %v4401_v44, 1  ;;  %v4402_v27 = vmul.f32 %v4361_v23, %v11996_v20  ;;  %v4234_v4 = vadd.f32 %v10663_v37, %v4233_v42  ;;  %4670 = vrot.lane.b32.xlu0 %v4401_v44, %s8853_s22  ;;  %v8554_v3 = vpop.f32.mrb[221].mxu0 }
 0x4d4   : > { %v4236_v35 = vpop.f32.mrb[222].mxu0 }
 0x4d5   : > { %v4834_v29 = vsel %vm1563_vm5, %v4831_v40, %v4833_v15  ;;  %v4508_v24 = vrot.slane %v4402_v27, 7  ;;  %v4835_v47 = vrot.slane %v4402_v27, 1  ;;  %v4321_v55 = vmul.f32 0.1, %v4234_v4  ;;  %4672 = vrot.lane.b32.xlu1 %v4402_v27, %s8853_s22  ;;  %v8555_v52 = vpop.f32.mrb[223].mxu0 }
 0x4d6   : > { %4933 = vst.msk [vmem:[#allocation2 + $0x1b8] sm:$0xff] %vm403_vm1, %v4834_v29  ;;  %v4237_v43 = vadd.f32 %v10663_v37, %v4236_v35  ;;  %v4507_v8 = vsel %vm1231_vm6, %v4504_v11, %v4506_v56  ;;  %v4951_v27 = vld [vmem:[#allocation2 + $0x10] sm:$0xc0] }
 0x4d7   : > { %v4836_v61 = vsel %vm1563_vm5, %v4833_v15, %v4835_v47  ;;  %v4362_v58 = vmax.f32 %v4234_v4, %v4321_v55  ;;  %4605 = vst.msk [vmem:[#allocation2 + $0x1c0] sm:$0xff] %vm403_vm1, %v4507_v8  ;;  %v4509_v2 = vsel %vm1231_vm6, %v4506_v56, %v4508_v24  ;;  %v12001_v35 = vld [vmem:[#allocation31_spill] sm:$0xff]  ;;  %v8798_v55 = vld [vmem:[#allocation2] sm:$0xff] }
 0x4d8   : > { %4934 = vst.msk [vmem:[#allocation2 + $0x1c8] sm:$0xff] %vm403_vm1, %v4836_v61  ;;  %v4322_v54 = vmul.f32 0.1, %v4237_v43  ;;  %4606 = vst.msk [vmem:[#allocation2 + $0x1d0] sm:$0xff] %vm403_vm1, %v4509_v2  ;;  %v5035_v52 = vpack.c.bf16 %v8798_v55, %v4951_v27  ;;  %v12002_v2 = vld [vmem:[#allocation32_spill] sm:$0xff] }
 0x4d9   : > { %v4403_v53 = vmul.f32 %v4362_v58, %v11997_v57 }
 0x4da   : > { %v4363_v16 = vmax.f32 %v4237_v43, %v4322_v54  ;;  %v4241_v36 = vpop.f32.mrb[224].mxu0 }
 0x4db   : > { %v4510_v60 = vrot.slane %v4403_v53, 7  ;;  %v4837_v48 = vrot.slane %v4403_v53, 1  ;;  %v4242_v51 = vadd.f32 %v10663_v37, %v4241_v36  ;;  %4674 = vrot.lane.b32.xlu0 %v4403_v53, %s8853_s22  ;;  %v8558_v41 = vpop.f32.mrb[225].mxu0 }
 0x4dc   : > { %v4404_v0 = vmul.f32 %v4363_v16, %v11998_v21  ;;  %v4244_v28 = vpop.f32.mrb[226].mxu0 }
 0x4dd   : > { %v4838_v14 = vsel %vm1563_vm5, %v4835_v47, %v4837_v48  ;;  %v4323_v31 = vmul.f32 0.1, %v4242_v51  ;;  %v4245_v39 = vadd.f32 %v10663_v37, %v4244_v28  ;;  %v8559_v10 = vpop.f32.mrb[227].mxu0  ;;  %v4511_v25 = vsel %vm1231_vm6, %v4508_v24, %v4510_v60 }
 0x4de   : > { %4935 = vst.msk [vmem:[#allocation2 + $0x1d8] sm:$0xff] %vm403_vm1, %v4838_v14  ;;  %v4512_v22 = vrot.slane %v4404_v0, 7  ;;  %v4839_v30 = vrot.slane %v4404_v0, 1  ;;  %4676 = vrot.lane.b32.xlu1 %v4404_v0, %s8853_s22  ;;  %4607 = vst.msk [vmem:[#allocation2 + $0x1e0] sm:$0xff] %vm403_vm1, %v4511_v25  ;;  %v10920_v0 = vld [vmem:[#allocation2 + $0x78] sm:$0xff]  ;;  %v5551_v14 = vrot.slane %v5035_v52, 3 }
 0x4df   : > { %v4364_v59 = vmax.f32 %v4242_v51, %v4323_v31  ;;  %v4324_v7 = vmul.f32 0.1, %v4245_v39 }
 0x4e0   : > { %v4840_v9 = vsel %vm1563_vm5, %v4837_v48, %v4839_v30  ;;  %v4513_v62 = vsel %vm1231_vm6, %v4510_v60, %v4512_v22 }
 0x4e1   : > { %4936 = vst.msk [vmem:[#allocation2 + $0x1e8] sm:$0xff] %vm403_vm1, %v4840_v9  ;;  %v4405_v32 = vmul.f32 %v4364_v59, %v11999_v45  ;;  %v4365_v33 = vmax.f32 %v4245_v39, %v4324_v7  ;;  %4608 = vst.msk [vmem:[#allocation2 + $0x1f0] sm:$0xff] %vm403_vm1, %v4513_v62  ;;  %v12003_v62 = vld [vmem:[#allocation33_spill] sm:$0xff] }
 0x4e2   : > { %v4249_v13 = vpop.f32.mrb[228].mxu0 }
 0x4e3   : > { %v4514_v12 = vrot.slane %v4405_v32, 7  ;;  %v4841_v1 = vrot.slane %v4405_v32, 1  ;;  %v4406_v5 = vmul.f32 %v4365_v33, %v12000_v49  ;;  %v4250_v11 = vadd.f32 %v10663_v37, %v4249_v13  ;;  %4678 = vrot.lane.b32.xlu0 %v4405_v32, %s8853_s22  ;;  %v8562_v40 = vpop.f32.mrb[229].mxu0  ;;  %v10935_v13 = vld [vmem:[#allocation2 + $0x88] sm:$0xff] }
 0x4e4   : > { %v4252_v18 = vpop.f32.mrb[230].mxu0  ;;  %v5110_v33 = vpack.c.bf16 %v10920_v0, %v10725_v63  ;;  %v12004_v40 = vld [vmem:[#allocation34_spill] sm:$0xff] }
 0x4e5   : > { %v4842_v38 = vsel %vm1563_vm5, %v4839_v30, %v4841_v1  ;;  %v4516_v46 = vrot.slane %v4406_v5, 7  ;;  %v4843_v50 = vrot.slane %v4406_v5, 1  ;;  %v4325_v19 = vmul.f32 0.1, %v4250_v11  ;;  %v4623_v34 = vpop.permute.xlu0 %4622  ;;  %4680 = vrot.lane.b32.xlu1 %v4406_v5, %s8853_s22  ;;  %v8563_v44 = vpop.f32.mrb[231].mxu0  ;;  %v8741_v30 = vld [vmem:[%s11877_s8 + $0xc0] sm:$0xff]  }
 0x4e6   : > { %4937 = vst.msk [vmem:[#allocation2 + $0x1f8] sm:$0xff] %vm403_vm1, %v4842_v38  ;;  %v4253_v23 = vadd.f32 %v10663_v37, %v4252_v18  ;;  %v4515_v42 = vsel %vm1231_vm6, %v4512_v22, %v4514_v12 }
 0x4e7   : > { %4745 = vst.msk [vmem:[#allocation2 + $0x40] sm:$0xff] %vm1520_vm8, %v4623_v34  ;;  %v4844_v56 = vsel %vm1563_vm5, %v4841_v1, %v4843_v50  ;;  %v4366_v15 = vmax.f32 %v4250_v11, %v4325_v19  ;;  %v4625_v20 = vpop.permute.xlu1 %4624  ;;  %v4517_v4 = vsel %vm1231_vm6, %v4514_v12, %v4516_v46  ;;  %v5042_v19 = vpack.c.bf16 %v10935_v13, %v10920_v0  ;;  %v12006_v0 = vld [vmem:[#allocation36_spill] sm:$0xff] }
 0x4e8   : > { %4609 = vst.msk [vmem:[#allocation2 + $0x200] sm:$0xff] %vm403_vm1, %v4515_v42  ;;  %4938 = vst.msk [vmem:[#allocation2 + $0x208] sm:$0xff] %vm403_vm1, %v4844_v56  ;;  %v4326_v3 = vmul.f32 0.1, %v4253_v23 }
 0x4e9   : > { %4746 = vst.msk [vmem:[#allocation2 + $0x50] sm:$0xff] %vm1520_vm8, %v4625_v20  ;;  %v4407_v29 = vmul.f32 %v4366_v15, %v12001_v35 }
 0x4ea   : > { %4610 = vst.msk [vmem:[#allocation2 + $0x210] sm:$0xff] %vm403_vm1, %v4517_v4  ;;  %v4367_v24 = vmax.f32 %v4253_v23, %v4326_v3  ;;  %v4257_v47 = vpop.f32.mrb[232].mxu0  ;;  %v10962_v3 = vld [vmem:[#allocation2 + $0x98] sm:$0xff] }
 0x4eb   : > { %v4518_v43 = vrot.slane %v4407_v29, 7  ;;  %v4845_v8 = vrot.slane %v4407_v29, 1  ;;  %v4258_v61 = vadd.f32 %v10663_v37, %v4257_v47  ;;  %4682 = vrot.lane.b32.xlu0 %v4407_v29, %s8853_s22  ;;  %v8566_v58 = vpop.f32.mrb[233].mxu0 }
 0x4ec   : > { %v10910_v54 = vmul.f32 %v4367_v24, %v12002_v2  ;;  %v4260_v57 = vpop.f32.mrb[234].mxu0  ;;  %v12005_v58 = vld [vmem:[#allocation35_spill] sm:$0xff] }
 0x4ed   : > { %v4846_v53 = vsel %vm1563_vm5, %v4843_v50, %v4845_v8  ;;  %v4327_v16 = vmul.f32 0.1, %v4258_v61  ;;  %v4261_v36 = vadd.f32 %v10663_v37, %v4260_v57  ;;  %v4627_v60 = vpop.permute.xlu0 %4626  ;;  %v8567_v48 = vpop.f32.mrb[235].mxu0  ;;  %v4519_v25 = vsel %vm1231_vm6, %v4516_v46, %v4518_v43  ;;  %v8742_v46 = vld [vmem:[%s11877_s8 + $0xc8] sm:$0xff]  }
 0x4ee   : > { %v4957_v51 = vld [vmem:[#allocation2 + $0x40] sm:$0xff]  ;;  %4939 = vst.msk [vmem:[#allocation2 + $0x218] sm:$0xff] %vm403_vm1, %v4846_v53  ;;  %v4520_v41 = vrot.slane %v10910_v54, 7  ;;  %v4847_v21 = vrot.slane %v10910_v54, 1  ;;  %4684 = vrot.lane.b32.xlu1 %v10910_v54, %s8853_s22  ;;  %4611 = vst.msk [vmem:[#allocation2 + $0x220] sm:$0xff] %vm403_vm1, %v4519_v25  ;;  %v5112_v54 = vpack.c.bf16 %v10962_v3, %v10935_v13  ;;  %v10986_v57 = vld [vmem:[#allocation2 + $0xa8] sm:$0xff] }
 0x4ef   : > { %4747 = vst.msk [vmem:[#allocation2 + $0x60] sm:$0xff] %vm1520_vm8, %v4627_v60  ;;  %v5037_v28 = vpack.c.bf16 %v4957_v51, %v8798_v55  ;;  %v4368_v31 = vmax.f32 %v4258_v61, %v4327_v16  ;;  %v4328_v39 = vmul.f32 0.1, %v4261_v36  ;;  %v4629_v10 = vpop.permute.xlu1 %4628  ;;  %v8743_v61 = vld [vmem:[%s11877_s8 + $0xd0] sm:$0xff]  }
 0x4f0   : > { %v4959_v22 = vld [vmem:[#allocation2 + $0x50] sm:$0xff]  ;;  %v4848_v59 = vsel %vm1563_vm5, %v4845_v8, %v4847_v21  ;;  %4748 = vst.msk [vmem:[#allocation2 + $0x70] sm:$0xff] %vm1520_vm8, %v4629_v10  ;;  %v4521_v12 = vsel %vm1231_vm6, %v4518_v43, %v4520_v41  ;;  %v10975_v8 = vrot.slane %v5042_v19, 3  ;;  %v11010_v10 = vld [vmem:[%s11877_s8 + $0xd8] sm:$0xff]  }
 0x4f1   : > { %v5107_v7 = vpack.c.bf16 %v4959_v22, %v4957_v51  ;;  %v10928_v9 = vrot.slane %v5037_v28, 3  ;;  %4940 = vst.msk [vmem:[#allocation2 + $0x228] sm:$0xff] %vm403_vm1, %v4848_v59  ;;  %v4409_v45 = vmul.f32 %v4368_v31, %v12003_v62  ;;  %v4369_v32 = vmax.f32 %v4261_v36, %v4328_v39  ;;  %4612 = vst.msk [vmem:[#allocation2 + $0x230] sm:$0xff] %vm403_vm1, %v4521_v12  ;;  %v10994_v51 = vld [vmem:[%s11876_s7] ss:$0 sm:$0xff] }
 0x4f2   : > { %v4265_v1 = vpop.f32.mrb[236].mxu0  ;;  %v5564_v31 = vsel %vm2331_vm7, %v10734_v17, %v10975_v8  ;;  %v5044_v39 = vpack.c.bf16 %v10986_v57, %v10962_v3 }
 0x4f3   : > { %5342 = vmatmul.mubr.bf16.vlgmr.msra.gmra.mrb[168].mxu1 %v5107_v7  ;;  %v5553_v49 = vsel %vm2331_vm7, %v5551_v14, %v10928_v9  ;;  %v4522_v5 = vrot.slane %v4409_v45, 7  ;;  %v4849_v11 = vrot.slane %v4409_v45, 1  ;;  %v10942_v18 = vmul.f32 %v4369_v32, %v12004_v40  ;;  %v8570_v63 = vpop.f32.mrb[237].mxu0  ;;  %4686 = vrot.lane.b32.xlu0 %v4409_v45, %s8853_s22  ;;  %v11022_v32 = vld [vmem:[#allocation2 + $0xb8] sm:$0xff] }
 0x4f4   : > { %v4266_v38 = vadd.f32 %v10663_v37, %v4265_v1  ;;  %8596 = vmatpush1.bf16.msra.mxu1 %v8741_v30  ;;  %7753 = vmatprep.mubr.msk.bf16.mxu1 %vm403_vm1, %v5110_v33  ;;  %v4268_v50 = vpop.f32.mrb[238].mxu0  ;;  %v11041_v63 = vld [vmem:[%s11877_s8 + $0xe0] sm:$0xff]   ;;  %v5114_v19 = vpack.c.bf16 %v11022_v32, %v10986_v57 }
 0x4f5   : > { %5822 = vmatmul.mubr.bf16.vlgmr.msra.gmra.mrb[252].mxu0 %v5553_v49  ;;  %v4850_v34 = vsel %vm1563_vm5, %v4847_v21, %v4849_v11  ;;  %v4524_v44 = vrot.slane %v10942_v18, 7  ;;  %v4851_v23 = vrot.slane %v10942_v18, 1  ;;  %v4631_v56 = vpop.permute.xlu0 %4630  ;;  %4688 = vrot.lane.b32.xlu1 %v10942_v18, %s8853_s22  ;;  %v8571_v15 = vpop.f32.mrb[239].mxu0  ;;  %v4269_v27 = vadd.f32 %v10663_v37, %v4268_v50  ;;  %v12007_v18 = vld [vmem:[#allocation37_spill] sm:$0xff] }
 0x4f6   : > { %v4329_v42 = vmul.f32 0.1, %v4266_v38  ;;  %7786 = vmatprep.mubr.msk.bf16.mxu0 %vm403_vm1, %v10742_v6  ;;  %v4961_v20 = vld [vmem:[#allocation2 + $0x60] sm:$0xff]  ;;  %4941 = vst.msk [vmem:[#allocation2 + $0x238] sm:$0xff] %vm403_vm1, %v4850_v34  ;;  %8585 = vmatprep.subr.bf16.mxu1 %v11951_v26  ;;  %v4523_v35 = vsel %vm1231_vm6, %v4520_v41, %v4522_v5  ;;  %v11049_v34 = vld [vmem:[#allocation2 + $0xc8] sm:$0xff] }
 0x4f7   : > { %4749 = vst.msk [vmem:[#allocation2 + $0x80] sm:$0xff] %vm1520_vm8, %v4631_v56  ;;  %v5039_v4 = vpack.c.bf16 %v4961_v20, %v4959_v22  ;;  %6419 = vmatpush1.bf16.msra.mxu0 %v8741_v30  ;;  %v4852_v6 = vsel %vm1563_vm5, %v4849_v11, %v4851_v23  ;;  %v4633_v24 = vpop.permute.xlu1 %4632  ;;  %v4963_v47 = vld [vmem:[#allocation2 + $0x70] sm:$0xff]  ;;  %v4525_v37 = vsel %vm1231_vm6, %v4522_v5, %v4524_v44  ;;  %v4330_v55 = vmul.f32 0.1, %v4269_v27 }
 0x4f8   : > { %v4370_v29 = vmax.f32 %v4266_v38, %v4329_v42  ;;  %8597 = vmatpush1.bf16.msra.mxu1 %v8742_v46  ;;  %4613 = vst.msk [vmem:[#allocation2 + $0x240] sm:$0xff] %vm403_vm1, %v4523_v35  ;;  %4942 = vst.msk [vmem:[#allocation2 + $0x248] sm:$0xff] %vm403_vm1, %v4852_v6  ;;  %v5109_v52 = vpack.c.bf16 %v4963_v47, %v4961_v20  ;;  %6420 = vmatprep.subr.bf16.mxu0 %v11951_v26  ;;  %v11035_v38 = vrot.slane %v5044_v39, 3  ;;  %v12008_v20 = vld [vmem:[#allocation38_spill] sm:$0xff] }
 0x4f9   : > { %4750 = vst.msk [vmem:[#allocation2 + $0x90] sm:$0xff] %vm1520_vm8, %v4633_v24  ;;  %v10973_v43 = vrot.slane %v5039_v4, 3  ;;  %8586 = vmatprep.subr.bf16.mxu1 %v11951_v26  ;;  %v4371_v53 = vmax.f32 %v4269_v27, %v4330_v55  ;;  %v11072_v24 = vld [vmem:[%s11877_s8 + $0xe8] sm:$0xff]  }
 0x4fa   : > { %4614 = vst.msk [vmem:[#allocation2 + $0x250] sm:$0xff] %vm403_vm1, %v4525_v37  ;;  %v4411_v2 = vmul.f32 %v4370_v29, %v12005_v58  ;;  %v4273_v16 = vpop.f32.mrb[240].mxu0  ;;  %v5568_v6 = vsel %vm2331_vm7, %v10975_v8, %v11035_v38  ;;  %v5046_v29 = vpack.c.bf16 %v11049_v34, %v11022_v32  ;;  %v12010_v32 = vld [vmem:[#allocation40_spill] sm:$0xff] }
 0x4fb   : > { %5350 = vmatmul.mubr.bf16.gmra.mrb[172].mxu1 %v5109_v52  ;;  %v5558_v36 = vsel %vm2331_vm7, %v10928_v9, %v10973_v43  ;;  %6421 = vmatpush1.bf16.msra.mxu0 %v8742_v46  ;;  %v4274_v41 = vadd.f32 %v10994_v51, %v4273_v16  ;;  %v8574_v21 = vpop.f32.mrb[241].mxu0  ;;  %v11000_v28 = vmul.f32 %v4371_v53, %v12006_v0 }
 0x4fc   : > { %v4526_v60 = vrot.slane %v4411_v2, 7  ;;  %v4853_v48 = vrot.slane %v4411_v2, 1  ;;  %7754 = vmatprep.mubr.msk.bf16.mxu1 %vm403_vm1, %v5112_v54  ;;  %4690 = vrot.lane.b32.xlu0 %v4411_v2, %s8853_s22  ;;  %v4276_v14 = vpop.f32.mrb[242].mxu0  ;;  %v11084_v54 = vld [vmem:[#allocation2 + $0xd8] sm:$0xff] }
 0x4fd   : > { %5830 = vmatmul.mubr.bf16.gmra.mrb[0].mxu0 %v5558_v36  ;;  %8598 = vmatpush1.bf16.msra.mxu1 %v8743_v61  ;;  %v4331_v30 = vmul.f32 0.1, %v4274_v41  ;;  %v4277_v25 = vadd.f32 %v10994_v51, %v4276_v14  ;;  %v4635_v59 = vpop.permute.xlu0 %4634  ;;  %v8575_v7 = vpop.f32.mrb[243].mxu0  ;;  %v4528_v17 = vrot.slane %v11000_v28, 7  ;;  %v4855_v62 = vrot.slane %v11000_v28, 1  ;;  %v11108_v14 = vld [vmem:[%s11877_s8 + $0xf0] sm:$0xff]  }
 0x4fe   : > { %v4854_v22 = vsel %vm1563_vm5, %v4851_v23, %v4853_v48  ;;  %7787 = vmatprep.mubr.msk.bf16.mxu0 %vm403_vm1, %v5564_v31  ;;  %v4965_v9 = vld [vmem:[#allocation2 + $0x80] sm:$0xff]  ;;  %8587 = vmatprep.subr.bf16.mxu1 %v11951_v26  ;;  %4751 = vst.msk [vmem:[#allocation2 + $0xa0] sm:$0xff] %vm1520_vm8, %v4635_v59  ;;  %v4527_v49 = vsel %vm1231_vm6, %v4524_v44, %v4526_v60  ;;  %v12009_v31 = vld [vmem:[#allocation39_spill] sm:$0xff] }
 0x4ff   : > { %4943 = vst.msk [vmem:[#allocation2 + $0x258] sm:$0xff] %vm403_vm1, %v4854_v22  ;;  %4692 = vrot.lane.b32.xlu1 %v11000_v28, %s8853_s22  ;;  %v5041_v45 = vpack.c.bf16 %v4965_v9, %v4963_v47  ;;  %6422 = vmatprep.subr.bf16.mxu0 %v11951_v26  ;;  %v4372_v33 = vmax.f32 %v4274_v41, %v4331_v30  ;;  %v4332_v13 = vmul.f32 0.1, %v4277_v25  ;;  %v4637_v12 = vpop.permute.xlu1 %4636  ;;  %4615 = vst.msk [vmem:[#allocation2 + $0x260] sm:$0xff] %vm403_vm1, %v4527_v49  ;;  %v11116_v22 = vld [vmem:[#allocation2 + $0xe8] sm:$0xff] }
 0x500   : > { %v11025_v1 = vld [vmem:[#allocation2 + $0x90] sm:$0xff]  ;;  %6423 = vmatpush1.bf16.msra.mxu0 %v8743_v61  ;;  %v4856_v5 = vsel %vm1563_vm5, %v4853_v48, %v4855_v62  ;;  %4752 = vst.msk [vmem:[#allocation2 + $0xb0] sm:$0xff] %vm1520_vm8, %v4637_v12  ;;  %v4529_v44 = vsel %vm1231_vm6, %v4526_v60, %v4528_v17  ;;  %v11102_v28 = vrot.slane %v5046_v29, 3  ;;  %v5048_v12 = vpack.c.bf16 %v11116_v22, %v11084_v54 }
 0x501   : > { %v5111_v11 = vpack.c.bf16 %v11025_v1, %v4965_v9  ;;  %v11033_v40 = vrot.slane %v5041_v45, 3  ;;  %8599 = vmatpush1.bf16.msra.mxu1 %v11010_v10  ;;  %6424 = vmatprep.subr.bf16.mxu0 %v11951_v26  ;;  %4944 = vst.msk [vmem:[#allocation2 + $0x268] sm:$0xff] %vm403_vm1, %v4856_v5  ;;  %v4413_v46 = vmul.f32 %v4372_v33, %v12007_v18  ;;  %4616 = vst.msk [vmem:[#allocation2 + $0x270] sm:$0xff] %vm403_vm1, %v4529_v44  ;;  %v8800_v45 = vld [vmem:[%s11870_s1] sm:$0xff]  ;;  %v8801_v44 = vld [vmem:[%s11870_s1 + $0x10] sm:$0xff] }
 0x502   : > { %v4373_v50 = vmax.f32 %v4277_v25, %v4332_v13  ;;  %8588 = vmatprep.subr.bf16.mxu1 %v11951_v26  ;;  %v4281_v23 = vpop.f32.mrb[244].mxu0  ;;  %vm6789_vm13 = vcmp.gt.f32.partialorder %v8800_v45, 0.0  ;;  %vm6791_vm14 = vcmp.gt.f32.partialorder %v8801_v44, 0.0  ;;  %v8807_v45 = vld [vmem:[%s11870_s1 + $0x40] sm:$0xff]  ;;  %v8810_v44 = vld [vmem:[%s11870_s1 + $0x48] sm:$0xff] }
 0x503   : > { %5358 = vmatmul.mubr.bf16.gmra.mrb[176].mxu1 %v5111_v11  ;;  %v5562_v42 = vsel %vm2331_vm7, %v10973_v43, %v11033_v40  ;;  %v4530_v56 = vrot.slane %v4413_v46, 7  ;;  %v4857_v15 = vrot.slane %v4413_v46, 1  ;;  %v4282_v4 = vadd.f32 %v10994_v51, %v4281_v23  ;;  %4694 = vrot.lane.b32.xlu0 %v4413_v46, %s8853_s22  ;;  %v8578_v3 = vpop.f32.mrb[245].mxu0 }
 0x504   : > { %v11058_v27 = vmul.f32 %v4373_v50, %v12008_v20  ;;  %7755 = vmatprep.mubr.msk.bf16.mxu1 %vm403_vm1, %v5114_v19  ;;  %v4284_v35 = vpop.f32.mrb[246].mxu0  ;;  %6425 = vmatpush1.bf16.msra.mxu0 %v11010_v10  ;;  %v5116_v10 = vpack.c.bf16 %v11084_v54, %v11049_v34  ;;  %v11159_v19 = vld [vmem:[#allocation2 + $0xf8] sm:$0xff]  ;;  %v6953_v34 = vsel %vm6789_vm13, 1, %v11951_v26  ;;  %v11179_v3 = vld [vmem:[%s11877_s8 + $0x100] sm:$0xff]  }
 0x505   : > { %5838 = vmatmul.mubr.bf16.gmra.mrb[4].mxu0 %v5562_v42  ;;  %8600 = vmatpush1.bf16.msra.mxu1 %v11041_v63  ;;  %v4858_v47 = vsel %vm1563_vm5, %v4855_v62, %v4857_v15  ;;  %v4333_v52 = vmul.f32 0.1, %v4282_v4  ;;  %v4639_v43 = vpop.permute.xlu0 %4638  ;;  %v8579_v8 = vpop.f32.mrb[247].mxu0  ;;  %v4969_v61 = vld [vmem:[#allocation2 + $0xa0] sm:$0xff]  ;;  %v4285_v58 = vadd.f32 %v10994_v51, %v4284_v35  ;;  %v4531_v57 = vsel %vm1231_vm6, %v4528_v17, %v4530_v56  ;;  %v8802_v35 = vld [vmem:[%s11870_s1 + $0x8] sm:$0xff] }
 0x506   : > { %v4532_v37 = vrot.slane %v11058_v27, 7  ;;  %v4859_v55 = vrot.slane %v11058_v27, 1  ;;  %7788 = vmatprep.mubr.msk.bf16.mxu0 %vm403_vm1, %v5568_v6  ;;  %4696 = vrot.lane.b32.xlu1 %v11058_v27, %s8853_s22  ;;  %4945 = vst.msk [vmem:[#allocation2 + $0x278] sm:$0xff] %vm403_vm1, %v4858_v47  ;;  %v5043_v2 = vpack.c.bf16 %v4969_v61, %v11025_v1  ;;  %4617 = vst.msk [vmem:[#allocation2 + $0x280] sm:$0xff] %vm403_vm1, %v4531_v57  ;;  %v11144_v1 = vld [vmem:[%s11877_s8 + $0xf8] sm:$0xff]   ;;  %vm6790_vm15 = vcmp.gt.f32.partialorder %v8802_v35, 0.0 }
 0x507   : > { %4753 = vst.msk [vmem:[#allocation2 + $0xc0] sm:$0xff] %vm1520_vm8, %v4639_v43  ;;  %8589 = vmatprep.subr.bf16.mxu1 %v11951_v26  ;;  %v4374_v16 = vmax.f32 %v4282_v4, %v4333_v52  ;;  %v4641_v36 = vpop.permute.xlu1 %4640  ;;  %v11090_v60 = vld [vmem:[#allocation2 + $0xb0] sm:$0xff]  ;;  %6426 = vmatprep.subr.bf16.mxu0 %v11951_v26  ;;  %v4334_v41 = vmul.f32 0.1, %v4285_v58  ;;  %v11173_v4 = vrot.slane %v5048_v12, 3  ;;  %v12011_v6 = vld [vmem:[#allocation41_spill] sm:$0xff] }
 0x508   : > { %v4860_v53 = vsel %vm1563_vm5, %v4857_v15, %v4859_v55  ;;  %v4533_v48 = vsel %vm1231_vm6, %v4530_v56, %v4532_v37  ;;  %4754 = vst.msk [vmem:[#allocation2 + $0xd0] sm:$0xff] %vm1520_vm8, %v4641_v36  ;;  %v5113_v21 = vpack.c.bf16 %v11090_v60, %v4969_v61  ;;  %v11100_v0 = vrot.slane %v5043_v2, 3  ;;  %6427 = vmatpush1.bf16.msra.mxu0 %v11041_v63  ;;  %v4982_v47 = vld [vmem:[#allocation2 + $0x108] sm:$0xff]  ;;  %v8803_v61 = vld [vmem:[%s11870_s1 + $0x20] sm:$0xff]  ;;  %v8808_v12 = vld [vmem:[%s11870_s1 + $0x38] sm:$0xff] }
 0x509   : > { %4946 = vst.msk [vmem:[#allocation2 + $0x288] sm:$0xff] %vm403_vm1, %v4860_v53  ;;  %8601 = vmatpush1.bf16.msra.mxu1 %v11072_v24  ;;  %4618 = vst.msk [vmem:[#allocation2 + $0x290] sm:$0xff] %vm403_vm1, %v4533_v48  ;;  %v11112_v39 = vmul.f32 %v4374_v16, %v12009_v31  ;;  %v4375_v30 = vmax.f32 %v4285_v58, %v4334_v41  ;;  %6428 = vmatprep.subr.bf16.mxu0 %v11951_v26  ;;  %v6955_v52 = vsel %vm6791_vm14, 1, %v11951_v26  ;;  %v11212_v57 = vld [vmem:[%s11877_s8 + $0x108] sm:$0xff]   ;;  %v8804_v53 = vld [vmem:[%s11870_s1 + $0x18] sm:$0xff] }
 0x50a   : > { %8590 = vmatprep.subr.bf16.mxu1 %v11951_v26  ;;  %v4289_v25 = vpop.f32.mrb[248].mxu0  ;;  %v5566_v59 = vsel %vm2331_vm7, %v11033_v40, %v11100_v0  ;;  %vm6793_vm0 = vcmp.gt.f32.partialorder %v8803_v61, 0.0  ;;  %v5576_v58 = vsel %vm2331_vm7, %v11102_v28, %v11173_v4  ;;  %v6954_v2 = vsel %vm6790_vm15, 1, %v11951_v26  ;;  %v8812_v35 = vld [vmem:[%s11870_s1 + $0x58] sm:$0xff] }
 0x50b   : > { %5366 = vmatmul.mubr.bf16.gmra.mrb[180].mxu1 %v5113_v21  ;;  %v4534_v7 = vrot.slane %v11112_v39, 7  ;;  %v4861_v9 = vrot.slane %v11112_v39, 1  ;;  %v4290_v17 = vadd.f32 %v10994_v51, %v4289_v25  ;;  %4698 = vrot.lane.b32.xlu0 %v11112_v39, %s8853_s22  ;;  %v8582_v62 = vpop.f32.mrb[249].mxu0  ;;  %v11133_v33 = vmul.f32 %v4375_v30, %v12010_v32  ;;  %v4984_v21 = vld [vmem:[#allocation2 + $0x118] sm:$0xff]  ;;  %v11239_v25 = vld [vmem:[%s11877_s8 + $0x110] sm:$0xff]  }
 0x50c   : > { %7756 = vmatprep.mubr.msk.bf16.mxu1 %vm403_vm1, %v5116_v10  ;;  %v4292_v13 = vpop.f32.mrb[250].mxu0  ;;  %v5572_v51 = vsel %vm2331_vm7, %v11035_v38, %v11102_v28  ;;  %6429 = vmatpush1.bf16.msra.mxu0 %v11072_v24  ;;  %v5118_v24 = vpack.c.bf16 %v11159_v19, %v11116_v22  ;;  %v5050_v54 = vpack.c.bf16 %v4982_v47, %v11159_v19  ;;  %vm6792_vm2 = vcmp.gt.f32.partialorder %v8804_v53, 0.0  ;;  %v4994_v53 = vld [vmem:[#allocation2 + $0x168] sm:$0xff] }
 0x50d   : > { %5846 = vmatmul.mubr.bf16.gmra.mrb[8].mxu0 %v5566_v59  ;;  %8602 = vmatpush1.bf16.msra.mxu1 %v11108_v14  ;;  %v4862_v49 = vsel %vm1563_vm5, %v4859_v55, %v4861_v9  ;;  %v4335_v5 = vmul.f32 0.1, %v4290_v17  ;;  %v4643_v11 = vpop.permute.xlu0 %4642  ;;  %v8583_v40 = vpop.f32.mrb[251].mxu0  ;;  %v4535_v38 = vsel %vm1231_vm6, %v4532_v37, %v4534_v7  ;;  %v4536_v18 = vrot.slane %v11133_v33, 7  ;;  %v8806_v59 = vld [vmem:[%s11870_s1 + $0x28] sm:$0xff] }
 0x50e   : > { %7789 = vmatprep.mubr.msk.bf16.mxu0 %vm403_vm1, %v5572_v51  ;;  %v4973_v63 = vld [vmem:[#allocation2 + $0xc0] sm:$0xff]  ;;  %8591 = vmatprep.subr.bf16.mxu1 %v11951_v26  ;;  %4947 = vst.msk [vmem:[#allocation2 + $0x298] sm:$0xff] %vm403_vm1, %v4862_v49  ;;  %v4863_v46 = vrot.slane %v11133_v33, 1  ;;  %4619 = vst.msk [vmem:[#allocation2 + $0x2a0] sm:$0xff] %vm403_vm1, %v4535_v38  ;;  %v6957_v31 = vsel %vm6793_vm0, 1, %v11951_v26  ;;  %v5579_v30 = vrot.slane %v5050_v54, 3 }
 0x50f   : > { %4755 = vst.msk [vmem:[#allocation2 + $0xe0] sm:$0xff] %vm1520_vm8, %v4643_v11  ;;  %4700 = vrot.lane.b32.xlu1 %v11133_v33, %s8853_s22  ;;  %v5045_v50 = vpack.c.bf16 %v4973_v63, %v11090_v60  ;;  %v4376_v23 = vmax.f32 %v4290_v17, %v4335_v5  ;;  %v4645_v42 = vpop.permute.xlu1 %4644  ;;  %v4975_v56 = vld [vmem:[#allocation2 + $0xd0] sm:$0xff]  ;;  %6430 = vmatprep.subr.bf16.mxu0 %v11951_v26  ;;  %vm6794_vm4 = vcmp.gt.f32.partialorder %v8806_v59, 0.0  ;;  %v11260_v51 = vld [vmem:[%s11877_s8 + $0x118] sm:$0xff]   ;;  %vm6796_vm9 = vcmp.gt.f32.partialorder %v8808_v12, 0.0  ;;  %v8814_v54 = vld [vmem:[%s11870_s1 + $0x68] sm:$0xff] }
 0x510   : > { %v4864_v15 = vsel %vm1563_vm5, %v4861_v9, %v4863_v46  ;;  %4756 = vst.msk [vmem:[#allocation2 + $0xf0] sm:$0xff] %vm1520_vm8, %v4645_v42  ;;  %v5115_v20 = vpack.c.bf16 %v4975_v56, %v4973_v63  ;;  %v4537_v37 = vsel %vm1231_vm6, %v4534_v7, %v4536_v18  ;;  %6431 = vmatpush1.bf16.msra.mxu0 %v11108_v14  ;;  %v6956_v14 = vsel %vm6792_vm2, 1, %v11951_v26  ;;  %v4986_v9 = vld [vmem:[#allocation2 + $0x128] sm:$0xff]  ;;  %v4988_v40 = vld [vmem:[#allocation2 + $0x138] sm:$0xff]  ;;  %v8809_v63 = vld [vmem:[%s11870_s1 + $0x50] sm:$0xff] }
 0x511   : > { %v11171_v27 = vrot.slane %v5045_v50, 3  ;;  %8603 = vmatpush1.bf16.msra.mxu1 %v11144_v1  ;;  %4948 = vst.msk [vmem:[#allocation2 + $0x2a8] sm:$0xff] %vm403_vm1, %v4864_v15  ;;  %v4417_v29 = vmul.f32 %v4376_v23, %v12011_v6  ;;  %4620 = vst.msk [vmem:[#allocation2 + $0x2b0] sm:$0xff] %vm403_vm1, %v4537_v37  ;;  %6432 = vmatprep.subr.bf16.mxu0 %v11951_v26  ;;  %v5120_v7 = vpack.c.bf16 %v4984_v21, %v4982_v47  ;;  %v4990_v42 = vld [vmem:[#allocation2 + $0x148] sm:$0xff]  ;;  %v4992_v47 = vld [vmem:[#allocation2 + $0x158] sm:$0xff] }
 0x512   : > { %8592 = vmatprep.subr.bf16.mxu1 %v11951_v26  ;;  %v5580_v32 = vsel %vm2331_vm7, %v11173_v4, %v5579_v30  ;;  %v6958_v33 = vsel %vm6794_vm4, 1, %v11951_v26  ;;  %v5052_v13 = vpack.c.bf16 %v4986_v9, %v4984_v21  ;;  %v6960_v19 = vsel %vm6796_vm9, 1, %v11951_v26  ;;  %v8813_v37 = vld [vmem:[%s11870_s1 + $0x70] sm:$0xff] }
 0x513   : > { %6995 = vperm.xlu1 %8622, %v6953_v34   ;;  %5374 = vmatmul.mubr.bf16.gmra.mrb[184].mxu1 %v5115_v20  ;;  %v5570_v55 = vsel %vm2331_vm7, %v11100_v0, %v11171_v27  ;;  %v4538_v43 = vrot.slane %v4417_v29, 7  ;;  %v4865_v8 = vrot.slane %v4417_v29, 1  ;;  %v8805_v0 = vld [vmem:[%s11870_s1 + $0x30] sm:$0xff]  ;;  %v5122_v23 = vpack.c.bf16 %v4988_v40, %v4986_v9  ;;  %v8811_v20 = vld [vmem:[%s11870_s1 + $0x60] sm:$0xff] }
 0x514   : > { %7757 = vmatprep.mubr.msk.bf16.mxu1 %vm403_vm1, %v5118_v24  ;;  %4702 = vrot.lane.b32.xlu0 %v4417_v29, %s8853_s22  ;;  %vm6795_vm3 = vcmp.gt.f32.partialorder %v8805_v0, 0.0  ;;  %v5583_v34 = vrot.slane %v5052_v13, 3  ;;  %vm6801_vm13 = vcmp.gt.f32.partialorder %v8811_v20, 0.0  ;;  %vm6800_vm14 = vcmp.gt.f32.partialorder %v8812_v35, 0.0  ;;  %v8816_v0 = vld [vmem:[%s11870_s1 + $0x78] sm:$0xff] }
 0x515   : > { %5854 = vmatmul.mubr.bf16.gmra.mrb[12].mxu0 %v5570_v55  ;;  %8604 = vmatpush1.bf16.msra.mxu1 %v11179_v3  ;;  %v4539_v16 = vsel %vm1231_vm6, %v4536_v18, %v4538_v43  ;;  %v4866_v36 = vsel %vm1563_vm5, %v4863_v46, %v4865_v8  ;;  %4950 = vst.msk [vmem:[#allocation2 + $0x2c8] sm:$0x7] %vm1729_vm10, %v4865_v8  ;;  %v4647_v60 = vpop.permute.xlu0 %4646  ;;  %v6959_v62 = vsel %vm6795_vm3, 1, %v11951_v26  ;;  %vm6797_vm6 = vcmp.gt.f32.partialorder %v8807_v45, 0.0 }
 0x516   : > { %7790 = vmatprep.mubr.msk.bf16.mxu0 %vm403_vm1, %v5576_v58  ;;  %v4977_v48 = vld [vmem:[#allocation2 + $0xe0] sm:$0xff]  ;;  %8593 = vmatprep.subr.bf16.mxu1 %v11951_v26  ;;  %4949 = vst.msk [vmem:[#allocation2 + $0x2b8] sm:$0xff] %vm403_vm1, %v4866_v36  ;;  %vm6799_vm10 = vcmp.gt.f32.partialorder %v8809_v63, 0.0  ;;  %v6961_v18 = vsel %vm6797_vm6, 1, %v11951_v26  ;;  %vm6803_vm15 = vcmp.gt.f32.partialorder %v8813_v37, 0.0  ;;  %v6964_v58 = vsel %vm6800_vm14, 1, %v11951_v26 }
 0x517   : > { %4621 = vst.msk [vmem:[#allocation2 + $0x2c0] sm:$0x1f] %vm1395_vm11, %v4539_v16  ;;  %7001 = vperm.xlu1 %8622, %v6955_v52   ;;  %v5047_v41 = vpack.c.bf16 %v4977_v48, %v4975_v56  ;;  %v4649_v28 = vpop.permute.xlu1 %4648  ;;  %v4979_v39 = vld [vmem:[#allocation2 + $0xf0] sm:$0xff]  ;;  %6433 = vmatpush1.bf16.msra.mxu0 %v11144_v1  ;;  %vm6798_vm11 = vcmp.gt.f32.partialorder %v8810_v44, 0.0  ;;  %v6963_v15 = vsel %vm6799_vm10, 1, %v11951_v26  ;;  %v6965_v52 = vsel %vm6801_vm13, 1, %v11951_v26 }
 0x518   : > { %4757 = vst.msk [vmem:[#allocation2 + $0x100] sm:$0xff] %vm1520_vm8, %v4647_v60  ;;  %6998 = vperm.xlu0 %8621, %v6954_v2   ;;  %4758 = vst.msk [vmem:[#allocation2 + $0x110] sm:$0xff] %vm1520_vm8, %v4649_v28  ;;  %v5117_v10 = vpack.c.bf16 %v4979_v39, %v4977_v48  ;;  %6434 = vmatprep.subr.bf16.mxu0 %v11951_v26  ;;  %v6962_v4 = vsel %vm6798_vm11, 1, %v11951_v26  ;;  %vm6802_vm0 = vcmp.gt.f32.partialorder %v8814_v54, 0.0  ;;  %v6967_v36 = vsel %vm6803_vm15, 1, %v11951_v26  ;;  %v8815_v60 = vld [vmem:[%s11870_s1 + $0x80] sm:$0xff] }
 0x519   : > { %v5573_v22 = vrot.slane %v5047_v41, 3  ;;  %8605 = vmatpush1.bf16.msra.mxu1 %v11212_v57  ;;  %vm6805_vm2 = vcmp.gt.f32.partialorder %v8815_v60, 0.0  ;;  %v6966_v41 = vsel %vm6802_vm0, 1, %v11951_v26  ;;  %v5056_v21 = vpack.c.bf16 %v4994_v53, %v4992_v47 }
 0x51a   : > { %8594 = vmatprep.subr.bf16.mxu1 %v11951_v26  ;;  %vm6804_vm3 = vcmp.gt.f32.partialorder %v8816_v0, 0.0 }
 0x51b   : > { %7007 = vperm.xlu1 %8622, %v6957_v31   ;;  %5382 = vmatmul.mubr.bf16.gmra.mrb[188].mxu1 %v5117_v10  ;;  %v5574_v17 = vsel %vm2331_vm7, %v11171_v27, %v5573_v22  ;;  %v5584_v27 = vsel %vm2331_vm7, %v5579_v30, %v5583_v34  ;;  %v4996_v10 = vld [vmem:[#allocation2 + $0x178] sm:$0xff]  ;;  %v6968_v9 = vsel %vm6804_vm3, 1, %v11951_v26 }
 0x51c   : > { %7758 = vmatprep.mubr.msk.bf16.mxu1 %vm403_vm1, %v5120_v7  ;;  %7004 = vperm.xlu0 %8621, %v6956_v14   ;;  %v6969_v14 = vsel %vm6805_vm2, 1, %v11951_v26  ;;  %v5126_v45 = vpack.c.bf16 %v4996_v10, %v4994_v53 }
 0x51d   : > { %5862 = vmatmul.mubr.bf16.gmra.mrb[16].mxu0 %v5574_v17  ;;  %8606 = vmatpush1.bf16.msra.mxu1 %v11239_v25  ;;  %v4651_v49 = vpop.permute.xlu0 %4650  ;;  %v5591_v17 = vrot.slane %v5056_v21, 3  ;;  %v8827_v21 = vld [vmem:[%s11870_s1 + $0xe0] sm:$0xff] }
 0x51e   : > { %7791 = vmatprep.mubr.msk.bf16.mxu0 %vm403_vm1, %v5580_v32  ;;  %4759 = vst.msk [vmem:[#allocation2 + $0x120] sm:$0xff] %vm1520_vm8, %v4651_v49  ;;  %8595 = vmatprep.subr.bf16.mxu1 %v11951_v26  ;;  %v4998_v32 = vld [vmem:[#allocation2 + $0x188] sm:$0xff]  ;;  %vm6817_vm3 = vcmp.gt.f32.partialorder %v8827_v21, 0.0 }
 0x51f   : > { %v4981_v5 = vld [vmem:[#allocation2 + $0x100] sm:$0xff]  ;;  %7013 = vperm.xlu1 %8622, %v6959_v62   ;;  %v4653_v38 = vpop.permute.xlu1 %4652  ;;  %v4983_v46 = vld [vmem:[#allocation2 + $0x110] sm:$0xff]  ;;  %6435 = vmatpush1.bf16.msra.mxu0 %v11179_v3  ;;  %v5054_v3 = vpack.c.bf16 %v4990_v42, %v4988_v40  ;;  %v8818_v62 = vld [vmem:[%s11870_s1 + $0x88] sm:$0xff] }
 0x520   : > { %v5049_v11 = vpack.c.bf16 %v4981_v5, %v4979_v39  ;;  %7010 = vperm.xlu0 %8621, %v6958_v33   ;;  %4760 = vst.msk [vmem:[#allocation2 + $0x130] sm:$0xff] %vm1520_vm8, %v4653_v38  ;;  %v5119_v1 = vpack.c.bf16 %v4983_v46, %v4981_v5  ;;  %6436 = vmatprep.subr.bf16.mxu0 %v11951_v26  ;;  %vm6806_vm6 = vcmp.gt.f32.partialorder %v8818_v62, 0.0 }
 0x521   : > { %8607 = vmatpush1.bf16.msra.mxu1 %v11260_v51  ;;  %v5587_v2 = vrot.slane %v5054_v3, 3  ;;  %v6970_v49 = vsel %vm6806_vm6, 1, %v11951_v26  ;;  %v5058_v5 = vpack.c.bf16 %v4998_v32, %v4996_v10  ;;  %v8823_v3 = vld [vmem:[%s11870_s1 + $0xc0] sm:$0xff] }
 0x522   : > { %v5577_v50 = vrot.slane %v5049_v11, 3  ;;  %v8820_v11 = vld [vmem:[%s11870_s1 + $0x98] sm:$0xff]  ;;  %vm6813_vm14 = vcmp.gt.f32.partialorder %v8823_v3, 0.0 }
 0x523   : > { %7019 = vperm.xlu1 %8622, %v6961_v18   ;;  %5390 = vmatmul.mubr.bf16.gmra.mrb[192].mxu1 %v5119_v1  ;;  %v5588_v48 = vsel %vm2331_vm7, %v5583_v34, %v5587_v2  ;;  %v5592_v12 = vsel %vm2331_vm7, %v5587_v2, %v5591_v17  ;;  %vm6808_vm10 = vcmp.gt.f32.partialorder %v8820_v11, 0.0  ;;  %v5000_v1 = vld [vmem:[#allocation2 + $0x198] sm:$0xff] }
 0x524   : > { %v5578_v56 = vsel %vm2331_vm7, %v5573_v22, %v5577_v50  ;;  %7759 = vmatprep.mubr.msk.bf16.mxu1 %vm403_vm1, %v5122_v23  ;;  %7016 = vperm.xlu0 %8621, %v6960_v19   ;;  %v8817_v22 = vld [vmem:[%s11870_s1 + $0x90] sm:$0xff]  ;;  %v6972_v44 = vsel %vm6808_vm10, 1, %v11951_v26  ;;  %v5595_v23 = vrot.slane %v5058_v5, 3 }
 0x525   : > { %5870 = vmatmul.mubr.bf16.gmra.mrb[20].mxu0 %v5578_v56  ;;  %v4655_v6 = vpop.permute.xlu0 %4654  ;;  %v4985_v29 = vld [vmem:[#allocation2 + $0x120] sm:$0xff]  ;;  %vm6807_vm4 = vcmp.gt.f32.partialorder %v8817_v22, 0.0 }
 0x526   : > { %7792 = vmatprep.mubr.msk.bf16.mxu0 %vm403_vm1, %v5584_v27  ;;  %6437 = vmatpush1.bf16.msra.mxu0 %v11212_v57  ;;  %4761 = vst.msk [vmem:[#allocation2 + $0x140] sm:$0xff] %vm1520_vm8, %v4655_v6  ;;  %v5051_v24 = vpack.c.bf16 %v4985_v29, %v4983_v46  ;;  %v5124_v57 = vpack.c.bf16 %v4992_v47, %v4990_v42  ;;  %v6971_v13 = vsel %vm6807_vm4, 1, %v11951_v26  ;;  %v8822_v42 = vld [vmem:[%s11870_s1 + $0xa8] sm:$0xff] }
 0x527   : > { %7025 = vperm.xlu1 %8622, %v6963_v15   ;;  %6438 = vmatprep.subr.bf16.mxu0 %v11951_v26  ;;  %v4657_v55 = vpop.permute.xlu1 %4656  ;;  %v4987_v43 = vld [vmem:[#allocation2 + $0x130] sm:$0xff]  ;;  %vm6810_vm13 = vcmp.gt.f32.partialorder %v8822_v42, 0.0  ;;  %v5002_v15 = vld [vmem:[#allocation2 + $0x1a8] sm:$0xff]  ;;  %v5128_v27 = vpack.c.bf16 %v5000_v1, %v4998_v32  ;;  %v5596_v35 = vsel %vm2331_vm7, %v5591_v17, %v5595_v23 }
 0x528   : > { %7022 = vperm.xlu0 %8621, %v6962_v4   ;;  %4762 = vst.msk [vmem:[#allocation2 + $0x150] sm:$0xff] %vm1520_vm8, %v4657_v55  ;;  %v5121_v8 = vpack.c.bf16 %v4987_v43, %v4985_v29  ;;  %v5581_v61 = vrot.slane %v5051_v24, 3  ;;  %v6974_v6 = vsel %vm6810_vm13, 1, %v11951_v26  ;;  %v5060_v29 = vpack.c.bf16 %v5002_v15, %v5000_v1  ;;  %v8824_v24 = vld [vmem:[%s11870_s1 + $0xb8] sm:$0xff]  ;;  %v8830_v32 = vld [vmem:[%s11870_s1 + $0xe8] sm:$0xff] }
 0x529   : > { %vm6812_vm15 = vcmp.gt.f32.partialorder %v8824_v24, 0.0 }
 0x52a   : > { %6439 = vmatpush1.bf16.msra.mxu0 %v11239_v25  ;;  %v5582_v16 = vsel %vm2331_vm7, %v5577_v50, %v5581_v61  ;;  %v8821_v50 = vld [vmem:[%s11870_s1 + $0xb0] sm:$0xff]  ;;  %v5599_v53 = vrot.slane %v5060_v29, 3 }
 0x52b   : > { %7031 = vperm.xlu1 %8622, %v6965_v52   ;;  %5398 = vmatmul.mubr.bf16.gmra.mrb[196].mxu1 %v5121_v8  ;;  %vm6811_vm11 = vcmp.gt.f32.partialorder %v8821_v50, 0.0  ;;  %v8825_v52 = vld [vmem:[%s11870_s1 + $0xd0] sm:$0xff] }
 0x52c   : > { %7760 = vmatprep.mubr.msk.bf16.mxu1 %vm403_vm1, %v5124_v57  ;;  %7028 = vperm.xlu0 %8621, %v6964_v58   ;;  %v6975_v4 = vsel %vm6811_vm11, 1, %v11951_v26  ;;  %vm6815_vm0 = vcmp.gt.f32.partialorder %v8825_v52, 0.0  ;;  %v6976_v57 = vsel %vm6812_vm15, 1, %v11951_v26  ;;  %v5600_v0 = vsel %vm2331_vm7, %v5595_v23, %v5599_v53 }
 0x52d   : > { %5878 = vmatmul.mubr.bf16.gmra.mrb[24].mxu0 %v5582_v16  ;;  %6440 = vmatprep.subr.bf16.mxu0 %v11951_v26  ;;  %v4659_v28 = vpop.permute.xlu0 %4658  ;;  %v4989_v31 = vld [vmem:[#allocation2 + $0x140] sm:$0xff]  ;;  %v8826_v16 = vld [vmem:[%s11870_s1 + $0xc8] sm:$0xff] }
 0x52e   : > { %7793 = vmatprep.mubr.msk.bf16.mxu0 %vm403_vm1, %v5588_v48  ;;  %6441 = vmatpush1.bf16.msra.mxu0 %v11260_v51  ;;  %4763 = vst.msk [vmem:[#allocation2 + $0x160] sm:$0xff] %vm1520_vm8, %v4659_v28  ;;  %v5053_v39 = vpack.c.bf16 %v4989_v31, %v4987_v43  ;;  %v8819_v51 = vld [vmem:[%s11870_s1 + $0xa0] sm:$0xff]  ;;  %v6977_v43 = vsel %vm6813_vm14, 1, %v11951_v26  ;;  %vm6814_vm2 = vcmp.gt.f32.partialorder %v8826_v16, 0.0 }
 0x52f   : > { %7037 = vperm.xlu1 %8622, %v6967_v36   ;;  %v4991_v30 = vld [vmem:[#allocation2 + $0x150] sm:$0xff]  ;;  %vm6809_vm9 = vcmp.gt.f32.partialorder %v8819_v51, 0.0  ;;  %v5006_v36 = vld [vmem:[#allocation2 + $0x1c8] sm:$0xff]  ;;  %v6978_v28 = vsel %vm6814_vm2, 1, %v11951_v26 }
 0x530   : > { %7034 = vperm.xlu0 %8621, %v6966_v41   ;;  %v4661_v25 = vpop.permute.xlu1 %4660  ;;  %v5123_v59 = vpack.c.bf16 %v4991_v30, %v4989_v31  ;;  %v5585_v7 = vrot.slane %v5053_v39, 3  ;;  %v6973_v46 = vsel %vm6809_vm9, 1, %v11951_v26  ;;  %v6979_v41 = vsel %vm6815_vm0, 1, %v11951_v26  ;;  %v8828_v39 = vld [vmem:[%s11870_s1 + $0xd8] sm:$0xff] }
 0x531   : > { %4764 = vst.msk [vmem:[#allocation2 + $0x170] sm:$0xff] %vm1520_vm8, %v4661_v25  ;;  %vm6816_vm4 = vcmp.gt.f32.partialorder %v8828_v39, 0.0  ;;  %v6981_v25 = vsel %vm6817_vm3, 1, %v11951_v26  ;;  %vm6818_vm9 = vcmp.gt.f32.partialorder %v8830_v32, 0.0  ;;  %v8838_v39 = vld [vmem:[%s11870_s1 + $0x128] sm:$0xff] }
 0x532   : > { %v5586_v33 = vsel %vm2331_vm7, %v5581_v61, %v5585_v7  ;;  %v5004_v61 = vld [vmem:[#allocation2 + $0x1b8] sm:$0xff]  ;;  %v6980_v62 = vsel %vm6816_vm4, 1, %v11951_v26  ;;  %vm6826_vm3 = vcmp.gt.f32.partialorder %v8838_v39, 0.0 }
 0x533   : > { %7043 = vperm.xlu1 %8622, %v6969_v14   ;;  %5406 = vmatmul.mubr.bf16.gmra.mrb[200].mxu1 %v5123_v59  ;;  %v11390_v48 = vpack.c.bf16 %v5004_v61, %v5002_v15  ;;  %v5062_v31 = vpack.c.bf16 %v5006_v36, %v5004_v61  ;;  %v5008_v59 = vld [vmem:[#allocation2 + $0x1d8] sm:$0xff] }
 0x534   : > { %7761 = vmatprep.mubr.msk.bf16.mxu1 %vm403_vm1, %v5126_v45  ;;  %7040 = vperm.xlu0 %8621, %v6968_v9  }
 0x535   : > { %5886 = vmatmul.mubr.bf16.gmra.mrb[28].mxu0 %v5586_v33  ;;  %v4663_v40 = vpop.permute.xlu0 %4662  ;;  %v4993_v63 = vld [vmem:[#allocation2 + $0x160] sm:$0xff]  ;;  %v5603_v45 = vrot.slane %v5062_v31, 3 }
 0x536   : > { %7794 = vmatprep.mubr.msk.bf16.mxu0 %vm403_vm1, %v5592_v12  ;;  %4765 = vst.msk [vmem:[#allocation2 + $0x180] sm:$0xff] %vm1520_vm8, %v4663_v40  ;;  %v5055_v38 = vpack.c.bf16 %v4993_v63, %v4991_v30  ;;  %v11419_v12 = vpack.c.bf16 %v5008_v59, %v5006_v36  ;;  %v8831_v40 = vld [vmem:[%s11870_s1 + $0x100] sm:$0xff] }
 0x537   : > { %7049 = vperm.xlu1 %8622, %v6971_v13   ;;  %v4665_v18 = vpop.permute.xlu1 %4664  ;;  %v5010_v13 = vld [vmem:[#allocation2 + $0x1e8] sm:$0xff]  ;;  %vm6821_vm10 = vcmp.gt.f32.partialorder %v8831_v40, 0.0  ;;  %v5020_v40 = vld [vmem:[#allocation2 + $0x238] sm:$0xff] }
 0x538   : > { %7046 = vperm.xlu0 %8621, %v6970_v49   ;;  %4766 = vst.msk [vmem:[#allocation2 + $0x190] sm:$0xff] %vm1520_vm8, %v4665_v18  ;;  %v4995_v19 = vld [vmem:[#allocation2 + $0x170] sm:$0xff]  ;;  %v5589_v34 = vrot.slane %v5055_v38, 3  ;;  %v6982_v38 = vsel %vm6818_vm9, 1, %v11951_v26  ;;  %v5064_v18 = vpack.c.bf16 %v5010_v13, %v5008_v59  ;;  %v6985_v23 = vsel %vm6821_vm10, 1, %v11951_v26 }
 0x539   : > { %v5125_v56 = vpack.c.bf16 %v4995_v19, %v4993_v63  ;;  %v5604_v63 = vsel %vm2331_vm7, %v5599_v53, %v5603_v45 }
 0x53a   : > { %v5590_v20 = vsel %vm2331_vm7, %v5585_v7, %v5589_v34  ;;  %v8829_v7 = vld [vmem:[%s11870_s1 + $0xf0] sm:$0xff]  ;;  %v5607_v3 = vrot.slane %v5064_v18, 3 }
 0x53b   : > { %7055 = vperm.xlu1 %8622, %v6973_v46   ;;  %5414 = vmatmul.mubr.bf16.gmra.mrb[204].mxu1 %v5125_v56  ;;  %vm6819_vm6 = vcmp.gt.f32.partialorder %v8829_v7, 0.0  ;;  %v8832_v46 = vld [vmem:[%s11870_s1 + $0xf8] sm:$0xff]  ;;  %v8839_v7 = vld [vmem:[%s11870_s1 + $0x140] sm:$0xf] }
 0x53c   : > { %7052 = vperm.xlu0 %8621, %v6972_v44   ;;  %7762 = vmatprep.mubr.msk.bf16.mxu1 %vm403_vm1, %v5128_v27  ;;  %v6983_v49 = vsel %vm6819_vm6, 1, %v11951_v26  ;;  %vm6820_vm11 = vcmp.gt.f32.partialorder %v8832_v46, 0.0  ;;  %v8833_v44 = vld [vmem:[%s11870_s1 + $0x110] sm:$0xff]  ;;  %v5012_v56 = vld [vmem:[#allocation2 + $0x1f8] sm:$0xff]  ;;  %v5608_v52 = vsel %vm2331_vm7, %v5603_v45, %v5607_v3  ;;  %vm6829_vm4 = vcmp.gt.f32.partialorder %v8839_v7, 0.0 }
 0x53d   : > { %5894 = vmatmul.mubr.bf16.gmra.mrb[32].mxu0 %v5590_v20  ;;  %v4667_v47 = vpop.permute.xlu0 %4666  ;;  %v4997_v37 = vld [vmem:[#allocation2 + $0x180] sm:$0xff]  ;;  %vm6823_vm13 = vcmp.gt.f32.partialorder %v8833_v44, 0.0  ;;  %v11455_v24 = vpack.c.bf16 %v5012_v56, %v5010_v13  ;;  %v8840_v45 = vld [vmem:[%s11870_s1 + $0x138] sm:$0xff] }
 0x53e   : > { %7795 = vmatprep.mubr.msk.bf16.mxu0 %vm403_vm1, %v5596_v35  ;;  %4767 = vst.msk [vmem:[#allocation2 + $0x1a0] sm:$0xff] %vm1520_vm8, %v4667_v47  ;;  %v5057_v55 = vpack.c.bf16 %v4997_v37, %v4995_v19  ;;  %v8834_v35 = vld [vmem:[%s11870_s1 + $0x108] sm:$0xff]  ;;  %vm6828_vm6 = vcmp.gt.f32.partialorder %v8840_v45, 0.0  ;;  %v5032_v45 = vld [vmem:[#allocation2 + $0x298] sm:$0xff] }
 0x53f   : > { %7061 = vperm.xlu1 %8622, %v6975_v4   ;;  %v4999_v8 = vld [vmem:[#allocation2 + $0x190] sm:$0xff]  ;;  %v6984_v4 = vsel %vm6820_vm11, 1, %v11951_v26  ;;  %vm6822_vm14 = vcmp.gt.f32.partialorder %v8834_v35, 0.0  ;;  %v6992_v46 = vsel %vm6828_vm6, 1, %v11951_v26 }
 0x540   : > { %7058 = vperm.xlu0 %8621, %v6974_v6   ;;  %v4669_v58 = vpop.permute.xlu1 %4668  ;;  %v11381_v2 = vpack.c.bf16 %v4999_v8, %v4997_v37  ;;  %v5593_v54 = vrot.slane %v5057_v55, 3  ;;  %v5014_v6 = vld [vmem:[#allocation2 + $0x208] sm:$0xff]  ;;  %v8835_v37 = vld [vmem:[%s11870_s1 + $0x120] sm:$0xff]  ;;  %v6987_v55 = vsel %vm6823_vm13, 1, %v11951_v26 }
 0x541   : > { %4768 = vst.msk [vmem:[#allocation2 + $0x1b0] sm:$0xff] %vm1520_vm8, %v4669_v58  ;;  %vm6825_vm15 = vcmp.gt.f32.partialorder %v8835_v37, 0.0  ;;  %v8836_v58 = vld [vmem:[%s11870_s1 + $0x118] sm:$0xff]  ;;  %v5026_v37 = vld [vmem:[#allocation2 + $0x268] sm:$0xff] }
 0x542   : > { %v5594_v60 = vsel %vm2331_vm7, %v5589_v34, %v5593_v54  ;;  %v6214_v5 = vrot.slane %v11381_v2, 1  ;;  %vm6824_vm0 = vcmp.gt.f32.partialorder %v8836_v58, 0.0  ;;  %v6989_v36 = vsel %vm6825_vm15, 1, %v11951_v26 }
 0x543   : > { %7067 = vperm.xlu1 %8622, %v6977_v43   ;;  %5422 = vmatmul.mubr.bf16.gmra.mrb[208].mxu1 %v11381_v2  ;;  %v6986_v43 = vsel %vm6822_vm14, 1, %v11951_v26 }
 0x544   : > { %7064 = vperm.xlu0 %8621, %v6976_v57   ;;  %7763 = vmatprep.mubr.msk.bf16.mxu1 %vm403_vm1, %v11390_v48 }
 0x545   : > { %5902 = vmatmul.mubr.bf16.gmra.mrb[36].mxu0 %v5594_v60  ;;  %v4671_v10 = vpop.permute.xlu0 %4670  ;;  %v5001_v22 = vld [vmem:[#allocation2 + $0x1a0] sm:$0xff]  ;;  %v5016_v60 = vld [vmem:[#allocation2 + $0x218] sm:$0xff] }
 0x546   : > { %7796 = vmatprep.mubr.msk.bf16.mxu0 %vm403_vm1, %v5600_v0  ;;  %4769 = vst.msk [vmem:[#allocation2 + $0x1c0] sm:$0xff] %vm1520_vm8, %v4671_v10  ;;  %v5059_v14 = vpack.c.bf16 %v5001_v22, %v4999_v8  ;;  %v5066_v8 = vpack.c.bf16 %v5014_v6, %v5012_v56 }
 0x547   : > { %7073 = vperm.xlu1 %8622, %v6979_v41   ;;  %v4673_v30 = vpop.permute.xlu1 %4672  ;;  %v8837_v41 = vld [vmem:[%s11870_s1 + $0x130] sm:$0xff] }
 0x548   : > { %7070 = vperm.xlu0 %8621, %v6978_v28   ;;  %4770 = vst.msk [vmem:[#allocation2 + $0x1d0] sm:$0xff] %vm1520_vm8, %v4673_v30  ;;  %v5003_v9 = vld [vmem:[#allocation2 + $0x1b0] sm:$0xff]  ;;  %v5597_v17 = vrot.slane %v5059_v14, 3  ;;  %vm6827_vm2 = vcmp.gt.f32.partialorder %v8837_v41, 0.0  ;;  %v6988_v28 = vsel %vm6824_vm0, 1, %v11951_v26  ;;  %v5611_v31 = vrot.slane %v5066_v8, 3 }
 0x549   : > { %v5129_v33 = vpack.c.bf16 %v5003_v9, %v5001_v22  ;;  %v5018_v22 = vld [vmem:[#allocation2 + $0x228] sm:$0xff]  ;;  %v11488_v30 = vpack.c.bf16 %v5016_v60, %v5014_v6 }
 0x54a   : > { %v5598_v51 = vsel %vm2331_vm7, %v5593_v54, %v5597_v17  ;;  %v11511_v44 = vpack.c.bf16 %v5020_v40, %v5018_v22 }
 0x54b   : > { %7079 = vperm.xlu1 %8622, %v6981_v25   ;;  %5430 = vmatmul.mubr.bf16.gmra.mrb[212].mxu1 %v5129_v33  ;;  %v6218_v11 = vrot.slane %v5129_v33, 1  ;;  %v6991_v25 = vsel %vm6827_vm2, 1, %v11951_v26 }
 0x54c   : > { %7076 = vperm.xlu0 %8621, %v6980_v62   ;;  %7764 = vmatprep.mubr.msk.bf16.mxu1 %vm403_vm1, %v11419_v12  ;;  %v5068_v62 = vpack.c.bf16 %v5018_v22, %v5016_v60  ;;  %v5028_v60 = vld [vmem:[#allocation2 + $0x278] sm:$0xff] }
 0x54d   : > { %5910 = vmatmul.mubr.bf16.gmra.mrb[40].mxu0 %v5598_v51  ;;  %v4675_v1 = vpop.permute.xlu0 %4674  ;;  %v5005_v50 = vld [vmem:[#allocation2 + $0x1c0] sm:$0xff]  ;;  %v11438_v19 = vsel %vm1563_vm5, %v6214_v5, %v6218_v11  ;;  %v11534_v39 = vpack.c.bf16 %v5028_v60, %v5026_v37 }
 0x54e   : > { %7797 = vmatprep.mubr.msk.bf16.mxu0 %vm403_vm1, %v5604_v63  ;;  %4771 = vst.msk [vmem:[#allocation2 + $0x1e0] sm:$0xff] %vm1520_vm8, %v4675_v1  ;;  %v5061_v34 = vpack.c.bf16 %v5005_v50, %v5003_v9  ;;  %v5612_v9 = vsel %vm2331_vm7, %v5607_v3, %v5611_v31  ;;  %v5615_v1 = vrot.slane %v5068_v62, 3  ;;  %v5024_v3 = vld [vmem:[#allocation2 + $0x258] sm:$0xff] }
 0x54f   : > { %7085 = vperm.xlu1 %8622, %v6983_v49   ;;  %v5007_v42 = vld [vmem:[#allocation2 + $0x1d0] sm:$0xff]  ;;  %v6993_v49 = vsel %vm6829_vm4, 1, %v11951_v26  ;;  %v5072_v58 = vpack.c.bf16 %v5026_v37, %v5024_v3 }
 0x550   : > { %7082 = vperm.xlu0 %8621, %v6982_v38   ;;  %v4677_v15 = vpop.permute.xlu1 %4676  ;;  %v11446_v20 = vpack.c.bf16 %v5007_v42, %v5005_v50  ;;  %v5601_v27 = vrot.slane %v5061_v34, 3  ;;  %v5022_v50 = vld [vmem:[#allocation2 + $0x248] sm:$0xff] }
 0x551   : > { %4772 = vst.msk [vmem:[#allocation2 + $0x1f0] sm:$0xff] %vm1520_vm8, %v4677_v15  ;;  %v5070_v56 = vpack.c.bf16 %v5022_v50, %v5020_v40 }
 0x552   : > { %v5602_v29 = vsel %vm2331_vm7, %v5597_v17, %v5601_v27  ;;  %v6222_v47 = vrot.slane %v11446_v20, 1  ;;  %v6990_v17 = vsel %vm6826_vm3, 1, %v11951_v26 }
 0x553   : > { %7091 = vperm.xlu1 %8622, %v6985_v23   ;;  %5438 = vmatmul.mubr.bf16.gmra.mrb[216].mxu1 %v11446_v20 }
 0x554   : > { %7088 = vperm.xlu0 %8621, %v6984_v4   ;;  %7765 = vmatprep.mubr.msk.bf16.mxu1 %vm403_vm1, %v11455_v24  ;;  %v11469_v61 = vsel %vm1563_vm5, %v6218_v11, %v6222_v47 }
 0x555   : > { %5918 = vmatmul.mubr.bf16.gmra.mrb[44].mxu0 %v5602_v29  ;;  %v4679_v54 = vpop.permute.xlu0 %4678  ;;  %v5009_v57 = vld [vmem:[#allocation2 + $0x1e0] sm:$0xff]  ;;  %v5619_v29 = vrot.slane %v5070_v56, 3  ;;  %v5104_v56 = vld [vmem:[#allocation2 + $0x2b8] sm:$0xff] }
 0x556   : > { %7798 = vmatprep.mubr.msk.bf16.mxu0 %vm403_vm1, %v5608_v52  ;;  %4773 = vst.msk [vmem:[#allocation2 + $0x200] sm:$0xff] %vm1520_vm8, %v4679_v54  ;;  %v5063_v53 = vpack.c.bf16 %v5009_v57, %v5007_v42  ;;  %v5616_v42 = vsel %vm2331_vm7, %v5611_v31, %v5615_v1  ;;  %v11523_v52 = vpack.c.bf16 %v5024_v3, %v5022_v50  ;;  %v5030_v31 = vld [vmem:[#allocation2 + $0x288] sm:$0xff] }
 0x557   : > { %7097 = vperm.xlu1 %8622, %v6987_v55   ;;  %v4681_v16 = vpop.permute.xlu1 %4680  ;;  %v5620_v8 = vsel %vm2331_vm7, %v5615_v1, %v5619_v29  ;;  %v5102_v3 = vld [vmem:[#allocation2 + $0x2a8] sm:$0xff] }
 0x558   : > { %7094 = vperm.xlu0 %8621, %v6986_v43   ;;  %4774 = vst.msk [vmem:[#allocation2 + $0x210] sm:$0xff] %vm1520_vm8, %v4681_v16  ;;  %v5011_v21 = vld [vmem:[#allocation2 + $0x1f0] sm:$0xff]  ;;  %v5605_v0 = vrot.slane %v5063_v53, 3 }
 0x559   : > { %v5133_v10 = vpack.c.bf16 %v5011_v21, %v5009_v57 }
 0x55a   : > { %v5606_v14 = vsel %vm2331_vm7, %v5601_v27, %v5605_v0 }
 0x55b   : > { %7103 = vperm.xlu1 %8622, %v6989_v36   ;;  %5446 = vmatmul.mubr.bf16.gmra.mrb[220].mxu1 %v5133_v10  ;;  %v6226_v59 = vrot.slane %v5133_v10, 1 }
 0x55c   : > { %7100 = vperm.xlu0 %8621, %v6988_v28   ;;  %7766 = vmatprep.mubr.msk.bf16.mxu1 %vm403_vm1, %v11488_v30 }
 0x55d   : > { %5926 = vmatmul.mubr.bf16.gmra.mrb[48].mxu0 %v5606_v14  ;;  %v4683_v32 = vpop.permute.xlu0 %4682  ;;  %v5013_v33 = vld [vmem:[#allocation2 + $0x200] sm:$0xff]  ;;  %v11503_v13 = vsel %vm1563_vm5, %v6222_v47, %v6226_v59 }
 0x55e   : > { %7799 = vmatprep.mubr.msk.bf16.mxu0 %vm403_vm1, %v5612_v9  ;;  %4775 = vst.msk [vmem:[#allocation2 + $0x220] sm:$0xff] %vm1520_vm8, %v4683_v32  ;;  %v5065_v51 = vpack.c.bf16 %v5013_v33, %v5011_v21 }
 0x55f   : > { %7109 = vperm.xlu1 %8622, %v6991_v25   ;;  %v5015_v11 = vld [vmem:[#allocation2 + $0x210] sm:$0xff]  ;;  %v5074_v25 = vpack.c.bf16 %v5030_v31, %v5028_v60 }
 0x560   : > { %7106 = vperm.xlu0 %8621, %v6990_v17   ;;  %v4685_v63 = vpop.permute.xlu1 %4684  ;;  %v5135_v38 = vpack.c.bf16 %v5015_v11, %v5013_v33  ;;  %v5609_v18 = vrot.slane %v5065_v51, 3 }
 0x561   : > { %4776 = vst.msk [vmem:[#allocation2 + $0x230] sm:$0xff] %vm1520_vm8, %v4685_v63  ;;  %v5627_v51 = vrot.slane %v5074_v25, 3  ;;  %v11547_v63 = vpack.c.bf16 %v5032_v45, %v5030_v31  ;;  %v5994_v31 = vld [vmem:[#allocation2 + $0x88] sm:$0xff] }
 0x562   : > { %v5610_v34 = vsel %vm2331_vm7, %v5605_v0, %v5609_v18  ;;  %v6230_v23 = vrot.slane %v5135_v38, 1  ;;  %v5623_v0 = vrot.slane %v5072_v58, 3  ;;  %v5106_v58 = vld [vmem:[#allocation2 + $0x2c8] sm:$0xf] }
 0x563   : > { %7115 = vperm.xlu1 %8622, %v6993_v49   ;;  %5454 = vmatmul.mubr.bf16.gmra.mrb[224].mxu1 %v5135_v38 }
 0x564   : > { %7112 = vperm.xlu0 %8621, %v6992_v46   ;;  %7767 = vmatprep.mubr.msk.bf16.mxu1 %vm403_vm1, %v11511_v44  ;;  %v11517_v26 = vsel %vm1563_vm5, %v6226_v59, %v6230_v23  ;;  %v5624_v14 = vsel %vm2331_vm7, %v5619_v29, %v5623_v0 }
 0x565   : > { %5934 = vmatmul.mubr.bf16.gmra.mrb[52].mxu0 %v5610_v34  ;;  %v5017_v15 = vld [vmem:[#allocation2 + $0x220] sm:$0xff]  ;;  %v4687_v20 = vpop.permute.xlu0 %4686 }
 0x566   : > { %7800 = vmatprep.mubr.msk.bf16.mxu0 %vm403_vm1, %v5616_v42  ;;  %v5067_v27 = vpack.c.bf16 %v5017_v15, %v5015_v11  ;;  %4777 = vst.msk [vmem:[#allocation2 + $0x240] sm:$0xff] %vm1520_vm8, %v4687_v20  ;;  %v5034_v11 = vld [vmem:[#allocation2 + $0x2a8] sm:$0x3] }
 0x567   : > { %v4689_v4 = vpop.permute.xlu1 %4688  ;;  %v5076_v46 = vpack.c.bf16 %v5034_v11, %v5032_v45 }
 0x568   : > { %4778 = vst.msk [vmem:[#allocation2 + $0x250] sm:$0xff] %vm1520_vm8, %v4689_v4  ;;  %v5019_v35 = vld [vmem:[#allocation2 + $0x230] sm:$0xff]  ;;  %v5613_v6 = vrot.slane %v5067_v27, 3 }
 0x569   : > { %v5137_v47 = vpack.c.bf16 %v5019_v35, %v5017_v15  ;;  %v5631_v4 = vrot.slane %v5076_v46, 3  ;;  %v5993_v46 = vld [vmem:[#allocation2 + $0x80] sm:$0xff] }
 0x56a   : > { %v5614_v55 = vsel %vm2331_vm7, %v5609_v18, %v5613_v6  ;;  %v5628_v18 = vsel %vm2331_vm7, %v5623_v0, %v5627_v51  ;;  %v5148_v0 = vpack.c.bf16 %v5106_v58, %v5106_v58 }
 0x56b   : > { %5462 = vmatmul.mubr.bf16.gmra.mrb[228].mxu1 %v5137_v47  ;;  %v6234_v43 = vrot.slane %v5137_v47, 1  ;;  %v5632_v47 = vsel %vm2331_vm7, %v5627_v51, %v5631_v4  ;;  %v5995_v51 = vld [vmem:[#allocation2 + $0x90] sm:$0xff] }
 0x56c   : > { %7768 = vmatprep.mubr.msk.bf16.mxu1 %vm403_vm1, %v11523_v52 }
 0x56d   : > { %5942 = vmatmul.mubr.bf16.gmra.mrb[56].mxu0 %v5614_v55  ;;  %v11530_v57 = vsel %vm1563_vm5, %v6230_v23, %v6234_v43  ;;  %v5021_v53 = vld [vmem:[#allocation2 + $0x240] sm:$0xff] }
 0x56e   : > { %7801 = vmatprep.mubr.msk.bf16.mxu0 %vm403_vm1, %v5620_v8  ;;  %v4691_v54 = vpop.permute.xlu0 %4690  ;;  %v5069_v36 = vpack.c.bf16 %v5021_v53, %v5019_v35 }
 0x56f   : > { %4779 = vst.msk [vmem:[#allocation2 + $0x260] sm:$0xff] %vm1520_vm8, %v4691_v54  ;;  %v5023_v16 = vld [vmem:[#allocation2 + $0x250] sm:$0xff] }
 0x570   : > { %v5139_v21 = vpack.c.bf16 %v5023_v16, %v5021_v53  ;;  %v5617_v28 = vrot.slane %v5069_v36, 3  ;;  %v6000_v36 = vld [vmem:[#allocation2 + $0xb8] sm:$0xff] }
 0x571   : > { %v4693_v41 = vpop.permute.xlu1 %4692 }
 0x572   : > { %4780 = vst.msk [vmem:[#allocation2 + $0x270] sm:$0xff] %vm1520_vm8, %v4693_v41  ;;  %v6238_v10 = vrot.slane %v5139_v21, 1  ;;  %v5618_v22 = vsel %vm2331_vm7, %v5613_v6, %v5617_v28  ;;  %v11559_v6 = vpack.c.bf16 %v5104_v56, %v5102_v3  ;;  %v5996_v41 = vld [vmem:[#allocation2 + $0x98] sm:$0xff] }
 0x573   : > { %5470 = vmatmul.mubr.bf16.gmra.mrb[232].mxu1 %v5139_v21  ;;  %v6074_v25 = vpack.c.bf16 %v5996_v41, %v5994_v31  ;;  %v6005_v31 = vld [vmem:[#allocation2 + $0xe0] sm:$0xff] }
 0x574   : > { %7769 = vmatprep.mubr.msk.bf16.mxu1 %vm403_vm1, %v11534_v39  ;;  %v11541_v59 = vsel %vm1563_vm5, %v6234_v43, %v6238_v10 }
 0x575   : > { %5950 = vmatmul.mubr.bf16.gmra.mrb[60].mxu0 %v5618_v22  ;;  %v4695_v7 = vpop.permute.xlu0 %4694  ;;  %v5992_v22 = vld [vmem:[#allocation2 + $0x78] sm:$0xff] }
 0x576   : > { %7802 = vmatprep.mubr.msk.bf16.mxu0 %vm403_vm1, %v5624_v14  ;;  %v5025_v9 = vld [vmem:[#allocation2 + $0x260] sm:$0xff]  ;;  %4781 = vst.msk [vmem:[#allocation2 + $0x280] sm:$0xff] %vm1520_vm8, %v4695_v7  ;;  %v5990_v7 = vld [vmem:[#allocation2 + $0x68] sm:$0xfc] }
 0x577   : > { %v5071_v17 = vpack.c.bf16 %v5025_v9, %v5023_v16 }
 0x578   : > { %v4697_v62 = vpop.permute.xlu1 %4696 }
 0x579   : > { %4782 = vst.msk [vmem:[#allocation2 + $0x290] sm:$0xff] %vm1520_vm8, %v4697_v62  ;;  %v5027_v32 = vld [vmem:[#allocation2 + $0x270] sm:$0xff]  ;;  %v5621_v33 = vrot.slane %v5071_v17, 3  ;;  %v6072_v62 = vpack.c.bf16 %v5992_v22, %v5990_v7 }
 0x57a   : > { %v5141_v49 = vpack.c.bf16 %v5027_v32, %v5025_v9 }
 0x57b   : > { %v5622_v40 = vsel %vm2331_vm7, %v5617_v28, %v5621_v33  ;;  %v5998_v28 = vld [vmem:[#allocation2 + $0xa8] sm:$0xff] }
 0x57c   : > { %5478 = vmatmul.mubr.bf16.gmra.mrb[236].mxu1 %v5141_v49  ;;  %v6242_v38 = vrot.slane %v5141_v49, 1  ;;  %v6004_v49 = vld [vmem:[#allocation2 + $0xd8] sm:$0xff] }
 0x57d   : > { %7770 = vmatprep.mubr.msk.bf16.mxu1 %vm403_vm1, %v11547_v63  ;;  %5958 = vmatmul.mubr.bf16.gmra.mrb[64].mxu0 %v5622_v40  ;;  %v4699_v1 = vpop.permute.xlu0 %4698  ;;  %v5029_v50 = vld [vmem:[#allocation2 + $0x280] sm:$0xff] }
 0x57e   : > { %7803 = vmatprep.mubr.msk.bf16.mxu0 %vm403_vm1, %v5628_v18  ;;  %v11554_v34 = vsel %vm1563_vm5, %v6238_v10, %v6242_v38  ;;  %4783 = vst.msk [vmem:[#allocation2 + $0x2a0] sm:$0xff] %vm1520_vm8, %v4699_v1  ;;  %v5073_v23 = vpack.c.bf16 %v5029_v50, %v5027_v32  ;;  %v6076_v10 = vpack.c.bf16 %v6000_v36, %v5998_v28  ;;  %v5999_v32 = vld [vmem:[#allocation2 + $0xb0] sm:$0xff]  ;;  %v5997_v40 = vld [vmem:[#allocation2 + $0xa0] sm:$0xff]  ;;  %v6012_v28 = vld [vmem:[#allocation2 + $0x118] sm:$0xff] }
 0x57f   : > { %v5991_v18 = vld [vmem:[#allocation2 + $0x70] sm:$0xff]  ;;  %v6075_v1 = vpack.c.bf16 %v5999_v32, %v5997_v40  ;;  %v6014_v40 = vld [vmem:[#allocation2 + $0x128] sm:$0xff] }
 0x580   : > { %v5031_v42 = vld [vmem:[#allocation2 + $0x290] sm:$0xff]  ;;  %v5625_v27 = vrot.slane %v5073_v23, 3  ;;  %v6188_v45 = vrot.slane %v6076_v10, 1 }
 0x581   : > { %v4701_v15 = vpop.permute.xlu1 %4700  ;;  %v5143_v20 = vpack.c.bf16 %v5031_v42, %v5029_v50  ;;  %v6002_v50 = vld [vmem:[#allocation2 + $0xc8] sm:$0xff]  ;;  %v6011_v32 = vld [vmem:[#allocation2 + $0x110] sm:$0xff] }
 0x582   : > { %4784 = vst.msk [vmem:[#allocation2 + $0x2b0] sm:$0xff] %vm1520_vm8, %v4701_v15  ;;  %v5626_v35 = vsel %vm2331_vm7, %v5621_v33, %v5625_v27  ;;  %v6184_v33 = vrot.slane %v6074_v25, 1  ;;  %v6078_v56 = vpack.c.bf16 %v6004_v49, %v6002_v50  ;;  %v6010_v25 = vld [vmem:[#allocation2 + $0x108] sm:$0xff]  ;;  %v6015_v50 = vld [vmem:[#allocation2 + $0x130] sm:$0xff] }
 0x583   : > { %v6246_v29 = vrot.slane %v5143_v20, 1 }
 0x584   : > { %5486 = vmatmul.mubr.bf16.gmra.mrb[240].mxu1 %v5143_v20  ;;  %v6189_v23 = vsel %vm1563_vm5, %v6184_v33, %v6188_v45  ;;  %v5989_v20 = vld [vmem:[#allocation2 + $0x60] sm:$0xfc] }
 0x585   : > { %7771 = vmatprep.mubr.msk.bf16.mxu1 %vm403_vm1, %v11559_v6  ;;  %5966 = vmatmul.mubr.bf16.gmra.mrb[68].mxu0 %v5626_v35  ;;  %v11565_v37 = vsel %vm1563_vm5, %v6242_v38, %v6246_v29  ;;  %v5033_v55 = vld [vmem:[#allocation2 + $0x2a0] sm:$0x3]  ;;  %v6183_v38 = vrot.slane %v6072_v62, 1  ;;  %v6192_v35 = vrot.slane %v6078_v56, 1 }
 0x586   : > { %7804 = vmatprep.mubr.msk.bf16.mxu0 %vm403_vm1, %v5632_v47  ;;  %v4703_v43 = vpop.permute.xlu0 %4702  ;;  %v5075_v8 = vpack.c.bf16 %v5033_v55, %v5031_v42  ;;  %v5101_v53 = vld [vmem:[#allocation2 + $0x2a0] sm:$0xff]  ;;  %v6073_v42 = vpack.c.bf16 %v5995_v51, %v5993_v46  ;;  %v6008_v47 = vld [vmem:[#allocation2 + $0xf8] sm:$0xff] }
 0x587   : > { %4785 = vst.msk [vmem:[#allocation2 + $0x2c0] sm:$0xf] %vm1561_vm12, %v4703_v43  ;;  %v6185_v15 = vsel %vm1563_vm5, %v6183_v38, %v6184_v33  ;;  %v6001_v43 = vld [vmem:[#allocation2 + $0xc0] sm:$0xff]  ;;  %v6016_v33 = vld [vmem:[#allocation2 + $0x138] sm:$0xff] }
 0x588   : > { %v5629_v54 = vrot.slane %v5075_v8, 3  ;;  %v6181_v3 = vrot.slane %v6073_v42, 1  ;;  %v6009_v51 = vld [vmem:[#allocation2 + $0x100] sm:$0xff] }
 0x589   : > { %v5103_v16 = vld [vmem:[#allocation2 + $0x2b0] sm:$0xff]  ;;  %v6013_v42 = vld [vmem:[#allocation2 + $0x120] sm:$0xff] }
 0x58a   : > { %v11569_v60 = vpack.c.bf16 %v5103_v16, %v5101_v53  ;;  %v5630_v21 = vsel %vm2331_vm7, %v5625_v27, %v5629_v54  ;;  %v6071_v27 = vpack.c.bf16 %v5991_v18, %v5989_v20  ;;  %v6006_v53 = vld [vmem:[#allocation2 + $0xe8] sm:$0xff]  ;;  %v6193_v16 = vsel %vm1563_vm5, %v6188_v45, %v6192_v35 }
 0x58b   : > { %v6080_v36 = vpack.c.bf16 %v6008_v47, %v6006_v53  ;;  %v6084_v18 = vpack.c.bf16 %v6016_v33, %v6014_v40  ;;  %v6018_v20 = vld [vmem:[#allocation2 + $0x148] sm:$0xff]  ;;  %v6024_v47 = vld [vmem:[#allocation2 + $0x178] sm:$0xff] }
 0x58c   : > { %5494 = vmatmul.mubr.bf16.gmra.mrb[244].mxu1 %v11569_v60  ;;  %v6250_v14 = vrot.slane %v11569_v60, 1  ;;  %v6180_v55 = vrot.slane %v6071_v27, 1 }
 0x58d   : > { %7772 = vmatprep.mubr.msk.bf16.mxu1 %vm403_vm1, %v5148_v0  ;;  %5974 = vmatmul.mubr.bf16.gmra.mrb[72].mxu0 %v5630_v21  ;;  %v6196_v21 = vrot.slane %v6080_v36, 1  ;;  %v6007_v0 = vld [vmem:[#allocation2 + $0xf0] sm:$0xff] }
 0x58e   : > { %7805 = vmatprep.mubr.msk.bf16.mxu0 %vm403_vm1, %v5631_v4  ;;  %v11579_v9 = vsel %vm1563_vm5, %v6246_v29, %v6250_v14  ;;  %v5105_v17 = vld [vmem:[#allocation2 + $0x2c0] sm:$0xf]  ;;  %v6186_v4 = vrot.slane %v6075_v1, 1  ;;  %v6003_v29 = vld [vmem:[#allocation2 + $0xd0] sm:$0xff]  ;;  %v6079_v22 = vpack.c.bf16 %v6007_v0, %v6005_v31  ;;  %v6204_v1 = vrot.slane %v6084_v18, 1 }
 0x58f   : > { %v5147_v11 = vpack.c.bf16 %v5105_v17, %v5105_v17  ;;  %v6077_v58 = vpack.c.bf16 %v6003_v29, %v6001_v43  ;;  %v6197_v7 = vsel %vm1563_vm5, %v6192_v35, %v6196_v21  ;;  %v6082_v17 = vpack.c.bf16 %v6012_v28, %v6010_v25  ;;  %v6019_v29 = vld [vmem:[#allocation2 + $0x150] sm:$0xff]  ;;  %v6021_v0 = vld [vmem:[#allocation2 + $0x160] sm:$0xff] }
 0x590   : > { %v6187_v8 = vsel %vm1563_vm5, %v6181_v3, %v6186_v4  ;;  %v6194_v62 = vrot.slane %v6079_v22, 1 }
 0x591   : > { %v6190_v41 = vrot.slane %v6077_v58, 1  ;;  %v6200_v45 = vrot.slane %v6082_v17, 1  ;;  %v6022_v58 = vld [vmem:[#allocation2 + $0x168] sm:$0xff] }
 0x593   : > { %v6191_v10 = vsel %vm1563_vm5, %v6186_v4, %v6190_v41  ;;  %v6195_v49 = vsel %vm1563_vm5, %v6190_v41, %v6194_v62  ;;  %v6201_v38 = vsel %vm1563_vm5, %v6196_v21, %v6200_v45  ;;  %v6205_v27 = vsel %vm1563_vm5, %v6200_v45, %v6204_v1  ;;  %v6023_v41 = vld [vmem:[#allocation2 + $0x170] sm:$0xff]  ;;  %v6028_v21 = vld [vmem:[#allocation2 + $0x198] sm:$0xff] }
 0x594   : > { %5502 = vmatmul.mubr.bf16.gmra.mrb[248].mxu1 %v5147_v11  ;;  %v6081_v11 = vpack.c.bf16 %v6011_v32, %v6009_v51  ;;  %v6087_v31 = vpack.c.bf16 %v6023_v41, %v6021_v0 }
 0x595   : > { %5982 = vmatmul.mubr.bf16.gmra.mrb[76].mxu0 %v5629_v54  ;;  %7843 = vmatprep.mubr.msk.bf16.mxu1 %vm403_vm1, %v6189_v23  ;;  %v6182_v54 = vsel %vm1563_vm5, %v6180_v55, %v6181_v3  ;;  %v6020_v23 = vld [vmem:[#allocation2 + $0x158] sm:$0xff]  ;;  %v6017_v55 = vld [vmem:[#allocation2 + $0x140] sm:$0xff] }
 0x596   : > { %7842 = vmatprep.mubr.msk.bf16.mxu0 %vm403_vm1, %v6185_v15  ;;  %v6198_v46 = vrot.slane %v6081_v11, 1  ;;  %v6083_v15 = vpack.c.bf16 %v6015_v50, %v6013_v42  ;;  %v6086_v4 = vpack.c.bf16 %v6020_v23, %v6018_v20 }
 0x598   : > { %v6199_v56 = vsel %vm1563_vm5, %v6194_v62, %v6198_v46  ;;  %v6202_v3 = vrot.slane %v6083_v15, 1  ;;  %v6208_v35 = vrot.slane %v6086_v4, 1  ;;  %v6210_v62 = vrot.slane %v6087_v31, 1 }
 0x599   : > { %v6220_v15 = vrot.slane %v11390_v48, 1 }
 0x59a   : > { %v6203_v43 = vsel %vm1563_vm5, %v6198_v46, %v6202_v3  ;;  %v6209_v53 = vsel %vm1563_vm5, %v6204_v1, %v6208_v35 }
 0x59c   : > { %6459 = vmatmul.mubr.bf16.vlgmr.msra.gmra.mrb[252].mxu1 %v6187_v8  ;;  %v6085_v8 = vpack.c.bf16 %v6019_v29, %v6017_v55 }
 0x59d   : > { %6451 = vmatmul.mubr.bf16.vlgmr.msra.gmra.mrb[80].mxu0 %v6182_v54  ;;  %7844 = vmatprep.mubr.msk.bf16.mxu1 %vm403_vm1, %v6193_v16  ;;  %v6088_v54 = vpack.c.bf16 %v6024_v47, %v6022_v58  ;;  %v6215_v47 = vsel %vm1563_vm5, %v6210_v62, %v6214_v5 }
 0x59e   : > { %v6206_v16 = vrot.slane %v6085_v8, 1 }
 0x59f   : > { %v6212_v36 = vrot.slane %v6088_v54, 1 }
 0x5a0   : > { %v6207_v28 = vsel %vm1563_vm5, %v6202_v3, %v6206_v16  ;;  %v6211_v46 = vsel %vm1563_vm5, %v6206_v16, %v6210_v62 }
 0x5a1   : > { %v6213_v22 = vsel %vm1563_vm5, %v6208_v35, %v6212_v36 }
 0x5a4   : > { %6467 = vmatmul.mubr.bf16.gmra.mrb[0].mxu1 %v6191_v10  ;;  %v6026_v10 = vld [vmem:[#allocation2 + $0x188] sm:$0xff] }
 0x5a5   : > { %7845 = vmatprep.mubr.msk.bf16.mxu1 %vm403_vm1, %v6197_v7  ;;  %v6090_v25 = vpack.c.bf16 %v6028_v21, %v6026_v10 }
 0x5a7   : > { %v6216_v33 = vrot.slane %v6090_v25, 1 }
 0x5a9   : > { %v6217_v1 = vsel %vm1563_vm5, %v6212_v36, %v6216_v33  ;;  %v6221_v55 = vsel %vm1563_vm5, %v6216_v33, %v6220_v15 }
 0x5ac   : > { %6475 = vmatmul.mubr.bf16.gmra.mrb[4].mxu1 %v6195_v49 }
 0x5ad   : > { %7846 = vmatprep.mubr.msk.bf16.mxu1 %vm403_vm1, %v6201_v38 }
 0x5b4   : > { %6483 = vmatmul.mubr.bf16.gmra.mrb[8].mxu1 %v6199_v56 }
 0x5b5   : > { %7847 = vmatprep.mubr.msk.bf16.mxu1 %vm403_vm1, %v6205_v27 }
 0x5bc   : > { %6491 = vmatmul.mubr.bf16.gmra.mrb[12].mxu1 %v6203_v43 }
 0x5bd   : > { %7848 = vmatprep.mubr.msk.bf16.mxu1 %vm403_vm1, %v6209_v53  ;;  %v6224_v53 = vrot.slane %v11419_v12, 1  ;;  %v6228_v12 = vrot.slane %v11455_v24, 1  ;;  %v6232_v24 = vrot.slane %v11488_v30, 1  ;;  %v6236_v30 = vrot.slane %v11511_v44, 1 }
 0x5be   : > { %v6240_v44 = vrot.slane %v11523_v52, 1  ;;  %v6244_v52 = vrot.slane %v11534_v39, 1  ;;  %v6248_v39 = vrot.slane %v11547_v63, 1 }
 0x5bf   : > { %v6225_v5 = vsel %vm1563_vm5, %v6220_v15, %v6224_v53 }
 0x5c4   : > { %6499 = vmatmul.mubr.bf16.gmra.mrb[16].mxu1 %v6207_v28 }
 0x5c5   : > { %7849 = vmatprep.mubr.msk.bf16.mxu1 %vm403_vm1, %v6213_v22 }
 0x5c6   : > { %v5343_v7 = vpop.f32.mrb[168].mxu1 }
 0x5c7   : > { %v5345_v17 = vpop.f32.mrb[169].mxu1 }
 0x5c8   : > { %v5823_v45 = vpop.f32.mrb[252].mxu0  ;;  %v5346_v32 = vpop.f32.mrb[170].mxu1 }
 0x5c9   : > { %v11604_v51 = vadd.f32 %v5823_v45, %v5343_v7  ;;  %v5825_v49 = vpop.f32.mrb[253].mxu0  ;;  %v5348_v11 = vpop.f32.mrb[171].mxu1 }
 0x5ca   : > { %v5826_v40 = vpop.f32.mrb[254].mxu0 }
 0x5cb   : > { %v11606_v38 = vadd.f32 %v5826_v40, %v5346_v32  ;;  %v5828_v18 = vpop.f32.mrb[255].mxu0 }
 0x5cc   : > { %6507 = vmatmul.mubr.bf16.gmra.mrb[20].mxu1 %v6211_v46 }
 0x5cd   : > { %7850 = vmatprep.mubr.msk.bf16.mxu1 %vm403_vm1, %v6217_v1 }
 0x5ce   : > { %v5351_v50 = vpop.f32.mrb[172].mxu1 }
 0x5cf   : > { %v5353_v23 = vpop.f32.mrb[173].mxu1 }
 0x5d0   : > { %v5831_v42 = vpop.f32.mrb[0].mxu0  ;;  %v5354_v56 = vpop.f32.mrb[174].mxu1 }
 0x5d1   : > { %v11612_v20 = vadd.f32 %v5831_v42, %v5351_v50  ;;  %v5833_v27 = vpop.f32.mrb[1].mxu0  ;;  %v5356_v4 = vpop.f32.mrb[175].mxu1 }
 0x5d2   : > { %v5834_v3 = vpop.f32.mrb[2].mxu0 }
 0x5d3   : > { %v11614_v35 = vadd.f32 %v5834_v3, %v5354_v56  ;;  %v5836_v29 = vpop.f32.mrb[3].mxu0 }
 0x5d4   : > { %6515 = vmatmul.mubr.bf16.gmra.mrb[24].mxu1 %v6215_v47 }
 0x5d5   : > { %7851 = vmatprep.mubr.msk.bf16.mxu1 %vm403_vm1, %v6221_v55 }
 0x5d6   : > { %v5359_v43 = vpop.f32.mrb[176].mxu1 }
 0x5d7   : > { %v5361_v8 = vpop.f32.mrb[177].mxu1 }
 0x5d8   : > { %v5839_v48 = vpop.f32.mrb[4].mxu0  ;;  %v5362_v58 = vpop.f32.mrb[178].mxu1 }
 0x5d9   : > { %v11622_v54 = vadd.f32 %v5839_v48, %v5359_v43  ;;  %v5841_v16 = vpop.f32.mrb[5].mxu0  ;;  %v5364_v36 = vpop.f32.mrb[179].mxu1 }
 0x5da   : > { %v5842_v41 = vpop.f32.mrb[6].mxu0 }
 0x5db   : > { %v11624_v21 = vadd.f32 %v5842_v41, %v5362_v58  ;;  %v5844_v2 = vpop.f32.mrb[7].mxu0 }
 0x5dc   : > { %6523 = vmatmul.mubr.bf16.gmra.mrb[28].mxu1 %v11438_v19  ;;  %v6229_v19 = vsel %vm1563_vm5, %v6224_v53, %v6228_v12 }
 0x5dd   : > { %7852 = vmatprep.mubr.msk.bf16.mxu1 %vm403_vm1, %v6225_v5 }
 0x5de   : > { %v5367_v0 = vpop.f32.mrb[180].mxu1 }
 0x5df   : > { %v5369_v28 = vpop.f32.mrb[181].mxu1 }
 0x5e0   : > { %v5847_v31 = vpop.f32.mrb[8].mxu0  ;;  %v5370_v10 = vpop.f32.mrb[182].mxu1 }
 0x5e1   : > { %v11630_v22 = vadd.f32 %v5847_v31, %v5367_v0  ;;  %v5849_v25 = vpop.f32.mrb[9].mxu0  ;;  %v5372_v7 = vpop.f32.mrb[183].mxu1 }
 0x5e2   : > { %v5850_v17 = vpop.f32.mrb[10].mxu0 }
 0x5e3   : > { %v11632_v62 = vadd.f32 %v5850_v17, %v5370_v10  ;;  %v5852_v45 = vpop.f32.mrb[11].mxu0 }
 0x5e4   : > { %6531 = vmatmul.mubr.bf16.gmra.mrb[32].mxu1 %v11469_v61  ;;  %v6233_v61 = vsel %vm1563_vm5, %v6228_v12, %v6232_v24 }
 0x5e5   : > { %7853 = vmatprep.mubr.msk.bf16.mxu1 %vm403_vm1, %v6229_v19 }
 0x5e6   : > { %v5375_v32 = vpop.f32.mrb[184].mxu1 }
 0x5e7   : > { %v5377_v33 = vpop.f32.mrb[185].mxu1 }
 0x5e8   : > { %v5855_v49 = vpop.f32.mrb[12].mxu0  ;;  %v5378_v11 = vpop.f32.mrb[186].mxu1 }
 0x5e9   : > { %v11638_v40 = vadd.f32 %v5855_v49, %v5375_v32  ;;  %v5857_v18 = vpop.f32.mrb[13].mxu0  ;;  %v5380_v46 = vpop.f32.mrb[187].mxu1 }
 0x5ea   : > { %v5858_v1 = vpop.f32.mrb[14].mxu0 }
 0x5eb   : > { %v11640_v50 = vadd.f32 %v5858_v1, %v5378_v11  ;;  %v5860_v23 = vpop.f32.mrb[15].mxu0 }
 0x5ec   : > { %6539 = vmatmul.mubr.bf16.gmra.mrb[36].mxu1 %v11503_v13  ;;  %v6237_v13 = vsel %vm1563_vm5, %v6232_v24, %v6236_v30 }
 0x5ed   : > { %7854 = vmatprep.mubr.msk.bf16.mxu1 %vm403_vm1, %v6233_v61 }
 0x5ee   : > { %v5383_v42 = vpop.f32.mrb[188].mxu1 }
 0x5ef   : > { %v5385_v56 = vpop.f32.mrb[189].mxu1 }
 0x5f0   : > { %v5863_v15 = vpop.f32.mrb[16].mxu0  ;;  %v5386_v27 = vpop.f32.mrb[190].mxu1 }
 0x5f1   : > { %v11646_v4 = vadd.f32 %v5863_v15, %v5383_v42  ;;  %v5865_v3 = vpop.f32.mrb[17].mxu0  ;;  %v5388_v29 = vpop.f32.mrb[191].mxu1 }
 0x5f2   : > { %v5866_v47 = vpop.f32.mrb[18].mxu0 }
 0x5f3   : > { %v11648_v55 = vadd.f32 %v5866_v47, %v5386_v27  ;;  %v5868_v43 = vpop.f32.mrb[19].mxu0  ;;  %v6066_v47 = vld [vmem:[#allocation2 + $0x2c8] sm:$0xff] }
 0x5f4   : > { %6547 = vmatmul.mubr.bf16.gmra.mrb[40].mxu1 %v11517_v26  ;;  %v6241_v26 = vsel %vm1563_vm5, %v6236_v30, %v6240_v44  ;;  %v6252_v30 = vrot.slane %v11559_v6, 1  ;;  %v6068_v43 = vld [vmem:[#allocation2 + $0x2d8] sm:$0xff] }
 0x5f5   : > { %7855 = vmatprep.mubr.msk.bf16.mxu1 %vm403_vm1, %v6237_v13 }
 0x5f6   : > { %v5391_v8 = vpop.f32.mrb[192].mxu1 }
 0x5f7   : > { %v5393_v48 = vpop.f32.mrb[193].mxu1 }
 0x5f8   : > { %v5871_v58 = vpop.f32.mrb[20].mxu0  ;;  %v5394_v53 = vpop.f32.mrb[194].mxu1 }
 0x5f9   : > { %v11654_v16 = vadd.f32 %v5871_v58, %v5391_v8  ;;  %v5873_v36 = vpop.f32.mrb[21].mxu0  ;;  %v5396_v41 = vpop.f32.mrb[195].mxu1  ;;  %v6253_v58 = vsel %vm1563_vm5, %v6248_v39, %v6252_v30 }
 0x5fa   : > { %v5874_v2 = vpop.f32.mrb[22].mxu0 }
 0x5fb   : > { %v11656_v5 = vadd.f32 %v5874_v2, %v5394_v53  ;;  %v5876_v0 = vpop.f32.mrb[23].mxu0  ;;  %v6110_v53 = vpack.c.bf16 %v6068_v43, %v6066_v47  ;;  %v6065_v2 = vld [vmem:[#allocation2 + $0x2c0] sm:$0xff] }
 0x5fc   : > { %6555 = vmatmul.mubr.bf16.gmra.mrb[44].mxu1 %v11530_v57  ;;  %v6245_v57 = vsel %vm1563_vm5, %v6240_v44, %v6244_v52 }
 0x5fd   : > { %7856 = vmatprep.mubr.msk.bf16.mxu1 %vm403_vm1, %v6241_v26  ;;  %v6256_v41 = vrot.slane %v6110_v53, 1 }
 0x5fe   : > { %v5399_v28 = vpop.f32.mrb[196].mxu1 }
 0x5ff   : > { %v5401_v31 = vpop.f32.mrb[197].mxu1 }
 0x600   : > { %v5879_v10 = vpop.f32.mrb[24].mxu0  ;;  %v5402_v12 = vpop.f32.mrb[198].mxu1  ;;  %v6070_v31 = vld [vmem:[#allocation2 + $0x2e8] sm:$0x3f] }
 0x601   : > { %v11662_v25 = vadd.f32 %v5879_v10, %v5399_v28  ;;  %v5881_v7 = vpop.f32.mrb[25].mxu0  ;;  %v5404_v17 = vpop.f32.mrb[199].mxu1 }
 0x602   : > { %v5882_v45 = vpop.f32.mrb[26].mxu0  ;;  %v8841_v7 = vld [vmem:[#allocation2] sm:$0xff] }
 0x603   : > { %v11664_v19 = vadd.f32 %v5882_v45, %v5402_v12  ;;  %v5884_v32 = vpop.f32.mrb[27].mxu0  ;;  %v6109_v17 = vpack.c.bf16 %v8841_v7, %v6065_v2  ;;  %v6257_v45 = vsel %vm1563_vm5, %v6252_v30, %v6256_v41 }
 0x604   : > { %6563 = vmatmul.mubr.bf16.gmra.mrb[48].mxu1 %v11541_v59  ;;  %v6249_v59 = vsel %vm1563_vm5, %v6244_v52, %v6248_v39  ;;  %v6112_v32 = vpack.c.bf16 %v6070_v31, %v6070_v31  ;;  %v6069_v39 = vld [vmem:[#allocation2 + $0x2e0] sm:$0x3f] }
 0x605   : > { %7857 = vmatprep.mubr.msk.bf16.mxu1 %vm403_vm1, %v6245_v57 }
 0x606   : > { %v5407_v33 = vpop.f32.mrb[200].mxu1 }
 0x607   : > { %v5409_v49 = vpop.f32.mrb[201].mxu1 }
 0x608   : > { %v5887_v11 = vpop.f32.mrb[28].mxu0  ;;  %v5410_v24 = vpop.f32.mrb[202].mxu1 }
 0x609   : > { %v11670_v18 = vadd.f32 %v5887_v11, %v5407_v33  ;;  %v5889_v46 = vpop.f32.mrb[29].mxu0  ;;  %v5412_v1 = vpop.f32.mrb[203].mxu1  ;;  %v6254_v33 = vrot.slane %v6109_v17, 1 }
 0x60a   : > { %v5890_v23 = vpop.f32.mrb[30].mxu0 }
 0x60b   : > { %v11672_v61 = vadd.f32 %v5890_v23, %v5410_v24  ;;  %v5892_v42 = vpop.f32.mrb[31].mxu0  ;;  %v6260_v24 = vrot.slane %v6112_v32, 1 }
 0x60c   : > { %6571 = vmatmul.mubr.bf16.gmra.mrb[52].mxu1 %v11554_v34 }
 0x60d   : > { %7858 = vmatprep.mubr.msk.bf16.mxu1 %vm403_vm1, %v6249_v59  ;;  %v6261_v30 = vsel %vm1563_vm5, %v6256_v41, %v6260_v24 }
 0x60e   : > { %v5415_v56 = vpop.f32.mrb[204].mxu1 }
 0x60f   : > { %v5417_v15 = vpop.f32.mrb[205].mxu1 }
 0x610   : > { %v5895_v27 = vpop.f32.mrb[32].mxu0  ;;  %v5418_v3 = vpop.f32.mrb[206].mxu1  ;;  %v6255_v15 = vsel %vm1563_vm5, %v6250_v14, %v6254_v33 }
 0x611   : > { %v11678_v63 = vadd.f32 %v5895_v27, %v5415_v56  ;;  %v5897_v29 = vpop.f32.mrb[33].mxu0  ;;  %v5420_v13 = vpop.f32.mrb[207].mxu1  ;;  %v6111_v27 = vpack.c.bf16 %v6069_v39, %v6069_v39 }
 0x612   : > { %v5898_v8 = vpop.f32.mrb[34].mxu0 }
 0x613   : > { %v11680_v48 = vadd.f32 %v5898_v8, %v5418_v3  ;;  %v5900_v34 = vpop.f32.mrb[35].mxu0  ;;  %v6258_v29 = vrot.slane %v6111_v27, 1 }
 0x614   : > { %6579 = vmatmul.mubr.bf16.gmra.mrb[56].mxu1 %v11565_v37 }
 0x615   : > { %7859 = vmatprep.mubr.msk.bf16.mxu1 %vm403_vm1, %v6253_v58  ;;  %v6259_v14 = vsel %vm1563_vm5, %v6254_v33, %v6258_v29 }
 0x616   : > { %v5423_v44 = vpop.f32.mrb[208].mxu1 }
 0x617   : > { %v5425_v6 = vpop.f32.mrb[209].mxu1 }
 0x618   : > { %v5903_v36 = vpop.f32.mrb[36].mxu0  ;;  %v5426_v26 = vpop.f32.mrb[210].mxu1 }
 0x619   : > { %v11685_v0 = vadd.f32 %v5903_v36, %v5423_v44  ;;  %v5905_v28 = vpop.f32.mrb[37].mxu0  ;;  %v5428_v10 = vpop.f32.mrb[211].mxu1 }
 0x61a   : > { %v5906_v12 = vpop.f32.mrb[38].mxu0 }
 0x61b   : > { %v11687_v52 = vadd.f32 %v5906_v12, %v5426_v26  ;;  %v5908_v37 = vpop.f32.mrb[39].mxu0 }
 0x61c   : > { %6587 = vmatmul.mubr.bf16.gmra.mrb[60].mxu1 %v11579_v9 }
 0x61d   : > { %7860 = vmatprep.mubr.msk.bf16.mxu1 %vm403_vm1, %v6257_v45 }
 0x61e   : > { %v5431_v57 = vpop.f32.mrb[212].mxu1 }
 0x61f   : > { %v5433_v49 = vpop.f32.mrb[213].mxu1 }
 0x620   : > { %v5911_v11 = vpop.f32.mrb[40].mxu0  ;;  %v5434_v1 = vpop.f32.mrb[214].mxu1 }
 0x621   : > { %v11692_v46 = vadd.f32 %v5911_v11, %v5431_v57  ;;  %v5913_v23 = vpop.f32.mrb[41].mxu0  ;;  %v5436_v42 = vpop.f32.mrb[215].mxu1 }
 0x622   : > { %v5914_v59 = vpop.f32.mrb[42].mxu0 }
 0x623   : > { %v11694_v56 = vadd.f32 %v5914_v59, %v5434_v1  ;;  %v5916_v9 = vpop.f32.mrb[43].mxu0 }
 0x624   : > { %6595 = vmatmul.mubr.bf16.gmra.mrb[64].mxu1 %v6255_v15 }
 0x625   : > { %7861 = vmatprep.mubr.msk.bf16.mxu1 %vm403_vm1, %v6261_v30 }
 0x626   : > { %v5439_v3 = vpop.f32.mrb[216].mxu1 }
 0x627   : > { %v5441_v47 = vpop.f32.mrb[217].mxu1 }
 0x628   : > { %v5919_v43 = vpop.f32.mrb[44].mxu0  ;;  %v5442_v8 = vpop.f32.mrb[218].mxu1 }
 0x629   : > { %v11701_v13 = vadd.f32 %v5919_v43, %v5439_v3  ;;  %v5921_v34 = vpop.f32.mrb[45].mxu0  ;;  %v5444_v58 = vpop.f32.mrb[219].mxu1 }
 0x62a   : > { %v5922_v53 = vpop.f32.mrb[46].mxu0 }
 0x62b   : > { %v11703_v44 = vadd.f32 %v5922_v53, %v5442_v8  ;;  %v5924_v60 = vpop.f32.mrb[47].mxu0 }
 0x62c   : > { %6603 = vmatmul.mubr.bf16.gmra.mrb[68].mxu1 %v6259_v14 }
 0x62d   : > { %7862 = vmatprep.mubr.msk.bf16.mxu1 %vm403_vm1, %v6260_v24 }
 0x62e   : > { %v5447_v6 = vpop.f32.mrb[220].mxu1 }
 0x62f   : > { %v5449_v36 = vpop.f32.mrb[221].mxu1 }
 0x630   : > { %v5927_v41 = vpop.f32.mrb[48].mxu0  ;;  %v5450_v26 = vpop.f32.mrb[222].mxu1 }
 0x631   : > { %v11707_v2 = vadd.f32 %v5927_v41, %v5447_v6  ;;  %v5929_v28 = vpop.f32.mrb[49].mxu0  ;;  %v5452_v31 = vpop.f32.mrb[223].mxu1 }
 0x632   : > { %v5930_v10 = vpop.f32.mrb[50].mxu0 }
 0x633   : > { %v11709_v12 = vadd.f32 %v5930_v10, %v5450_v26  ;;  %v5932_v37 = vpop.f32.mrb[51].mxu0 }
 0x634   : > { %6611 = vmatmul.mubr.bf16.gmra.mrb[72].mxu1 %v6258_v29 }
 0x636   : > { %v5455_v7 = vpop.f32.mrb[224].mxu1 }
 0x637   : > { %v5457_v17 = vpop.f32.mrb[225].mxu1 }
 0x638   : > { %v5935_v45 = vpop.f32.mrb[52].mxu0  ;;  %v5458_v57 = vpop.f32.mrb[226].mxu1 }
 0x639   : > { %v11711_v32 = vadd.f32 %v5935_v45, %v5455_v7  ;;  %v5937_v33 = vpop.f32.mrb[53].mxu0  ;;  %v5460_v49 = vpop.f32.mrb[227].mxu1 }
 0x63a   : > { %v5938_v11 = vpop.f32.mrb[54].mxu0 }
 0x63b   : > { %v11713_v24 = vadd.f32 %v5938_v11, %v5458_v57  ;;  %v5940_v39 = vpop.f32.mrb[55].mxu0 }
 0x63e   : > { %v5463_v1 = vpop.f32.mrb[228].mxu1 }
 0x63f   : > { %v5465_v23 = vpop.f32.mrb[229].mxu1 }
 0x640   : > { %v5943_v42 = vpop.f32.mrb[56].mxu0  ;;  %v5466_v9 = vpop.f32.mrb[230].mxu1 }
 0x641   : > { %v11715_v59 = vadd.f32 %v5943_v42, %v5463_v1  ;;  %v5945_v15 = vpop.f32.mrb[57].mxu0  ;;  %v5468_v27 = vpop.f32.mrb[231].mxu1 }
 0x642   : > { %v5946_v30 = vpop.f32.mrb[58].mxu0 }
 0x643   : > { %v11717_v3 = vadd.f32 %v5946_v30, %v5466_v9  ;;  %v5948_v29 = vpop.f32.mrb[59].mxu0 }
 0x646   : > { %v5471_v47 = vpop.f32.mrb[232].mxu1 }
 0x647   : > { %v5473_v43 = vpop.f32.mrb[233].mxu1 }
 0x648   : > { %v5951_v8 = vpop.f32.mrb[60].mxu0  ;;  %v5474_v58 = vpop.f32.mrb[234].mxu1 }
 0x649   : > { %v11719_v34 = vadd.f32 %v5951_v8, %v5471_v47  ;;  %v5953_v53 = vpop.f32.mrb[61].mxu0  ;;  %v5476_v60 = vpop.f32.mrb[235].mxu1 }
 0x64a   : > { %v5954_v14 = vpop.f32.mrb[62].mxu0 }
 0x64b   : > { %v11721_v6 = vadd.f32 %v5954_v14, %v5474_v58  ;;  %v5956_v36 = vpop.f32.mrb[63].mxu0 }
 0x64f   : > { %v5479_v41 = vpop.f32.mrb[236].mxu1 }
 0x650   : > { %v5481_v26 = vpop.f32.mrb[237].mxu1  ;;  %v5959_v28 = vpop.f32.mrb[64].mxu0 }
 0x651   : > { %v11723_v31 = vadd.f32 %v5959_v28, %v5479_v41  ;;  %v5482_v10 = vpop.f32.mrb[238].mxu1  ;;  %v5961_v37 = vpop.f32.mrb[65].mxu0 }
 0x652   : > { %v5484_v7 = vpop.f32.mrb[239].mxu1  ;;  %v5962_v17 = vpop.f32.mrb[66].mxu0 }
 0x653   : > { %v11725_v45 = vadd.f32 %v5962_v17, %v5482_v10  ;;  %v5964_v57 = vpop.f32.mrb[67].mxu0 }
 0x657   : > { %v5487_v33 = vpop.f32.mrb[240].mxu1 }
 0x658   : > { %v5489_v49 = vpop.f32.mrb[241].mxu1  ;;  %v5967_v11 = vpop.f32.mrb[68].mxu0 }
 0x659   : > { %v11727_v39 = vadd.f32 %v5967_v11, %v5487_v33  ;;  %v5490_v1 = vpop.f32.mrb[242].mxu1  ;;  %v5969_v23 = vpop.f32.mrb[69].mxu0 }
 0x65a   : > { %v5492_v42 = vpop.f32.mrb[243].mxu1  ;;  %v5970_v9 = vpop.f32.mrb[70].mxu0  ;;  %v11740_v23 = vld [vmem:[%s11878_s9] ss:$0 sm:$0xff] }
 0x65b   : > { %v11729_v15 = vadd.f32 %v5970_v9, %v5490_v1  ;;  %v5972_v27 = vpop.f32.mrb[71].mxu0  ;;  %v6996_v49 = vpop.permute.xlu1 %6995 }
 0x65c   : > { %v6999_v11 = vpop.permute.xlu0 %6998  ;;  %vm7117_vm1 = vcmp.eq.s32.totalorder %v6996_v49, 1 }
 0x65d   : > { %vm7118_vm7 = vcmp.eq.s32.totalorder %v6999_v11, 1 }
 0x65f   : > { %v5495_v30 = vpop.f32.mrb[244].mxu1 }
 0x660   : > { %v5497_v29 = vpop.f32.mrb[245].mxu1  ;;  %v5975_v47 = vpop.f32.mrb[72].mxu0 }
 0x661   : > { %v11731_v43 = vadd.f32 %v5975_v47, %v5495_v30  ;;  %v5498_v8 = vpop.f32.mrb[246].mxu1  ;;  %v5977_v58 = vpop.f32.mrb[73].mxu0 }
 0x662   : > { %v5500_v53 = vpop.f32.mrb[247].mxu1  ;;  %v5978_v60 = vpop.f32.mrb[74].mxu0 }
 0x663   : > { %v11733_v14 = vadd.f32 %v5978_v60, %v5498_v8  ;;  %v5980_v36 = vpop.f32.mrb[75].mxu0 }
 0x664   : > { %v8288_v36 = vld [vmem:[%s10400_s25 + $0x8] sm:$0xff]  }
 0x665   : > { %12012 = vst [vmem:[#allocation3_spill] sm:$0xff] %v11733_v14 }
 0x667   : > { %v5503_v41 = vpop.f32.mrb[248].mxu1 }
 0x668   : > { %v5505_v26 = vpop.f32.mrb[249].mxu1  ;;  %v5983_v28 = vpop.f32.mrb[76].mxu0 }
 0x669   : > { %v11735_v10 = vadd.f32 %v5983_v28, %v5503_v41  ;;  %v5506_v37 = vpop.f32.mrb[250].mxu1  ;;  %v5985_v7 = vpop.f32.mrb[77].mxu0 }
 0x66a   : > { %v5507_v17 = vpop.f32.mrb[251].mxu1  ;;  %v5986_v57 = vpop.f32.mrb[78].mxu0 }
 0x66b   : > { %12013 = vst [vmem:[#allocation4_spill] sm:$0xff] %v11735_v10  ;;  %v5987_v33 = vpop.f32.mrb[79].mxu0 }
 0x66c   : > { %v8095_v33 = vunpack.c.l.bf16 %v8288_v36 }
 0x66f   : > { %v6460_v1 = vpop.f32.mrb[252].mxu1 }
 0x670   : > { %v6620_v42 = vadd.f32 %v6460_v1, %v11612_v20  ;;  %v6452_v9 = vpop.f32.mrb[80].mxu0  ;;  %v6462_v27 = vpop.f32.mrb[253].mxu1  ;;  %v8090_v20 = vld [vmem:[%s10400_s25] sm:$0xff]  }
 0x671   : > { %v6618_v30 = vadd.f32 %v6452_v9, %v11604_v51  ;;  %v6454_v29 = vpop.f32.mrb[81].mxu0  ;;  %v6463_v47 = vpop.f32.mrb[254].mxu1  ;;  %v8091_v9 = vunpack.c.l.bf16 %v8090_v20  ;;  %v8092_v14 = vunpack.c.h.bf16 %v8090_v20 }
 0x672   : > { %v6668_v8 = vadd.f32 %v11740_v23, %v6620_v42  ;;  %v6621_v58 = vadd.f32 %v6463_v47, %v11614_v35  ;;  %v6455_v53 = vpop.f32.mrb[82].mxu0  ;;  %v6465_v60 = vpop.f32.mrb[255].mxu1 }
 0x673   : > { %v6666_v41 = vadd.f32 %v11740_v23, %v6618_v30  ;;  %v6619_v26 = vadd.f32 %v6455_v53, %v11606_v38  ;;  %v6457_v28 = vpop.f32.mrb[83].mxu0  ;;  %v7002_v42 = vpop.permute.xlu1 %7001  ;;  %v8096_v38 = vunpack.c.h.bf16 %v8288_v36 }
 0x674   : > { %v6709_v37 = vmul.f32 0.1, %v6668_v8  ;;  %v6669_v7 = vadd.f32 %v11740_v23, %v6621_v58  ;;  %v7005_v47 = vpop.permute.xlu0 %7004  ;;  %vm7119_vm5 = vcmp.eq.s32.totalorder %v7002_v42, 1 }
 0x675   : > { %v6707_v17 = vmul.f32 0.1, %v6666_v41  ;;  %v6667_v51 = vadd.f32 %v11740_v23, %v6619_v26  ;;  %vm7120_vm8 = vcmp.eq.s32.totalorder %v7005_v47, 1 }
 0x676   : > { %v6750_v57 = vmax.f32 %v6668_v8, %v6709_v37  ;;  %v6710_v1 = vmul.f32 0.1, %v6669_v7 }
 0x677   : > { %v6748_v35 = vmax.f32 %v6666_v41, %v6707_v17  ;;  %v6708_v27 = vmul.f32 0.1, %v6667_v51  ;;  %v6468_v29 = vpop.f32.mrb[0].mxu1 }
 0x678   : > { %v6914_v30 = vadd.f32 %v8095_v33, %v6750_v57  ;;  %v6751_v60 = vmax.f32 %v6669_v7, %v6710_v1  ;;  %v6622_v53 = vadd.f32 %v6468_v29, %v11622_v54  ;;  %v6470_v28 = vpop.f32.mrb[1].mxu1  ;;  %v8289_v7 = vld [vmem:[%s10400_s25 + $0x10] sm:$0xff]   ;;  %v7008_v29 = vpop.permute.xlu1 %7007 }
 0x679   : > { %v6912_v58 = vadd.f32 %v8091_v9, %v6748_v35  ;;  %v6749_v10 = vmax.f32 %v6667_v51, %v6708_v27  ;;  %v6471_v26 = vpop.f32.mrb[2].mxu1  ;;  %v8099_v27 = vunpack.c.l.bf16 %v8289_v7  ;;  %v7011_v42 = vpop.permute.xlu0 %7010  ;;  %v8100_v47 = vunpack.c.h.bf16 %v8289_v7 }
 0x67a   : > { %v6915_v8 = vadd.f32 %v8096_v38, %v6751_v60  ;;  %v6670_v37 = vadd.f32 %v11740_v23, %v6622_v53  ;;  %v6623_v41 = vadd.f32 %v6471_v26, %v11624_v21  ;;  %v6473_v17 = vpop.f32.mrb[3].mxu1  ;;  %v7160_v54 = vsel %vm7119_vm5, %v6914_v30, 0.0 }
 0x67b   : > { %v6913_v36 = vadd.f32 %v8092_v14, %v6749_v10  ;;  %v7158_v51 = vsel %vm7117_vm1, %v6912_v58, 0.0  ;;  %vm7121_vm12 = vcmp.eq.s32.totalorder %v7008_v29, 1  ;;  %vm7122_vm9 = vcmp.eq.s32.totalorder %v7011_v42, 1 }
 0x67c   : > { %v7161_v57 = vsel %vm7120_vm8, %v6915_v8, 0.0  ;;  %v6711_v33 = vmul.f32 0.1, %v6670_v37  ;;  %v6671_v20 = vadd.f32 %v11740_v23, %v6623_v41  ;;  %v8290_v8 = vld [vmem:[%s10400_s25 + $0x18] sm:$0xff]  }
 0x67d   : > { %v8177_v49 = vpack.c.bf16 %v7161_v57, %v7160_v54  ;;  %v7159_v1 = vsel %vm7118_vm7, %v6913_v36, 0.0 }
 0x67e   : > { %v8172_v35 = vpack.c.bf16 %v7159_v1, %v7158_v51  ;;  %v6752_v9 = vmax.f32 %v6670_v37, %v6711_v33  ;;  %v6712_v21 = vmul.f32 0.1, %v6671_v20  ;;  %v7014_v33 = vpop.permute.xlu1 %7013  ;;  %v7017_v51 = vpop.permute.xlu0 %7016  ;;  %v8104_v1 = vunpack.c.h.bf16 %v8290_v8 }
 0x67f   : > { %8307 = vst [vmem:[%s10400_s25 + $0x8] sm:$0xff] %v8177_v49   ;;  %v6476_v11 = vpop.f32.mrb[4].mxu1  ;;  %vm7123_vm10 = vcmp.eq.s32.totalorder %v7014_v33, 1  ;;  %vm7124_vm11 = vcmp.eq.s32.totalorder %v7017_v51, 1 }
 0x680   : > { %8173 = vst [vmem:[%s10400_s25] sm:$0xff] %v8172_v35   ;;  %v6916_v14 = vadd.f32 %v8099_v27, %v6752_v9  ;;  %v6753_v10 = vmax.f32 %v6671_v20, %v6712_v21  ;;  %v6624_v30 = vadd.f32 %v6476_v11, %v11630_v22  ;;  %v6478_v60 = vpop.f32.mrb[5].mxu1  ;;  %v8103_v22 = vunpack.c.l.bf16 %v8290_v8 }
 0x681   : > { %v6479_v38 = vpop.f32.mrb[6].mxu1 }
 0x682   : > { %v6917_v53 = vadd.f32 %v8100_v47, %v6753_v10  ;;  %v6672_v28 = vadd.f32 %v11740_v23, %v6624_v30  ;;  %v6625_v58 = vadd.f32 %v6479_v38, %v11632_v62  ;;  %v6481_v26 = vpop.f32.mrb[7].mxu1  ;;  %v7162_v37 = vsel %vm7121_vm12, %v6916_v14, 0.0  ;;  %v8291_v14 = vld [vmem:[%s10400_s25 + $0x20] sm:$0xff]   ;;  %v7023_v8 = vpop.permute.xlu0 %7022 }
 0x683   : > { %vm7126_vm14 = vcmp.eq.s32.totalorder %v7023_v8, 1 }
 0x684   : > { %v7163_v41 = vsel %vm7122_vm9, %v6917_v53, 0.0  ;;  %v6713_v17 = vmul.f32 0.1, %v6672_v28  ;;  %v6673_v36 = vadd.f32 %v11740_v23, %v6625_v58  ;;  %v7020_v58 = vpop.permute.xlu1 %7019 }
 0x685   : > { %v8182_v7 = vpack.c.bf16 %v7163_v41, %v7162_v37  ;;  %v8108_v41 = vunpack.c.h.bf16 %v8291_v14  ;;  %vm7125_vm13 = vcmp.eq.s32.totalorder %v7020_v58, 1 }
 0x686   : > { %v6754_v54 = vmax.f32 %v6672_v28, %v6713_v17  ;;  %v6714_v57 = vmul.f32 0.1, %v6673_v36 }
 0x687   : > { %8308 = vst [vmem:[%s10400_s25 + $0x10] sm:$0xff] %v8182_v7   ;;  %v6484_v20 = vpop.f32.mrb[8].mxu1 }
 0x688   : > { %v6918_v49 = vadd.f32 %v8103_v22, %v6754_v54  ;;  %v6755_v62 = vmax.f32 %v6673_v36, %v6714_v57  ;;  %v6626_v35 = vadd.f32 %v6484_v20, %v11638_v40  ;;  %v6486_v9 = vpop.f32.mrb[9].mxu1  ;;  %v8107_v40 = vunpack.c.l.bf16 %v8291_v14  ;;  %v8292_v20 = vld [vmem:[%s10400_s25 + $0x28] sm:$0xff]  }
 0x689   : > { %v6487_v27 = vpop.f32.mrb[10].mxu1  ;;  %v8112_v14 = vunpack.c.h.bf16 %v8292_v20 }
 0x68a   : > { %v6919_v21 = vadd.f32 %v8104_v1, %v6755_v62  ;;  %v6674_v29 = vadd.f32 %v11740_v23, %v6626_v35  ;;  %v6627_v11 = vadd.f32 %v6487_v27, %v11640_v50  ;;  %v6489_v42 = vpop.f32.mrb[11].mxu1  ;;  %v7164_v10 = vsel %vm7123_vm10, %v6918_v49, 0.0 }
 0x68c   : > { %v7165_v47 = vsel %vm7124_vm11, %v6919_v21, 0.0  ;;  %v6715_v30 = vmul.f32 0.1, %v6674_v29  ;;  %v6675_v60 = vadd.f32 %v11740_v23, %v6627_v11  ;;  %v7026_v21 = vpop.permute.xlu1 %7025  ;;  %v7029_v11 = vpop.permute.xlu0 %7028 }
 0x68d   : > { %v8187_v38 = vpack.c.bf16 %v7165_v47, %v7164_v10  ;;  %vm7127_vm15 = vcmp.eq.s32.totalorder %v7026_v21, 1  ;;  %vm7128_vm0 = vcmp.eq.s32.totalorder %v7029_v11, 1 }
 0x68e   : > { %v6756_v53 = vmax.f32 %v6674_v29, %v6715_v30  ;;  %v6716_v28 = vmul.f32 0.1, %v6675_v60 }
 0x68f   : > { %8309 = vst [vmem:[%s10400_s25 + $0x18] sm:$0xff] %v8187_v38   ;;  %v6492_v26 = vpop.f32.mrb[12].mxu1 }
 0x690   : > { %v6920_v37 = vadd.f32 %v8107_v40, %v6756_v53  ;;  %v6757_v50 = vmax.f32 %v6675_v60, %v6716_v28  ;;  %v6628_v17 = vadd.f32 %v6492_v26, %v11646_v4  ;;  %v6494_v36 = vpop.f32.mrb[13].mxu1  ;;  %v8111_v4 = vunpack.c.l.bf16 %v8292_v20  ;;  %v8293_v28 = vld [vmem:[%s10400_s25 + $0x30] sm:$0xff]  }
 0x691   : > { %v6495_v7 = vpop.f32.mrb[14].mxu1  ;;  %v7032_v36 = vpop.permute.xlu1 %7031 }
 0x692   : > { %v6921_v54 = vadd.f32 %v8108_v41, %v6757_v50  ;;  %v6676_v22 = vadd.f32 %v11740_v23, %v6628_v17  ;;  %v6629_v57 = vadd.f32 %v6495_v7, %v11648_v55  ;;  %v6497_v33 = vpop.f32.mrb[15].mxu1  ;;  %v7166_v51 = vsel %vm7125_vm13, %v6920_v37, 0.0 }
 0x693   : > { %vm7129_vm2 = vcmp.eq.s32.totalorder %v7032_v36, 1 }
 0x694   : > { %v7167_v49 = vsel %vm7126_vm14, %v6921_v54, 0.0  ;;  %v6717_v62 = vmul.f32 0.1, %v6676_v22  ;;  %v6677_v1 = vadd.f32 %v11740_v23, %v6629_v57  ;;  %v7035_v54 = vpop.permute.xlu0 %7034  ;;  %v8116_v57 = vunpack.c.h.bf16 %v8293_v28 }
 0x695   : > { %v8192_v35 = vpack.c.bf16 %v7167_v49, %v7166_v51  ;;  %vm7130_vm3 = vcmp.eq.s32.totalorder %v7035_v54, 1 }
 0x696   : > { %v6758_v9 = vmax.f32 %v6676_v22, %v6717_v62  ;;  %v6718_v27 = vmul.f32 0.1, %v6677_v1 }
 0x697   : > { %8310 = vst [vmem:[%s10400_s25 + $0x20] sm:$0xff] %v8192_v35   ;;  %v6500_v29 = vpop.f32.mrb[16].mxu1 }
 0x698   : > { %v6922_v42 = vadd.f32 %v8111_v4, %v6758_v9  ;;  %v6759_v55 = vmax.f32 %v6677_v1, %v6718_v27  ;;  %v6630_v10 = vadd.f32 %v6500_v29, %v11654_v16  ;;  %v6502_v47 = vpop.f32.mrb[17].mxu1  ;;  %v8115_v16 = vunpack.c.l.bf16 %v8293_v28  ;;  %v8294_v9 = vld [vmem:[%s10400_s25 + $0x38] sm:$0xff]  }
 0x699   : > { %v6503_v30 = vpop.f32.mrb[18].mxu1  ;;  %v7041_v47 = vpop.permute.xlu0 %7040 }
 0x69a   : > { %v6923_v60 = vadd.f32 %v8112_v14, %v6759_v55  ;;  %v6678_v38 = vadd.f32 %v11740_v23, %v6630_v10  ;;  %v6631_v53 = vadd.f32 %v6503_v30, %v11656_v5  ;;  %v6505_v40 = vpop.f32.mrb[19].mxu1  ;;  %v7168_v58 = vsel %vm7127_vm15, %v6922_v42, 0.0  ;;  %v7038_v14 = vpop.permute.xlu1 %7037 }
 0x69b   : > { %vm7131_vm4 = vcmp.eq.s32.totalorder %v7038_v14, 1  ;;  %vm7132_vm6 = vcmp.eq.s32.totalorder %v7041_v47, 1 }
 0x69c   : > { %v7169_v26 = vsel %vm7128_vm0, %v6923_v60, 0.0  ;;  %v6719_v8 = vmul.f32 0.1, %v6678_v38  ;;  %v6679_v37 = vadd.f32 %v11740_v23, %v6631_v53  ;;  %v8120_v60 = vunpack.c.h.bf16 %v8294_v9 }
 0x69d   : > { %v8197_v50 = vpack.c.bf16 %v7169_v26, %v7168_v58 }
 0x69e   : > { %v6760_v41 = vmax.f32 %v6678_v38, %v6719_v8  ;;  %v6720_v17 = vmul.f32 0.1, %v6679_v37 }
 0x69f   : > { %8311 = vst [vmem:[%s10400_s25 + $0x28] sm:$0xff] %v8197_v50   ;;  %v6508_v7 = vpop.f32.mrb[20].mxu1 }
 0x6a0   : > { %v6924_v22 = vadd.f32 %v8115_v16, %v6760_v41  ;;  %v6761_v5 = vmax.f32 %v6679_v37, %v6720_v17  ;;  %v6632_v33 = vadd.f32 %v6508_v7, %v11662_v25  ;;  %v6510_v20 = vpop.f32.mrb[21].mxu1  ;;  %v8119_v25 = vunpack.c.l.bf16 %v8294_v9  ;;  %v8295_v37 = vld [vmem:[%s10400_s25 + $0x40] sm:$0xff]  }
 0x6a1   : > { %v6511_v51 = vpop.f32.mrb[22].mxu1  ;;  %v8124_v20 = vunpack.c.h.bf16 %v8295_v37 }
 0x6a2   : > { %v6925_v49 = vadd.f32 %v8116_v57, %v6761_v5  ;;  %v6680_v62 = vadd.f32 %v11740_v23, %v6632_v33  ;;  %v6633_v1 = vadd.f32 %v6511_v51, %v11664_v19  ;;  %v6513_v35 = vpop.f32.mrb[23].mxu1  ;;  %v7170_v4 = vsel %vm7129_vm2, %v6924_v22, 0.0  ;;  %v7044_v22 = vpop.permute.xlu1 %7043 }
 0x6a3   : > { %v7047_v57 = vpop.permute.xlu0 %7046  ;;  %vm7133_vm1 = vcmp.eq.s32.totalorder %v7044_v22, 1 }
 0x6a4   : > { %v7171_v27 = vsel %vm7130_vm3, %v6925_v49, 0.0  ;;  %v6721_v21 = vmul.f32 0.1, %v6680_v62  ;;  %v6681_v29 = vadd.f32 %v11740_v23, %v6633_v1  ;;  %vm7134_vm5 = vcmp.eq.s32.totalorder %v7047_v57, 1 }
 0x6a5   : > { %v8202_v11 = vpack.c.bf16 %v7171_v27, %v7170_v4  ;;  %v8296_v27 = vld [vmem:[%s10400_s25 + $0x48] sm:$0xff]  }
 0x6a6   : > { %v6762_v42 = vmax.f32 %v6680_v62, %v6721_v21  ;;  %v6722_v55 = vmul.f32 0.1, %v6681_v29 }
 0x6a7   : > { %8312 = vst [vmem:[%s10400_s25 + $0x30] sm:$0xff] %v8202_v11   ;;  %v6516_v10 = vpop.f32.mrb[24].mxu1 }
 0x6a8   : > { %v6926_v30 = vadd.f32 %v8119_v25, %v6762_v42  ;;  %v6763_v19 = vmax.f32 %v6681_v29, %v6722_v55  ;;  %v6634_v38 = vadd.f32 %v6516_v10, %v11670_v18  ;;  %v6518_v53 = vpop.f32.mrb[25].mxu1  ;;  %v8123_v18 = vunpack.c.l.bf16 %v8295_v37  ;;  %v7050_v10 = vpop.permute.xlu1 %7049  ;;  %v8297_v37 = vld [vmem:[%s10400_s25 + $0x50] sm:$0xff]  }
 0x6a9   : > { %v6519_v40 = vpop.f32.mrb[26].mxu1  ;;  %vm7135_vm7 = vcmp.eq.s32.totalorder %v7050_v10, 1 }
 0x6aa   : > { %v6927_v28 = vadd.f32 %v8120_v60, %v6763_v19  ;;  %v6682_v58 = vadd.f32 %v11740_v23, %v6634_v38  ;;  %v6635_v26 = vadd.f32 %v6519_v40, %v11672_v61  ;;  %v6521_v8 = vpop.f32.mrb[27].mxu1  ;;  %v7172_v50 = vsel %vm7131_vm4, %v6926_v30, 0.0  ;;  %v7053_v30 = vpop.permute.xlu0 %7052 }
 0x6ab   : > { %v8128_v60 = vunpack.c.h.bf16 %v8296_v27  ;;  %vm7136_vm8 = vcmp.eq.s32.totalorder %v7053_v30, 1 }
 0x6ac   : > { %v7173_v41 = vsel %vm7132_vm6, %v6927_v28, 0.0  ;;  %v6723_v16 = vmul.f32 0.1, %v6682_v58  ;;  %v6683_v17 = vadd.f32 %v11740_v23, %v6635_v26 }
 0x6ad   : > { %v8207_v36 = vpack.c.bf16 %v7173_v41, %v7172_v50 }
 0x6ae   : > { %v6764_v7 = vmax.f32 %v6682_v58, %v6723_v16  ;;  %v6724_v54 = vmul.f32 0.1, %v6683_v17 }
 0x6af   : > { %8313 = vst [vmem:[%s10400_s25 + $0x38] sm:$0xff] %v8207_v36   ;;  %v6524_v5 = vpop.f32.mrb[28].mxu1 }
 0x6b0   : > { %v6928_v33 = vadd.f32 %v8123_v18, %v6764_v7  ;;  %v6765_v61 = vmax.f32 %v6683_v17, %v6724_v54  ;;  %v6636_v51 = vadd.f32 %v6524_v5, %v11678_v63  ;;  %v6526_v49 = vpop.f32.mrb[29].mxu1  ;;  %v8127_v63 = vunpack.c.l.bf16 %v8296_v27  ;;  %v7056_v54 = vpop.permute.xlu1 %7055 }
 0x6b1   : > { %v6527_v62 = vpop.f32.mrb[30].mxu1  ;;  %v7059_v5 = vpop.permute.xlu0 %7058  ;;  %vm7137_vm12 = vcmp.eq.s32.totalorder %v7056_v54, 1 }
 0x6b2   : > { %v6929_v1 = vadd.f32 %v8124_v20, %v6765_v61  ;;  %v6684_v35 = vadd.f32 %v11740_v23, %v6636_v51  ;;  %v6637_v9 = vadd.f32 %v6527_v62, %v11680_v48  ;;  %v6529_v4 = vpop.f32.mrb[31].mxu1  ;;  %v7174_v21 = vsel %vm7133_vm1, %v6928_v33, 0.0 }
 0x6b3   : > { %v8132_v33 = vunpack.c.h.bf16 %v8297_v37  ;;  %vm7138_vm9 = vcmp.eq.s32.totalorder %v7059_v5, 1 }
 0x6b4   : > { %v7175_v29 = vsel %vm7134_vm5, %v6929_v1, 0.0  ;;  %v6725_v11 = vmul.f32 0.1, %v6684_v35  ;;  %v6685_v42 = vadd.f32 %v11740_v23, %v6637_v9  ;;  %v8298_v9 = vld [vmem:[%s10400_s25 + $0x58] sm:$0xff]  }
 0x6b5   : > { %v8212_v25 = vpack.c.bf16 %v7175_v29, %v7174_v21 }
 0x6b6   : > { %v6766_v55 = vmax.f32 %v6684_v35, %v6725_v11  ;;  %v6726_v14 = vmul.f32 0.1, %v6685_v42 }
 0x6b7   : > { %8314 = vst [vmem:[%s10400_s25 + $0x40] sm:$0xff] %v8212_v25   ;;  %v6532_v47 = vpop.f32.mrb[32].mxu1 }
 0x6b8   : > { %v6930_v19 = vadd.f32 %v8127_v63, %v6766_v55  ;;  %v6767_v48 = vmax.f32 %v6685_v42, %v6726_v14  ;;  %v6638_v38 = vadd.f32 %v6532_v47, %v11685_v0  ;;  %v6534_v53 = vpop.f32.mrb[33].mxu1  ;;  %v8131_v0 = vunpack.c.l.bf16 %v8297_v37  ;;  %v7062_v55 = vpop.permute.xlu1 %7061 }
 0x6b9   : > { %v6535_v40 = vpop.f32.mrb[34].mxu1  ;;  %v7065_v14 = vpop.permute.xlu0 %7064  ;;  %v8136_v47 = vunpack.c.h.bf16 %v8298_v9  ;;  %vm7139_vm10 = vcmp.eq.s32.totalorder %v7062_v55, 1 }
 0x6ba   : > { %v6931_v28 = vadd.f32 %v8128_v60, %v6767_v48  ;;  %v6686_v58 = vadd.f32 %v11740_v23, %v6638_v38  ;;  %v6639_v26 = vadd.f32 %v6535_v40, %v11687_v52  ;;  %v6537_v8 = vpop.f32.mrb[35].mxu1  ;;  %v7176_v50 = vsel %vm7135_vm7, %v6930_v19, 0.0 }
 0x6bb   : > { %vm7140_vm11 = vcmp.eq.s32.totalorder %v7065_v14, 1 }
 0x6bc   : > { %v7177_v41 = vsel %vm7136_vm8, %v6931_v28, 0.0  ;;  %v6727_v16 = vmul.f32 0.1, %v6686_v58  ;;  %v6687_v17 = vadd.f32 %v11740_v23, %v6639_v26  ;;  %v8299_v28 = vld [vmem:[%s10400_s25 + $0x60] sm:$0xff]  }
 0x6bd   : > { %v8217_v36 = vpack.c.bf16 %v7177_v41, %v7176_v50 }
 0x6be   : > { %v6768_v7 = vmax.f32 %v6686_v58, %v6727_v16  ;;  %v6728_v18 = vmul.f32 0.1, %v6687_v17 }
 0x6bf   : > { %8315 = vst [vmem:[%s10400_s25 + $0x48] sm:$0xff] %v8217_v36   ;;  %v6540_v22 = vpop.f32.mrb[36].mxu1 }
 0x6c0   : > { %v6932_v57 = vadd.f32 %v8131_v0, %v6768_v7  ;;  %v6769_v52 = vmax.f32 %v6687_v17, %v6728_v18  ;;  %v6640_v61 = vadd.f32 %v6540_v22, %v11692_v46  ;;  %v6542_v20 = vpop.f32.mrb[37].mxu1  ;;  %v8135_v46 = vunpack.c.l.bf16 %v8298_v9  ;;  %v7068_v17 = vpop.permute.xlu1 %7067 }
 0x6c1   : > { %v6543_v51 = vpop.f32.mrb[38].mxu1  ;;  %v7071_v7 = vpop.permute.xlu0 %7070  ;;  %v8140_v18 = vunpack.c.h.bf16 %v8299_v28  ;;  %vm7141_vm13 = vcmp.eq.s32.totalorder %v7068_v17, 1  ;;  %v8300_v20 = vld [vmem:[%s10400_s25 + $0x68] sm:$0xff]  }
 0x6c2   : > { %v6933_v49 = vadd.f32 %v8132_v33, %v6769_v52  ;;  %v6688_v62 = vadd.f32 %v11740_v23, %v6640_v61  ;;  %v6641_v1 = vadd.f32 %v6543_v51, %v11694_v56  ;;  %v6545_v35 = vpop.f32.mrb[39].mxu1  ;;  %v7178_v4 = vsel %vm7137_vm12, %v6932_v57, 0.0 }
 0x6c3   : > { %vm7142_vm14 = vcmp.eq.s32.totalorder %v7071_v7, 1 }
 0x6c4   : > { %v7179_v27 = vsel %vm7138_vm9, %v6933_v49, 0.0  ;;  %v6729_v21 = vmul.f32 0.1, %v6688_v62  ;;  %v6689_v29 = vadd.f32 %v11740_v23, %v6641_v1 }
 0x6c5   : > { %v8222_v11 = vpack.c.bf16 %v7179_v27, %v7178_v4  ;;  %v7074_v27 = vpop.permute.xlu1 %7073 }
 0x6c6   : > { %v6770_v42 = vmax.f32 %v6688_v62, %v6729_v21  ;;  %v6730_v25 = vmul.f32 0.1, %v6689_v29  ;;  %vm7143_vm15 = vcmp.eq.s32.totalorder %v7074_v27, 1 }
 0x6c7   : > { %8316 = vst [vmem:[%s10400_s25 + $0x50] sm:$0xff] %v8222_v11   ;;  %v6548_v63 = vpop.f32.mrb[40].mxu1 }
 0x6c8   : > { %v6934_v10 = vadd.f32 %v8135_v46, %v6770_v42  ;;  %v6771_v56 = vmax.f32 %v6689_v29, %v6730_v25  ;;  %v6642_v30 = vadd.f32 %v6548_v63, %v11701_v13  ;;  %v6550_v19 = vpop.f32.mrb[41].mxu1  ;;  %v8139_v13 = vunpack.c.l.bf16 %v8299_v28  ;;  %v7077_v29 = vpop.permute.xlu0 %7076 }
 0x6c9   : > { %v6551_v48 = vpop.f32.mrb[42].mxu1  ;;  %v8144_v42 = vunpack.c.h.bf16 %v8300_v20  ;;  %vm7144_vm0 = vcmp.eq.s32.totalorder %v7077_v29, 1  ;;  %v7080_v28 = vpop.permute.xlu1 %7079 }
 0x6ca   : > { %v6935_v60 = vadd.f32 %v8136_v47, %v6771_v56  ;;  %v6690_v38 = vadd.f32 %v11740_v23, %v6642_v30  ;;  %v6643_v53 = vadd.f32 %v6551_v48, %v11703_v44  ;;  %v6553_v40 = vpop.f32.mrb[43].mxu1  ;;  %v7180_v58 = vsel %vm7139_vm10, %v6934_v10, 0.0  ;;  %v8301_v47 = vld [vmem:[%s10400_s25 + $0x70] sm:$0xff]  }
 0x6cb   : > { %vm7145_vm2 = vcmp.eq.s32.totalorder %v7080_v28, 1 }
 0x6cc   : > { %v7181_v26 = vsel %vm7140_vm11, %v6935_v60, 0.0  ;;  %v6731_v8 = vmul.f32 0.1, %v6690_v38  ;;  %v6691_v37 = vadd.f32 %v11740_v23, %v6643_v53 }
 0x6cd   : > { %v8227_v50 = vpack.c.bf16 %v7181_v26, %v7180_v58  ;;  %v7083_v26 = vpop.permute.xlu0 %7082 }
 0x6ce   : > { %v6772_v41 = vmax.f32 %v6690_v38, %v6731_v8  ;;  %v6732_v16 = vmul.f32 0.1, %v6691_v37  ;;  %vm7146_vm3 = vcmp.eq.s32.totalorder %v7083_v26, 1 }
 0x6cf   : > { %8317 = vst [vmem:[%s10400_s25 + $0x58] sm:$0xff] %v8227_v50   ;;  %v6556_v36 = vpop.f32.mrb[44].mxu1 }
 0x6d0   : > { %v6936_v0 = vadd.f32 %v8139_v13, %v6772_v41  ;;  %v6773_v44 = vmax.f32 %v6691_v37, %v6732_v16  ;;  %v6644_v54 = vadd.f32 %v6556_v36, %v11707_v2  ;;  %v6558_v22 = vpop.f32.mrb[45].mxu1  ;;  %v8143_v2 = vunpack.c.l.bf16 %v8300_v20 }
 0x6d1   : > { %v6559_v5 = vpop.f32.mrb[46].mxu1  ;;  %v8148_v37 = vunpack.c.h.bf16 %v8301_v47  ;;  %v7089_v20 = vpop.permute.xlu0 %7088 }
 0x6d2   : > { %v6937_v57 = vadd.f32 %v8140_v18, %v6773_v44  ;;  %v6692_v52 = vadd.f32 %v11740_v23, %v6644_v54  ;;  %v6645_v33 = vadd.f32 %v6559_v5, %v11709_v12  ;;  %v6561_v61 = vpop.f32.mrb[47].mxu1  ;;  %v7182_v51 = vsel %vm7141_vm13, %v6936_v0, 0.0  ;;  %v8302_v0 = vld [vmem:[%s10400_s25 + $0x78] sm:$0xff]  }
 0x6d3   : > { %vm7148_vm6 = vcmp.eq.s32.totalorder %v7089_v20, 1 }
 0x6d4   : > { %v7183_v49 = vsel %vm7142_vm14, %v6937_v57, 0.0  ;;  %v6733_v62 = vmul.f32 0.1, %v6692_v52  ;;  %v6693_v1 = vadd.f32 %v11740_v23, %v6645_v33  ;;  %v7086_v33 = vpop.permute.xlu1 %7085 }
 0x6d5   : > { %v8232_v35 = vpack.c.bf16 %v7183_v49, %v7182_v51  ;;  %v8152_v49 = vunpack.c.h.bf16 %v8302_v0  ;;  %vm7147_vm4 = vcmp.eq.s32.totalorder %v7086_v33, 1 }
 0x6d6   : > { %v6774_v9 = vmax.f32 %v6692_v52, %v6733_v62  ;;  %v6734_v4 = vmul.f32 0.1, %v6693_v1 }
 0x6d7   : > { %8318 = vst [vmem:[%s10400_s25 + $0x60] sm:$0xff] %v8232_v35   ;;  %v6564_v21 = vpop.f32.mrb[48].mxu1 }
 0x6d8   : > { %v6938_v11 = vadd.f32 %v8143_v2, %v6774_v9  ;;  %v6775_v12 = vmax.f32 %v6693_v1, %v6734_v4  ;;  %v6646_v46 = vadd.f32 %v6564_v21, %v11711_v32  ;;  %v6566_v25 = vpop.f32.mrb[49].mxu1  ;;  %v8147_v32 = vunpack.c.l.bf16 %v8301_v47  ;;  %v8303_v21 = vld [vmem:[%s10400_s25 + $0x80] sm:$0xff]  }
 0x6d9   : > { %v6567_v55 = vpop.f32.mrb[50].mxu1  ;;  %v8156_v47 = vunpack.c.h.bf16 %v8303_v21 }
 0x6da   : > { %v6939_v63 = vadd.f32 %v8144_v42, %v6775_v12  ;;  %v6694_v14 = vadd.f32 %v11740_v23, %v6646_v46  ;;  %v6647_v10 = vadd.f32 %v6567_v55, %v11713_v24  ;;  %v6569_v56 = vpop.f32.mrb[51].mxu1  ;;  %v7184_v30 = vsel %vm7143_vm15, %v6938_v11, 0.0 }
 0x6dc   : > { %v7185_v19 = vsel %vm7144_vm0, %v6939_v63, 0.0  ;;  %v6735_v48 = vmul.f32 0.1, %v6694_v14  ;;  %v6695_v60 = vadd.f32 %v11740_v23, %v6647_v10  ;;  %v7092_v63 = vpop.permute.xlu1 %7091  ;;  %v7095_v10 = vpop.permute.xlu0 %7094 }
 0x6dd   : > { %v8237_v38 = vpack.c.bf16 %v7185_v19, %v7184_v30  ;;  %vm7149_vm1 = vcmp.eq.s32.totalorder %v7092_v63, 1  ;;  %vm7150_vm5 = vcmp.eq.s32.totalorder %v7095_v10, 1 }
 0x6de   : > { %v6776_v53 = vmax.f32 %v6694_v14, %v6735_v48  ;;  %v6736_v40 = vmul.f32 0.1, %v6695_v60 }
 0x6df   : > { %8319 = vst [vmem:[%s10400_s25 + $0x68] sm:$0xff] %v8237_v38   ;;  %v6572_v58 = vpop.f32.mrb[52].mxu1 }
 0x6e0   : > { %v6940_v8 = vadd.f32 %v8147_v32, %v6776_v53  ;;  %v6777_v24 = vmax.f32 %v6695_v60, %v6736_v40  ;;  %v6648_v50 = vadd.f32 %v6572_v58, %v11715_v59  ;;  %v6574_v41 = vpop.f32.mrb[53].mxu1  ;;  %v8151_v59 = vunpack.c.l.bf16 %v8302_v0  ;;  %v8304_v40 = vld [vmem:[%s10400_s25 + $0x88] sm:$0xff]  }
 0x6e1   : > { %v6575_v13 = vpop.f32.mrb[54].mxu1  ;;  %v7098_v41 = vpop.permute.xlu1 %7097 }
 0x6e2   : > { %v6941_v16 = vadd.f32 %v8148_v37, %v6777_v24  ;;  %v6696_v17 = vadd.f32 %v11740_v23, %v6648_v50  ;;  %v6649_v36 = vadd.f32 %v6575_v13, %v11717_v3  ;;  %v6577_v7 = vpop.f32.mrb[55].mxu1  ;;  %v7186_v44 = vsel %vm7145_vm2, %v6940_v8, 0.0 }
 0x6e3   : > { %vm7151_vm7 = vcmp.eq.s32.totalorder %v7098_v41, 1 }
 0x6e4   : > { %v7187_v18 = vsel %vm7146_vm3, %v6941_v16, 0.0  ;;  %v6737_v54 = vmul.f32 0.1, %v6696_v17  ;;  %v6697_v22 = vadd.f32 %v11740_v23, %v6649_v36  ;;  %v7101_v16 = vpop.permute.xlu0 %7100  ;;  %v8160_v36 = vunpack.c.h.bf16 %v8304_v40 }
 0x6e5   : > { %v8242_v5 = vpack.c.bf16 %v7187_v18, %v7186_v44  ;;  %vm7152_vm8 = vcmp.eq.s32.totalorder %v7101_v16, 1 }
 0x6e6   : > { %v6778_v57 = vmax.f32 %v6696_v17, %v6737_v54  ;;  %v6738_v52 = vmul.f32 0.1, %v6697_v22 }
 0x6e7   : > { %8320 = vst [vmem:[%s10400_s25 + $0x70] sm:$0xff] %v8242_v5   ;;  %v6580_v61 = vpop.f32.mrb[56].mxu1 }
 0x6e8   : > { %v6942_v51 = vadd.f32 %v8151_v59, %v6778_v57  ;;  %v6779_v3 = vmax.f32 %v6697_v22, %v6738_v52  ;;  %v6650_v62 = vadd.f32 %v6580_v61, %v11719_v34  ;;  %v6582_v1 = vpop.f32.mrb[57].mxu1  ;;  %v8155_v34 = vunpack.c.l.bf16 %v8303_v21  ;;  %v8305_v57 = vld [vmem:[%s10400_s25 + $0x90] sm:$0xff]  }
 0x6e9   : > { %v6583_v35 = vpop.f32.mrb[58].mxu1  ;;  %v7107_v1 = vpop.permute.xlu0 %7106 }
 0x6ea   : > { %v6943_v9 = vadd.f32 %v8152_v49, %v6779_v3  ;;  %v6698_v2 = vadd.f32 %v11740_v23, %v6650_v62  ;;  %v6651_v4 = vadd.f32 %v6583_v35, %v11721_v6  ;;  %v6585_v27 = vpop.f32.mrb[59].mxu1  ;;  %v7188_v29 = vsel %vm7147_vm4, %v6942_v51, 0.0  ;;  %v7104_v49 = vpop.permute.xlu1 %7103 }
 0x6eb   : > { %vm7153_vm12 = vcmp.eq.s32.totalorder %v7104_v49, 1  ;;  %vm7154_vm9 = vcmp.eq.s32.totalorder %v7107_v1, 1 }
 0x6ec   : > { %v7189_v11 = vsel %vm7148_vm6, %v6943_v9, 0.0  ;;  %v6739_v12 = vmul.f32 0.1, %v6698_v2  ;;  %v6699_v42 = vadd.f32 %v11740_v23, %v6651_v4  ;;  %v8164_v9 = vunpack.c.h.bf16 %v8305_v57 }
 0x6ed   : > { %v8247_v46 = vpack.c.bf16 %v7189_v11, %v7188_v29  ;;  %v12014_v11 = vld [vmem:[#allocation3_spill] sm:$0xff] }
 0x6ee   : > { %v6780_v25 = vmax.f32 %v6698_v2, %v6739_v12  ;;  %v6740_v55 = vmul.f32 0.1, %v6699_v42 }
 0x6ef   : > { %8321 = vst [vmem:[%s10400_s25 + $0x78] sm:$0xff] %v8247_v46   ;;  %v6588_v14 = vpop.f32.mrb[60].mxu1  ;;  %v8306_v46 = vld [vmem:[%s10400_s25 + $0x98] sm:$0xff]  }
 0x6f0   : > { %v6944_v56 = vadd.f32 %v8155_v34, %v6780_v25  ;;  %v6781_v6 = vmax.f32 %v6699_v42, %v6740_v55  ;;  %v6652_v30 = vadd.f32 %v6588_v14, %v11723_v31  ;;  %v6590_v19 = vpop.f32.mrb[61].mxu1  ;;  %v8159_v31 = vunpack.c.l.bf16 %v8304_v40 }
 0x6f1   : > { %v6591_v48 = vpop.f32.mrb[62].mxu1 }
 0x6f2   : > { %v6945_v60 = vadd.f32 %v8156_v47, %v6781_v6  ;;  %v6700_v38 = vadd.f32 %v11740_v23, %v6652_v30  ;;  %v6653_v53 = vadd.f32 %v6591_v48, %v11725_v45  ;;  %v6593_v32 = vpop.f32.mrb[63].mxu1  ;;  %v7190_v28 = vsel %vm7149_vm1, %v6944_v56, 0.0  ;;  %v7110_v6 = vpop.permute.xlu1 %7109 }
 0x6f3   : > { %v7113_v30 = vpop.permute.xlu0 %7112  ;;  %vm7155_vm10 = vcmp.eq.s32.totalorder %v7110_v6, 1 }
 0x6f4   : > { %v7191_v58 = vsel %vm7150_vm5, %v6945_v60, 0.0  ;;  %v6741_v26 = vmul.f32 0.1, %v6700_v38  ;;  %v6701_v8 = vadd.f32 %v11740_v23, %v6653_v53  ;;  %v8168_v60 = vunpack.c.h.bf16 %v8306_v46 }
 0x6f5   : > { %v8252_v24 = vpack.c.bf16 %v7191_v58, %v7190_v28  ;;  %vm7156_vm11 = vcmp.eq.s32.totalorder %v7113_v30, 1 }
 0x6f6   : > { %v6782_v37 = vmax.f32 %v6700_v38, %v6741_v26  ;;  %v6742_v50 = vmul.f32 0.1, %v6701_v8  ;;  %v12015_v38 = vld [vmem:[#allocation4_spill] sm:$0xff]  ;;  %v7116_v41 = vpop.permute.xlu1 %7115 }
 0x6f7   : > { %8322 = vst [vmem:[%s10400_s25 + $0x80] sm:$0xff] %v8252_v24   ;;  %v6596_v13 = vpop.f32.mrb[64].mxu1  ;;  %vm7157_vm13 = vcmp.eq.s32.totalorder %v7116_v41, 1 }
 0x6f8   : > { %v6946_v17 = vadd.f32 %v8159_v31, %v6782_v37  ;;  %v6783_v45 = vmax.f32 %v6701_v8, %v6742_v50  ;;  %v6654_v7 = vadd.f32 %v6596_v13, %v11727_v39  ;;  %v6598_v0 = vpop.f32.mrb[65].mxu1  ;;  %v8163_v39 = vunpack.c.l.bf16 %v8305_v57  ;;  %v6870_v8 = vld [vmem:[%s10400_s25 + $0xa0] sm:$0x3] }
 0x6f9   : > { %v6599_v44 = vpop.f32.mrb[66].mxu1  ;;  %v6911_v16 = vunpack.c.l.bf16 %v6870_v8 }
 0x6fa   : > { %v6947_v18 = vadd.f32 %v8160_v36, %v6783_v45  ;;  %v6702_v54 = vadd.f32 %v11740_v23, %v6654_v7  ;;  %v6655_v22 = vadd.f32 %v6599_v44, %v11729_v15  ;;  %v6601_v5 = vpop.f32.mrb[67].mxu1  ;;  %v7192_v59 = vsel %vm7151_vm7, %v6946_v17, 0.0 }
 0x6fc   : > { %v7193_v52 = vsel %vm7152_vm8, %v6947_v18, 0.0  ;;  %v6743_v33 = vmul.f32 0.1, %v6702_v54  ;;  %v6703_v61 = vadd.f32 %v11740_v23, %v6655_v22 }
 0x6fd   : > { %v8257_v20 = vpack.c.bf16 %v7193_v52, %v7192_v59 }
 0x6fe   : > { %v6784_v51 = vmax.f32 %v6702_v54, %v6743_v33  ;;  %v6744_v3 = vmul.f32 0.1, %v6703_v61 }
 0x6ff   : > { %8323 = vst [vmem:[%s10400_s25 + $0x88] sm:$0xff] %v8257_v20   ;;  %v6604_v62 = vpop.f32.mrb[68].mxu1 }
 0x700   : > { %v6948_v35 = vadd.f32 %v8163_v39, %v6784_v51  ;;  %v6785_v15 = vmax.f32 %v6703_v61, %v6744_v3  ;;  %v6656_v2 = vadd.f32 %v6604_v62, %v11731_v43  ;;  %v6606_v4 = vpop.f32.mrb[69].mxu1  ;;  %v8167_v43 = vunpack.c.l.bf16 %v8306_v46 }
 0x701   : > { %v6607_v27 = vpop.f32.mrb[70].mxu1 }
 0x702   : > { %v6949_v21 = vadd.f32 %v8164_v9, %v6785_v15  ;;  %v6704_v29 = vadd.f32 %v11740_v23, %v6656_v2  ;;  %v6657_v12 = vadd.f32 %v6607_v27, %v12014_v11  ;;  %v6609_v42 = vpop.f32.mrb[71].mxu1  ;;  %v7194_v25 = vsel %vm7153_vm12, %v6948_v35, 0.0 }
 0x704   : > { %v7195_v34 = vsel %vm7154_vm9, %v6949_v21, 0.0  ;;  %v6745_v55 = vmul.f32 0.1, %v6704_v29  ;;  %v6705_v63 = vadd.f32 %v11740_v23, %v6657_v12 }
 0x705   : > { %v8262_v14 = vpack.c.bf16 %v7195_v34, %v7194_v25 }
 0x706   : > { %v6786_v10 = vmax.f32 %v6704_v29, %v6745_v55  ;;  %v6746_v56 = vmul.f32 0.1, %v6705_v63 }
 0x707   : > { %8324 = vst [vmem:[%s10400_s25 + $0x90] sm:$0xff] %v8262_v14   ;;  %v6612_v47 = vpop.f32.mrb[72].mxu1 }
 0x708   : > { %v6950_v19 = vadd.f32 %v8167_v43, %v6786_v10  ;;  %v6787_v48 = vmax.f32 %v6705_v63, %v6746_v56  ;;  %v6658_v53 = vadd.f32 %v6612_v47, %v12015_v38  ;;  %v6614_v32 = vpop.f32.mrb[73].mxu1 }
 0x709   : > { %v6615_v40 = vpop.f32.mrb[74].mxu1 }
 0x70a   : > { %v6951_v28 = vadd.f32 %v8168_v60, %v6787_v48  ;;  %v6706_v58 = vadd.f32 %v11740_v23, %v6658_v53  ;;  %v6616_v26 = vpop.f32.mrb[75].mxu1  ;;  %v7196_v24 = vsel %vm7155_vm10, %v6950_v19, 0.0 }
 0x70c   : > { %v7197_v37 = vsel %vm7156_vm11, %v6951_v28, 0.0  ;;  %v6747_v31 = vmul.f32 0.1, %v6706_v58 }
 0x70d   : > { %v8267_v50 = vpack.c.bf16 %v7197_v37, %v7196_v24 }
 0x70e   : > { %v6788_v13 = vmax.f32 %v6706_v58, %v6747_v31 }
 0x70f   : > { %8325 = vst [vmem:[%s10400_s25 + $0x98] sm:$0xff] %v8267_v50  }
 0x710   : > { %v6952_v17 = vadd.f32 %v6911_v16, %v6788_v13 }
 0x712   : > { %v7198_v45 = vsel %vm7157_vm13, %v6952_v17, 0.0 }
 0x713   : > { %v7988_v36 = vpack.c.bf16 %v7198_v45, %v7198_v45 }
 0x715   : > { %7404 = vst [vmem:[%s10400_s25 + $0xa0] sm:$0x3] %v7988_v36 }
 0x716 PF: > { %s20_s13 = sadd.s32 1, %s8848_s13  }
 0x717   : > { %p17_p4 = scmp.ge.s32.totalorder %s20_s13, 4  }
 0x719   :  { %19 = sbr.rel (!%p17_p4) target bundleno = 1 (0x1), region = 94 }

</bundles_post_ra>
